<compile_context>
chip_gen: v7x
topology: tpu7x:2x2x1
jax: 0.10.0
libtpu: 0.0.40
codegen_flags: <defaults>
</compile_context>

<pallas_src>
import jax
import jax.numpy as jnp
from jax.experimental import pallas as pl
from jax.experimental.pallas import tpu as pltpu

BN_EPS = 1e-3
_VMEM_LIMIT = 48 * 1024 * 1024  # safe on v7x (64 MiB physical), > default scoped


def _round_up(x, m):
    return (x + m - 1) // m * m


# ----------------------------------------------------------------------------
# Pallas kernels
# ----------------------------------------------------------------------------
def _conv_bn_relu_kernel(x_ref, w_ref, scale_ref, bias_ref, o_ref, acc_ref):
    """grid = (M tiles, Cout tiles, K tiles); K is the reduction axis (last)."""
    @pl.when(pl.program_id(2) == 0)
    def _init():
        acc_ref[...] = jnp.zeros_like(acc_ref)

    acc_ref[...] += jnp.dot(x_ref[...], w_ref[...],
                            preferred_element_type=jnp.float32)

    @pl.when(pl.program_id(2) == pl.num_programs(2) - 1)
    def _finalize():
        y = acc_ref[...] * scale_ref[...] + bias_ref[...]
        o_ref[...] = jnp.maximum(y, 0.0).astype(o_ref.dtype)


def _maxpool_kernel(p_ref, o_ref):
    """p_ref: (tm, 9*C) lane-stacked window taps; o_ref: (tm, C)."""
    c = o_ref.shape[-1]
    y = p_ref[:, 0:c]
    for t in range(1, 9):                       # lane-aligned slices (C = 7*128)
        y = jnp.maximum(y, p_ref[:, t * c:(t + 1) * c])
    o_ref[...] = y.astype(o_ref.dtype)


# ----------------------------------------------------------------------------
# Tiled fused matmul + BN + ReLU wrapper
# ----------------------------------------------------------------------------
def _pick_tile_k(K):
    """Largest multiple of 128 that divides K, capped at 1024 (else full K)."""
    if K % 128 != 0:
        return K
    best = 128
    t = 128
    while t <= min(K, 1024):
        if K % t == 0:
            best = t
        t += 128
    return best


def fused_matmul_bn_relu(x2d, w, scale, bias):
    """relu((x2d @ w) * scale + bias), bf16 MXU inputs, f32 accumulation."""
    M, K = x2d.shape
    Cout = w.shape[1]

    tm = 256 if M >= 256 else _round_up(max(M, 8), 8)
    Mp = _round_up(M, tm)
    tk = _pick_tile_k(K)
    tn = 256 if Cout % 256 == 0 else (128 if Cout % 128 == 0 else Cout)

    x2d = x2d.astype(jnp.bfloat16)
    if Mp != M:
        x2d = jnp.pad(x2d, ((0, Mp - M), (0, 0)))

    grid = (Mp // tm, Cout // tn, K // tk)

    out = pl.pallas_call(
        _conv_bn_relu_kernel,
        out_shape=jax.ShapeDtypeStruct((Mp, Cout), jnp.float32),
        grid=grid,
        in_specs=[
            pl.BlockSpec((tm, tk), lambda i, j, k: (i, k)),   # patches
            pl.BlockSpec((tk, tn), lambda i, j, k: (k, j)),   # weights
            pl.BlockSpec((1, tn), lambda i, j, k: (0, j)),    # BN scale
            pl.BlockSpec((1, tn), lambda i, j, k: (0, j)),    # BN bias
        ],
        out_specs=pl.BlockSpec((tm, tn), lambda i, j, k: (i, j)),
        scratch_shapes=[pltpu.VMEM((tm, tn), jnp.float32)],
        compiler_params=pltpu.CompilerParams(
            dimension_semantics=("parallel", "parallel", "arbitrary"),
            vmem_limit_bytes=_VMEM_LIMIT,
        ),
    )(x2d, w, scale, bias)

    if Mp != M:
        out = out[:M]
    return out


# ----------------------------------------------------------------------------
# Conv / pool wrappers (NHWC)
# ----------------------------------------------------------------------------
def _im2col(x_nhwc, k, s, p):
    """kxk patches (stride s, pad p) -> (N*Ho*Wo, k*k*C), tap order (kh, kw, C)."""
    if p:
        x_nhwc = jnp.pad(x_nhwc, ((0, 0), (p, p), (p, p), (0, 0)))
    N, H, W, C = x_nhwc.shape
    Ho = (H - k) // s + 1
    Wo = (W - k) // s + 1
    cols = [x_nhwc[:, dy:dy + s * Ho:s, dx:dx + s * Wo:s, :]
            for dy in range(k) for dx in range(k)]
    patches = jnp.concatenate(cols, axis=-1)            # (N, Ho, Wo, k*k*C)
    return patches.reshape(N * Ho * Wo, k * k * C), (N, Ho, Wo)


def conv_bn_relu(x_nhwc, params, k, s=1, p=0):
    """ConvPlus: Conv2d(bias=False) + BatchNorm(eval, eps=1e-3) + ReLU."""
    w_mat, scale, bias = params                          # (K, Cout) bf16, (1,Cout) f32
    if k == 1 and s == 1 and p == 0:
        N, H, W, C = x_nhwc.shape
        patches, (N, Ho, Wo) = x_nhwc.reshape(N * H * W, C), (N, H, W)
    else:
        # cast before im2col so the duplicated patch matrix moves half the bytes
        patches, (N, Ho, Wo) = _im2col(x_nhwc.astype(jnp.bfloat16), k, s, p)
    out = fused_matmul_bn_relu(patches, w_mat, scale, bias)
    return out.reshape(N, Ho, Wo, w_mat.shape[1])


def maxpool_3x3_s2(x_nhwc):
    """MaxPool2d(kernel=3, stride=2, padding=0)."""
    N, H, W, C = x_nhwc.shape
    Ho = (H - 3) // 2 + 1
    Wo = (W - 3) // 2 + 1
    taps = [x_nhwc[:, dy:dy + 2 * Ho:2, dx:dx + 2 * Wo:2, :]
            for dy in range(3) for dx in range(3)]
    # lane-stacked taps: (M, 9*C), 9*C is a multiple of 128 -> unmasked loads
    stacked = jnp.concatenate(taps, axis=-1).reshape(N * Ho * Wo, 9 * C)

    M = N * Ho * Wo
    tm = 128 if M >= 128 else _round_up(max(M, 8), 8)
    Mp = _round_up(M, tm)
    if Mp != M:
        stacked = jnp.pad(stacked, ((0, Mp - M), (0, 0)))

    out = pl.pallas_call(
        _maxpool_kernel,
        out_shape=jax.ShapeDtypeStruct((Mp, C), x_nhwc.dtype),
        grid=(Mp // tm,),
        in_specs=[pl.BlockSpec((tm, 9 * C), lambda i: (i, 0))],
        out_specs=pl.BlockSpec((tm, C), lambda i: (i, 0)),
        compiler_params=pltpu.CompilerParams(
            dimension_semantics=("parallel",),
            vmem_limit_bytes=_VMEM_LIMIT,
        ),
    )(stacked)

    if Mp != M:
        out = out[:M]
    return out.reshape(N, Ho, Wo, C)


# ----------------------------------------------------------------------------
# Deterministic parameter construction (synthetic weights, eval-mode BN fold)
# ----------------------------------------------------------------------------
def make_convplus_params(key, cin, cout, k):
    k1, k2, k3, k4, k5 = jax.random.split(key, 5)
    w = jax.random.normal(k1, (cout, cin, k, k), jnp.float32) / jnp.sqrt(cin * k * k)
    gamma = jax.random.uniform(k2, (cout,), jnp.float32, 0.5, 1.5)
    beta = 0.1 * jax.random.normal(k3, (cout,), jnp.float32)
    run_mean = 0.1 * jax.random.normal(k4, (cout,), jnp.float32)
    run_var = jax.random.uniform(k5, (cout,), jnp.float32, 0.5, 1.5)
    scale = gamma / jnp.sqrt(run_var + BN_EPS)
    bias = beta - run_mean * scale
    # weight matrix matching im2col tap ordering (kh, kw, Cin) -> rows; bf16 stream
    w_mat = jnp.transpose(w, (2, 3, 1, 0)).reshape(k * k * cin, cout).astype(jnp.bfloat16)
    return w_mat, scale.reshape(1, cout), bias.reshape(1, cout)


def make_mixed7a_params(key):
    ks = jax.random.split(key, 7)
    p = {
        "b0_0": make_convplus_params(ks[0], 896, 256, 1),
        "b0_1": make_convplus_params(ks[1], 256, 384, 3),
        "b1_0": make_convplus_params(ks[2], 896, 256, 1),
        "b1_1": make_convplus_params(ks[3], 256, 256, 3),
        "b2_0": make_convplus_params(ks[4], 896, 256, 1),
        "b2_1": make_convplus_params(ks[5], 256, 256, 3),
        "b2_2": make_convplus_params(ks[6], 256, 256, 3),
    }
    # Fuse the three 1x1 stem convs into one (896, 768) matmul (3 x 256 outputs).
    p["stem"] = (
        jnp.concatenate([p["b0_0"][0], p["b1_0"][0], p["b2_0"][0]], axis=1),
        jnp.concatenate([p["b0_0"][1], p["b1_0"][1], p["b2_0"][1]], axis=1),
        jnp.concatenate([p["b0_0"][2], p["b1_0"][2], p["b2_0"][2]], axis=1),
    )
    return p


# ----------------------------------------------------------------------------
# Mixed_7a forward
# ----------------------------------------------------------------------------
def mixed_7a(x_nchw, params):
    x = jnp.transpose(x_nchw, (0, 2, 3, 1))              # NCHW -> NHWC

    # Fused 1x1 stem: one (N*H*W, 896) @ (896, 768) matmul, sliced into 3 x 256.
    stem = conv_bn_relu(x, params["stem"], k=1)          # (N, H, W, 768)
    b0 = stem[..., 0:256]
    b1 = stem[..., 256:512]
    b2 = stem[..., 512:768]

    b0 = conv_bn_relu(b0, params["b0_1"], k=3, s=2)      # -> 384 ch
    b1 = conv_bn_relu(b1, params["b1_1"], k=3, s=2)      # -> 256 ch
    b2 = conv_bn_relu(b2, params["b2_1"], k=3, p=1)      # -> 256 ch (same spatial)
    b2 = conv_bn_relu(b2, params["b2_2"], k=3, s=2)      # -> 256 ch
    b3 = maxpool_3x3_s2(x)                               # -> 896 ch

    out = jnp.concatenate((b0, b1, b2, b3), axis=-1)     # 1792 = 14*128, lane dense
    return jnp.transpose(out, (0, 3, 1, 2))              # NHWC -> NCHW


if __name__ == "__main__":
    key = jax.random.PRNGKey(0)
    kx, kp = jax.random.split(key)

    # Small spatial size (9x9); channel count 896 is fixed by the module.
    N, C, H, W = 2, 896, 9, 9
    x = jax.random.normal(kx, (N, C, H, W), jnp.float32)
    params = make_mixed7a_params(kp)

    fwd = jax.jit(mixed_7a)
    out = jax.block_until_ready(fwd(x, params))

    expected = (N, 384 + 256 + 256 + 896, (H - 3) // 2 + 1, (W - 3) // 2 + 1)
    assert out.shape == expected, (out.shape, expected)
    assert out.dtype == jnp.float32
    print("KERNEL_OK")
</pallas_src>

<mosaic_0001>
module attributes {stable_mosaic.version = 11 : i64} {
  func.func @_conv_bn_relu_kernel(%arg0: i32, %arg1: i32, %arg2: i32, %arg3: memref<168x896xbf16, #tpu.memory_space<vmem>>, %arg4: memref<896x256xbf16, #tpu.memory_space<vmem>>, %arg5: memref<1x256xf32, #tpu.memory_space<vmem>>, %arg6: memref<1x256xf32, #tpu.memory_space<vmem>>, %arg7: memref<168x256xf32, #tpu.memory_space<vmem>>, %arg8: memref<168x256xf32, #tpu.memory_space<vmem>>) attributes {dimension_semantics = [#tpu.dimension_semantics<parallel>, #tpu.dimension_semantics<parallel>, #tpu.dimension_semantics<arbitrary>], iteration_bounds = array<i64: 1, 3, 1>, scalar_prefetch = 0 : i64, scratch_operands = 1 : i64, tpu.core_type = #tpu.core_type<tc>, window_params = [{transform_indices = @transform_0, window_bounds = array<i64: 168, 896>}, {transform_indices = @transform_1, window_bounds = array<i64: 896, 256>}, {transform_indices = @transform_2, window_bounds = array<i64: 1, 256>}, {transform_indices = @transform_3, window_bounds = array<i64: 1, 256>}, {transform_indices = @transform_4, window_bounds = array<i64: 168, 256>}]} {
    %c0_i32 = arith.constant 0 : i32
    %0 = arith.cmpi eq, %arg2, %c0_i32 : i32
    %1 = arith.extui %0 : i1 to i32
    %c0_i32_0 = arith.constant 0 : i32
    %2 = arith.cmpi ne, %1, %c0_i32_0 : i32
    scf.if %2 {
      %cst_10 = arith.constant 0.000000e+00 : f32
      %12 = vector.broadcast %cst_10 : f32 to vector<168x256xf32>
      %c0_11 = arith.constant 0 : index
      %c0_12 = arith.constant 0 : index
      %13 = vector.load %arg8[%c0_11, %c0_12] : memref<168x256xf32, #tpu.memory_space<vmem>>, vector<168x256xf32>
      tpu.vector_store %arg8[%c0_11, %c0_12], %12 {strides = array<i32>} : memref<168x256xf32, #tpu.memory_space<vmem>>, vector<168x256xf32>,
    } else {
    }
    %c0 = arith.constant 0 : index
    %c0_1 = arith.constant 0 : index
    %3 = vector.load %arg8[%c0, %c0_1] : memref<168x256xf32, #tpu.memory_space<vmem>>, vector<168x256xf32>
    %c0_2 = arith.constant 0 : index
    %c0_3 = arith.constant 0 : index
    %4 = vector.load %arg3[%c0_2, %c0_3] : memref<168x896xbf16, #tpu.memory_space<vmem>>, vector<168x896xbf16>
    %c0_4 = arith.constant 0 : index
    %c0_5 = arith.constant 0 : index
    %5 = vector.load %arg4[%c0_4, %c0_5] : memref<896x256xbf16, #tpu.memory_space<vmem>>, vector<896x256xbf16>
    %cst = arith.constant dense<0.000000e+00> : vector<168x256xf32>
    %6 = tpu.matmul %4, %5, %cst {dimension_numbers = #tpu.dot_dimension_numbers<[1], [0], [0], [1], [0, 0, 1, 1], [], []>} : vector<168x896xbf16>, vector<896x256xbf16>, vector<168x256xf32> -> vector<168x256xf32>
    %7 = arith.addf %3, %6 : vector<168x256xf32>
    %c0_6 = arith.constant 0 : index
    %c0_7 = arith.constant 0 : index
    %8 = vector.load %arg8[%c0_6, %c0_7] : memref<168x256xf32, #tpu.memory_space<vmem>>, vector<168x256xf32>
    tpu.vector_store %arg8[%c0_6, %c0_7], %7 {strides = array<i32>} : memref<168x256xf32, #tpu.memory_space<vmem>>, vector<168x256xf32>,
    %c0_i32_8 = arith.constant 0 : i32
    %9 = arith.cmpi eq, %arg2, %c0_i32_8 : i32
    %10 = arith.extui %9 : i1 to i32
    %c0_i32_9 = arith.constant 0 : i32
    %11 = arith.cmpi ne, %10, %c0_i32_9 : i32
    scf.if %11 {
      %c0_10 = arith.constant 0 : index
      %c0_11 = arith.constant 0 : index
      %12 = vector.load %arg8[%c0_10, %c0_11] : memref<168x256xf32, #tpu.memory_space<vmem>>, vector<168x256xf32>
      %c0_12 = arith.constant 0 : index
      %c0_13 = arith.constant 0 : index
      %13 = vector.load %arg5[%c0_12, %c0_13] : memref<1x256xf32, #tpu.memory_space<vmem>>, vector<1x256xf32>
      %14 = vector.broadcast %13 : vector<1x256xf32> to vector<168x256xf32>
      %15 = arith.mulf %12, %14 : vector<168x256xf32>
      %c0_14 = arith.constant 0 : index
      %c0_15 = arith.constant 0 : index
      %16 = vector.load %arg6[%c0_14, %c0_15] : memref<1x256xf32, #tpu.memory_space<vmem>>, vector<1x256xf32>
      %17 = vector.broadcast %16 : vector<1x256xf32> to vector<168x256xf32>
      %18 = arith.addf %15, %17 : vector<168x256xf32>
      %cst_16 = arith.constant 0.000000e+00 : f32
      %19 = vector.broadcast %cst_16 : f32 to vector<168x256xf32>
      %20 = arith.maximumf %18, %19 : vector<168x256xf32>
      %c0_17 = arith.constant 0 : index
      %c0_18 = arith.constant 0 : index
      %21 = vector.load %arg7[%c0_17, %c0_18] : memref<168x256xf32, #tpu.memory_space<vmem>>, vector<168x256xf32>
      tpu.vector_store %arg7[%c0_17, %c0_18], %20 {strides = array<i32>} : memref<168x256xf32, #tpu.memory_space<vmem>>, vector<168x256xf32>,
    } else {
    }
    return
  }
  func.func @transform_0(%arg0: i32, %arg1: i32, %arg2: i32) -> (i32, i32) {
    %c0_i32 = arith.constant 0 : i32
    return %arg0, %arg2 : i32, i32
  }
  func.func @transform_1(%arg0: i32, %arg1: i32, %arg2: i32) -> (i32, i32) {
    %c0_i32 = arith.constant 0 : i32
    return %arg2, %arg1 : i32, i32
  }
  func.func @transform_2(%arg0: i32, %arg1: i32, %arg2: i32) -> (i32, i32) {
    %c0_i32 = arith.constant 0 : i32
    %c0_i32_0 = arith.constant 0 : i32
    return %c0_i32, %arg1 : i32, i32
  }
  func.func @transform_3(%arg0: i32, %arg1: i32, %arg2: i32) -> (i32, i32) {
    %c0_i32 = arith.constant 0 : i32
    %c0_i32_0 = arith.constant 0 : i32
    return %c0_i32, %arg1 : i32, i32
  }
  func.func @transform_4(%arg0: i32, %arg1: i32, %arg2: i32) -> (i32, i32) {
    %c0_i32 = arith.constant 0 : i32
    return %arg0, %arg1 : i32, i32
  }
}

module attributes {stable_mosaic.version = 11 : i64} {
  func.func @_conv_bn_relu_kernel(%arg0: i32, %arg1: i32, %arg2: i32, %arg3: memref<32x768xbf16, #tpu.memory_space<vmem>>, %arg4: memref<768x128xbf16, #tpu.memory_space<vmem>>, %arg5: memref<1x128xf32, #tpu.memory_space<vmem>>, %arg6: memref<1x128xf32, #tpu.memory_space<vmem>>, %arg7: memref<32x128xf32, #tpu.memory_space<vmem>>, %arg8: memref<32x128xf32, #tpu.memory_space<vmem>>) attributes {dimension_semantics = [#tpu.dimension_semantics<parallel>, #tpu.dimension_semantics<parallel>, #tpu.dimension_semantics<arbitrary>], iteration_bounds = array<i64: 1, 3, 3>, scalar_prefetch = 0 : i64, scratch_operands = 1 : i64, tpu.core_type = #tpu.core_type<tc>, window_params = [{transform_indices = @transform_0, window_bounds = array<i64: 32, 768>}, {transform_indices = @transform_1, window_bounds = array<i64: 768, 128>}, {transform_indices = @transform_2, window_bounds = array<i64: 1, 128>}, {transform_indices = @transform_3, window_bounds = array<i64: 1, 128>}, {transform_indices = @transform_4, window_bounds = array<i64: 32, 128>}]} {
    %c0_i32 = arith.constant 0 : i32
    %0 = arith.cmpi eq, %arg2, %c0_i32 : i32
    %1 = arith.extui %0 : i1 to i32
    %c0_i32_0 = arith.constant 0 : i32
    %2 = arith.cmpi ne, %1, %c0_i32_0 : i32
    scf.if %2 {
      %cst_9 = arith.constant 0.000000e+00 : f32
      %12 = vector.broadcast %cst_9 : f32 to vector<32x128xf32>
      %c0_10 = arith.constant 0 : index
      %c0_11 = arith.constant 0 : index
      %13 = vector.load %arg8[%c0_10, %c0_11] : memref<32x128xf32, #tpu.memory_space<vmem>>, vector<32x128xf32>
      tpu.vector_store %arg8[%c0_10, %c0_11], %12 {strides = array<i32>} : memref<32x128xf32, #tpu.memory_space<vmem>>, vector<32x128xf32>,
    } else {
    }
    %c0 = arith.constant 0 : index
    %c0_1 = arith.constant 0 : index
    %3 = vector.load %arg8[%c0, %c0_1] : memref<32x128xf32, #tpu.memory_space<vmem>>, vector<32x128xf32>
    %c0_2 = arith.constant 0 : index
    %c0_3 = arith.constant 0 : index
    %4 = vector.load %arg3[%c0_2, %c0_3] : memref<32x768xbf16, #tpu.memory_space<vmem>>, vector<32x768xbf16>
    %c0_4 = arith.constant 0 : index
    %c0_5 = arith.constant 0 : index
    %5 = vector.load %arg4[%c0_4, %c0_5] : memref<768x128xbf16, #tpu.memory_space<vmem>>, vector<768x128xbf16>
    %cst = arith.constant dense<0.000000e+00> : vector<32x128xf32>
    %6 = tpu.matmul %4, %5, %cst {dimension_numbers = #tpu.dot_dimension_numbers<[1], [0], [0], [1], [0, 0, 1, 1], [], []>} : vector<32x768xbf16>, vector<768x128xbf16>, vector<32x128xf32> -> vector<32x128xf32>
    %7 = arith.addf %3, %6 : vector<32x128xf32>
    %c0_6 = arith.constant 0 : index
    %c0_7 = arith.constant 0 : index
    %8 = vector.load %arg8[%c0_6, %c0_7] : memref<32x128xf32, #tpu.memory_space<vmem>>, vector<32x128xf32>
    tpu.vector_store %arg8[%c0_6, %c0_7], %7 {strides = array<i32>} : memref<32x128xf32, #tpu.memory_space<vmem>>, vector<32x128xf32>,
    %c2_i32 = arith.constant 2 : i32
    %9 = arith.cmpi eq, %arg2, %c2_i32 : i32
    %10 = arith.extui %9 : i1 to i32
    %c0_i32_8 = arith.constant 0 : i32
    %11 = arith.cmpi ne, %10, %c0_i32_8 : i32
    scf.if %11 {
      %c0_9 = arith.constant 0 : index
      %c0_10 = arith.constant 0 : index
      %12 = vector.load %arg8[%c0_9, %c0_10] : memref<32x128xf32, #tpu.memory_space<vmem>>, vector<32x128xf32>
      %c0_11 = arith.constant 0 : index
      %c0_12 = arith.constant 0 : index
      %13 = vector.load %arg5[%c0_11, %c0_12] : memref<1x128xf32, #tpu.memory_space<vmem>>, vector<1x128xf32>
      %14 = vector.broadcast %13 : vector<1x128xf32> to vector<32x128xf32>
      %15 = arith.mulf %12, %14 : vector<32x128xf32>
      %c0_13 = arith.constant 0 : index
      %c0_14 = arith.constant 0 : index
      %16 = vector.load %arg6[%c0_13, %c0_14] : memref<1x128xf32, #tpu.memory_space<vmem>>, vector<1x128xf32>
      %17 = vector.broadcast %16 : vector<1x128xf32> to vector<32x128xf32>
      %18 = arith.addf %15, %17 : vector<32x128xf32>
      %cst_15 = arith.constant 0.000000e+00 : f32
      %19 = vector.broadcast %cst_15 : f32 to vector<32x128xf32>
      %20 = arith.maximumf %18, %19 : vector<32x128xf32>
      %c0_16 = arith.constant 0 : index
      %c0_17 = arith.constant 0 : index
      %21 = vector.load %arg7[%c0_16, %c0_17] : memref<32x128xf32, #tpu.memory_space<vmem>>, vector<32x128xf32>
      tpu.vector_store %arg7[%c0_16, %c0_17], %20 {strides = array<i32>} : memref<32x128xf32, #tpu.memory_space<vmem>>, vector<32x128xf32>,
    } else {
    }
    return
  }
  func.func @transform_0(%arg0: i32, %arg1: i32, %arg2: i32) -> (i32, i32) {
    %c0_i32 = arith.constant 0 : i32
    return %arg0, %arg2 : i32, i32
  }
  func.func @transform_1(%arg0: i32, %arg1: i32, %arg2: i32) -> (i32, i32) {
    %c0_i32 = arith.constant 0 : i32
    return %arg2, %arg1 : i32, i32
  }
  func.func @transform_2(%arg0: i32, %arg1: i32, %arg2: i32) -> (i32, i32) {
    %c0_i32 = arith.constant 0 : i32
    %c0_i32_0 = arith.constant 0 : i32
    return %c0_i32, %arg1 : i32, i32
  }
  func.func @transform_3(%arg0: i32, %arg1: i32, %arg2: i32) -> (i32, i32) {
    %c0_i32 = arith.constant 0 : i32
    %c0_i32_0 = arith.constant 0 : i32
    return %c0_i32, %arg1 : i32, i32
  }
  func.func @transform_4(%arg0: i32, %arg1: i32, %arg2: i32) -> (i32, i32) {
    %c0_i32 = arith.constant 0 : i32
    return %arg0, %arg1 : i32, i32
  }
}

module attributes {stable_mosaic.version = 11 : i64} {
  func.func @_conv_bn_relu_kernel(%arg0: i32, %arg1: i32, %arg2: i32, %arg3: memref<32x768xbf16, #tpu.memory_space<vmem>>, %arg4: memref<768x256xbf16, #tpu.memory_space<vmem>>, %arg5: memref<1x256xf32, #tpu.memory_space<vmem>>, %arg6: memref<1x256xf32, #tpu.memory_space<vmem>>, %arg7: memref<32x256xf32, #tpu.memory_space<vmem>>, %arg8: memref<32x256xf32, #tpu.memory_space<vmem>>) attributes {dimension_semantics = [#tpu.dimension_semantics<parallel>, #tpu.dimension_semantics<parallel>, #tpu.dimension_semantics<arbitrary>], iteration_bounds = array<i64: 1, 1, 3>, scalar_prefetch = 0 : i64, scratch_operands = 1 : i64, tpu.core_type = #tpu.core_type<tc>, window_params = [{transform_indices = @transform_0, window_bounds = array<i64: 32, 768>}, {transform_indices = @transform_1, window_bounds = array<i64: 768, 256>}, {transform_indices = @transform_2, window_bounds = array<i64: 1, 256>}, {transform_indices = @transform_3, window_bounds = array<i64: 1, 256>}, {transform_indices = @transform_4, window_bounds = array<i64: 32, 256>}]} {
    %c0_i32 = arith.constant 0 : i32
    %0 = arith.cmpi eq, %arg2, %c0_i32 : i32
    %1 = arith.extui %0 : i1 to i32
    %c0_i32_0 = arith.constant 0 : i32
    %2 = arith.cmpi ne, %1, %c0_i32_0 : i32
    scf.if %2 {
      %cst_9 = arith.constant 0.000000e+00 : f32
      %12 = vector.broadcast %cst_9 : f32 to vector<32x256xf32>
      %c0_10 = arith.constant 0 : index
      %c0_11 = arith.constant 0 : index
      %13 = vector.load %arg8[%c0_10, %c0_11] : memref<32x256xf32, #tpu.memory_space<vmem>>, vector<32x256xf32>
      tpu.vector_store %arg8[%c0_10, %c0_11], %12 {strides = array<i32>} : memref<32x256xf32, #tpu.memory_space<vmem>>, vector<32x256xf32>,
    } else {
    }
    %c0 = arith.constant 0 : index
    %c0_1 = arith.constant 0 : index
    %3 = vector.load %arg8[%c0, %c0_1] : memref<32x256xf32, #tpu.memory_space<vmem>>, vector<32x256xf32>
    %c0_2 = arith.constant 0 : index
    %c0_3 = arith.constant 0 : index
    %4 = vector.load %arg3[%c0_2, %c0_3] : memref<32x768xbf16, #tpu.memory_space<vmem>>, vector<32x768xbf16>
    %c0_4 = arith.constant 0 : index
    %c0_5 = arith.constant 0 : index
    %5 = vector.load %arg4[%c0_4, %c0_5] : memref<768x256xbf16, #tpu.memory_space<vmem>>, vector<768x256xbf16>
    %cst = arith.constant dense<0.000000e+00> : vector<32x256xf32>
    %6 = tpu.matmul %4, %5, %cst {dimension_numbers = #tpu.dot_dimension_numbers<[1], [0], [0], [1], [0, 0, 1, 1], [], []>} : vector<32x768xbf16>, vector<768x256xbf16>, vector<32x256xf32> -> vector<32x256xf32>
    %7 = arith.addf %3, %6 : vector<32x256xf32>
    %c0_6 = arith.constant 0 : index
    %c0_7 = arith.constant 0 : index
    %8 = vector.load %arg8[%c0_6, %c0_7] : memref<32x256xf32, #tpu.memory_space<vmem>>, vector<32x256xf32>
    tpu.vector_store %arg8[%c0_6, %c0_7], %7 {strides = array<i32>} : memref<32x256xf32, #tpu.memory_space<vmem>>, vector<32x256xf32>,
    %c2_i32 = arith.constant 2 : i32
    %9 = arith.cmpi eq, %arg2, %c2_i32 : i32
    %10 = arith.extui %9 : i1 to i32
    %c0_i32_8 = arith.constant 0 : i32
    %11 = arith.cmpi ne, %10, %c0_i32_8 : i32
    scf.if %11 {
      %c0_9 = arith.constant 0 : index
      %c0_10 = arith.constant 0 : index
      %12 = vector.load %arg8[%c0_9, %c0_10] : memref<32x256xf32, #tpu.memory_space<vmem>>, vector<32x256xf32>
      %c0_11 = arith.constant 0 : index
      %c0_12 = arith.constant 0 : index
      %13 = vector.load %arg5[%c0_11, %c0_12] : memref<1x256xf32, #tpu.memory_space<vmem>>, vector<1x256xf32>
      %14 = vector.broadcast %13 : vector<1x256xf32> to vector<32x256xf32>
      %15 = arith.mulf %12, %14 : vector<32x256xf32>
      %c0_13 = arith.constant 0 : index
      %c0_14 = arith.constant 0 : index
      %16 = vector.load %arg6[%c0_13, %c0_14] : memref<1x256xf32, #tpu.memory_space<vmem>>, vector<1x256xf32>
      %17 = vector.broadcast %16 : vector<1x256xf32> to vector<32x256xf32>
      %18 = arith.addf %15, %17 : vector<32x256xf32>
      %cst_15 = arith.constant 0.000000e+00 : f32
      %19 = vector.broadcast %cst_15 : f32 to vector<32x256xf32>
      %20 = arith.maximumf %18, %19 : vector<32x256xf32>
      %c0_16 = arith.constant 0 : index
      %c0_17 = arith.constant 0 : index
      %21 = vector.load %arg7[%c0_16, %c0_17] : memref<32x256xf32, #tpu.memory_space<vmem>>, vector<32x256xf32>
      tpu.vector_store %arg7[%c0_16, %c0_17], %20 {strides = array<i32>} : memref<32x256xf32, #tpu.memory_space<vmem>>, vector<32x256xf32>,
    } else {
    }
    return
  }
  func.func @transform_0(%arg0: i32, %arg1: i32, %arg2: i32) -> (i32, i32) {
    %c0_i32 = arith.constant 0 : i32
    return %arg0, %arg2 : i32, i32
  }
  func.func @transform_1(%arg0: i32, %arg1: i32, %arg2: i32) -> (i32, i32) {
    %c0_i32 = arith.constant 0 : i32
    return %arg2, %arg1 : i32, i32
  }
  func.func @transform_2(%arg0: i32, %arg1: i32, %arg2: i32) -> (i32, i32) {
    %c0_i32 = arith.constant 0 : i32
    %c0_i32_0 = arith.constant 0 : i32
    return %c0_i32, %arg1 : i32, i32
  }
  func.func @transform_3(%arg0: i32, %arg1: i32, %arg2: i32) -> (i32, i32) {
    %c0_i32 = arith.constant 0 : i32
    %c0_i32_0 = arith.constant 0 : i32
    return %c0_i32, %arg1 : i32, i32
  }
  func.func @transform_4(%arg0: i32, %arg1: i32, %arg2: i32) -> (i32, i32) {
    %c0_i32 = arith.constant 0 : i32
    return %arg0, %arg1 : i32, i32
  }
}

module attributes {stable_mosaic.version = 11 : i64} {
  func.func @_conv_bn_relu_kernel(%arg0: i32, %arg1: i32, %arg2: i32, %arg3: memref<168x768xbf16, #tpu.memory_space<vmem>>, %arg4: memref<768x256xbf16, #tpu.memory_space<vmem>>, %arg5: memref<1x256xf32, #tpu.memory_space<vmem>>, %arg6: memref<1x256xf32, #tpu.memory_space<vmem>>, %arg7: memref<168x256xf32, #tpu.memory_space<vmem>>, %arg8: memref<168x256xf32, #tpu.memory_space<vmem>>) attributes {dimension_semantics = [#tpu.dimension_semantics<parallel>, #tpu.dimension_semantics<parallel>, #tpu.dimension_semantics<arbitrary>], iteration_bounds = array<i64: 1, 1, 3>, scalar_prefetch = 0 : i64, scratch_operands = 1 : i64, tpu.core_type = #tpu.core_type<tc>, window_params = [{transform_indices = @transform_0, window_bounds = array<i64: 168, 768>}, {transform_indices = @transform_1, window_bounds = array<i64: 768, 256>}, {transform_indices = @transform_2, window_bounds = array<i64: 1, 256>}, {transform_indices = @transform_3, window_bounds = array<i64: 1, 256>}, {transform_indices = @transform_4, window_bounds = array<i64: 168, 256>}]} {
    %c0_i32 = arith.constant 0 : i32
    %0 = arith.cmpi eq, %arg2, %c0_i32 : i32
    %1 = arith.extui %0 : i1 to i32
    %c0_i32_0 = arith.constant 0 : i32
    %2 = arith.cmpi ne, %1, %c0_i32_0 : i32
    scf.if %2 {
      %cst_9 = arith.constant 0.000000e+00 : f32
      %12 = vector.broadcast %cst_9 : f32 to vector<168x256xf32>
      %c0_10 = arith.constant 0 : index
      %c0_11 = arith.constant 0 : index
      %13 = vector.load %arg8[%c0_10, %c0_11] : memref<168x256xf32, #tpu.memory_space<vmem>>, vector<168x256xf32>
      tpu.vector_store %arg8[%c0_10, %c0_11], %12 {strides = array<i32>} : memref<168x256xf32, #tpu.memory_space<vmem>>, vector<168x256xf32>,
    } else {
    }
    %c0 = arith.constant 0 : index
    %c0_1 = arith.constant 0 : index
    %3 = vector.load %arg8[%c0, %c0_1] : memref<168x256xf32, #tpu.memory_space<vmem>>, vector<168x256xf32>
    %c0_2 = arith.constant 0 : index
    %c0_3 = arith.constant 0 : index
    %4 = vector.load %arg3[%c0_2, %c0_3] : memref<168x768xbf16, #tpu.memory_space<vmem>>, vector<168x768xbf16>
    %c0_4 = arith.constant 0 : index
    %c0_5 = arith.constant 0 : index
    %5 = vector.load %arg4[%c0_4, %c0_5] : memref<768x256xbf16, #tpu.memory_space<vmem>>, vector<768x256xbf16>
    %cst = arith.constant dense<0.000000e+00> : vector<168x256xf32>
    %6 = tpu.matmul %4, %5, %cst {dimension_numbers = #tpu.dot_dimension_numbers<[1], [0], [0], [1], [0, 0, 1, 1], [], []>} : vector<168x768xbf16>, vector<768x256xbf16>, vector<168x256xf32> -> vector<168x256xf32>
    %7 = arith.addf %3, %6 : vector<168x256xf32>
    %c0_6 = arith.constant 0 : index
    %c0_7 = arith.constant 0 : index
    %8 = vector.load %arg8[%c0_6, %c0_7] : memref<168x256xf32, #tpu.memory_space<vmem>>, vector<168x256xf32>
    tpu.vector_store %arg8[%c0_6, %c0_7], %7 {strides = array<i32>} : memref<168x256xf32, #tpu.memory_space<vmem>>, vector<168x256xf32>,
    %c2_i32 = arith.constant 2 : i32
    %9 = arith.cmpi eq, %arg2, %c2_i32 : i32
    %10 = arith.extui %9 : i1 to i32
    %c0_i32_8 = arith.constant 0 : i32
    %11 = arith.cmpi ne, %10, %c0_i32_8 : i32
    scf.if %11 {
      %c0_9 = arith.constant 0 : index
      %c0_10 = arith.constant 0 : index
      %12 = vector.load %arg8[%c0_9, %c0_10] : memref<168x256xf32, #tpu.memory_space<vmem>>, vector<168x256xf32>
      %c0_11 = arith.constant 0 : index
      %c0_12 = arith.constant 0 : index
      %13 = vector.load %arg5[%c0_11, %c0_12] : memref<1x256xf32, #tpu.memory_space<vmem>>, vector<1x256xf32>
      %14 = vector.broadcast %13 : vector<1x256xf32> to vector<168x256xf32>
      %15 = arith.mulf %12, %14 : vector<168x256xf32>
      %c0_13 = arith.constant 0 : index
      %c0_14 = arith.constant 0 : index
      %16 = vector.load %arg6[%c0_13, %c0_14] : memref<1x256xf32, #tpu.memory_space<vmem>>, vector<1x256xf32>
      %17 = vector.broadcast %16 : vector<1x256xf32> to vector<168x256xf32>
      %18 = arith.addf %15, %17 : vector<168x256xf32>
      %cst_15 = arith.constant 0.000000e+00 : f32
      %19 = vector.broadcast %cst_15 : f32 to vector<168x256xf32>
      %20 = arith.maximumf %18, %19 : vector<168x256xf32>
      %c0_16 = arith.constant 0 : index
      %c0_17 = arith.constant 0 : index
      %21 = vector.load %arg7[%c0_16, %c0_17] : memref<168x256xf32, #tpu.memory_space<vmem>>, vector<168x256xf32>
      tpu.vector_store %arg7[%c0_16, %c0_17], %20 {strides = array<i32>} : memref<168x256xf32, #tpu.memory_space<vmem>>, vector<168x256xf32>,
    } else {
    }
    return
  }
  func.func @transform_0(%arg0: i32, %arg1: i32, %arg2: i32) -> (i32, i32) {
    %c0_i32 = arith.constant 0 : i32
    return %arg0, %arg2 : i32, i32
  }
  func.func @transform_1(%arg0: i32, %arg1: i32, %arg2: i32) -> (i32, i32) {
    %c0_i32 = arith.constant 0 : i32
    return %arg2, %arg1 : i32, i32
  }
  func.func @transform_2(%arg0: i32, %arg1: i32, %arg2: i32) -> (i32, i32) {
    %c0_i32 = arith.constant 0 : i32
    %c0_i32_0 = arith.constant 0 : i32
    return %c0_i32, %arg1 : i32, i32
  }
  func.func @transform_3(%arg0: i32, %arg1: i32, %arg2: i32) -> (i32, i32) {
    %c0_i32 = arith.constant 0 : i32
    %c0_i32_0 = arith.constant 0 : i32
    return %c0_i32, %arg1 : i32, i32
  }
  func.func @transform_4(%arg0: i32, %arg1: i32, %arg2: i32) -> (i32, i32) {
    %c0_i32 = arith.constant 0 : i32
    return %arg0, %arg1 : i32, i32
  }
}

module attributes {stable_mosaic.version = 11 : i64} {
  func.func @_maxpool_kernel(%arg0: i32, %arg1: memref<32x8064xf32, #tpu.memory_space<vmem>>, %arg2: memref<32x896xf32, #tpu.memory_space<vmem>>) attributes {dimension_semantics = [#tpu.dimension_semantics<parallel>], iteration_bounds = array<i64: 1>, scalar_prefetch = 0 : i64, scratch_operands = 0 : i64, tpu.core_type = #tpu.core_type<tc>, window_params = [{transform_indices = @transform_0, window_bounds = array<i64: 32, 8064>}, {transform_indices = @transform_1, window_bounds = array<i64: 32, 896>}]} {
    %c0 = arith.constant 0 : index
    %c0_0 = arith.constant 0 : index
    %0 = vector.load %arg1[%c0, %c0_0] : memref<32x8064xf32, #tpu.memory_space<vmem>>, vector<32x896xf32>
    %c0_1 = arith.constant 0 : index
    %c896 = arith.constant 896 : index
    %1 = vector.load %arg1[%c0_1, %c896] : memref<32x8064xf32, #tpu.memory_space<vmem>>, vector<32x896xf32>
    %2 = arith.maximumf %0, %1 : vector<32x896xf32>
    %c0_2 = arith.constant 0 : index
    %c1792 = arith.constant 1792 : index
    %3 = vector.load %arg1[%c0_2, %c1792] : memref<32x8064xf32, #tpu.memory_space<vmem>>, vector<32x896xf32>
    %4 = arith.maximumf %2, %3 : vector<32x896xf32>
    %c0_3 = arith.constant 0 : index
    %c2688 = arith.constant 2688 : index
    %5 = vector.load %arg1[%c0_3, %c2688] : memref<32x8064xf32, #tpu.memory_space<vmem>>, vector<32x896xf32>
    %6 = arith.maximumf %4, %5 : vector<32x896xf32>
    %c0_4 = arith.constant 0 : index
    %c3584 = arith.constant 3584 : index
    %7 = vector.load %arg1[%c0_4, %c3584] : memref<32x8064xf32, #tpu.memory_space<vmem>>, vector<32x896xf32>
    %8 = arith.maximumf %6, %7 : vector<32x896xf32>
    %c0_5 = arith.constant 0 : index
    %c4480 = arith.constant 4480 : index
    %9 = vector.load %arg1[%c0_5, %c4480] : memref<32x8064xf32, #tpu.memory_space<vmem>>, vector<32x896xf32>
    %10 = arith.maximumf %8, %9 : vector<32x896xf32>
    %c0_6 = arith.constant 0 : index
    %c5376 = arith.constant 5376 : index
    %11 = vector.load %arg1[%c0_6, %c5376] : memref<32x8064xf32, #tpu.memory_space<vmem>>, vector<32x896xf32>
    %12 = arith.maximumf %10, %11 : vector<32x896xf32>
    %c0_7 = arith.constant 0 : index
    %c6272 = arith.constant 6272 : index
    %13 = vector.load %arg1[%c0_7, %c6272] : memref<32x8064xf32, #tpu.memory_space<vmem>>, vector<32x896xf32>
    %14 = arith.maximumf %12, %13 : vector<32x896xf32>
    %c0_8 = arith.constant 0 : index
    %c7168 = arith.constant 7168 : index
    %15 = vector.load %arg1[%c0_8, %c7168] : memref<32x8064xf32, #tpu.memory_space<vmem>>, vector<32x896xf32>
    %16 = arith.maximumf %14, %15 : vector<32x896xf32>
    %c0_9 = arith.constant 0 : index
    %c0_10 = arith.constant 0 : index
    %17 = vector.load %arg2[%c0_9, %c0_10] : memref<32x896xf32, #tpu.memory_space<vmem>>, vector<32x896xf32>
    tpu.vector_store %arg2[%c0_9, %c0_10], %16 {strides = array<i32>} : memref<32x896xf32, #tpu.memory_space<vmem>>, vector<32x896xf32>,
    return
  }
  func.func @transform_0(%arg0: i32) -> (i32, i32) {
    %c0_i32 = arith.constant 0 : i32
    %c0_i32_0 = arith.constant 0 : i32
    return %arg0, %c0_i32 : i32, i32
  }
  func.func @transform_1(%arg0: i32) -> (i32, i32) {
    %c0_i32 = arith.constant 0 : i32
    %c0_i32_0 = arith.constant 0 : i32
    return %arg0, %c0_i32 : i32, i32
  }
}

</mosaic_0001>

<bundles_post_ra>
// kernel: mixed_7a.6
= control target key start
LH: loop header
LB: loop body
LE: loop exit
PB: predicated region body
PF: predicated region fallthrough
CT: control target
= control target key end

     0   :  { %s3840_s15 = smov 0   ;;  %s3842_s16 = smov 0   ;;  %s4720_s0 = inlined_call_operand.vmem [shape: bf16[168,896], index: 0, kind: input, shape index: {}]   ;;  %s4721_s1 = inlined_call_operand.vmem [shape: bf16[896,768], index: 1, kind: input, shape index: {}]   ;;  %s4722_s2 = inlined_call_operand.vmem [shape: f32[1,768], index: 2, kind: input, shape index: {}]   ;;  %s4723_s3 = inlined_call_operand.vmem [shape: f32[1,768], index: 3, kind: input, shape index: {}]   ;;  %s4724_s4 = inlined_call_operand.vmem [shape: f32[168,768], index: 4, kind: output, shape index: {}]  }
   0x1   :  { %s3844_s17 = smov 0   ;;  %s3846_s18 = smov 0  }
   0x2   :  { %s3848_s19 = smov 0  }
   0x3 LB: > { %s29_s20 = sadd.s32 1, %s3808_s18  ;;  %s3120_s21 = sadd.s32 4294967295, %s3812_s19   ;;  %s3812_s19 = sphi %s3848_s19, %s14_s19   ;;  %s3808_s18 = sphi %s3846_s18, %s4729_s18   ;;  %s3804_s17 = sphi %s3844_s17, %s4728_s17   ;;  %s3800_s16 = sphi %s3842_s16, %s4727_s16   ;;  %s3796_s15 = sphi %s3840_s15, %s4726_s15  }
   0x4   : > { %p31_p0 = scmp.ge.s32.totalorder %s29_s20, 3  ;;  %p77_p1 = scmp.ne.s32.totalorder %s3800_s16, %s3796_s15 }
   0x5   : > { %p78_p2 = scmp.eq.s32.totalorder %s3812_s19, 0  ;;  %p161_p4 = scmp.eq.s32.totalorder %s3120_s21, 2 }
   0x6   : > { %s4731_s20 = smov (%p31_p0, %s29_s20), 0  ;;  %s70_s23 = sadd.s32 1, %s3800_s16 }
   0x7   : > { %p79_p3 = por %p78_p2, %p77_p1  ;;  %s66_s22 = ssub.s32 %s3808_s18, %s4731_s20 }
   0x8   : > { %p68_p5 = scmp.eq.s32.totalorder %s66_s22, 0  ;;  %p3875_p6 = por %p161_p4, %p77_p1 }
   0x9   : > { %p3124_p7 = scmp.ge.s32.totalorder %s3812_s19, 3 }
   0xa   : > { %s3880_s25 = scalar_select %p68_p5, %s3800_s16, %s70_s23  }
   0xb   : > { %198 = sbr.rel (%p3124_p7) target bundleno = 79 (0x4f), region = 20 }
  0x12   : > { %201 = sbr.rel (!%p79_p3) target bundleno = 79 (0x4f), region = 24  ;;  %s203_s26 = sand.u32 (%p79_p3), 1, %s3800_s16  }
  0x13   : > { %s3323_s27 = sshll.u32 (%p79_p3), %s3808_s18, 3  ;;  %s3455_s28 = smul.u32 (%p79_p3), 896, %s203_s26 }
  0x14   : > { %s3888_s5 = scalar_lea.vmem (%p79_p3), %s4721_s1, %s3323_s27 }
  0x15   : > { %v461_v0 = vld [vmem:[%s3888_s5] sm:$0xff] (%p79_p3)  ;;  %v463_v1 = vld [vmem:[%s3888_s5 + $0x18] sm:$0xff] (%p79_p3)  ;;  %v465_v2 = vld [vmem:[%s3888_s5 + $0x30] sm:$0xff] (%p79_p3)  ;;  %s3896_s6 = scalar_lea.vmem (%p79_p3), [#allocation3], %s3455_s28 }
  0x16   : > { %v467_v3 = vld [vmem:[%s3888_s5 + $0x48] sm:$0xff] (%p79_p3)  ;;  %v469_v4 = vld [vmem:[%s3888_s5 + $0x60] sm:$0xff] (%p79_p3)  ;;  %v471_v5 = vld [vmem:[%s3888_s5 + $0x78] sm:$0xff] (%p79_p3)  ;;  %462 = vst [vmem:[%s3896_s6] sm:$0xff] (%p79_p3), %v461_v0 }
  0x17   : > { %464 = vst [vmem:[%s3896_s6 + $0x8] sm:$0xff] (%p79_p3), %v463_v1  ;;  %466 = vst [vmem:[%s3896_s6 + $0x10] sm:$0xff] (%p79_p3), %v465_v2  ;;  %v473_v6 = vld [vmem:[%s3888_s5 + $0x90] sm:$0xff] (%p79_p3)  ;;  %v475_v7 = vld [vmem:[%s3888_s5 + $0xa8] sm:$0xff] (%p79_p3) }
  0x18   : > { %468 = vst [vmem:[%s3896_s6 + $0x18] sm:$0xff] (%p79_p3), %v467_v3  ;;  %470 = vst [vmem:[%s3896_s6 + $0x20] sm:$0xff] (%p79_p3), %v469_v4  ;;  %v477_v8 = vld [vmem:[%s3888_s5 + $0xc0] sm:$0xff] (%p79_p3)  ;;  %v479_v9 = vld [vmem:[%s3888_s5 + $0xd8] sm:$0xff] (%p79_p3) }
  0x19   : > { %472 = vst [vmem:[%s3896_s6 + $0x28] sm:$0xff] %v471_v5  ;;  %474 = vst [vmem:[%s3896_s6 + $0x30] sm:$0xff] %v473_v6  ;;  %v481_v10 = vld [vmem:[%s3888_s5 + $0xf0] sm:$0xff]  ;;  %v483_v11 = vld [vmem:[%s3888_s5 + $0x108] sm:$0xff] }
  0x1a   : > { %476 = vst [vmem:[%s3896_s6 + $0x38] sm:$0xff] %v475_v7  ;;  %478 = vst [vmem:[%s3896_s6 + $0x40] sm:$0xff] %v477_v8  ;;  %v485_v12 = vld [vmem:[%s3888_s5 + $0x120] sm:$0xff]  ;;  %v487_v13 = vld [vmem:[%s3888_s5 + $0x138] sm:$0xff] }
  0x1b   : > { %480 = vst [vmem:[%s3896_s6 + $0x48] sm:$0xff] %v479_v9  ;;  %482 = vst [vmem:[%s3896_s6 + $0x50] sm:$0xff] %v481_v10  ;;  %v489_v14 = vld [vmem:[%s3888_s5 + $0x150] sm:$0xff]  ;;  %v491_v15 = vld [vmem:[%s3888_s5 + $0x168] sm:$0xff] }
  0x1c   : > { %484 = vst [vmem:[%s3896_s6 + $0x58] sm:$0xff] %v483_v11  ;;  %486 = vst [vmem:[%s3896_s6 + $0x60] sm:$0xff] %v485_v12  ;;  %v493_v16 = vld [vmem:[%s3888_s5 + $0x180] sm:$0xff]  ;;  %v495_v17 = vld [vmem:[%s3888_s5 + $0x198] sm:$0xff] }
  0x1d   : > { %488 = vst [vmem:[%s3896_s6 + $0x68] sm:$0xff] %v487_v13  ;;  %490 = vst [vmem:[%s3896_s6 + $0x70] sm:$0xff] %v489_v14  ;;  %v497_v18 = vld [vmem:[%s3888_s5 + $0x1b0] sm:$0xff]  ;;  %v499_v19 = vld [vmem:[%s3888_s5 + $0x1c8] sm:$0xff] }
  0x1e   : > { %492 = vst [vmem:[%s3896_s6 + $0x78] sm:$0xff] %v491_v15  ;;  %494 = vst [vmem:[%s3896_s6 + $0x80] sm:$0xff] %v493_v16  ;;  %v501_v20 = vld [vmem:[%s3888_s5 + $0x1e0] sm:$0xff]  ;;  %v503_v21 = vld [vmem:[%s3888_s5 + $0x1f8] sm:$0xff] }
  0x1f   : > { %496 = vst [vmem:[%s3896_s6 + $0x88] sm:$0xff] %v495_v17  ;;  %498 = vst [vmem:[%s3896_s6 + $0x90] sm:$0xff] %v497_v18  ;;  %v505_v22 = vld [vmem:[%s3888_s5 + $0x210] sm:$0xff]  ;;  %v507_v23 = vld [vmem:[%s3888_s5 + $0x228] sm:$0xff] }
  0x20   : > { %500 = vst [vmem:[%s3896_s6 + $0x98] sm:$0xff] %v499_v19  ;;  %502 = vst [vmem:[%s3896_s6 + $0xa0] sm:$0xff] %v501_v20  ;;  %v509_v24 = vld [vmem:[%s3888_s5 + $0x240] sm:$0xff]  ;;  %v511_v25 = vld [vmem:[%s3888_s5 + $0x258] sm:$0xff] }
  0x21   : > { %504 = vst [vmem:[%s3896_s6 + $0xa8] sm:$0xff] %v503_v21  ;;  %506 = vst [vmem:[%s3896_s6 + $0xb0] sm:$0xff] %v505_v22  ;;  %v513_v26 = vld [vmem:[%s3888_s5 + $0x270] sm:$0xff]  ;;  %v515_v27 = vld [vmem:[%s3888_s5 + $0x288] sm:$0xff] }
  0x22   : > { %508 = vst [vmem:[%s3896_s6 + $0xb8] sm:$0xff] %v507_v23  ;;  %510 = vst [vmem:[%s3896_s6 + $0xc0] sm:$0xff] %v509_v24  ;;  %v517_v28 = vld [vmem:[%s3888_s5 + $0x2a0] sm:$0xff]  ;;  %v519_v29 = vld [vmem:[%s3888_s5 + $0x2b8] sm:$0xff] }
  0x23   : > { %512 = vst [vmem:[%s3896_s6 + $0xc8] sm:$0xff] %v511_v25  ;;  %514 = vst [vmem:[%s3896_s6 + $0xd0] sm:$0xff] %v513_v26  ;;  %v521_v30 = vld [vmem:[%s3888_s5 + $0x2d0] sm:$0xff]  ;;  %v523_v31 = vld [vmem:[%s3888_s5 + $0x2e8] sm:$0xff] }
  0x24   : > { %516 = vst [vmem:[%s3896_s6 + $0xd8] sm:$0xff] %v515_v27  ;;  %518 = vst [vmem:[%s3896_s6 + $0xe0] sm:$0xff] %v517_v28  ;;  %v525_v32 = vld [vmem:[%s3888_s5 + $0x300] sm:$0xff]  ;;  %v527_v33 = vld [vmem:[%s3888_s5 + $0x318] sm:$0xff] }
  0x25   : > { %520 = vst [vmem:[%s3896_s6 + $0xe8] sm:$0xff] %v519_v29  ;;  %522 = vst [vmem:[%s3896_s6 + $0xf0] sm:$0xff] %v521_v30  ;;  %v529_v34 = vld [vmem:[%s3888_s5 + $0x330] sm:$0xff]  ;;  %v531_v35 = vld [vmem:[%s3888_s5 + $0x348] sm:$0xff] }
  0x26   : > { %524 = vst [vmem:[%s3896_s6 + $0xf8] sm:$0xff] %v523_v31  ;;  %526 = vst [vmem:[%s3896_s6 + $0x100] sm:$0xff] %v525_v32  ;;  %v533_v36 = vld [vmem:[%s3888_s5 + $0x360] sm:$0xff]  ;;  %v535_v37 = vld [vmem:[%s3888_s5 + $0x378] sm:$0xff] }
  0x27   : > { %528 = vst [vmem:[%s3896_s6 + $0x108] sm:$0xff] %v527_v33  ;;  %530 = vst [vmem:[%s3896_s6 + $0x110] sm:$0xff] %v529_v34  ;;  %v537_v38 = vld [vmem:[%s3888_s5 + $0x390] sm:$0xff]  ;;  %v539_v39 = vld [vmem:[%s3888_s5 + $0x3a8] sm:$0xff] }
  0x28   : > { %532 = vst [vmem:[%s3896_s6 + $0x118] sm:$0xff] %v531_v35  ;;  %534 = vst [vmem:[%s3896_s6 + $0x120] sm:$0xff] %v533_v36  ;;  %v541_v40 = vld [vmem:[%s3888_s5 + $0x3c0] sm:$0xff]  ;;  %v543_v41 = vld [vmem:[%s3888_s5 + $0x3d8] sm:$0xff] }
  0x29   : > { %536 = vst [vmem:[%s3896_s6 + $0x128] sm:$0xff] %v535_v37  ;;  %538 = vst [vmem:[%s3896_s6 + $0x130] sm:$0xff] %v537_v38  ;;  %v545_v42 = vld [vmem:[%s3888_s5 + $0x3f0] sm:$0xff]  ;;  %v547_v43 = vld [vmem:[%s3888_s5 + $0x408] sm:$0xff] }
  0x2a   : > { %540 = vst [vmem:[%s3896_s6 + $0x138] sm:$0xff] %v539_v39  ;;  %542 = vst [vmem:[%s3896_s6 + $0x140] sm:$0xff] %v541_v40  ;;  %v549_v44 = vld [vmem:[%s3888_s5 + $0x420] sm:$0xff]  ;;  %v551_v45 = vld [vmem:[%s3888_s5 + $0x438] sm:$0xff] }
  0x2b   : > { %544 = vst [vmem:[%s3896_s6 + $0x148] sm:$0xff] %v543_v41  ;;  %546 = vst [vmem:[%s3896_s6 + $0x150] sm:$0xff] %v545_v42  ;;  %v553_v46 = vld [vmem:[%s3888_s5 + $0x450] sm:$0xff]  ;;  %v555_v47 = vld [vmem:[%s3888_s5 + $0x468] sm:$0xff] }
  0x2c   : > { %548 = vst [vmem:[%s3896_s6 + $0x158] sm:$0xff] %v547_v43  ;;  %550 = vst [vmem:[%s3896_s6 + $0x160] sm:$0xff] %v549_v44  ;;  %v557_v48 = vld [vmem:[%s3888_s5 + $0x480] sm:$0xff]  ;;  %v559_v49 = vld [vmem:[%s3888_s5 + $0x498] sm:$0xff] }
  0x2d   : > { %552 = vst [vmem:[%s3896_s6 + $0x168] sm:$0xff] %v551_v45  ;;  %554 = vst [vmem:[%s3896_s6 + $0x170] sm:$0xff] %v553_v46  ;;  %v561_v50 = vld [vmem:[%s3888_s5 + $0x4b0] sm:$0xff]  ;;  %v563_v51 = vld [vmem:[%s3888_s5 + $0x4c8] sm:$0xff] }
  0x2e   : > { %556 = vst [vmem:[%s3896_s6 + $0x178] sm:$0xff] %v555_v47  ;;  %558 = vst [vmem:[%s3896_s6 + $0x180] sm:$0xff] %v557_v48  ;;  %v565_v52 = vld [vmem:[%s3888_s5 + $0x4e0] sm:$0xff]  ;;  %v567_v53 = vld [vmem:[%s3888_s5 + $0x4f8] sm:$0xff] }
  0x2f   : > { %560 = vst [vmem:[%s3896_s6 + $0x188] sm:$0xff] %v559_v49  ;;  %562 = vst [vmem:[%s3896_s6 + $0x190] sm:$0xff] %v561_v50  ;;  %v569_v54 = vld [vmem:[%s3888_s5 + $0x510] sm:$0xff]  ;;  %v571_v55 = vld [vmem:[%s3888_s5 + $0x528] sm:$0xff] }
  0x30   : > { %564 = vst [vmem:[%s3896_s6 + $0x198] sm:$0xff] %v563_v51  ;;  %566 = vst [vmem:[%s3896_s6 + $0x1a0] sm:$0xff] %v565_v52  ;;  %v573_v56 = vld [vmem:[%s3888_s5 + $0x540] sm:$0xff]  ;;  %v575_v57 = vld [vmem:[%s3888_s5 + $0x558] sm:$0xff] }
  0x31   : > { %568 = vst [vmem:[%s3896_s6 + $0x1a8] sm:$0xff] %v567_v53  ;;  %570 = vst [vmem:[%s3896_s6 + $0x1b0] sm:$0xff] %v569_v54  ;;  %v577_v58 = vld [vmem:[%s3888_s5 + $0x570] sm:$0xff]  ;;  %v579_v59 = vld [vmem:[%s3888_s5 + $0x588] sm:$0xff] }
  0x32   : > { %572 = vst [vmem:[%s3896_s6 + $0x1b8] sm:$0xff] %v571_v55  ;;  %574 = vst [vmem:[%s3896_s6 + $0x1c0] sm:$0xff] %v573_v56  ;;  %v581_v60 = vld [vmem:[%s3888_s5 + $0x5a0] sm:$0xff]  ;;  %v583_v61 = vld [vmem:[%s3888_s5 + $0x5b8] sm:$0xff] }
  0x33   : > { %576 = vst [vmem:[%s3896_s6 + $0x1c8] sm:$0xff] %v575_v57  ;;  %578 = vst [vmem:[%s3896_s6 + $0x1d0] sm:$0xff] %v577_v58  ;;  %v585_v62 = vld [vmem:[%s3888_s5 + $0x5d0] sm:$0xff]  ;;  %v587_v63 = vld [vmem:[%s3888_s5 + $0x5e8] sm:$0xff] }
  0x34   : > { %580 = vst [vmem:[%s3896_s6 + $0x1d8] sm:$0xff] %v579_v59  ;;  %582 = vst [vmem:[%s3896_s6 + $0x1e0] sm:$0xff] %v581_v60  ;;  %v589_v0 = vld [vmem:[%s3888_s5 + $0x600] sm:$0xff]  ;;  %v591_v1 = vld [vmem:[%s3888_s5 + $0x618] sm:$0xff] }
  0x35   : > { %584 = vst [vmem:[%s3896_s6 + $0x1e8] sm:$0xff] %v583_v61  ;;  %586 = vst [vmem:[%s3896_s6 + $0x1f0] sm:$0xff] %v585_v62  ;;  %v593_v2 = vld [vmem:[%s3888_s5 + $0x630] sm:$0xff]  ;;  %v595_v3 = vld [vmem:[%s3888_s5 + $0x648] sm:$0xff] }
  0x36   : > { %588 = vst [vmem:[%s3896_s6 + $0x1f8] sm:$0xff] %v587_v63  ;;  %590 = vst [vmem:[%s3896_s6 + $0x200] sm:$0xff] %v589_v0  ;;  %v597_v4 = vld [vmem:[%s3888_s5 + $0x660] sm:$0xff]  ;;  %v599_v5 = vld [vmem:[%s3888_s5 + $0x678] sm:$0xff] }
  0x37   : > { %592 = vst [vmem:[%s3896_s6 + $0x208] sm:$0xff] %v591_v1  ;;  %594 = vst [vmem:[%s3896_s6 + $0x210] sm:$0xff] %v593_v2  ;;  %v601_v6 = vld [vmem:[%s3888_s5 + $0x690] sm:$0xff]  ;;  %v603_v7 = vld [vmem:[%s3888_s5 + $0x6a8] sm:$0xff] }
  0x38   : > { %596 = vst [vmem:[%s3896_s6 + $0x218] sm:$0xff] %v595_v3  ;;  %598 = vst [vmem:[%s3896_s6 + $0x220] sm:$0xff] %v597_v4  ;;  %v605_v8 = vld [vmem:[%s3888_s5 + $0x6c0] sm:$0xff]  ;;  %v607_v9 = vld [vmem:[%s3888_s5 + $0x6d8] sm:$0xff] }
  0x39   : > { %600 = vst [vmem:[%s3896_s6 + $0x228] sm:$0xff] %v599_v5  ;;  %602 = vst [vmem:[%s3896_s6 + $0x230] sm:$0xff] %v601_v6  ;;  %v609_v10 = vld [vmem:[%s3888_s5 + $0x6f0] sm:$0xff]  ;;  %v611_v11 = vld [vmem:[%s3888_s5 + $0x708] sm:$0xff] }
  0x3a   : > { %604 = vst [vmem:[%s3896_s6 + $0x238] sm:$0xff] %v603_v7  ;;  %606 = vst [vmem:[%s3896_s6 + $0x240] sm:$0xff] %v605_v8  ;;  %v613_v12 = vld [vmem:[%s3888_s5 + $0x720] sm:$0xff]  ;;  %v615_v13 = vld [vmem:[%s3888_s5 + $0x738] sm:$0xff] }
  0x3b   : > { %608 = vst [vmem:[%s3896_s6 + $0x248] sm:$0xff] %v607_v9  ;;  %610 = vst [vmem:[%s3896_s6 + $0x250] sm:$0xff] %v609_v10  ;;  %v617_v14 = vld [vmem:[%s3888_s5 + $0x750] sm:$0xff]  ;;  %v619_v15 = vld [vmem:[%s3888_s5 + $0x768] sm:$0xff] }
  0x3c   : > { %612 = vst [vmem:[%s3896_s6 + $0x258] sm:$0xff] %v611_v11  ;;  %614 = vst [vmem:[%s3896_s6 + $0x260] sm:$0xff] %v613_v12  ;;  %v621_v16 = vld [vmem:[%s3888_s5 + $0x780] sm:$0xff]  ;;  %v623_v17 = vld [vmem:[%s3888_s5 + $0x798] sm:$0xff] }
  0x3d   : > { %616 = vst [vmem:[%s3896_s6 + $0x268] sm:$0xff] %v615_v13  ;;  %618 = vst [vmem:[%s3896_s6 + $0x270] sm:$0xff] %v617_v14  ;;  %v625_v18 = vld [vmem:[%s3888_s5 + $0x7b0] sm:$0xff]  ;;  %v627_v19 = vld [vmem:[%s3888_s5 + $0x7c8] sm:$0xff] }
  0x3e   : > { %620 = vst [vmem:[%s3896_s6 + $0x278] sm:$0xff] %v619_v15  ;;  %622 = vst [vmem:[%s3896_s6 + $0x280] sm:$0xff] %v621_v16  ;;  %v629_v20 = vld [vmem:[%s3888_s5 + $0x7e0] sm:$0xff]  ;;  %v631_v21 = vld [vmem:[%s3888_s5 + $0x7f8] sm:$0xff] }
  0x3f   : > { %624 = vst [vmem:[%s3896_s6 + $0x288] sm:$0xff] %v623_v17  ;;  %626 = vst [vmem:[%s3896_s6 + $0x290] sm:$0xff] %v625_v18  ;;  %v633_v22 = vld [vmem:[%s3888_s5 + $0x810] sm:$0xff]  ;;  %v635_v23 = vld [vmem:[%s3888_s5 + $0x828] sm:$0xff] }
  0x40   : > { %628 = vst [vmem:[%s3896_s6 + $0x298] sm:$0xff] %v627_v19  ;;  %630 = vst [vmem:[%s3896_s6 + $0x2a0] sm:$0xff] %v629_v20  ;;  %v637_v24 = vld [vmem:[%s3888_s5 + $0x840] sm:$0xff]  ;;  %v639_v25 = vld [vmem:[%s3888_s5 + $0x858] sm:$0xff] }
  0x41   : > { %632 = vst [vmem:[%s3896_s6 + $0x2a8] sm:$0xff] %v631_v21  ;;  %634 = vst [vmem:[%s3896_s6 + $0x2b0] sm:$0xff] %v633_v22  ;;  %v641_v26 = vld [vmem:[%s3888_s5 + $0x870] sm:$0xff]  ;;  %v643_v27 = vld [vmem:[%s3888_s5 + $0x888] sm:$0xff] }
  0x42   : > { %636 = vst [vmem:[%s3896_s6 + $0x2b8] sm:$0xff] %v635_v23  ;;  %638 = vst [vmem:[%s3896_s6 + $0x2c0] sm:$0xff] %v637_v24  ;;  %v645_v28 = vld [vmem:[%s3888_s5 + $0x8a0] sm:$0xff]  ;;  %v647_v29 = vld [vmem:[%s3888_s5 + $0x8b8] sm:$0xff] }
  0x43   : > { %640 = vst [vmem:[%s3896_s6 + $0x2c8] sm:$0xff] %v639_v25  ;;  %642 = vst [vmem:[%s3896_s6 + $0x2d0] sm:$0xff] %v641_v26  ;;  %v649_v30 = vld [vmem:[%s3888_s5 + $0x8d0] sm:$0xff]  ;;  %v651_v31 = vld [vmem:[%s3888_s5 + $0x8e8] sm:$0xff] }
  0x44   : > { %644 = vst [vmem:[%s3896_s6 + $0x2d8] sm:$0xff] %v643_v27  ;;  %646 = vst [vmem:[%s3896_s6 + $0x2e0] sm:$0xff] %v645_v28  ;;  %v653_v32 = vld [vmem:[%s3888_s5 + $0x900] sm:$0xff]  ;;  %v655_v33 = vld [vmem:[%s3888_s5 + $0x918] sm:$0xff] }
  0x45   : > { %648 = vst [vmem:[%s3896_s6 + $0x2e8] sm:$0xff] %v647_v29  ;;  %650 = vst [vmem:[%s3896_s6 + $0x2f0] sm:$0xff] %v649_v30  ;;  %v657_v34 = vld [vmem:[%s3888_s5 + $0x930] sm:$0xff]  ;;  %v659_v35 = vld [vmem:[%s3888_s5 + $0x948] sm:$0xff] }
  0x46   : > { %652 = vst [vmem:[%s3896_s6 + $0x2f8] sm:$0xff] %v651_v31  ;;  %654 = vst [vmem:[%s3896_s6 + $0x300] sm:$0xff] %v653_v32  ;;  %v661_v36 = vld [vmem:[%s3888_s5 + $0x960] sm:$0xff]  ;;  %v663_v37 = vld [vmem:[%s3888_s5 + $0x978] sm:$0xff] }
  0x47   : > { %656 = vst [vmem:[%s3896_s6 + $0x308] sm:$0xff] %v655_v33  ;;  %658 = vst [vmem:[%s3896_s6 + $0x310] sm:$0xff] %v657_v34  ;;  %v665_v38 = vld [vmem:[%s3888_s5 + $0x990] sm:$0xff]  ;;  %v667_v39 = vld [vmem:[%s3888_s5 + $0x9a8] sm:$0xff] }
  0x48   : > { %660 = vst [vmem:[%s3896_s6 + $0x318] sm:$0xff] %v659_v35  ;;  %662 = vst [vmem:[%s3896_s6 + $0x320] sm:$0xff] %v661_v36  ;;  %v669_v40 = vld [vmem:[%s3888_s5 + $0x9c0] sm:$0xff]  ;;  %v671_v41 = vld [vmem:[%s3888_s5 + $0x9d8] sm:$0xff] }
  0x49   : > { %664 = vst [vmem:[%s3896_s6 + $0x328] sm:$0xff] %v663_v37  ;;  %666 = vst [vmem:[%s3896_s6 + $0x330] sm:$0xff] %v665_v38  ;;  %v673_v42 = vld [vmem:[%s3888_s5 + $0x9f0] sm:$0xff]  ;;  %v675_v43 = vld [vmem:[%s3888_s5 + $0xa08] sm:$0xff] }
  0x4a   : > { %668 = vst [vmem:[%s3896_s6 + $0x338] sm:$0xff] %v667_v39  ;;  %670 = vst [vmem:[%s3896_s6 + $0x340] sm:$0xff] %v669_v40  ;;  %v677_v44 = vld [vmem:[%s3888_s5 + $0xa20] sm:$0xff]  ;;  %v679_v45 = vld [vmem:[%s3888_s5 + $0xa38] sm:$0xff] }
  0x4b   : > { %672 = vst [vmem:[%s3896_s6 + $0x348] sm:$0xff] %v671_v41  ;;  %674 = vst [vmem:[%s3896_s6 + $0x350] sm:$0xff] %v673_v42  ;;  %v681_v46 = vld [vmem:[%s3888_s5 + $0xa50] sm:$0xff]  ;;  %v683_v47 = vld [vmem:[%s3888_s5 + $0xa68] sm:$0xff] }
  0x4c   : > { %676 = vst [vmem:[%s3896_s6 + $0x358] sm:$0xff] %v675_v43  ;;  %678 = vst [vmem:[%s3896_s6 + $0x360] sm:$0xff] %v677_v44 }
  0x4d   : > { %680 = vst [vmem:[%s3896_s6 + $0x368] sm:$0xff] %v679_v45  ;;  %682 = vst [vmem:[%s3896_s6 + $0x370] sm:$0xff] %v681_v46 }
  0x4e   : > { %684 = vst [vmem:[%s3896_s6 + $0x378] sm:$0xff] %v683_v47 }
  0x4f PF: > { %p3127_p8 = scmp.ge.s32.totalorder %s3812_s19, 1  ;;  %p705_p9 = scmp.lt.s32.totalorder %s3812_s19, 4 }
  0x51   : > { %p706_p10 = pnand %p3127_p8, %p705_p9 }
  0x52   : > { %s712_s7 = sand.u32 (!%p706_p10), 1, %s3796_s15   ;;  %v3597_v48 = vld [vmem:[%s4720_s0 + $0x4] ss:$28 sps:$4 sm:$0xff] (!%p706_p10)   ;;  %v3600_v49 = vld [vmem:[%s4720_s0 + $0x14] ss:$28 sps:$4 sm:$0xff] (!%p706_p10)  }
  0x53   : > { %709 = sbr.rel (%p706_p10) target bundleno = 551 (0x227), region = 70  ;;  %2042 = vmatprep.mubr.bf16.mxu1 (!%p706_p10), %v3597_v48  ;;  %2324 = vmatprep.mubr.bf16.mxu0 (!%p706_p10), %v3600_v49 }
  0x54   : > { %s3456_s8 = smul.u32 (!%p706_p10), 896, %s712_s7 }
  0x55   : > { %s3457_s22 = smul.u32 (!%p706_p10), 336, %s712_s7 }
  0x56   : > { %s4127_s13 = scalar_lea.vmem (!%p706_p10), [#allocation3], %s3456_s8  ;;  %s3128_s8 = sshll.u32 (!%p706_p10), %s3804_s17, 1 }
  0x57   : > { %v3499_v50 = vld [vmem:[%s4127_s13 + $0x4] ss:$8 sps:$4 sm:$0xff] (!%p706_p10)   ;;  %v3503_v52 = vld [vmem:[%s4127_s13] ss:$8 sps:$4 sm:$0xff] (!%p706_p10)   ;;  %v3505_v54 = vld [vmem:[%s4127_s13 + $0x14] ss:$8 sps:$4 sm:$0xff] (!%p706_p10)  }
  0x58   : > { %v3501_v51 = vld [vmem:[%s4127_s13 + $0x204] ss:$8 sps:$4 sm:$0xff] (!%p706_p10)   ;;  %2010 = vmatprep.subr.bf16.mxu1 (!%p706_p10), %v3499_v50  ;;  %v3504_v53 = vld [vmem:[%s4127_s13 + $0x200] ss:$8 sps:$4 sm:$0xff] (!%p706_p10)   ;;  %v3507_v55 = vld [vmem:[%s4127_s13 + $0x214] ss:$8 sps:$4 sm:$0xff] (!%p706_p10)  }
  0x59   : > { %2292 = vmatprep.subr.bf16.mxu0 (!%p706_p10), %v3501_v51  ;;  %2011 = vmatpush1.bf16.msra.mxu1 (!%p706_p10), %v3503_v52  ;;  %v3509_v56 = vld [vmem:[%s4127_s13 + $0x10] ss:$8 sps:$4 sm:$0xff] (!%p706_p10)   ;;  %v3511_v58 = vld [vmem:[%s4127_s13 + $0x24] ss:$8 sps:$4 sm:$0xff] (!%p706_p10)   ;;  %v3515_v60 = vld [vmem:[%s4127_s13 + $0x20] ss:$8 sps:$4 sm:$0xff] (!%p706_p10)  }
  0x5a   : > { %2293 = vmatpush1.bf16.msra.mxu0 %v3504_v53  ;;  %2012 = vmatprep.subr.bf16.mxu1 %v3505_v54  ;;  %v3510_v57 = vld [vmem:[%s4127_s13 + $0x210] ss:$8 sps:$4 sm:$0xff]   ;;  %v3513_v59 = vld [vmem:[%s4127_s13 + $0x224] ss:$8 sps:$4 sm:$0xff]   ;;  %v3516_v61 = vld [vmem:[%s4127_s13 + $0x220] ss:$8 sps:$4 sm:$0xff]  }
  0x5b   : > { %2294 = vmatprep.subr.bf16.mxu0 %v3507_v55  ;;  %v3517_v62 = vld [vmem:[%s4127_s13 + $0x34] ss:$8 sps:$4 sm:$0xff]   ;;  %v3521_v0 = vld [vmem:[%s4127_s13 + $0x30] ss:$8 sps:$4 sm:$0xff]   ;;  %v3523_v2 = vld [vmem:[%s4127_s13 + $0x44] ss:$8 sps:$4 sm:$0xff]  }
  0x5c   : > { %v3519_v63 = vld [vmem:[%s4127_s13 + $0x234] ss:$8 sps:$4 sm:$0xff]   ;;  %v3522_v1 = vld [vmem:[%s4127_s13 + $0x230] ss:$8 sps:$4 sm:$0xff]   ;;  %v3525_v3 = vld [vmem:[%s4127_s13 + $0x244] ss:$8 sps:$4 sm:$0xff]  }
  0x5d   : > { %2013 = vmatpush1.bf16.msra.mxu1 %v3509_v56  ;;  %v3527_v4 = vld [vmem:[%s4127_s13 + $0x40] ss:$8 sps:$4 sm:$0xff]   ;;  %v3529_v6 = vld [vmem:[%s4127_s13 + $0x54] ss:$8 sps:$4 sm:$0xff]   ;;  %v3533_v8 = vld [vmem:[%s4127_s13 + $0x50] ss:$8 sps:$4 sm:$0xff]  }
  0x5e   : > { %2295 = vmatpush1.bf16.msra.mxu0 %v3510_v57  ;;  %2014 = vmatprep.subr.bf16.mxu1 %v3511_v58  ;;  %v3528_v5 = vld [vmem:[%s4127_s13 + $0x240] ss:$8 sps:$4 sm:$0xff]   ;;  %v3531_v7 = vld [vmem:[%s4127_s13 + $0x254] ss:$8 sps:$4 sm:$0xff]   ;;  %v3534_v9 = vld [vmem:[%s4127_s13 + $0x250] ss:$8 sps:$4 sm:$0xff]  }
  0x5f   : > { %2296 = vmatprep.subr.bf16.mxu0 %v3513_v59  ;;  %v3535_v10 = vld [vmem:[%s4127_s13 + $0x64] ss:$8 sps:$4 sm:$0xff]   ;;  %v3539_v12 = vld [vmem:[%s4127_s13 + $0x60] ss:$8 sps:$4 sm:$0xff]   ;;  %v3541_v14 = vld [vmem:[%s4127_s13 + $0x74] ss:$8 sps:$4 sm:$0xff]  }
  0x60   : > { %v3537_v11 = vld [vmem:[%s4127_s13 + $0x264] ss:$8 sps:$4 sm:$0xff]   ;;  %v3540_v13 = vld [vmem:[%s4127_s13 + $0x260] ss:$8 sps:$4 sm:$0xff]   ;;  %v3543_v15 = vld [vmem:[%s4127_s13 + $0x274] ss:$8 sps:$4 sm:$0xff]  }
  0x61   : > { %2015 = vmatpush1.bf16.msra.mxu1 %v3515_v60  ;;  %v3545_v16 = vld [vmem:[%s4127_s13 + $0x70] ss:$8 sps:$4 sm:$0xff]   ;;  %v3547_v18 = vld [vmem:[%s4127_s13 + $0x84] ss:$8 sps:$4 sm:$0xff]   ;;  %v3551_v20 = vld [vmem:[%s4127_s13 + $0x80] ss:$8 sps:$4 sm:$0xff]  }
  0x62   : > { %2297 = vmatpush1.bf16.msra.mxu0 %v3516_v61  ;;  %2016 = vmatprep.subr.bf16.mxu1 %v3517_v62  ;;  %v3546_v17 = vld [vmem:[%s4127_s13 + $0x270] ss:$8 sps:$4 sm:$0xff]   ;;  %v3549_v19 = vld [vmem:[%s4127_s13 + $0x284] ss:$8 sps:$4 sm:$0xff]   ;;  %v3552_v21 = vld [vmem:[%s4127_s13 + $0x280] ss:$8 sps:$4 sm:$0xff]  }
  0x63   : > { %2298 = vmatprep.subr.bf16.mxu0 %v3519_v63  ;;  %v3553_v22 = vld [vmem:[%s4127_s13 + $0x94] ss:$8 sps:$4 sm:$0xff]   ;;  %v3557_v24 = vld [vmem:[%s4127_s13 + $0x90] ss:$8 sps:$4 sm:$0xff]   ;;  %v3559_v26 = vld [vmem:[%s4127_s13 + $0xa4] ss:$8 sps:$4 sm:$0xff]  }
  0x64   : > { %v3555_v23 = vld [vmem:[%s4127_s13 + $0x294] ss:$8 sps:$4 sm:$0xff]   ;;  %v3558_v25 = vld [vmem:[%s4127_s13 + $0x290] ss:$8 sps:$4 sm:$0xff]   ;;  %v3561_v27 = vld [vmem:[%s4127_s13 + $0x2a4] ss:$8 sps:$4 sm:$0xff]  }
  0x65   : > { %2017 = vmatpush1.bf16.msra.mxu1 %v3521_v0  ;;  %v3563_v28 = vld [vmem:[%s4127_s13 + $0xa0] ss:$8 sps:$4 sm:$0xff]   ;;  %v3565_v30 = vld [vmem:[%s4127_s13 + $0xb4] ss:$8 sps:$4 sm:$0xff]   ;;  %v3569_v32 = vld [vmem:[%s4127_s13 + $0xb0] ss:$8 sps:$4 sm:$0xff]  }
  0x66   : > { %2299 = vmatpush1.bf16.msra.mxu0 %v3522_v1  ;;  %2018 = vmatprep.subr.bf16.mxu1 %v3523_v2  ;;  %v3564_v29 = vld [vmem:[%s4127_s13 + $0x2a0] ss:$8 sps:$4 sm:$0xff]   ;;  %v3567_v31 = vld [vmem:[%s4127_s13 + $0x2b4] ss:$8 sps:$4 sm:$0xff]   ;;  %v3570_v33 = vld [vmem:[%s4127_s13 + $0x2b0] ss:$8 sps:$4 sm:$0xff]  }
  0x67   : > { %2300 = vmatprep.subr.bf16.mxu0 %v3525_v3  ;;  %v3571_v34 = vld [vmem:[%s4127_s13 + $0xc4] ss:$8 sps:$4 sm:$0xff]   ;;  %v3575_v36 = vld [vmem:[%s4127_s13 + $0xc0] ss:$8 sps:$4 sm:$0xff]   ;;  %v3577_v38 = vld [vmem:[%s4127_s13 + $0xd4] ss:$8 sps:$4 sm:$0xff]  }
  0x68   : > { %v3573_v35 = vld [vmem:[%s4127_s13 + $0x2c4] ss:$8 sps:$4 sm:$0xff]   ;;  %v3576_v37 = vld [vmem:[%s4127_s13 + $0x2c0] ss:$8 sps:$4 sm:$0xff]   ;;  %v3579_v39 = vld [vmem:[%s4127_s13 + $0x2d4] ss:$8 sps:$4 sm:$0xff]  }
  0x69   : > { %2019 = vmatpush1.bf16.msra.mxu1 %v3527_v4  ;;  %v3581_v40 = vld [vmem:[%s4127_s13 + $0xd0] ss:$8 sps:$4 sm:$0xff]   ;;  %v3583_v42 = vld [vmem:[%s4127_s13 + $0xe4] ss:$8 sps:$4 sm:$0xff]   ;;  %v3587_v44 = vld [vmem:[%s4127_s13 + $0xe0] ss:$8 sps:$4 sm:$0xff]  }
  0x6a   : > { %2301 = vmatpush1.bf16.msra.mxu0 %v3528_v5  ;;  %2020 = vmatprep.subr.bf16.mxu1 %v3529_v6  ;;  %v3582_v41 = vld [vmem:[%s4127_s13 + $0x2d0] ss:$8 sps:$4 sm:$0xff]   ;;  %v3585_v43 = vld [vmem:[%s4127_s13 + $0x2e4] ss:$8 sps:$4 sm:$0xff]   ;;  %v3588_v45 = vld [vmem:[%s4127_s13 + $0x2e0] ss:$8 sps:$4 sm:$0xff]  }
  0x6b   : > { %2302 = vmatprep.subr.bf16.mxu0 %v3531_v7  ;;  %v3589_v46 = vld [vmem:[%s4127_s13 + $0xf4] ss:$8 sps:$4 sm:$0xff]   ;;  %v3593_v48 = vld [vmem:[%s4127_s13 + $0xf0] ss:$8 sps:$4 sm:$0xff]   ;;  %v3603_v50 = vld [vmem:[%s4127_s13 + $0x104] ss:$8 sps:$4 sm:$0xff]  }
  0x6c   : > { %v3591_v47 = vld [vmem:[%s4127_s13 + $0x2f4] ss:$8 sps:$4 sm:$0xff]   ;;  %v3594_v49 = vld [vmem:[%s4127_s13 + $0x2f0] ss:$8 sps:$4 sm:$0xff]   ;;  %v3606_v51 = vld [vmem:[%s4127_s13 + $0x304] ss:$8 sps:$4 sm:$0xff]  }
  0x6d   : > { %2021 = vmatpush1.bf16.msra.mxu1 %v3533_v8  ;;  %v3595_v52 = vld [vmem:[%s4720_s0] ss:$28 sps:$4 sm:$0xff]   ;;  %v3598_v53 = vld [vmem:[%s4720_s0 + $0x10] ss:$28 sps:$4 sm:$0xff]   ;;  %v3614_v0 = vld [vmem:[%s4720_s0 + $0x38] ss:$28 sps:$4 sm:$0xff]  }
  0x6e   : > { %2303 = vmatpush1.bf16.msra.mxu0 %v3534_v9  ;;  %2022 = vmatprep.subr.bf16.mxu1 %v3535_v10  ;;  %v3601_v54 = vld [vmem:[%s4127_s13 + $0x100] ss:$8 sps:$4 sm:$0xff]   ;;  %v3610_v55 = vld [vmem:[%s4720_s0 + $0x3c] ss:$28 sps:$4 sm:$0xff]   ;;  %v3618_v61 = vld [vmem:[%s4127_s13 + $0x124] ss:$8 sps:$4 sm:$0xff]  }
  0x6f   : > { %2304 = vmatprep.subr.bf16.mxu0 %v3537_v11  ;;  %v3604_v56 = vld [vmem:[%s4127_s13 + $0x300] ss:$8 sps:$4 sm:$0xff]   ;;  %v3609_v57 = vld [vmem:[%s4127_s13 + $0x114] ss:$8 sps:$4 sm:$0xff]   ;;  %v3607_v60 = vld [vmem:[%s4127_s13 + $0x110] ss:$8 sps:$4 sm:$0xff]  }
  0x70   : > { %v3612_v58 = vld [vmem:[%s4720_s0 + $0x4c] ss:$28 sps:$4 sm:$0xff]   ;;  %v3621_v59 = vld [vmem:[%s4127_s13 + $0x314] ss:$8 sps:$4 sm:$0xff]   ;;  %v3619_v62 = vld [vmem:[%s4127_s13 + $0x310] ss:$8 sps:$4 sm:$0xff]  }
  0x71   : > { %2023 = vmatpush1.bf16.msra.mxu1 %v3539_v12  ;;  %v3636_v63 = vld [vmem:[%s4127_s13 + $0x324] ss:$8 sps:$4 sm:$0xff]   ;;  %v3616_v2 = vld [vmem:[%s4127_s13 + $0x120] ss:$8 sps:$4 sm:$0xff]   ;;  %v3622_v3 = vld [vmem:[%s4720_s0 + $0x74] ss:$28 sps:$4 sm:$0xff]  }
  0x72   : > { %2305 = vmatpush1.bf16.msra.mxu0 %v3540_v13  ;;  %2024 = vmatprep.subr.bf16.mxu1 %v3541_v14  ;;  %v3615_v1 = vld [vmem:[%s4720_s0 + $0x48] ss:$28 sps:$4 sm:$0xff]   ;;  %v3630_v5 = vld [vmem:[%s4127_s13 + $0x134] ss:$8 sps:$4 sm:$0xff]   ;;  %v3628_v8 = vld [vmem:[%s4127_s13 + $0x130] ss:$8 sps:$4 sm:$0xff]  }
  0x73   : > { %2306 = vmatprep.subr.bf16.mxu0 %v3543_v15  ;;  %v3624_v4 = vld [vmem:[%s4720_s0 + $0x84] ss:$28 sps:$4 sm:$0xff]   ;;  %v3657_v7 = vld [vmem:[%s4127_s13 + $0x334] ss:$8 sps:$4 sm:$0xff]   ;;  %v3626_v9 = vld [vmem:[%s4720_s0 + $0x70] ss:$28 sps:$4 sm:$0xff]  }
  0x74   : > { %v3634_v6 = vld [vmem:[%s4127_s13 + $0x320] ss:$8 sps:$4 sm:$0xff]   ;;  %v3633_v10 = vld [vmem:[%s4127_s13 + $0x144] ss:$8 sps:$4 sm:$0xff]   ;;  %v3655_v11 = vld [vmem:[%s4127_s13 + $0x330] ss:$8 sps:$4 sm:$0xff]  }
  0x75   : > { %2025 = vmatpush1.bf16.msra.mxu1 %v3545_v16  ;;  %v3627_v12 = vld [vmem:[%s4720_s0 + $0x80] ss:$28 sps:$4 sm:$0xff]   ;;  %v3637_v14 = vld [vmem:[%s4720_s0 + $0xac] ss:$28 sps:$4 sm:$0xff]   ;;  %p769_p11 = scmp.lt.s32.totalorder %s3128_s8, 5  ;;  %s4493_s15 = scalar_lea.vmem [#allocation4], %s3457_s22 }
  0x76   : > { %2307 = vmatpush1.bf16.msra.mxu0 %v3546_v17  ;;  %2026 = vmatprep.subr.bf16.mxu1 %v3547_v18  ;;  %v3631_v13 = vld [vmem:[%s4127_s13 + $0x140] ss:$8 sps:$4 sm:$0xff]   ;;  %v3639_v15 = vld [vmem:[%s4720_s0 + $0xbc] ss:$28 sps:$4 sm:$0xff]   ;;  %v3672_v17 = vld [vmem:[%s4127_s13 + $0x344] ss:$8 sps:$4 sm:$0xff]  }
  0x77   : > { %2308 = vmatprep.subr.bf16.mxu0 %v3549_v19  ;;  %v3645_v16 = vld [vmem:[%s4127_s13 + $0x154] ss:$8 sps:$4 sm:$0xff]   ;;  %v3643_v18 = vld [vmem:[%s4127_s13 + $0x150] ss:$8 sps:$4 sm:$0xff]   ;;  %v3670_v19 = vld [vmem:[%s4127_s13 + $0x340] ss:$8 sps:$4 sm:$0xff]  }
  0x78   : > { %s4733_s8 = smov (!%p769_p11, %s3128_s8), 5  ;;  %s3324_s7 = sshll.u32 (%p3875_p6), %s3804_s17, 4 }
  0x79   : > { %2027 = vmatpush1.bf16.msra.mxu1 %v3551_v20  ;;  %v3691_v20 = vld [vmem:[%s4127_s13 + $0x354] ss:$8 sps:$4 sm:$0xff]   ;;  %s771_s11 = scalar_lea.vmem %s4722_s2, %s4733_s8  ;;  %s776_s21 = scalar_lea.vmem %s4723_s3, %s4733_s8 }
  0x7a   : > { %2309 = vmatpush1.bf16.msra.mxu0 %v3552_v21  ;;  %2028 = vmatprep.subr.bf16.mxu1 %v3553_v22  ;;  %v3641_v21 = vld [vmem:[%s4720_s0 + $0xa8] ss:$28 sps:$4 sm:$0xff]   ;;  %s4622_s27 = scalar_lea.vmem (%p3875_p6), %s4724_s4, %s3324_s7 }
  0x7b   : > { %2310 = vmatprep.subr.bf16.mxu0 %v3555_v23  ;;  %v3654_v22 = vld [vmem:[%s4127_s13 + $0x164] ss:$8 sps:$4 sm:$0xff]   ;;  %v3642_v23 = vld [vmem:[%s4720_s0 + $0xb8] ss:$28 sps:$4 sm:$0xff]  }
  0x7d   : > { %2029 = vmatpush1.bf16.msra.mxu1 %v3557_v24  ;;  %v3646_v24 = vld [vmem:[%s4720_s0 + $0xe4] ss:$28 sps:$4 sm:$0xff]  }
  0x7e   : > { %2311 = vmatpush1.bf16.msra.mxu0 %v3558_v25  ;;  %2030 = vmatprep.subr.bf16.mxu1 %v3559_v26  ;;  %v3648_v25 = vld [vmem:[%s4720_s0 + $0xf4] ss:$28 sps:$4 sm:$0xff]   ;;  %v3652_v26 = vld [vmem:[%s4127_s13 + $0x160] ss:$8 sps:$4 sm:$0xff]  }
  0x7f   : > { %2312 = vmatprep.subr.bf16.mxu0 %v3561_v27  ;;  %v3662_v27 = vld [vmem:[%s4127_s13 + $0x174] ss:$8 sps:$4 sm:$0xff]  }
  0x81   : > { %2031 = vmatpush1.bf16.msra.mxu1 %v3563_v28  ;;  %v3689_v28 = vld [vmem:[%s4127_s13 + $0x350] ss:$8 sps:$4 sm:$0xff]  }
  0x82   : > { %2313 = vmatpush1.bf16.msra.mxu0 %v3564_v29  ;;  %2032 = vmatprep.subr.bf16.mxu1 %v3565_v30  ;;  %v3708_v29 = vld [vmem:[%s4127_s13 + $0x364] ss:$8 sps:$4 sm:$0xff]   ;;  %v3660_v30 = vld [vmem:[%s4127_s13 + $0x170] ss:$8 sps:$4 sm:$0xff]  }
  0x83   : > { %2314 = vmatprep.subr.bf16.mxu0 %v3567_v31  ;;  %v3706_v31 = vld [vmem:[%s4127_s13 + $0x360] ss:$8 sps:$4 sm:$0xff]  }
  0x85   : > { %2033 = vmatpush1.bf16.msra.mxu1 %v3569_v32  ;;  %v3650_v32 = vld [vmem:[%s4720_s0 + $0xe0] ss:$28 sps:$4 sm:$0xff]  }
  0x86   : > { %2315 = vmatpush1.bf16.msra.mxu0 %v3570_v33  ;;  %2034 = vmatprep.subr.bf16.mxu1 %v3571_v34  ;;  %v3669_v33 = vld [vmem:[%s4127_s13 + $0x184] ss:$8 sps:$4 sm:$0xff]  }
  0x87   : > { %2316 = vmatprep.subr.bf16.mxu0 %v3573_v35  ;;  %v3651_v34 = vld [vmem:[%s4720_s0 + $0xf0] ss:$28 sps:$4 sm:$0xff]   ;;  %v3723_v35 = vld [vmem:[%s4127_s13 + $0x374] ss:$8 sps:$4 sm:$0xff]  }
  0x89   : > { %2035 = vmatpush1.bf16.msra.mxu1 %v3575_v36  ;;  %v3658_v36 = vld [vmem:[%s4720_s0 + $0x11c] ss:$28 sps:$4 sm:$0xff]  }
  0x8a   : > { %2317 = vmatpush1.bf16.msra.mxu0 %v3576_v37  ;;  %2036 = vmatprep.subr.bf16.mxu1 %v3577_v38  ;;  %v3663_v37 = vld [vmem:[%s4720_s0 + $0x12c] ss:$28 sps:$4 sm:$0xff]  }
  0x8b   : > { %2318 = vmatprep.subr.bf16.mxu0 %v3579_v39  ;;  %v3667_v38 = vld [vmem:[%s4127_s13 + $0x180] ss:$8 sps:$4 sm:$0xff]   ;;  %v3721_v39 = vld [vmem:[%s4127_s13 + $0x370] ss:$8 sps:$4 sm:$0xff]  }
  0x8d   : > { %2037 = vmatpush1.bf16.msra.mxu1 %v3581_v40  ;;  %v3681_v40 = vld [vmem:[%s4127_s13 + $0x194] ss:$8 sps:$4 sm:$0xff]  }
  0x8e   : > { %2319 = vmatpush1.bf16.msra.mxu0 %v3582_v41  ;;  %2038 = vmatprep.subr.bf16.mxu1 %v3583_v42  ;;  %v3665_v41 = vld [vmem:[%s4720_s0 + $0x118] ss:$28 sps:$4 sm:$0xff]  }
  0x8f   : > { %2320 = vmatprep.subr.bf16.mxu0 %v3585_v43  ;;  %v3679_v42 = vld [vmem:[%s4127_s13 + $0x190] ss:$8 sps:$4 sm:$0xff]   ;;  %v3686_v43 = vld [vmem:[%s4127_s13 + $0x1a4] ss:$8 sps:$4 sm:$0xff]  }
  0x91   : > { %2039 = vmatpush1.bf16.msra.mxu1 %v3587_v44  ;;  %v3666_v44 = vld [vmem:[%s4720_s0 + $0x128] ss:$28 sps:$4 sm:$0xff]  }
  0x92   : > { %2321 = vmatpush1.bf16.msra.mxu0 %v3588_v45  ;;  %2040 = vmatprep.subr.bf16.mxu1 %v3589_v46  ;;  %v3673_v45 = vld [vmem:[%s4720_s0 + $0x154] ss:$28 sps:$4 sm:$0xff]   ;;  %v3675_v46 = vld [vmem:[%s4720_s0 + $0x164] ss:$28 sps:$4 sm:$0xff]  }
  0x93   : > { %2322 = vmatprep.subr.bf16.mxu0 %v3591_v47  ;;  %v3684_v47 = vld [vmem:[%s4127_s13 + $0x1a0] ss:$8 sps:$4 sm:$0xff]  }
  0x95   : > { %2041 = vmatpush1.bf16.msra.mxu1 %v3593_v48  ;;  %v3696_v48 = vld [vmem:[%s4127_s13 + $0x1b4] ss:$8 sps:$4 sm:$0xff]  }
  0x96   : > { %2323 = vmatpush1.bf16.msra.mxu0 %v3594_v49  ;;  %2151 = vmatprep.subr.bf16.mxu1 %v3603_v50  ;;  %v3677_v49 = vld [vmem:[%s4720_s0 + $0x150] ss:$28 sps:$4 sm:$0xff]  }
  0x97   : > { %2433 = vmatprep.subr.bf16.mxu0 %v3606_v51  ;;  %v3694_v50 = vld [vmem:[%s4127_s13 + $0x1b0] ss:$8 sps:$4 sm:$0xff]   ;;  %v3678_v51 = vld [vmem:[%s4720_s0 + $0x160] ss:$28 sps:$4 sm:$0xff]  }
  0x98   : > { %2043 = vmatmul.mubr.bf16.vlgmr.msra.gmra.mrb[0].mxu1 %v3595_v52  ;;  %v3705_v52 = vld [vmem:[%s4127_s13 + $0x1c4] ss:$8 sps:$4 sm:$0xff]  }
  0x99   : > { %2325 = vmatmul.mubr.bf16.vlgmr.msra.gmra.mrb[0].mxu0 %v3598_v53  ;;  %2152 = vmatpush1.bf16.msra.mxu1 %v3601_v54  ;;  %v3682_v53 = vld [vmem:[%s4720_s0 + $0x18c] ss:$28 sps:$4 sm:$0xff]   ;;  %v3687_v54 = vld [vmem:[%s4720_s0 + $0x19c] ss:$28 sps:$4 sm:$0xff]  }
  0x9a   : > { %2434 = vmatpush1.bf16.msra.mxu0 %v3604_v56  ;;  %2153 = vmatprep.subr.bf16.mxu1 %v3609_v57  ;;  %v3716_v56 = vld [vmem:[%s4127_s13 + $0x1d4] ss:$8 sps:$4 sm:$0xff]   ;;  %v3692_v57 = vld [vmem:[%s4720_s0 + $0x188] ss:$28 sps:$4 sm:$0xff]  }
  0x9b   : > { %2052 = vmatprep.mubr.bf16.mxu1 %v3610_v55  ;;  %2334 = vmatprep.mubr.bf16.mxu0 %v3612_v58  ;;  %v3703_v55 = vld [vmem:[%s4127_s13 + $0x1c0] ss:$8 sps:$4 sm:$0xff]   ;;  %v3693_v58 = vld [vmem:[%s4720_s0 + $0x198] ss:$28 sps:$4 sm:$0xff]  }
  0x9c   : > { %2435 = vmatprep.subr.bf16.mxu0 %v3621_v59  ;;  %v3714_v59 = vld [vmem:[%s4127_s13 + $0x1d0] ss:$8 sps:$4 sm:$0xff]  }
  0x9d   : > { %2154 = vmatpush1.bf16.msra.mxu1 %v3607_v60  ;;  %v3720_v60 = vld [vmem:[%s4127_s13 + $0x1e4] ss:$8 sps:$4 sm:$0xff]  }
  0x9e   : > { %2436 = vmatpush1.bf16.msra.mxu0 %v3619_v62  ;;  %2155 = vmatprep.subr.bf16.mxu1 %v3618_v61  ;;  %v3697_v61 = vld [vmem:[%s4720_s0 + $0x1c4] ss:$28 sps:$4 sm:$0xff]   ;;  %v3699_v62 = vld [vmem:[%s4720_s0 + $0x1d4] ss:$28 sps:$4 sm:$0xff]  }
  0x9f   : > { %2437 = vmatprep.subr.bf16.mxu0 %v3636_v63  ;;  %v3718_v63 = vld [vmem:[%s4127_s13 + $0x1e0] ss:$8 sps:$4 sm:$0xff]  }
  0xa0   : > { %2053 = vmatmul.mubr.bf16.gmra.mrb[4].mxu1 %v3614_v0  ;;  %v3730_v0 = vld [vmem:[%s4127_s13 + $0x1f4] ss:$8 sps:$4 sm:$0xff]  }
  0xa1   : > { %2335 = vmatmul.mubr.bf16.gmra.mrb[4].mxu0 %v3615_v1  ;;  %2156 = vmatpush1.bf16.msra.mxu1 %v3616_v2  ;;  %v3728_v1 = vld [vmem:[%s4127_s13 + $0x1f0] ss:$8 sps:$4 sm:$0xff]   ;;  %v3701_v2 = vld [vmem:[%s4720_s0 + $0x1c0] ss:$28 sps:$4 sm:$0xff]  }
  0xa2   : > { %2062 = vmatprep.mubr.bf16.mxu1 %v3622_v3  ;;  %2344 = vmatprep.mubr.bf16.mxu0 %v3624_v4  ;;  %v3702_v3 = vld [vmem:[%s4720_s0 + $0x1d0] ss:$28 sps:$4 sm:$0xff]   ;;  %v3709_v4 = vld [vmem:[%s4720_s0 + $0x1fc] ss:$28 sps:$4 sm:$0xff]  }
  0xa3   : > { %2157 = vmatprep.subr.bf16.mxu1 %v3630_v5  ;;  %2438 = vmatpush1.bf16.msra.mxu0 %v3634_v6  ;;  %v3711_v5 = vld [vmem:[%s4720_s0 + $0x20c] ss:$28 sps:$4 sm:$0xff]   ;;  %v949_v6 = vld [vmem:[%s4720_s0 + $0x230] sm:$0xff] }
  0xa4   : > { %2439 = vmatprep.subr.bf16.mxu0 %v3657_v7  ;;  %v951_v7 = vld [vmem:[%s4720_s0 + $0x240] sm:$0xff] }
  0xa5   : > { %2158 = vmatpush1.bf16.msra.mxu1 %v3628_v8  ;;  %v3713_v8 = vld [vmem:[%s4720_s0 + $0x1f8] ss:$28 sps:$4 sm:$0xff]  }
  0xa6   : > { %2159 = vmatprep.subr.bf16.mxu1 %v3633_v10  ;;  %v3201_v10 = vcombine.high %v949_v6, %v949_v6 }
  0xa7   : > { %2440 = vmatpush1.bf16.msra.mxu0 %v3655_v11  ;;  %v3205_v11 = vcombine.high %v951_v7, %v951_v7 }
  0xa8   : > { %2063 = vmatmul.mubr.bf16.gmra.mrb[8].mxu1 %v3626_v9  ;;  %2441 = vmatprep.subr.bf16.mxu0 %v3672_v17  ;;  %v3717_v9 = vld [vmem:[%s4720_s0 + $0x208] ss:$28 sps:$4 sm:$0xff]   ;;  %v3734_v17 = vld [vmem:[%s4720_s0 + $0x18] ss:$28 sps:$4 sm:$0xff]  }
  0xa9   : > { %2345 = vmatmul.mubr.bf16.gmra.mrb[8].mxu0 %v3627_v12  ;;  %2072 = vmatprep.mubr.bf16.mxu1 %v3637_v14  ;;  %v3200_v12 = vcombine.low %v949_v6, %v949_v6  ;;  %v3733_v14 = vld [vmem:[%s4720_s0 + $0xc] ss:$28 sps:$4 sm:$0xff]  }
  0xaa   : > { %2160 = vmatpush1.bf16.msra.mxu1 %v3631_v13  ;;  %2354 = vmatprep.mubr.bf16.mxu0 %v3639_v15  ;;  %v3204_v13 = vcombine.low %v951_v7, %v951_v7  ;;  %v3814_v15 = vmov 0  }
  0xab   : > { %2161 = vmatprep.subr.bf16.mxu1 %v3645_v16  ;;  %2442 = vmatpush1.bf16.msra.mxu0 %v3670_v19  ;;  %v3731_v16 = vld [vmem:[%s4720_s0 + $0x8] ss:$28 sps:$4 sm:$0xff]   ;;  %v3737_v19 = vld [vmem:[%s4720_s0 + $0x40] ss:$28 sps:$4 sm:$0xff]  }
  0xac   : > { %2443 = vmatprep.subr.bf16.mxu0 %v3691_v20  ;;  %v3738_v20 = vld [vmem:[%s4720_s0 + $0x50] ss:$28 sps:$4 sm:$0xff]  }
  0xae   : > { %2162 = vmatpush1.bf16.msra.mxu1 %v3643_v18  ;;  %v3735_v18 = vld [vmem:[%s4720_s0 + $0x44] ss:$28 sps:$4 sm:$0xff]  }
  0xaf   : > { %2163 = vmatprep.subr.bf16.mxu1 %v3654_v22  ;;  %2444 = vmatpush1.bf16.msra.mxu0 %v3689_v28  ;;  %v3741_v22 = vld [vmem:[%s4720_s0 + $0x78] ss:$28 sps:$4 sm:$0xff]   ;;  %v3749_v28 = vld [vmem:[%s4720_s0 + $0xe8] ss:$28 sps:$4 sm:$0xff]  }
  0xb0   : > { %2073 = vmatmul.mubr.bf16.gmra.mrb[12].mxu1 %v3641_v21  ;;  %2445 = vmatprep.subr.bf16.mxu0 %v3708_v29  ;;  %v3739_v21 = vld [vmem:[%s4720_s0 + $0x7c] ss:$28 sps:$4 sm:$0xff]  }
  0xb1   : > { %2355 = vmatmul.mubr.bf16.gmra.mrb[12].mxu0 %v3642_v23  ;;  %2082 = vmatprep.mubr.bf16.mxu1 %v3646_v24  ;;  %v3742_v23 = vld [vmem:[%s4720_s0 + $0x88] ss:$28 sps:$4 sm:$0xff]   ;;  %v3743_v24 = vld [vmem:[%s4720_s0 + $0xb4] ss:$28 sps:$4 sm:$0xff]  }
  0xb2   : > { %2364 = vmatprep.mubr.bf16.mxu0 %v3648_v25  ;;  %2164 = vmatpush1.bf16.msra.mxu1 %v3652_v26  ;;  %v3745_v25 = vld [vmem:[%s4720_s0 + $0xb0] ss:$28 sps:$4 sm:$0xff]   ;;  %v3746_v26 = vld [vmem:[%s4720_s0 + $0xc0] ss:$28 sps:$4 sm:$0xff]   ;;  %v3750_v29 = vld [vmem:[%s4720_s0 + $0xf8] ss:$28 sps:$4 sm:$0xff]  }
  0xb3   : > { %2165 = vmatprep.subr.bf16.mxu1 %v3662_v27  ;;  %2446 = vmatpush1.bf16.msra.mxu0 %v3706_v31  ;;  %v3747_v27 = vld [vmem:[%s4720_s0 + $0xec] ss:$28 sps:$4 sm:$0xff]   ;;  %v3753_v31 = vld [vmem:[%s4720_s0 + $0x120] ss:$28 sps:$4 sm:$0xff]  }
  0xb4   : > { %2447 = vmatprep.subr.bf16.mxu0 %v3723_v35  ;;  %v3758_v35 = vld [vmem:[%s4720_s0 + $0x168] ss:$28 sps:$4 sm:$0xff]  }
  0xb6   : > { %2166 = vmatpush1.bf16.msra.mxu1 %v3660_v30  ;;  %v3751_v30 = vld [vmem:[%s4720_s0 + $0x124] ss:$28 sps:$4 sm:$0xff]  }
  0xb7   : > { %2167 = vmatprep.subr.bf16.mxu1 %v3669_v33  ;;  %2448 = vmatpush1.bf16.msra.mxu0 %v3721_v39  ;;  %v3755_v33 = vld [vmem:[%s4720_s0 + $0x15c] ss:$28 sps:$4 sm:$0xff]   ;;  %v3763_v39 = vld [vmem:[%s4720_s0 + $0x1cc] ss:$28 sps:$4 sm:$0xff]  }
  0xb8   : > { %2083 = vmatmul.mubr.bf16.gmra.mrb[16].mxu1 %v3650_v32  ;;  %v3754_v32 = vld [vmem:[%s4720_s0 + $0x130] ss:$28 sps:$4 sm:$0xff]  }
  0xb9   : > { %2365 = vmatmul.mubr.bf16.gmra.mrb[16].mxu0 %v3651_v34  ;;  %2092 = vmatprep.mubr.bf16.mxu1 %v3658_v36  ;;  %v3757_v34 = vld [vmem:[%s4720_s0 + $0x158] ss:$28 sps:$4 sm:$0xff]  }
  0xba   : > { %2374 = vmatprep.mubr.bf16.mxu0 %v3663_v37  ;;  %2168 = vmatpush1.bf16.msra.mxu1 %v3667_v38  ;;  %v3759_v36 = vld [vmem:[%s4720_s0 + $0x194] ss:$28 sps:$4 sm:$0xff]   ;;  %v3762_v38 = vld [vmem:[%s4720_s0 + $0x1a0] ss:$28 sps:$4 sm:$0xff]  }
  0xbb   : > { %2169 = vmatprep.subr.bf16.mxu1 %v3681_v40  ;;  %v3761_v37 = vld [vmem:[%s4720_s0 + $0x190] ss:$28 sps:$4 sm:$0xff]   ;;  %v3765_v40 = vld [vmem:[%s4720_s0 + $0x1c8] ss:$28 sps:$4 sm:$0xff]  }
  0xbe   : > { %2170 = vmatpush1.bf16.msra.mxu1 %v3679_v42  ;;  %v3767_v42 = vld [vmem:[%s4720_s0 + $0x204] ss:$28 sps:$4 sm:$0xff]  }
  0xbf   : > { %2171 = vmatprep.subr.bf16.mxu1 %v3686_v43  ;;  %v950_v43 = vld [vmem:[%s4720_s0 + $0x238] sm:$0xff] }
  0xc0   : > { %2093 = vmatmul.mubr.bf16.gmra.mrb[20].mxu1 %v3665_v41  ;;  %v3766_v41 = vld [vmem:[%s4720_s0 + $0x1d8] ss:$28 sps:$4 sm:$0xff]  }
  0xc1   : > { %2375 = vmatmul.mubr.bf16.gmra.mrb[20].mxu0 %v3666_v44  ;;  %2102 = vmatprep.mubr.bf16.mxu1 %v3673_v45  ;;  %v3769_v44 = vld [vmem:[%s4720_s0 + $0x200] ss:$28 sps:$4 sm:$0xff]   ;;  %v3770_v45 = vld [vmem:[%s4720_s0 + $0x210] ss:$28 sps:$4 sm:$0xff]  }
  0xc2   : > { %2384 = vmatprep.mubr.bf16.mxu0 %v3675_v46  ;;  %2172 = vmatpush1.bf16.msra.mxu1 %v3684_v47  ;;  %v3203_v46 = vcombine.high %v950_v43, %v950_v43  ;;  %v3202_v47 = vcombine.low %v950_v43, %v950_v43 }
  0xc3   : > { %2173 = vmatprep.subr.bf16.mxu1 %v3696_v48  ;;  %v3773_v48 = vld [vmem:[%s4720_s0 + $0x248] ss:$0 sps:$4 sm:$0xff]  }
  0xc6   : > { %2174 = vmatpush1.bf16.msra.mxu1 %v3694_v50 }
  0xc7   : > { %2175 = vmatprep.subr.bf16.mxu1 %v3705_v52  ;;  %v2703_v52 = vld [vmem:[%s771_s11] sm:$0x3] }
  0xc8   : > { %2103 = vmatmul.mubr.bf16.gmra.mrb[24].mxu1 %v3677_v49  ;;  %v2705_v49 = vlaneseq }
  0xc9   : > { %2385 = vmatmul.mubr.bf16.gmra.mrb[24].mxu0 %v3678_v51  ;;  %2112 = vmatprep.mubr.bf16.mxu1 %v3682_v53 }
  0xca   : > { %2394 = vmatprep.mubr.bf16.mxu0 %v3687_v54  ;;  %2176 = vmatpush1.bf16.msra.mxu1 %v3703_v55  ;;  %v2706_v50 = vshrl.u32 %v2705_v49, 7  ;;  %v2757_v54 = vld [vmem:[%s776_s21] sm:$0x3] }
  0xcb   : > { %2177 = vmatprep.subr.bf16.mxu1 %v3716_v56 }
  0xcc   : > { %v2707_v51 = vsub.s32 0, %v2706_v50  ;;  %v2711_v53 = vsub.s32 1, %v2706_v50 }
  0xce   : > { %2178 = vmatpush1.bf16.msra.mxu1 %v3714_v59  ;;  %v4475_v55 = vrot.slane %v2703_v52, %v2707_v51 }
  0xcf   : > { %2179 = vmatprep.subr.bf16.mxu1 %v3720_v60  ;;  %v4479_v60 = vrot.slane %v2757_v54, %v2707_v51 }
  0xd0   : > { %2113 = vmatmul.mubr.bf16.gmra.mrb[28].mxu1 %v3692_v57 }
  0xd1   : > { %2395 = vmatmul.mubr.bf16.gmra.mrb[28].mxu0 %v3693_v58  ;;  %2122 = vmatprep.mubr.bf16.mxu1 %v3697_v61  ;;  %v4477_v58 = vrot.slane %v2703_v52, %v2711_v53 }
  0xd2   : > { %2404 = vmatprep.mubr.bf16.mxu0 %v3699_v62  ;;  %2180 = vmatpush1.bf16.msra.mxu1 %v3718_v63 }
  0xd3   : > { %2181 = vmatprep.subr.bf16.mxu1 %v3730_v0  ;;  %v4483_v0 = vrot.slane %v2757_v54, %v2711_v53 }
  0xd6   : > { %2182 = vmatpush1.bf16.msra.mxu1 %v3728_v1 }
  0xd8   : > { %2123 = vmatmul.mubr.bf16.gmra.mrb[32].mxu1 %v3701_v2 }
  0xd9   : > { %2405 = vmatmul.mubr.bf16.gmra.mrb[32].mxu0 %v3702_v3  ;;  %2132 = vmatprep.mubr.bf16.mxu1 %v3709_v4 }
  0xda   : > { %2414 = vmatprep.mubr.bf16.mxu0 %v3711_v5 }
  0xe0   : > { %2133 = vmatmul.mubr.bf16.gmra.mrb[36].mxu1 %v3713_v8 }
  0xe1   : > { %2415 = vmatmul.mubr.bf16.gmra.mrb[36].mxu0 %v3717_v9  ;;  %2142 = vmatprep.mubr.bf16.mxu1 %v3201_v10 }
  0xe2   : > { %2424 = vmatprep.mubr.bf16.mxu0 %v3205_v11 }
  0xe8   : > { %2143 = vmatmul.mubr.bf16.gmra.mrb[40].mxu1 %v3200_v12 }
  0xe9   : > { %2425 = vmatmul.mubr.bf16.gmra.mrb[40].mxu0 %v3204_v13  ;;  %2183 = vmatprep.mubr.bf16.mxu1 %v3733_v14 }
  0xea   : > { %2465 = vmatprep.mubr.bf16.mxu0 %v3814_v15 }
  0xf0   : > { %2184 = vmatmul.mubr.bf16.vlgmr.msra.gmra.mrb[0].mxu1 %v3731_v16 }
  0xf1   : > { %2466 = vmatmul.mubr.bf16.vlgmr.msra.gmra.mrb[0].mxu0 %v3734_v17  ;;  %2193 = vmatprep.mubr.bf16.mxu1 %v3735_v18 }
  0xf2   : > { %2475 = vmatprep.mubr.bf16.mxu0 %v3814_v15 }
  0xf8   : > { %2194 = vmatmul.mubr.bf16.gmra.mrb[4].mxu1 %v3737_v19 }
  0xf9   : > { %2476 = vmatmul.mubr.bf16.gmra.mrb[4].mxu0 %v3738_v20  ;;  %2203 = vmatprep.mubr.bf16.mxu1 %v3739_v21 }
  0xfa   : > { %2485 = vmatprep.mubr.bf16.mxu0 %v3814_v15 }
 0x100   : > { %2204 = vmatmul.mubr.bf16.gmra.mrb[8].mxu1 %v3741_v22 }
 0x101   : > { %2486 = vmatmul.mubr.bf16.gmra.mrb[8].mxu0 %v3742_v23  ;;  %2213 = vmatprep.mubr.bf16.mxu1 %v3743_v24 }
 0x102   : > { %2495 = vmatprep.mubr.bf16.mxu0 %v3814_v15 }
 0x108   : > { %2214 = vmatmul.mubr.bf16.gmra.mrb[12].mxu1 %v3745_v25 }
 0x109   : > { %2496 = vmatmul.mubr.bf16.gmra.mrb[12].mxu0 %v3746_v26  ;;  %2223 = vmatprep.mubr.bf16.mxu1 %v3747_v27 }
 0x10a   : > { %2505 = vmatprep.mubr.bf16.mxu0 %v3814_v15 }
 0x110   : > { %2224 = vmatmul.mubr.bf16.gmra.mrb[16].mxu1 %v3749_v28 }
 0x111   : > { %2506 = vmatmul.mubr.bf16.gmra.mrb[16].mxu0 %v3750_v29  ;;  %2233 = vmatprep.mubr.bf16.mxu1 %v3751_v30 }
 0x112   : > { %2515 = vmatprep.mubr.bf16.mxu0 %v3814_v15 }
 0x118   : > { %2234 = vmatmul.mubr.bf16.gmra.mrb[20].mxu1 %v3753_v31 }
 0x119   : > { %2516 = vmatmul.mubr.bf16.gmra.mrb[20].mxu0 %v3754_v32  ;;  %2243 = vmatprep.mubr.bf16.mxu1 %v3755_v33 }
 0x11a   : > { %2525 = vmatprep.mubr.bf16.mxu0 %v3814_v15 }
 0x120   : > { %2244 = vmatmul.mubr.bf16.gmra.mrb[24].mxu1 %v3757_v34 }
 0x121   : > { %2526 = vmatmul.mubr.bf16.gmra.mrb[24].mxu0 %v3758_v35  ;;  %2253 = vmatprep.mubr.bf16.mxu1 %v3759_v36 }
 0x122   : > { %2535 = vmatprep.mubr.bf16.mxu0 %v3814_v15 }
 0x128   : > { %2254 = vmatmul.mubr.bf16.gmra.mrb[28].mxu1 %v3761_v37 }
 0x129   : > { %2536 = vmatmul.mubr.bf16.gmra.mrb[28].mxu0 %v3762_v38  ;;  %2263 = vmatprep.mubr.bf16.mxu1 %v3763_v39 }
 0x12a   : > { %2545 = vmatprep.mubr.bf16.mxu0 %v3814_v15 }
 0x130   : > { %2264 = vmatmul.mubr.bf16.gmra.mrb[32].mxu1 %v3765_v40 }
 0x131   : > { %2546 = vmatmul.mubr.bf16.gmra.mrb[32].mxu0 %v3766_v41  ;;  %2273 = vmatprep.mubr.bf16.mxu1 %v3767_v42 }
 0x132   : > { %2555 = vmatprep.mubr.bf16.mxu0 %v3814_v15 }
 0x138   : > { %2274 = vmatmul.mubr.bf16.gmra.mrb[36].mxu1 %v3769_v44 }
 0x139   : > { %2556 = vmatmul.mubr.bf16.gmra.mrb[36].mxu0 %v3770_v45  ;;  %2283 = vmatprep.mubr.bf16.mxu1 %v3203_v46 }
 0x13a   : > { %2565 = vmatprep.mubr.bf16.mxu0 %v3814_v15 }
 0x140   : > { %2284 = vmatmul.mubr.bf16.gmra.mrb[40].mxu1 %v3202_v47 }
 0x141   : > { %2566 = vmatmul.mubr.bf16.gmra.mrb[40].mxu0 %v3773_v48 }
 0x1c3   : > { %v2185_v56 = vpop.f32.mrb[0].mxu1 }
 0x1c4   : > { %v2467_v57 = vpop.f32.mrb[0].mxu0  ;;  %v2187_v61 = vpop.f32.mrb[1].mxu1 }
 0x1c5   : > { %v3325_v59 = vadd.f32 %v2467_v57, %v2185_v56  ;;  %v2469_v62 = vpop.f32.mrb[1].mxu0  ;;  %v2189_v1 = vpop.f32.mrb[2].mxu1 }
 0x1c6   : > { %v3326_v63 = vadd.f32 %v2469_v62, %v2187_v61  ;;  %v2471_v2 = vpop.f32.mrb[2].mxu0  ;;  %v2191_v5 = vpop.f32.mrb[3].mxu1 }
 0x1c7   : > { %v2715_v3 = vmul.f32 %v3325_v59, %v4475_v55  ;;  %v3327_v4 = vadd.f32 %v2471_v2, %v2189_v1  ;;  %v2473_v6 = vpop.f32.mrb[3].mxu0 }
 0x1c8   : > { %v2716_v7 = vmul.f32 %v3326_v63, %v4477_v58  ;;  %v3328_v8 = vadd.f32 %v2473_v6, %v2191_v5 }
 0x1c9   : > { %v2769_v9 = vadd.f32 %v4479_v60, %v2715_v3  ;;  %v2717_v10 = vmul.f32 %v3327_v4, %v4475_v55 }
 0x1ca   : > { %v2770_v11 = vadd.f32 %v4483_v0, %v2716_v7  ;;  %v2718_v12 = vmul.f32 %v3328_v8, %v4477_v58 }
 0x1cb   : > { %v2811_v13 = vmax.f32 %v2769_v9, 0.0  ;;  %v2771_v14 = vadd.f32 %v4479_v60, %v2717_v10  ;;  %v2195_v17 = vpop.f32.mrb[4].mxu1 }
 0x1cc   : > { %v2812_v15 = vmax.f32 %v2770_v11, 0.0  ;;  %v2772_v16 = vadd.f32 %v4483_v0, %v2718_v12  ;;  %v2477_v18 = vpop.f32.mrb[4].mxu0  ;;  %v2197_v21 = vpop.f32.mrb[5].mxu1 }
 0x1cd   : > { %2853 = vst [vmem:[%s4493_s15] sm:$0xff] %v2811_v13  ;;  %v2813_v19 = vmax.f32 %v2771_v14, 0.0  ;;  %v3329_v20 = vadd.f32 %v2477_v18, %v2195_v17  ;;  %v2479_v22 = vpop.f32.mrb[5].mxu0  ;;  %v2199_v25 = vpop.f32.mrb[6].mxu1 }
 0x1ce   : > { %2854 = vst [vmem:[%s4493_s15 + $0x8] sm:$0xff] %v2812_v15  ;;  %v2814_v23 = vmax.f32 %v2772_v16, 0.0  ;;  %v3330_v24 = vadd.f32 %v2479_v22, %v2197_v21  ;;  %v2481_v26 = vpop.f32.mrb[6].mxu0  ;;  %v2201_v29 = vpop.f32.mrb[7].mxu1 }
 0x1cf   : > { %2855 = vst [vmem:[%s4493_s15 + $0x10] sm:$0xff] %v2813_v19  ;;  %v2719_v27 = vmul.f32 %v3329_v20, %v4475_v55  ;;  %v3331_v28 = vadd.f32 %v2481_v26, %v2199_v25  ;;  %v2483_v30 = vpop.f32.mrb[7].mxu0 }
 0x1d0   : > { %2856 = vst [vmem:[%s4493_s15 + $0x18] sm:$0xff] %v2814_v23  ;;  %v2720_v31 = vmul.f32 %v3330_v24, %v4477_v58  ;;  %v3332_v32 = vadd.f32 %v2483_v30, %v2201_v29 }
 0x1d1   : > { %v2773_v33 = vadd.f32 %v4479_v60, %v2719_v27  ;;  %v2721_v34 = vmul.f32 %v3331_v28, %v4475_v55 }
 0x1d2   : > { %v2774_v35 = vadd.f32 %v4483_v0, %v2720_v31  ;;  %v2722_v36 = vmul.f32 %v3332_v32, %v4477_v58 }
 0x1d3   : > { %v2815_v37 = vmax.f32 %v2773_v33, 0.0  ;;  %v2775_v38 = vadd.f32 %v4479_v60, %v2721_v34  ;;  %v2205_v41 = vpop.f32.mrb[8].mxu1 }
 0x1d4   : > { %v2816_v39 = vmax.f32 %v2774_v35, 0.0  ;;  %v2776_v40 = vadd.f32 %v4483_v0, %v2722_v36  ;;  %v2487_v42 = vpop.f32.mrb[8].mxu0  ;;  %v2207_v45 = vpop.f32.mrb[9].mxu1 }
 0x1d5   : > { %2857 = vst [vmem:[%s4493_s15 + $0x20] sm:$0xff] %v2815_v37  ;;  %v2817_v43 = vmax.f32 %v2775_v38, 0.0  ;;  %v3333_v44 = vadd.f32 %v2487_v42, %v2205_v41  ;;  %v2489_v46 = vpop.f32.mrb[9].mxu0  ;;  %v2209_v49 = vpop.f32.mrb[10].mxu1 }
 0x1d6   : > { %2858 = vst [vmem:[%s4493_s15 + $0x28] sm:$0xff] %v2816_v39  ;;  %v2818_v47 = vmax.f32 %v2776_v40, 0.0  ;;  %v3334_v48 = vadd.f32 %v2489_v46, %v2207_v45  ;;  %v2491_v50 = vpop.f32.mrb[10].mxu0  ;;  %v2211_v53 = vpop.f32.mrb[11].mxu1 }
 0x1d7   : > { %2859 = vst [vmem:[%s4493_s15 + $0x30] sm:$0xff] %v2817_v43  ;;  %v2723_v51 = vmul.f32 %v3333_v44, %v4475_v55  ;;  %v3335_v52 = vadd.f32 %v2491_v50, %v2209_v49  ;;  %v2493_v54 = vpop.f32.mrb[11].mxu0 }
 0x1d8   : > { %2860 = vst [vmem:[%s4493_s15 + $0x38] sm:$0xff] %v2818_v47  ;;  %v2724_v56 = vmul.f32 %v3334_v48, %v4477_v58  ;;  %v3336_v57 = vadd.f32 %v2493_v54, %v2211_v53 }
 0x1d9   : > { %v2777_v59 = vadd.f32 %v4479_v60, %v2723_v51  ;;  %v2725_v61 = vmul.f32 %v3335_v52, %v4475_v55 }
 0x1da   : > { %v2778_v62 = vadd.f32 %v4483_v0, %v2724_v56  ;;  %v2726_v63 = vmul.f32 %v3336_v57, %v4477_v58 }
 0x1db   : > { %v2819_v1 = vmax.f32 %v2777_v59, 0.0  ;;  %v2779_v2 = vadd.f32 %v4479_v60, %v2725_v61  ;;  %v2215_v5 = vpop.f32.mrb[12].mxu1 }
 0x1dc   : > { %v2820_v3 = vmax.f32 %v2778_v62, 0.0  ;;  %v2780_v4 = vadd.f32 %v4483_v0, %v2726_v63  ;;  %v2497_v6 = vpop.f32.mrb[12].mxu0  ;;  %v2217_v9 = vpop.f32.mrb[13].mxu1 }
 0x1dd   : > { %2861 = vst [vmem:[%s4493_s15 + $0x40] sm:$0xff] %v2819_v1  ;;  %v2821_v7 = vmax.f32 %v2779_v2, 0.0  ;;  %v3337_v8 = vadd.f32 %v2497_v6, %v2215_v5  ;;  %v2499_v10 = vpop.f32.mrb[13].mxu0  ;;  %v2219_v13 = vpop.f32.mrb[14].mxu1 }
 0x1de   : > { %2862 = vst [vmem:[%s4493_s15 + $0x48] sm:$0xff] %v2820_v3  ;;  %v2822_v11 = vmax.f32 %v2780_v4, 0.0  ;;  %v3338_v12 = vadd.f32 %v2499_v10, %v2217_v9  ;;  %v2501_v14 = vpop.f32.mrb[14].mxu0  ;;  %v2221_v17 = vpop.f32.mrb[15].mxu1 }
 0x1df   : > { %2863 = vst [vmem:[%s4493_s15 + $0x50] sm:$0xff] %v2821_v7  ;;  %v2727_v15 = vmul.f32 %v3337_v8, %v4475_v55  ;;  %v3339_v16 = vadd.f32 %v2501_v14, %v2219_v13  ;;  %v2503_v18 = vpop.f32.mrb[15].mxu0 }
 0x1e0   : > { %2864 = vst [vmem:[%s4493_s15 + $0x58] sm:$0xff] %v2822_v11  ;;  %v2728_v19 = vmul.f32 %v3338_v12, %v4477_v58  ;;  %v3340_v20 = vadd.f32 %v2503_v18, %v2221_v17 }
 0x1e1   : > { %v2781_v21 = vadd.f32 %v4479_v60, %v2727_v15  ;;  %v2729_v22 = vmul.f32 %v3339_v16, %v4475_v55 }
 0x1e2   : > { %v2782_v23 = vadd.f32 %v4483_v0, %v2728_v19  ;;  %v2730_v24 = vmul.f32 %v3340_v20, %v4477_v58 }
 0x1e3   : > { %v2823_v25 = vmax.f32 %v2781_v21, 0.0  ;;  %v2783_v26 = vadd.f32 %v4479_v60, %v2729_v22  ;;  %v2225_v29 = vpop.f32.mrb[16].mxu1 }
 0x1e4   : > { %v2824_v27 = vmax.f32 %v2782_v23, 0.0  ;;  %v2784_v28 = vadd.f32 %v4483_v0, %v2730_v24  ;;  %v2507_v30 = vpop.f32.mrb[16].mxu0  ;;  %v2227_v33 = vpop.f32.mrb[17].mxu1 }
 0x1e5   : > { %2865 = vst [vmem:[%s4493_s15 + $0x60] sm:$0xff] %v2823_v25  ;;  %v2825_v31 = vmax.f32 %v2783_v26, 0.0  ;;  %v3341_v32 = vadd.f32 %v2507_v30, %v2225_v29  ;;  %v2509_v34 = vpop.f32.mrb[17].mxu0  ;;  %v2229_v37 = vpop.f32.mrb[18].mxu1 }
 0x1e6   : > { %2866 = vst [vmem:[%s4493_s15 + $0x68] sm:$0xff] %v2824_v27  ;;  %v2826_v35 = vmax.f32 %v2784_v28, 0.0  ;;  %v3342_v36 = vadd.f32 %v2509_v34, %v2227_v33  ;;  %v2511_v38 = vpop.f32.mrb[18].mxu0  ;;  %v2231_v41 = vpop.f32.mrb[19].mxu1 }
 0x1e7   : > { %2867 = vst [vmem:[%s4493_s15 + $0x70] sm:$0xff] %v2825_v31  ;;  %v2731_v39 = vmul.f32 %v3341_v32, %v4475_v55  ;;  %v3343_v40 = vadd.f32 %v2511_v38, %v2229_v37  ;;  %v2513_v42 = vpop.f32.mrb[19].mxu0 }
 0x1e8   : > { %2868 = vst [vmem:[%s4493_s15 + $0x78] sm:$0xff] %v2826_v35  ;;  %v2732_v43 = vmul.f32 %v3342_v36, %v4477_v58  ;;  %v3344_v44 = vadd.f32 %v2513_v42, %v2231_v41 }
 0x1e9   : > { %v2785_v45 = vadd.f32 %v4479_v60, %v2731_v39  ;;  %v2733_v46 = vmul.f32 %v3343_v40, %v4475_v55 }
 0x1ea   : > { %v2786_v47 = vadd.f32 %v4483_v0, %v2732_v43  ;;  %v2734_v48 = vmul.f32 %v3344_v44, %v4477_v58 }
 0x1eb   : > { %v2827_v49 = vmax.f32 %v2785_v45, 0.0  ;;  %v2787_v50 = vadd.f32 %v4479_v60, %v2733_v46  ;;  %v2235_v53 = vpop.f32.mrb[20].mxu1 }
 0x1ec   : > { %v2828_v51 = vmax.f32 %v2786_v47, 0.0  ;;  %v2788_v52 = vadd.f32 %v4483_v0, %v2734_v48  ;;  %v2517_v54 = vpop.f32.mrb[20].mxu0  ;;  %v2237_v59 = vpop.f32.mrb[21].mxu1 }
 0x1ed   : > { %2869 = vst [vmem:[%s4493_s15 + $0x80] sm:$0xff] %v2827_v49  ;;  %v2829_v56 = vmax.f32 %v2787_v50, 0.0  ;;  %v3345_v57 = vadd.f32 %v2517_v54, %v2235_v53  ;;  %v2519_v61 = vpop.f32.mrb[21].mxu0  ;;  %v2239_v1 = vpop.f32.mrb[22].mxu1 }
 0x1ee   : > { %2870 = vst [vmem:[%s4493_s15 + $0x88] sm:$0xff] %v2828_v51  ;;  %v2830_v62 = vmax.f32 %v2788_v52, 0.0  ;;  %v3346_v63 = vadd.f32 %v2519_v61, %v2237_v59  ;;  %v2521_v2 = vpop.f32.mrb[22].mxu0  ;;  %v2241_v5 = vpop.f32.mrb[23].mxu1 }
 0x1ef   : > { %2871 = vst [vmem:[%s4493_s15 + $0x90] sm:$0xff] %v2829_v56  ;;  %v2735_v3 = vmul.f32 %v3345_v57, %v4475_v55  ;;  %v3347_v4 = vadd.f32 %v2521_v2, %v2239_v1  ;;  %v2523_v6 = vpop.f32.mrb[23].mxu0 }
 0x1f0   : > { %2872 = vst [vmem:[%s4493_s15 + $0x98] sm:$0xff] %v2830_v62  ;;  %v2736_v7 = vmul.f32 %v3346_v63, %v4477_v58  ;;  %v3348_v8 = vadd.f32 %v2523_v6, %v2241_v5 }
 0x1f1   : > { %v2789_v9 = vadd.f32 %v4479_v60, %v2735_v3  ;;  %v2737_v10 = vmul.f32 %v3347_v4, %v4475_v55 }
 0x1f2   : > { %v2790_v11 = vadd.f32 %v4483_v0, %v2736_v7  ;;  %v2738_v12 = vmul.f32 %v3348_v8, %v4477_v58 }
 0x1f3   : > { %v2831_v13 = vmax.f32 %v2789_v9, 0.0  ;;  %v2791_v14 = vadd.f32 %v4479_v60, %v2737_v10  ;;  %v2245_v17 = vpop.f32.mrb[24].mxu1 }
 0x1f4   : > { %v2832_v15 = vmax.f32 %v2790_v11, 0.0  ;;  %v2792_v16 = vadd.f32 %v4483_v0, %v2738_v12  ;;  %v2527_v18 = vpop.f32.mrb[24].mxu0  ;;  %v2247_v21 = vpop.f32.mrb[25].mxu1 }
 0x1f5   : > { %2873 = vst [vmem:[%s4493_s15 + $0xa0] sm:$0xff] %v2831_v13  ;;  %v2833_v19 = vmax.f32 %v2791_v14, 0.0  ;;  %v3349_v20 = vadd.f32 %v2527_v18, %v2245_v17  ;;  %v2529_v22 = vpop.f32.mrb[25].mxu0  ;;  %v2249_v25 = vpop.f32.mrb[26].mxu1 }
 0x1f6   : > { %2874 = vst [vmem:[%s4493_s15 + $0xa8] sm:$0xff] %v2832_v15  ;;  %v2834_v23 = vmax.f32 %v2792_v16, 0.0  ;;  %v3350_v24 = vadd.f32 %v2529_v22, %v2247_v21  ;;  %v2531_v26 = vpop.f32.mrb[26].mxu0  ;;  %v2251_v29 = vpop.f32.mrb[27].mxu1 }
 0x1f7   : > { %2875 = vst [vmem:[%s4493_s15 + $0xb0] sm:$0xff] %v2833_v19  ;;  %v2739_v27 = vmul.f32 %v3349_v20, %v4475_v55  ;;  %v3351_v28 = vadd.f32 %v2531_v26, %v2249_v25  ;;  %v2533_v30 = vpop.f32.mrb[27].mxu0 }
 0x1f8   : > { %2876 = vst [vmem:[%s4493_s15 + $0xb8] sm:$0xff] %v2834_v23  ;;  %v2740_v31 = vmul.f32 %v3350_v24, %v4477_v58  ;;  %v3352_v32 = vadd.f32 %v2533_v30, %v2251_v29 }
 0x1f9   : > { %v2793_v33 = vadd.f32 %v4479_v60, %v2739_v27  ;;  %v2741_v34 = vmul.f32 %v3351_v28, %v4475_v55 }
 0x1fa   : > { %v2794_v35 = vadd.f32 %v4483_v0, %v2740_v31  ;;  %v2742_v36 = vmul.f32 %v3352_v32, %v4477_v58 }
 0x1fb   : > { %v2835_v37 = vmax.f32 %v2793_v33, 0.0  ;;  %v2795_v38 = vadd.f32 %v4479_v60, %v2741_v34  ;;  %v2255_v41 = vpop.f32.mrb[28].mxu1 }
 0x1fc   : > { %v2836_v39 = vmax.f32 %v2794_v35, 0.0  ;;  %v2796_v40 = vadd.f32 %v4483_v0, %v2742_v36  ;;  %v2537_v42 = vpop.f32.mrb[28].mxu0  ;;  %v2257_v45 = vpop.f32.mrb[29].mxu1 }
 0x1fd   : > { %2877 = vst [vmem:[%s4493_s15 + $0xc0] sm:$0xff] %v2835_v37  ;;  %v2837_v43 = vmax.f32 %v2795_v38, 0.0  ;;  %v3353_v44 = vadd.f32 %v2537_v42, %v2255_v41  ;;  %v2539_v46 = vpop.f32.mrb[29].mxu0  ;;  %v2259_v49 = vpop.f32.mrb[30].mxu1 }
 0x1fe   : > { %2878 = vst [vmem:[%s4493_s15 + $0xc8] sm:$0xff] %v2836_v39  ;;  %v2838_v47 = vmax.f32 %v2796_v40, 0.0  ;;  %v3354_v48 = vadd.f32 %v2539_v46, %v2257_v45  ;;  %v2541_v50 = vpop.f32.mrb[30].mxu0  ;;  %v2261_v53 = vpop.f32.mrb[31].mxu1 }
 0x1ff   : > { %2879 = vst [vmem:[%s4493_s15 + $0xd0] sm:$0xff] %v2837_v43  ;;  %v2743_v51 = vmul.f32 %v3353_v44, %v4475_v55  ;;  %v3355_v52 = vadd.f32 %v2541_v50, %v2259_v49  ;;  %v2543_v54 = vpop.f32.mrb[31].mxu0 }
 0x200   : > { %2880 = vst [vmem:[%s4493_s15 + $0xd8] sm:$0xff] %v2838_v47  ;;  %v2744_v56 = vmul.f32 %v3354_v48, %v4477_v58  ;;  %v3356_v57 = vadd.f32 %v2543_v54, %v2261_v53 }
 0x201   : > { %v2797_v59 = vadd.f32 %v4479_v60, %v2743_v51  ;;  %v2745_v61 = vmul.f32 %v3355_v52, %v4475_v55 }
 0x202   : > { %v2798_v62 = vadd.f32 %v4483_v0, %v2744_v56  ;;  %v2746_v63 = vmul.f32 %v3356_v57, %v4477_v58 }
 0x203   : > { %v2839_v1 = vmax.f32 %v2797_v59, 0.0  ;;  %v2799_v2 = vadd.f32 %v4479_v60, %v2745_v61  ;;  %v2265_v5 = vpop.f32.mrb[32].mxu1 }
 0x204   : > { %v2840_v3 = vmax.f32 %v2798_v62, 0.0  ;;  %v2800_v4 = vadd.f32 %v4483_v0, %v2746_v63  ;;  %v2547_v6 = vpop.f32.mrb[32].mxu0  ;;  %v2267_v9 = vpop.f32.mrb[33].mxu1 }
 0x205   : > { %2881 = vst [vmem:[%s4493_s15 + $0xe0] sm:$0xff] %v2839_v1  ;;  %v2841_v7 = vmax.f32 %v2799_v2, 0.0  ;;  %v3357_v8 = vadd.f32 %v2547_v6, %v2265_v5  ;;  %v2549_v10 = vpop.f32.mrb[33].mxu0  ;;  %v2269_v13 = vpop.f32.mrb[34].mxu1 }
 0x206   : > { %2882 = vst [vmem:[%s4493_s15 + $0xe8] sm:$0xff] %v2840_v3  ;;  %v2842_v11 = vmax.f32 %v2800_v4, 0.0  ;;  %v3358_v12 = vadd.f32 %v2549_v10, %v2267_v9  ;;  %v2551_v14 = vpop.f32.mrb[34].mxu0  ;;  %v2271_v17 = vpop.f32.mrb[35].mxu1 }
 0x207   : > { %2883 = vst [vmem:[%s4493_s15 + $0xf0] sm:$0xff] %v2841_v7  ;;  %v2747_v15 = vmul.f32 %v3357_v8, %v4475_v55  ;;  %v3359_v16 = vadd.f32 %v2551_v14, %v2269_v13  ;;  %v2553_v18 = vpop.f32.mrb[35].mxu0  ;;  %v2932_v13 = vld [vmem:[%s4493_s15 + $0x30] sm:$0xff] (%p3875_p6)  ;;  %v2934_v14 = vld [vmem:[%s4493_s15 + $0x38] sm:$0xff] (%p3875_p6) }
 0x208   : > { %2884 = vst [vmem:[%s4493_s15 + $0xf8] sm:$0xff] %v2842_v11  ;;  %v2748_v19 = vmul.f32 %v3358_v12, %v4477_v58  ;;  %v3360_v20 = vadd.f32 %v2553_v18, %v2271_v17  ;;  %v2928_v11 = vld [vmem:[%s4493_s15 + $0x20] sm:$0xff] (%p3875_p6)  ;;  %v2930_v12 = vld [vmem:[%s4493_s15 + $0x28] sm:$0xff] (%p3875_p6)  ;;  %2933 = vst [vmem:[%s4622_s27 + $0x90] sm:$0xff] (%p3875_p6), %v2932_v13 }
 0x209   : > { %v2801_v21 = vadd.f32 %v4479_v60, %v2747_v15  ;;  %v2749_v22 = vmul.f32 %v3359_v16, %v4475_v55  ;;  %2929 = vst [vmem:[%s4622_s27 + $0x60] sm:$0xff] (%p3875_p6), %v2928_v11  ;;  %2931 = vst [vmem:[%s4622_s27 + $0x68] sm:$0xff] (%p3875_p6), %v2930_v12  ;;  %v2936_v15 = vld [vmem:[%s4493_s15 + $0x40] sm:$0xff] (%p3875_p6)  ;;  %v2938_v16 = vld [vmem:[%s4493_s15 + $0x48] sm:$0xff] (%p3875_p6) }
 0x20a   : > { %v2802_v23 = vadd.f32 %v4483_v0, %v2748_v19  ;;  %v2750_v24 = vmul.f32 %v3360_v20, %v4477_v58  ;;  %2935 = vst [vmem:[%s4622_s27 + $0x98] sm:$0xff] (%p3875_p6), %v2934_v14  ;;  %2937 = vst [vmem:[%s4622_s27 + $0xc0] sm:$0xff] (%p3875_p6), %v2936_v15  ;;  %v2940_v17 = vld [vmem:[%s4493_s15 + $0x50] sm:$0xff] (%p3875_p6)  ;;  %v2942_v18 = vld [vmem:[%s4493_s15 + $0x58] sm:$0xff] (%p3875_p6) }
 0x20b   : > { %v2843_v25 = vmax.f32 %v2801_v21, 0.0  ;;  %v2803_v26 = vadd.f32 %v4479_v60, %v2749_v22  ;;  %v2275_v29 = vpop.f32.mrb[36].mxu1  ;;  %2939 = vst [vmem:[%s4622_s27 + $0xc8] sm:$0xff] (%p3875_p6), %v2938_v16  ;;  %2941 = vst [vmem:[%s4622_s27 + $0xf0] sm:$0xff] (%p3875_p6), %v2940_v17  ;;  %v2944_v19 = vld [vmem:[%s4493_s15 + $0x60] sm:$0xff] (%p3875_p6)  ;;  %v2946_v20 = vld [vmem:[%s4493_s15 + $0x68] sm:$0xff] (%p3875_p6) }
 0x20c   : > { %v2844_v27 = vmax.f32 %v2802_v23, 0.0  ;;  %v2804_v28 = vadd.f32 %v4483_v0, %v2750_v24  ;;  %v2557_v30 = vpop.f32.mrb[36].mxu0  ;;  %v2277_v33 = vpop.f32.mrb[37].mxu1  ;;  %2943 = vst [vmem:[%s4622_s27 + $0xf8] sm:$0xff] (%p3875_p6), %v2942_v18  ;;  %v2948_v21 = vld [vmem:[%s4493_s15 + $0x70] sm:$0xff] (%p3875_p6)  ;;  %2945 = vst [vmem:[%s4622_s27 + $0x120] sm:$0xff] (%p3875_p6), %v2944_v19 }
 0x20d   : > { %2885 = vst [vmem:[%s4493_s15 + $0x100] sm:$0xff] %v2843_v25  ;;  %v2845_v31 = vmax.f32 %v2803_v26, 0.0  ;;  %v3361_v32 = vadd.f32 %v2557_v30, %v2275_v29  ;;  %v2559_v34 = vpop.f32.mrb[37].mxu0  ;;  %v2279_v37 = vpop.f32.mrb[38].mxu1  ;;  %2947 = vst [vmem:[%s4622_s27 + $0x128] sm:$0xff] (%p3875_p6), %v2946_v20  ;;  %v2950_v22 = vld [vmem:[%s4493_s15 + $0x78] sm:$0xff] (%p3875_p6) }
 0x20e   : > { %2886 = vst [vmem:[%s4493_s15 + $0x108] sm:$0xff] %v2844_v27  ;;  %v2846_v35 = vmax.f32 %v2804_v28, 0.0  ;;  %v3362_v36 = vadd.f32 %v2559_v34, %v2277_v33  ;;  %v2561_v38 = vpop.f32.mrb[38].mxu0  ;;  %v2281_v41 = vpop.f32.mrb[39].mxu1  ;;  %2949 = vst [vmem:[%s4622_s27 + $0x150] sm:$0xff] (%p3875_p6), %v2948_v21  ;;  %v2952_v23 = vld [vmem:[%s4493_s15 + $0x80] sm:$0xff] (%p3875_p6) }
 0x20f   : > { %2887 = vst [vmem:[%s4493_s15 + $0x110] sm:$0xff] %v2845_v31  ;;  %v2751_v39 = vmul.f32 %v3361_v32, %v4475_v55  ;;  %v3363_v40 = vadd.f32 %v2561_v38, %v2279_v37  ;;  %v2563_v42 = vpop.f32.mrb[39].mxu0  ;;  %v2954_v24 = vld [vmem:[%s4493_s15 + $0x88] sm:$0xff] (%p3875_p6)  ;;  %2951 = vst [vmem:[%s4622_s27 + $0x158] sm:$0xff] (%p3875_p6), %v2950_v22  ;;  %v2956_v25 = vld [vmem:[%s4493_s15 + $0x90] sm:$0xff] (%p3875_p6) }
 0x210   : > { %2888 = vst [vmem:[%s4493_s15 + $0x118] sm:$0xff] %v2846_v35  ;;  %v2752_v43 = vmul.f32 %v3362_v36, %v4477_v58  ;;  %v3364_v44 = vadd.f32 %v2563_v42, %v2281_v41  ;;  %2953 = vst [vmem:[%s4622_s27 + $0x180] sm:$0xff] (%p3875_p6), %v2952_v23  ;;  %v2958_v26 = vld [vmem:[%s4493_s15 + $0x98] sm:$0xff] (%p3875_p6)  ;;  %v2960_v27 = vld [vmem:[%s4493_s15 + $0xa0] sm:$0xff] (%p3875_p6) }
 0x211   : > { %v2805_v45 = vadd.f32 %v4479_v60, %v2751_v39  ;;  %v2753_v46 = vmul.f32 %v3363_v40, %v4475_v55  ;;  %2955 = vst [vmem:[%s4622_s27 + $0x188] sm:$0xff] (%p3875_p6), %v2954_v24  ;;  %2957 = vst [vmem:[%s4622_s27 + $0x1b0] sm:$0xff] (%p3875_p6), %v2956_v25  ;;  %v2962_v28 = vld [vmem:[%s4493_s15 + $0xa8] sm:$0xff] (%p3875_p6)  ;;  %v2964_v29 = vld [vmem:[%s4493_s15 + $0xb0] sm:$0xff] (%p3875_p6) }
 0x212   : > { %v2806_v47 = vadd.f32 %v4483_v0, %v2752_v43  ;;  %v2754_v48 = vmul.f32 %v3364_v44, %v4477_v58  ;;  %2959 = vst [vmem:[%s4622_s27 + $0x1b8] sm:$0xff] (%p3875_p6), %v2958_v26  ;;  %2961 = vst [vmem:[%s4622_s27 + $0x1e0] sm:$0xff] (%p3875_p6), %v2960_v27  ;;  %v2966_v30 = vld [vmem:[%s4493_s15 + $0xb8] sm:$0xff] (%p3875_p6)  ;;  %v2968_v31 = vld [vmem:[%s4493_s15 + $0xc0] sm:$0xff] (%p3875_p6) }
 0x213   : > { %v2847_v49 = vmax.f32 %v2805_v45, 0.0  ;;  %v2807_v50 = vadd.f32 %v4479_v60, %v2753_v46  ;;  %v2285_v53 = vpop.f32.mrb[40].mxu1  ;;  %2963 = vst [vmem:[%s4622_s27 + $0x1e8] sm:$0xff] (%p3875_p6), %v2962_v28  ;;  %2965 = vst [vmem:[%s4622_s27 + $0x210] sm:$0xff] (%p3875_p6), %v2964_v29  ;;  %v2970_v32 = vld [vmem:[%s4493_s15 + $0xc8] sm:$0xff] (%p3875_p6)  ;;  %v2972_v33 = vld [vmem:[%s4493_s15 + $0xd0] sm:$0xff] (%p3875_p6) }
 0x214   : > { %v2848_v51 = vmax.f32 %v2806_v47, 0.0  ;;  %v2808_v52 = vadd.f32 %v4483_v0, %v2754_v48  ;;  %v2567_v54 = vpop.f32.mrb[40].mxu0  ;;  %v2287_v59 = vpop.f32.mrb[41].mxu1  ;;  %2967 = vst [vmem:[%s4622_s27 + $0x218] sm:$0xff] (%p3875_p6), %v2966_v30  ;;  %2969 = vst [vmem:[%s4622_s27 + $0x240] sm:$0xff] (%p3875_p6), %v2968_v31  ;;  %v2974_v34 = vld [vmem:[%s4493_s15 + $0xd8] sm:$0xff] (%p3875_p6) }
 0x215   : > { %2889 = vst [vmem:[%s4493_s15 + $0x120] sm:$0xff] %v2847_v49  ;;  %v2849_v56 = vmax.f32 %v2807_v50, 0.0  ;;  %v3365_v57 = vadd.f32 %v2567_v54, %v2285_v53  ;;  %v2569_v61 = vpop.f32.mrb[41].mxu0  ;;  %v2289_v1 = vpop.f32.mrb[42].mxu1  ;;  %2971 = vst [vmem:[%s4622_s27 + $0x248] sm:$0xff] (%p3875_p6), %v2970_v32  ;;  %v2976_v35 = vld [vmem:[%s4493_s15 + $0xe0] sm:$0xff] (%p3875_p6) }
 0x216   : > { %2890 = vst [vmem:[%s4493_s15 + $0x128] sm:$0xff] %v2848_v51  ;;  %v2850_v62 = vmax.f32 %v2808_v52, 0.0  ;;  %v3366_v63 = vadd.f32 %v2569_v61, %v2287_v59  ;;  %v2571_v2 = vpop.f32.mrb[42].mxu0  ;;  %v2290_v4 = vpop.f32.mrb[43].mxu1  ;;  %2973 = vst [vmem:[%s4622_s27 + $0x270] sm:$0xff] (%p3875_p6), %v2972_v33  ;;  %v2978_v36 = vld [vmem:[%s4493_s15 + $0xe8] sm:$0xff] (%p3875_p6) }
 0x217   : > { %2891 = vst [vmem:[%s4493_s15 + $0x130] sm:$0xff] %v2849_v56  ;;  %v2755_v3 = vmul.f32 %v3365_v57, %v4475_v55  ;;  %v2572_v5 = vpop.f32.mrb[43].mxu0  ;;  %v2920_v55 = vld [vmem:[%s4493_s15] sm:$0xff] (%p3875_p6)  ;;  %2975 = vst [vmem:[%s4622_s27 + $0x278] sm:$0xff] (%p3875_p6), %v2974_v34  ;;  %v2980_v37 = vld [vmem:[%s4493_s15 + $0xf0] sm:$0xff] (%p3875_p6) }
 0x218   : > { %2892 = vst [vmem:[%s4493_s15 + $0x138] sm:$0xff] %v2850_v62  ;;  %v2756_v6 = vmul.f32 %v3366_v63, %v4477_v58  ;;  %2901 = sbr.rel (!%p3875_p6) target bundleno = 551 (0x227), region = 86  ;;  %v2922_v58 = vld [vmem:[%s4493_s15 + $0x8] sm:$0xff] (%p3875_p6)  ;;  %2921 = vst [vmem:[%s4622_s27] sm:$0xff] (%p3875_p6), %v2920_v55  ;;  %v2982_v38 = vld [vmem:[%s4493_s15 + $0xf8] sm:$0xff] (%p3875_p6) }
 0x219   : > { %v2809_v7 = vadd.f32 %v4479_v60, %v2755_v3  ;;  %v2924_v60 = vld [vmem:[%s4493_s15 + $0x10] sm:$0xff] (%p3875_p6)  ;;  %2923 = vst [vmem:[%s4622_s27 + $0x8] sm:$0xff] (%p3875_p6), %v2922_v58  ;;  %2977 = vst [vmem:[%s4622_s27 + $0x2a0] sm:$0xff] (%p3875_p6), %v2976_v35  ;;  %v2984_v39 = vld [vmem:[%s4493_s15 + $0x100] sm:$0xff] (%p3875_p6) }
 0x21a   : > { %v2810_v8 = vadd.f32 %v4483_v0, %v2756_v6  ;;  %v2926_v0 = vld [vmem:[%s4493_s15 + $0x18] sm:$0xff] (%p3875_p6)  ;;  %2925 = vst [vmem:[%s4622_s27 + $0x30] sm:$0xff] (%p3875_p6), %v2924_v60  ;;  %2979 = vst [vmem:[%s4622_s27 + $0x2a8] sm:$0xff] (%p3875_p6), %v2978_v36  ;;  %v2986_v40 = vld [vmem:[%s4493_s15 + $0x108] sm:$0xff] (%p3875_p6) }
 0x21b   : > { %v2851_v9 = vmax.f32 %v2809_v7, 0.0  ;;  %2927 = vst [vmem:[%s4622_s27 + $0x38] sm:$0xff] (%p3875_p6), %v2926_v0  ;;  %2981 = vst [vmem:[%s4622_s27 + $0x2d0] sm:$0xff] (%p3875_p6), %v2980_v37  ;;  %v2988_v41 = vld [vmem:[%s4493_s15 + $0x110] sm:$0xff] (%p3875_p6)  ;;  %v2990_v42 = vld [vmem:[%s4493_s15 + $0x118] sm:$0xff] (%p3875_p6) }
 0x21c   : > { %v2852_v10 = vmax.f32 %v2810_v8, 0.0  ;;  %2983 = vst [vmem:[%s4622_s27 + $0x2d8] sm:$0xff] (%p3875_p6), %v2982_v38  ;;  %2985 = vst [vmem:[%s4622_s27 + $0x300] sm:$0xff] (%p3875_p6), %v2984_v39  ;;  %v2992_v43 = vld [vmem:[%s4493_s15 + $0x120] sm:$0xff] (%p3875_p6) }
 0x21d   : > { %2893 = vst [vmem:[%s4493_s15 + $0x140] sm:$0xff] %v2851_v9  ;;  %2987 = vst [vmem:[%s4622_s27 + $0x308] sm:$0xff] (%p3875_p6), %v2986_v40  ;;  %v2994_v44 = vld [vmem:[%s4493_s15 + $0x128] sm:$0xff] (%p3875_p6) }
 0x21e   : > { %2894 = vst [vmem:[%s4493_s15 + $0x148] sm:$0xff] %v2852_v10  ;;  %2989 = vst [vmem:[%s4622_s27 + $0x330] sm:$0xff] (%p3875_p6), %v2988_v41  ;;  %v2996_v45 = vld [vmem:[%s4493_s15 + $0x130] sm:$0xff] (%p3875_p6) }
 0x21f   : > { %2991 = vst [vmem:[%s4622_s27 + $0x338] sm:$0xff] %v2990_v42  ;;  %2993 = vst [vmem:[%s4622_s27 + $0x360] sm:$0xff] %v2992_v43  ;;  %v2998_v46 = vld [vmem:[%s4493_s15 + $0x138] sm:$0xff] }
 0x220   : > { %2995 = vst [vmem:[%s4622_s27 + $0x368] sm:$0xff] %v2994_v44  ;;  %2997 = vst [vmem:[%s4622_s27 + $0x390] sm:$0xff] %v2996_v45 }
 0x221   : > { %2999 = vst [vmem:[%s4622_s27 + $0x398] sm:$0xff] %v2998_v46 }
 0x224   : > { %v3000_v47 = vld [vmem:[%s4493_s15 + $0x140] sm:$0xff] }
 0x225   : > { %v3002_v48 = vld [vmem:[%s4493_s15 + $0x148] sm:$0xff]  ;;  %3001 = vst [vmem:[%s4622_s27 + $0x3c0] sm:$0xff] %v3000_v47 }
 0x226   : > { %3003 = vst [vmem:[%s4622_s27 + $0x3c8] sm:$0xff] %v3002_v48 }
 0x227 PF: > { %s14_s19 = sadd.s32 1, %s3812_s19   ;;  %s4726_s15 = smov %s3800_s16 }
 0x228   : > { %p11_p12 = scmp.ge.s32.totalorder %s14_s19, 5   ;;  %s4727_s16 = smov %s3880_s25 }
 0x229   : > { %s4728_s17 = smov %s3808_s18  ;;  %s4729_s18 = smov %s4731_s20 }
 0x22a   :  { %13 = sbr.rel (!%p11_p12) target bundleno = 3 (0x3), region = 149 }

// kernel: mixed_7a.7
= control target key start
LH: loop header
LB: loop body
LE: loop exit
PB: predicated region body
PF: predicated region fallthrough
CT: control target
= control target key end

     0   :  { %s2474_s0 = inlined_call_operand.vmem [shape: bf16[32,2304], index: 0, kind: input, shape index: {}]   ;;  %s2475_s1 = inlined_call_operand.vmem [shape: bf16[2304,384], index: 1, kind: input, shape index: {}]   ;;  %s2476_s2 = inlined_call_operand.vmem [shape: f32[1,384], index: 2, kind: input, shape index: {}]   ;;  %s2477_s3 = inlined_call_operand.vmem [shape: f32[1,384], index: 3, kind: input, shape index: {}]   ;;  %s2478_s4 = inlined_call_operand.vmem [shape: f32[32,384], index: 4, kind: output, shape index: {}]  }
   0x1   :  { %2482 = sst [smem:[#allocation9_spill]] %s2474_s0 }
   0x2   :  { %2483 = sst [smem:[#allocation10_spill]] %s2475_s1 }
   0x3   :  { %s2022_s15 = smov 0   ;;  %s2024_s16 = smov 0  }
   0x4   :  { %s2026_s17 = smov 0   ;;  %s2028_s18 = smov 0  }
   0x5   :  { %s2030_s19 = smov 0   ;;  %s2032_s20 = smov 0  }
   0x6   :  { %s2034_s21 = smov 0   ;;  %s2036_s22 = smov 0  }
   0x7   :  { %s2038_s23 = smov 0   ;;  %s2040_s24 = smov 0  }
   0x8   :  { %s2042_s25 = smov 0  }
   0x9 LB: > { %2484 = sst [smem:[#allocation6_spill]] %s1990_s24  ;;  %s1570_s26 = sadd.s32 4294967295, %s1994_s25   ;;  %s1994_s25 = sphi %s2042_s25, %s14_s25   ;;  %s1990_s24 = sphi %s2040_s24, %s2494_s24   ;;  %s1986_s23 = sphi %s2038_s23, %s2502_s23   ;;  %s1982_s22 = sphi %s2036_s22, %s2492_s22   ;;  %s1978_s21 = sphi %s2034_s21, %s2501_s21   ;;  %s1974_s20 = sphi %s2032_s20, %s2500_s20   ;;  %s1970_s19 = sphi %s2030_s19, %s2499_s19   ;;  %s1966_s18 = sphi %s2028_s18, %s2498_s18   ;;  %s1962_s17 = sphi %s2026_s17, %s2497_s17   ;;  %s1958_s16 = sphi %s2024_s16, %s2496_s16   ;;  %s1954_s15 = sphi %s2022_s15, %s2495_s15  }
   0xa   : > { %s26_s27 = sadd.s32 1, %s1986_s23  ;;  %s29_s28 = sadd.s32 1, %s1990_s24 }
   0xb   : > { %p27_p0 = scmp.ge.s32.totalorder %s26_s27, 3  ;;  %s42_s29 = sadd.s32 1, %s1974_s20 }
   0xc   : > { %p49_p1 = scmp.ne.s32.totalorder %s1974_s20, %s1970_s19  ;;  %p50_p2 = scmp.eq.s32.totalorder %s1994_s25, 0 }
   0xd   : > { %s2504_s27 = smov (%p27_p0, %s26_s27), 0  ;;  %s2506_s28 = smov (!%p27_p0, %s29_s28), %s1990_s24 }
   0xe   : > { %2485 = sst [smem:[#allocation7_spill]] %s2504_s27  ;;  %s38_s30 = ssub.s32 %s1986_s23, %s2504_s27 }
   0xf   : > { %p31_p3 = scmp.ge.s32.totalorder %s2506_s28, 3  ;;  %p40_p4 = scmp.eq.s32.totalorder %s38_s30, 0 }
  0x10   : > { %p2089_p5 = por %p50_p2, %p49_p1  ;;  %s70_s6 = sadd.s32 1, %s1966_s18 }
  0x11   : > { %s2508_s28 = smov (%p31_p3, %s2506_s28), 0  ;;  %p77_p6 = scmp.ne.s32.totalorder %s1966_s18, %s1962_s17 }
  0x12   : > { %2487 = sst [smem:[#allocation8_spill]] %s2508_s28  ;;  %s66_s8 = ssub.s32 %s1990_s24, %s2508_s28 }
  0x13   : > { %s2097_s7 = scalar_select %p40_p4, %s1974_s20, %s42_s29  }
  0x14   : > { %s67_s9 = sor.u32 %s66_s8, %s38_s30  ;;  %p148_p7 = scmp.eq.s32.totalorder %s66_s8, 0 }
  0x15   : > { %p68_p8 = scmp.eq.s32.totalorder %s67_s9, 0  ;;  %p2103_p9 = por %p77_p6, %p50_p2 }
  0x16   : > { %s150_s11 = sadd.s32 1, %s1958_s16  ;;  %p160_p10 = scmp.ne.s32.totalorder %s1958_s16, %s1954_s15 }
  0x17   : > { %s2111_s12 = scalar_select %p68_p8, %s1966_s18, %s70_s6  }
  0x18   : > { %s2114_s13 = scalar_select %p148_p7, %s1958_s16, %s150_s11  }
  0x19   : > { %p161_p11 = scmp.eq.s32.totalorder %s1570_s26, 8  ;;  %p1573_p13 = scmp.ge.s32.totalorder %s1994_s25, 9 }
  0x1b   : > { %p2116_p12 = por %p161_p11, %p160_p10  ;;  %183 = sbr.rel (%p1573_p13) target bundleno = 122 (0x7a), region = 16 }
  0x22   : > { %186 = sbr.rel (!%p2089_p5) target bundleno = 49 (0x31), region = 20  ;;  %s188_s29 = sand.u32 (%p2089_p5), 1, %s1974_s20  }
  0x23   : > { %s1646_s30 = smul.u32 (%p2089_p5), 24, %s1986_s23  ;;  %s2490_s0 = sld [smem:[#allocation9_spill]] (%p2089_p5) }
  0x24   : > { %s1747_s8 = smul.u32 (%p2089_p5), 96, %s188_s29 }
  0x26   : > { %s190_s26 = scalar_lea.vmem (%p2089_p5), [#allocation3], %s1747_s8 }
  0x29   : > { %s196_s11 = scalar_lea.vmem %s2490_s0, %s1646_s30 }
  0x2a   : > { %v209_v0 = vld [vmem:[%s196_s11] sm:$0xff]  ;;  %v211_v1 = vld [vmem:[%s196_s11 + $0x8] sm:$0xff]  ;;  %v213_v2 = vld [vmem:[%s196_s11 + $0x10] sm:$0xff] }
  0x2b   : > { %210 = vst [vmem:[%s190_s26] sm:$0xff] %v209_v0  ;;  %212 = vst [vmem:[%s190_s26 + $0x8] sm:$0xff] %v211_v1  ;;  %v215_v3 = vld [vmem:[%s196_s11 + $0x48] sm:$0xff]  ;;  %v217_v4 = vld [vmem:[%s196_s11 + $0x50] sm:$0xff] }
  0x2c   : > { %214 = vst [vmem:[%s190_s26 + $0x10] sm:$0xff] %v213_v2  ;;  %v219_v5 = vld [vmem:[%s196_s11 + $0x58] sm:$0xff]  ;;  %216 = vst [vmem:[%s190_s26 + $0x18] sm:$0xff] %v215_v3  ;;  %v221_v6 = vld [vmem:[%s196_s11 + $0x90] sm:$0xff] }
  0x2d   : > { %218 = vst [vmem:[%s190_s26 + $0x20] sm:$0xff] %v217_v4  ;;  %220 = vst [vmem:[%s190_s26 + $0x28] sm:$0xff] %v219_v5  ;;  %v223_v7 = vld [vmem:[%s196_s11 + $0x98] sm:$0xff]  ;;  %v225_v8 = vld [vmem:[%s196_s11 + $0xa0] sm:$0xff] }
  0x2e   : > { %222 = vst [vmem:[%s190_s26 + $0x30] sm:$0xff] %v221_v6  ;;  %224 = vst [vmem:[%s190_s26 + $0x38] sm:$0xff] %v223_v7  ;;  %v227_v9 = vld [vmem:[%s196_s11 + $0xd8] sm:$0xff]  ;;  %v229_v10 = vld [vmem:[%s196_s11 + $0xe0] sm:$0xff] }
  0x2f   : > { %226 = vst [vmem:[%s190_s26 + $0x40] sm:$0xff] %v225_v8  ;;  %v231_v11 = vld [vmem:[%s196_s11 + $0xe8] sm:$0xff]  ;;  %228 = vst [vmem:[%s190_s26 + $0x48] sm:$0xff] %v227_v9 }
  0x30   : > { %230 = vst [vmem:[%s190_s26 + $0x50] sm:$0xff] %v229_v10  ;;  %232 = vst [vmem:[%s190_s26 + $0x58] sm:$0xff] %v231_v11 }
  0x31 PF: > { %238 = sbr.rel (!%p2103_p9) target bundleno = 122 (0x7a), region = 43  ;;  %s240_s5 = sand.u32 (%p2103_p9), 1, %s1966_s18  }
  0x32   : > { %s1748_s29 = smul.u32 (%p2103_p9), 384, %s240_s5  ;;  %s2491_s1 = sld [smem:[#allocation10_spill]] (%p2103_p9) }
  0x33   : > { %s1752_s30 = smul.u32 (%p2103_p9), 288, %s1986_s23 }
  0x34   : > { %s2141_s10 = scalar_lea.vmem (%p2103_p9), [#allocation4], %s1748_s29 }
  0x35   : > { %s245_s8 = sadd.s32 (%p2103_p9), %s1990_s24, %s1752_s30 }
  0x36   : > { %s1575_s6 = sshll.u32 (%p2103_p9), %s245_s8, 2 }
  0x38   : > { %s2136_s28 = scalar_lea.vmem %s2491_s1, %s1575_s6 }
  0x39   : > { %v263_v12 = vld [vmem:[%s2136_s28] sm:$0xf]  ;;  %v265_v13 = vld [vmem:[%s2136_s28 + $0xc] sm:$0xf]  ;;  %v267_v14 = vld [vmem:[%s2136_s28 + $0x18] sm:$0xf] }
  0x3a   : > { %264 = vst [vmem:[%s2141_s10] sm:$0xf] %v263_v12  ;;  %266 = vst [vmem:[%s2141_s10 + $0x4] sm:$0xf] %v265_v13  ;;  %v269_v15 = vld [vmem:[%s2136_s28 + $0x24] sm:$0xf] }
  0x3b   : > { %268 = vst [vmem:[%s2141_s10 + $0x8] sm:$0xf] %v267_v14  ;;  %v271_v16 = vld [vmem:[%s2136_s28 + $0x30] sm:$0xf]  ;;  %v273_v17 = vld [vmem:[%s2136_s28 + $0x3c] sm:$0xf] }
  0x3c   : > { %270 = vst [vmem:[%s2141_s10 + $0xc] sm:$0xf] %v269_v15  ;;  %272 = vst [vmem:[%s2141_s10 + $0x10] sm:$0xf] %v271_v16  ;;  %v275_v18 = vld [vmem:[%s2136_s28 + $0x48] sm:$0xf] }
  0x3d   : > { %274 = vst [vmem:[%s2141_s10 + $0x14] sm:$0xf] %v273_v17  ;;  %v277_v19 = vld [vmem:[%s2136_s28 + $0x54] sm:$0xf]  ;;  %v279_v20 = vld [vmem:[%s2136_s28 + $0x60] sm:$0xf] }
  0x3e   : > { %276 = vst [vmem:[%s2141_s10 + $0x18] sm:$0xf] %v275_v18  ;;  %278 = vst [vmem:[%s2141_s10 + $0x1c] sm:$0xf] %v277_v19  ;;  %v281_v21 = vld [vmem:[%s2136_s28 + $0x6c] sm:$0xf] }
  0x3f   : > { %280 = vst [vmem:[%s2141_s10 + $0x20] sm:$0xf] %v279_v20  ;;  %v283_v22 = vld [vmem:[%s2136_s28 + $0x78] sm:$0xf]  ;;  %v285_v23 = vld [vmem:[%s2136_s28 + $0x84] sm:$0xf] }
  0x40   : > { %282 = vst [vmem:[%s2141_s10 + $0x24] sm:$0xf] %v281_v21  ;;  %284 = vst [vmem:[%s2141_s10 + $0x28] sm:$0xf] %v283_v22  ;;  %v287_v24 = vld [vmem:[%s2136_s28 + $0x90] sm:$0xf] }
  0x41   : > { %286 = vst [vmem:[%s2141_s10 + $0x2c] sm:$0xf] %v285_v23  ;;  %v289_v25 = vld [vmem:[%s2136_s28 + $0x9c] sm:$0xf]  ;;  %v291_v26 = vld [vmem:[%s2136_s28 + $0xa8] sm:$0xf] }
  0x42   : > { %288 = vst [vmem:[%s2141_s10 + $0x30] sm:$0xf] %v287_v24  ;;  %290 = vst [vmem:[%s2141_s10 + $0x34] sm:$0xf] %v289_v25  ;;  %v293_v27 = vld [vmem:[%s2136_s28 + $0xb4] sm:$0xf] }
  0x43   : > { %292 = vst [vmem:[%s2141_s10 + $0x38] sm:$0xf] %v291_v26  ;;  %v295_v28 = vld [vmem:[%s2136_s28 + $0xc0] sm:$0xf]  ;;  %v297_v29 = vld [vmem:[%s2136_s28 + $0xcc] sm:$0xf] }
  0x44   : > { %294 = vst [vmem:[%s2141_s10 + $0x3c] sm:$0xf] %v293_v27  ;;  %296 = vst [vmem:[%s2141_s10 + $0x40] sm:$0xf] %v295_v28  ;;  %v299_v30 = vld [vmem:[%s2136_s28 + $0xd8] sm:$0xf] }
  0x45   : > { %298 = vst [vmem:[%s2141_s10 + $0x44] sm:$0xf] %v297_v29  ;;  %v301_v31 = vld [vmem:[%s2136_s28 + $0xe4] sm:$0xf]  ;;  %v303_v32 = vld [vmem:[%s2136_s28 + $0xf0] sm:$0xf] }
  0x46   : > { %300 = vst [vmem:[%s2141_s10 + $0x48] sm:$0xf] %v299_v30  ;;  %302 = vst [vmem:[%s2141_s10 + $0x4c] sm:$0xf] %v301_v31  ;;  %v305_v33 = vld [vmem:[%s2136_s28 + $0xfc] sm:$0xf] }
  0x47   : > { %304 = vst [vmem:[%s2141_s10 + $0x50] sm:$0xf] %v303_v32  ;;  %v307_v34 = vld [vmem:[%s2136_s28 + $0x108] sm:$0xf]  ;;  %v309_v35 = vld [vmem:[%s2136_s28 + $0x114] sm:$0xf] }
  0x48   : > { %306 = vst [vmem:[%s2141_s10 + $0x54] sm:$0xf] %v305_v33  ;;  %308 = vst [vmem:[%s2141_s10 + $0x58] sm:$0xf] %v307_v34  ;;  %v311_v36 = vld [vmem:[%s2136_s28 + $0x120] sm:$0xf] }
  0x49   : > { %310 = vst [vmem:[%s2141_s10 + $0x5c] sm:$0xf] %v309_v35  ;;  %v313_v37 = vld [vmem:[%s2136_s28 + $0x12c] sm:$0xf]  ;;  %v315_v38 = vld [vmem:[%s2136_s28 + $0x138] sm:$0xf] }
  0x4a   : > { %312 = vst [vmem:[%s2141_s10 + $0x60] sm:$0xf] %v311_v36  ;;  %314 = vst [vmem:[%s2141_s10 + $0x64] sm:$0xf] %v313_v37  ;;  %v317_v39 = vld [vmem:[%s2136_s28 + $0x144] sm:$0xf] }
  0x4b   : > { %316 = vst [vmem:[%s2141_s10 + $0x68] sm:$0xf] %v315_v38  ;;  %v319_v40 = vld [vmem:[%s2136_s28 + $0x150] sm:$0xf]  ;;  %v321_v41 = vld [vmem:[%s2136_s28 + $0x15c] sm:$0xf] }
  0x4c   : > { %318 = vst [vmem:[%s2141_s10 + $0x6c] sm:$0xf] %v317_v39  ;;  %320 = vst [vmem:[%s2141_s10 + $0x70] sm:$0xf] %v319_v40  ;;  %v323_v42 = vld [vmem:[%s2136_s28 + $0x168] sm:$0xf] }
  0x4d   : > { %322 = vst [vmem:[%s2141_s10 + $0x74] sm:$0xf] %v321_v41  ;;  %v325_v43 = vld [vmem:[%s2136_s28 + $0x174] sm:$0xf]  ;;  %v327_v44 = vld [vmem:[%s2136_s28 + $0x180] sm:$0xf] }
  0x4e   : > { %324 = vst [vmem:[%s2141_s10 + $0x78] sm:$0xf] %v323_v42  ;;  %326 = vst [vmem:[%s2141_s10 + $0x7c] sm:$0xf] %v325_v43  ;;  %v329_v45 = vld [vmem:[%s2136_s28 + $0x18c] sm:$0xf] }
  0x4f   : > { %328 = vst [vmem:[%s2141_s10 + $0x80] sm:$0xf] %v327_v44  ;;  %v331_v46 = vld [vmem:[%s2136_s28 + $0x198] sm:$0xf]  ;;  %v333_v47 = vld [vmem:[%s2136_s28 + $0x1a4] sm:$0xf] }
  0x50   : > { %330 = vst [vmem:[%s2141_s10 + $0x84] sm:$0xf] %v329_v45  ;;  %332 = vst [vmem:[%s2141_s10 + $0x88] sm:$0xf] %v331_v46  ;;  %v335_v48 = vld [vmem:[%s2136_s28 + $0x1b0] sm:$0xf] }
  0x51   : > { %334 = vst [vmem:[%s2141_s10 + $0x8c] sm:$0xf] %v333_v47  ;;  %v337_v49 = vld [vmem:[%s2136_s28 + $0x1bc] sm:$0xf]  ;;  %v339_v50 = vld [vmem:[%s2136_s28 + $0x1c8] sm:$0xf] }
  0x52   : > { %336 = vst [vmem:[%s2141_s10 + $0x90] sm:$0xf] %v335_v48  ;;  %338 = vst [vmem:[%s2141_s10 + $0x94] sm:$0xf] %v337_v49  ;;  %v341_v51 = vld [vmem:[%s2136_s28 + $0x1d4] sm:$0xf] }
  0x53   : > { %340 = vst [vmem:[%s2141_s10 + $0x98] sm:$0xf] %v339_v50  ;;  %v343_v52 = vld [vmem:[%s2136_s28 + $0x1e0] sm:$0xf]  ;;  %v345_v53 = vld [vmem:[%s2136_s28 + $0x1ec] sm:$0xf] }
  0x54   : > { %342 = vst [vmem:[%s2141_s10 + $0x9c] sm:$0xf] %v341_v51  ;;  %344 = vst [vmem:[%s2141_s10 + $0xa0] sm:$0xf] %v343_v52  ;;  %v347_v54 = vld [vmem:[%s2136_s28 + $0x1f8] sm:$0xf] }
  0x55   : > { %346 = vst [vmem:[%s2141_s10 + $0xa4] sm:$0xf] %v345_v53  ;;  %v349_v55 = vld [vmem:[%s2136_s28 + $0x204] sm:$0xf]  ;;  %v351_v56 = vld [vmem:[%s2136_s28 + $0x210] sm:$0xf] }
  0x56   : > { %348 = vst [vmem:[%s2141_s10 + $0xa8] sm:$0xf] %v347_v54  ;;  %350 = vst [vmem:[%s2141_s10 + $0xac] sm:$0xf] %v349_v55  ;;  %v353_v57 = vld [vmem:[%s2136_s28 + $0x21c] sm:$0xf] }
  0x57   : > { %352 = vst [vmem:[%s2141_s10 + $0xb0] sm:$0xf] %v351_v56  ;;  %v355_v58 = vld [vmem:[%s2136_s28 + $0x228] sm:$0xf]  ;;  %v357_v59 = vld [vmem:[%s2136_s28 + $0x234] sm:$0xf] }
  0x58   : > { %354 = vst [vmem:[%s2141_s10 + $0xb4] sm:$0xf] %v353_v57  ;;  %356 = vst [vmem:[%s2141_s10 + $0xb8] sm:$0xf] %v355_v58  ;;  %v359_v60 = vld [vmem:[%s2136_s28 + $0x240] sm:$0xf] }
  0x59   : > { %358 = vst [vmem:[%s2141_s10 + $0xbc] sm:$0xf] %v357_v59  ;;  %v361_v61 = vld [vmem:[%s2136_s28 + $0x24c] sm:$0xf]  ;;  %v363_v62 = vld [vmem:[%s2136_s28 + $0x258] sm:$0xf] }
  0x5a   : > { %360 = vst [vmem:[%s2141_s10 + $0xc0] sm:$0xf] %v359_v60  ;;  %362 = vst [vmem:[%s2141_s10 + $0xc4] sm:$0xf] %v361_v61  ;;  %v365_v63 = vld [vmem:[%s2136_s28 + $0x264] sm:$0xf] }
  0x5b   : > { %364 = vst [vmem:[%s2141_s10 + $0xc8] sm:$0xf] %v363_v62  ;;  %v367_v0 = vld [vmem:[%s2136_s28 + $0x270] sm:$0xf]  ;;  %v369_v1 = vld [vmem:[%s2136_s28 + $0x27c] sm:$0xf] }
  0x5c   : > { %366 = vst [vmem:[%s2141_s10 + $0xcc] sm:$0xf] %v365_v63  ;;  %368 = vst [vmem:[%s2141_s10 + $0xd0] sm:$0xf] %v367_v0  ;;  %v371_v2 = vld [vmem:[%s2136_s28 + $0x288] sm:$0xf] }
  0x5d   : > { %370 = vst [vmem:[%s2141_s10 + $0xd4] sm:$0xf] %v369_v1  ;;  %v373_v3 = vld [vmem:[%s2136_s28 + $0x294] sm:$0xf]  ;;  %v375_v4 = vld [vmem:[%s2136_s28 + $0x2a0] sm:$0xf] }
  0x5e   : > { %372 = vst [vmem:[%s2141_s10 + $0xd8] sm:$0xf] %v371_v2  ;;  %374 = vst [vmem:[%s2141_s10 + $0xdc] sm:$0xf] %v373_v3  ;;  %v377_v5 = vld [vmem:[%s2136_s28 + $0x2ac] sm:$0xf] }
  0x5f   : > { %376 = vst [vmem:[%s2141_s10 + $0xe0] sm:$0xf] %v375_v4  ;;  %v379_v6 = vld [vmem:[%s2136_s28 + $0x2b8] sm:$0xf]  ;;  %v381_v7 = vld [vmem:[%s2136_s28 + $0x2c4] sm:$0xf] }
  0x60   : > { %378 = vst [vmem:[%s2141_s10 + $0xe4] sm:$0xf] %v377_v5  ;;  %380 = vst [vmem:[%s2141_s10 + $0xe8] sm:$0xf] %v379_v6  ;;  %v383_v8 = vld [vmem:[%s2136_s28 + $0x2d0] sm:$0xf] }
  0x61   : > { %382 = vst [vmem:[%s2141_s10 + $0xec] sm:$0xf] %v381_v7  ;;  %v385_v9 = vld [vmem:[%s2136_s28 + $0x2dc] sm:$0xf]  ;;  %v387_v10 = vld [vmem:[%s2136_s28 + $0x2e8] sm:$0xf] }
  0x62   : > { %384 = vst [vmem:[%s2141_s10 + $0xf0] sm:$0xf] %v383_v8  ;;  %386 = vst [vmem:[%s2141_s10 + $0xf4] sm:$0xf] %v385_v9  ;;  %v389_v11 = vld [vmem:[%s2136_s28 + $0x2f4] sm:$0xf] }
  0x63   : > { %388 = vst [vmem:[%s2141_s10 + $0xf8] sm:$0xf] %v387_v10  ;;  %v391_v12 = vld [vmem:[%s2136_s28 + $0x300] sm:$0xf]  ;;  %v393_v13 = vld [vmem:[%s2136_s28 + $0x30c] sm:$0xf] }
  0x64   : > { %390 = vst [vmem:[%s2141_s10 + $0xfc] sm:$0xf] %v389_v11  ;;  %392 = vst [vmem:[%s2141_s10 + $0x100] sm:$0xf] %v391_v12  ;;  %v395_v14 = vld [vmem:[%s2136_s28 + $0x318] sm:$0xf] }
  0x65   : > { %394 = vst [vmem:[%s2141_s10 + $0x104] sm:$0xf] %v393_v13  ;;  %v397_v15 = vld [vmem:[%s2136_s28 + $0x324] sm:$0xf]  ;;  %v399_v16 = vld [vmem:[%s2136_s28 + $0x330] sm:$0xf] }
  0x66   : > { %396 = vst [vmem:[%s2141_s10 + $0x108] sm:$0xf] %v395_v14  ;;  %398 = vst [vmem:[%s2141_s10 + $0x10c] sm:$0xf] %v397_v15  ;;  %v401_v17 = vld [vmem:[%s2136_s28 + $0x33c] sm:$0xf] }
  0x67   : > { %400 = vst [vmem:[%s2141_s10 + $0x110] sm:$0xf] %v399_v16  ;;  %v403_v18 = vld [vmem:[%s2136_s28 + $0x348] sm:$0xf]  ;;  %v405_v19 = vld [vmem:[%s2136_s28 + $0x354] sm:$0xf] }
  0x68   : > { %402 = vst [vmem:[%s2141_s10 + $0x114] sm:$0xf] %v401_v17  ;;  %404 = vst [vmem:[%s2141_s10 + $0x118] sm:$0xf] %v403_v18  ;;  %v407_v20 = vld [vmem:[%s2136_s28 + $0x360] sm:$0xf] }
  0x69   : > { %406 = vst [vmem:[%s2141_s10 + $0x11c] sm:$0xf] %v405_v19  ;;  %v409_v21 = vld [vmem:[%s2136_s28 + $0x36c] sm:$0xf]  ;;  %v411_v22 = vld [vmem:[%s2136_s28 + $0x378] sm:$0xf] }
  0x6a   : > { %408 = vst [vmem:[%s2141_s10 + $0x120] sm:$0xf] %v407_v20  ;;  %410 = vst [vmem:[%s2141_s10 + $0x124] sm:$0xf] %v409_v21  ;;  %v413_v23 = vld [vmem:[%s2136_s28 + $0x384] sm:$0xf] }
  0x6b   : > { %412 = vst [vmem:[%s2141_s10 + $0x128] sm:$0xf] %v411_v22  ;;  %v415_v24 = vld [vmem:[%s2136_s28 + $0x390] sm:$0xf]  ;;  %v417_v25 = vld [vmem:[%s2136_s28 + $0x39c] sm:$0xf] }
  0x6c   : > { %414 = vst [vmem:[%s2141_s10 + $0x12c] sm:$0xf] %v413_v23  ;;  %416 = vst [vmem:[%s2141_s10 + $0x130] sm:$0xf] %v415_v24  ;;  %v419_v26 = vld [vmem:[%s2136_s28 + $0x3a8] sm:$0xf] }
  0x6d   : > { %418 = vst [vmem:[%s2141_s10 + $0x134] sm:$0xf] %v417_v25  ;;  %v421_v27 = vld [vmem:[%s2136_s28 + $0x3b4] sm:$0xf]  ;;  %v423_v28 = vld [vmem:[%s2136_s28 + $0x3c0] sm:$0xf] }
  0x6e   : > { %420 = vst [vmem:[%s2141_s10 + $0x138] sm:$0xf] %v419_v26  ;;  %422 = vst [vmem:[%s2141_s10 + $0x13c] sm:$0xf] %v421_v27  ;;  %v425_v29 = vld [vmem:[%s2136_s28 + $0x3cc] sm:$0xf] }
  0x6f   : > { %424 = vst [vmem:[%s2141_s10 + $0x140] sm:$0xf] %v423_v28  ;;  %v427_v30 = vld [vmem:[%s2136_s28 + $0x3d8] sm:$0xf]  ;;  %v429_v31 = vld [vmem:[%s2136_s28 + $0x3e4] sm:$0xf] }
  0x70   : > { %426 = vst [vmem:[%s2141_s10 + $0x144] sm:$0xf] %v425_v29  ;;  %428 = vst [vmem:[%s2141_s10 + $0x148] sm:$0xf] %v427_v30  ;;  %v431_v32 = vld [vmem:[%s2136_s28 + $0x3f0] sm:$0xf] }
  0x71   : > { %430 = vst [vmem:[%s2141_s10 + $0x14c] sm:$0xf] %v429_v31  ;;  %v433_v33 = vld [vmem:[%s2136_s28 + $0x3fc] sm:$0xf]  ;;  %v435_v34 = vld [vmem:[%s2136_s28 + $0x408] sm:$0xf] }
  0x72   : > { %432 = vst [vmem:[%s2141_s10 + $0x150] sm:$0xf] %v431_v32  ;;  %434 = vst [vmem:[%s2141_s10 + $0x154] sm:$0xf] %v433_v33  ;;  %v437_v35 = vld [vmem:[%s2136_s28 + $0x414] sm:$0xf] }
  0x73   : > { %436 = vst [vmem:[%s2141_s10 + $0x158] sm:$0xf] %v435_v34  ;;  %v439_v36 = vld [vmem:[%s2136_s28 + $0x420] sm:$0xf]  ;;  %v441_v37 = vld [vmem:[%s2136_s28 + $0x42c] sm:$0xf] }
  0x74   : > { %438 = vst [vmem:[%s2141_s10 + $0x15c] sm:$0xf] %v437_v35  ;;  %440 = vst [vmem:[%s2141_s10 + $0x160] sm:$0xf] %v439_v36  ;;  %v443_v38 = vld [vmem:[%s2136_s28 + $0x438] sm:$0xf] }
  0x75   : > { %442 = vst [vmem:[%s2141_s10 + $0x164] sm:$0xf] %v441_v37  ;;  %v445_v39 = vld [vmem:[%s2136_s28 + $0x444] sm:$0xf]  ;;  %v447_v40 = vld [vmem:[%s2136_s28 + $0x450] sm:$0xf] }
  0x76   : > { %444 = vst [vmem:[%s2141_s10 + $0x168] sm:$0xf] %v443_v38  ;;  %446 = vst [vmem:[%s2141_s10 + $0x16c] sm:$0xf] %v445_v39  ;;  %v449_v41 = vld [vmem:[%s2136_s28 + $0x45c] sm:$0xf] }
  0x77   : > { %448 = vst [vmem:[%s2141_s10 + $0x170] sm:$0xf] %v447_v40  ;;  %v451_v42 = vld [vmem:[%s2136_s28 + $0x468] sm:$0xf]  ;;  %v453_v43 = vld [vmem:[%s2136_s28 + $0x474] sm:$0xf] }
  0x78   : > { %450 = vst [vmem:[%s2141_s10 + $0x174] sm:$0xf] %v449_v41  ;;  %452 = vst [vmem:[%s2141_s10 + $0x178] sm:$0xf] %v451_v42 }
  0x79   : > { %454 = vst [vmem:[%s2141_s10 + $0x17c] sm:$0xf] %v453_v43 }
  0x7a PF: > { %p1576_p0 = scmp.ge.s32.totalorder %s1994_s25, 1  ;;  %p680_p1 = scmp.lt.s32.totalorder %s1994_s25, 10 }
  0x7c   : > { %p681_p2 = pnand %p1576_p0, %p680_p1 }
  0x7d   : > { %s687_s0 = sand.u32 (!%p681_p2), 1, %s1970_s19   ;;  %s694_s11 = sand.u32 (!%p681_p2), 1, %s1962_s17  }
  0x7e   : > { %684 = sbr.rel (%p681_p2) target bundleno = 452 (0x1c4), region = 92  ;;  %s725_s28 = sand.u32 (!%p681_p2), 1, %s1954_s15  }
  0x7f   : > { %s1750_s26 = smul.u32 (!%p681_p2), 96, %s687_s0  ;;  %s1577_s29 = sshll.u32 (!%p681_p2), %s725_s28, 5 }
  0x80   : > { %s1751_s5 = smul.u32 (!%p681_p2), 384, %s694_s11  ;;  %p731_p3 = scmp.lt.s32.totalorder (!%p681_p2), %s1982_s22, 2 }
  0x81   : > { %s2349_s24 = scalar_lea.vmem (!%p681_p2), [#allocation3], %s1750_s26  ;;  %s2353_s15 = scalar_lea.vmem (!%p681_p2), [#allocation5], %s1577_s29 }
  0x82   : > { %s2351_s17 = scalar_lea.vmem (!%p681_p2), [#allocation4], %s1751_s5  ;;  %p1578_p4 = scmp.ne.s32.totalorder (!%p681_p2), %s1978_s21, 0 }
  0x85   : > { %s2339_s30 = scalar_select %p731_p3, %s1982_s22, 2 }
  0x86   : > { %742 = sbr.rel (%p1578_p4) target bundleno = 141 (0x8d), region = 104  ;;  %v1996_v44 = vmov (!%p1578_p4), 0.0  }
  0x87   : > { %s733_s9 = scalar_lea.vmem %s2476_s2, %s2339_s30  ;;  %s736_s27 = scalar_lea.vmem %s2477_s3, %s2339_s30  ;;  %743 = vst [vmem:[#allocation2] sm:$0xff] (!%p1578_p4), %v1996_v44  ;;  %744 = vst [vmem:[#allocation2 + $0x8] sm:$0xff] (!%p1578_p4), %v1996_v44 }
  0x88   : > { %745 = vst [vmem:[#allocation2 + $0x10] sm:$0xff] (!%p1578_p4), %v1996_v44  ;;  %746 = vst [vmem:[#allocation2 + $0x18] sm:$0xff] (!%p1578_p4), %v1996_v44 }
  0x8d PF: > { %v1842_v45 = vld [vmem:[%s2351_s17 + $0x40] sm:$0xff]   ;;  %v1846_v49 = vld [vmem:[%s2351_s17 + $0x48] sm:$0xff]   ;;  %v1850_v53 = vld [vmem:[%s2351_s17 + $0x50] sm:$0xff]   ;;  %p1639_p5 = scmp.ne.s32.totalorder %s1978_s21, 2 }
  0x8e   : > { %v1843_v46 = vld [vmem:[%s2351_s17 + $0xc0] sm:$0xff]   ;;  %1647 = vmatprep.subr.bf16.mxu0 %v1842_v45  ;;  %v1847_v50 = vld [vmem:[%s2351_s17 + $0xc8] sm:$0xff]   ;;  %v1851_v54 = vld [vmem:[%s2351_s17 + $0xd0] sm:$0xff]  }
  0x8f   : > { %v1844_v47 = vld [vmem:[%s2351_s17] sm:$0xff]   ;;  %1675 = vmatprep.subr.bf16.mxu1 %v1843_v46  ;;  %v1848_v51 = vld [vmem:[%s2351_s17 + $0x8] sm:$0xff]   ;;  %v1852_v55 = vld [vmem:[%s2351_s17 + $0x10] sm:$0xff]  }
  0x90   : > { %v1845_v48 = vld [vmem:[%s2351_s17 + $0x80] sm:$0xff]   ;;  %1648 = vmatpush3.bf16.msra.mxu0 %v1844_v47  ;;  %v1849_v52 = vld [vmem:[%s2351_s17 + $0x88] sm:$0xff]   ;;  %v1853_v56 = vld [vmem:[%s2351_s17 + $0x90] sm:$0xff]  }
  0x91   : > { %1676 = vmatpush3.bf16.msra.mxu1 %v1845_v48  ;;  %1649 = vmatprep.subr.bf16.mxu0 %v1846_v49  ;;  %v1854_v57 = vld [vmem:[%s2351_s17 + $0x58] sm:$0xff]   ;;  %v1858_v61 = vld [vmem:[%s2351_s17 + $0x60] sm:$0xff]   ;;  %v1862_v1 = vld [vmem:[%s2351_s17 + $0x68] sm:$0xff]  }
  0x92   : > { %1677 = vmatprep.subr.bf16.mxu1 %v1847_v50  ;;  %v1855_v58 = vld [vmem:[%s2351_s17 + $0xd8] sm:$0xff]   ;;  %v1859_v62 = vld [vmem:[%s2351_s17 + $0xe0] sm:$0xff]   ;;  %v1863_v2 = vld [vmem:[%s2351_s17 + $0xe8] sm:$0xff]  }
  0x93   : > { %v1856_v59 = vld [vmem:[%s2351_s17 + $0x18] sm:$0xff]   ;;  %v1860_v63 = vld [vmem:[%s2351_s17 + $0x20] sm:$0xff]   ;;  %v1864_v3 = vld [vmem:[%s2351_s17 + $0x28] sm:$0xff]  }
  0x94   : > { %1650 = vmatpush3.bf16.msra.mxu0 %v1848_v51  ;;  %v1857_v60 = vld [vmem:[%s2351_s17 + $0x98] sm:$0xff]   ;;  %v1861_v0 = vld [vmem:[%s2351_s17 + $0xa0] sm:$0xff]   ;;  %v1865_v4 = vld [vmem:[%s2351_s17 + $0xa8] sm:$0xff]  }
  0x95   : > { %1678 = vmatpush3.bf16.msra.mxu1 %v1849_v52  ;;  %1651 = vmatprep.subr.bf16.mxu0 %v1850_v53  ;;  %v1866_v5 = vld [vmem:[%s2351_s17 + $0x70] sm:$0xff]   ;;  %v1870_v9 = vld [vmem:[%s2351_s17 + $0x78] sm:$0xff]   ;;  %v1877_v15 = vld [vmem:[%s2349_s24 + $0x8] ss:$24 sps:$4 sm:$0xff]  }
  0x96   : > { %1679 = vmatprep.subr.bf16.mxu1 %v1851_v54  ;;  %v1867_v6 = vld [vmem:[%s2351_s17 + $0xf0] sm:$0xff]   ;;  %v1871_v10 = vld [vmem:[%s2351_s17 + $0xf8] sm:$0xff]   ;;  %v1879_v16 = vld [vmem:[%s2349_s24 + $0xc] ss:$24 sps:$4 sm:$0xff]  }
  0x97   : > { %v1868_v7 = vld [vmem:[%s2351_s17 + $0x30] sm:$0xff]   ;;  %v1872_v11 = vld [vmem:[%s2351_s17 + $0x38] sm:$0xff]   ;;  %v1880_v17 = vld [vmem:[%s2351_s17 + $0x140] sm:$0xff]   ;;  %1288 = vmatprep.mubr.bf16.mxu1 %v1879_v16 }
  0x98   : > { %1652 = vmatpush3.bf16.msra.mxu0 %v1852_v55  ;;  %v1869_v8 = vld [vmem:[%s2351_s17 + $0xb0] sm:$0xff]   ;;  %v1873_v12 = vld [vmem:[%s2351_s17 + $0xb8] sm:$0xff]   ;;  %v1881_v18 = vld [vmem:[%s2351_s17 + $0x100] sm:$0xff]  }
  0x99   : > { %1680 = vmatpush3.bf16.msra.mxu1 %v1853_v56  ;;  %1653 = vmatprep.subr.bf16.mxu0 %v1854_v57  ;;  %v1874_v13 = vld [vmem:[%s2349_s24] ss:$24 sps:$4 sm:$0xff]   ;;  %v1876_v14 = vld [vmem:[%s2349_s24 + $0x4] ss:$24 sps:$4 sm:$0xff]   ;;  %v1882_v19 = vld [vmem:[%s2351_s17 + $0x148] sm:$0xff]  }
  0x9a   : > { %1681 = vmatprep.subr.bf16.mxu1 %v1855_v58  ;;  %1239 = vmatprep.mubr.bf16.mxu0 %v1876_v14  ;;  %v1883_v20 = vld [vmem:[%s2351_s17 + $0x108] sm:$0xff]   ;;  %v1884_v21 = vld [vmem:[%s2351_s17 + $0x150] sm:$0xff]   ;;  %v1886_v23 = vld [vmem:[%s2351_s17 + $0x158] sm:$0xff]  }
  0x9b   : > { %v1885_v22 = vld [vmem:[%s2351_s17 + $0x110] sm:$0xff]   ;;  %v1887_v24 = vld [vmem:[%s2351_s17 + $0x118] sm:$0xff]   ;;  %v1888_v27 = vld [vmem:[%s2351_s17 + $0x160] sm:$0xff]  }
  0x9c   : > { %1654 = vmatpush3.bf16.msra.mxu0 %v1856_v59  ;;  %v1890_v25 = vld [vmem:[%s2349_s24 + $0x34] ss:$24 sps:$4 sm:$0xff]   ;;  %v1895_v28 = vld [vmem:[%s2349_s24 + $0x30] ss:$24 sps:$4 sm:$0xff]   ;;  %v1889_v30 = vld [vmem:[%s2351_s17 + $0x120] sm:$0xff]  }
  0x9d   : > { %1682 = vmatpush3.bf16.msra.mxu1 %v1857_v60  ;;  %1655 = vmatprep.subr.bf16.mxu0 %v1858_v61  ;;  %v1892_v26 = vld [vmem:[%s2349_s24 + $0x3c] ss:$24 sps:$4 sm:$0xff]   ;;  %v1896_v29 = vld [vmem:[%s2349_s24 + $0x38] ss:$24 sps:$4 sm:$0xff]   ;;  %v1894_v31 = vld [vmem:[%s2351_s17 + $0x168] sm:$0xff]  }
  0x9e   : > { %1683 = vmatprep.subr.bf16.mxu1 %v1859_v62  ;;  %v1897_v32 = vld [vmem:[%s2351_s17 + $0x128] sm:$0xff]   ;;  %v1898_v34 = vld [vmem:[%s2351_s17 + $0x170] sm:$0xff]   ;;  %v1907_v35 = vld [vmem:[%s2349_s24 + $0x44] ss:$24 sps:$4 sm:$0xff]  }
  0x9f   : > { %v1904_v33 = vld [vmem:[%s2349_s24 + $0x14] ss:$24 sps:$4 sm:$0xff]   ;;  %v1900_v37 = vld [vmem:[%s2351_s17 + $0x178] sm:$0xff]   ;;  %v1902_v39 = vld [vmem:[%s2349_s24 + $0x10] ss:$24 sps:$4 sm:$0xff]  }
  0xa0   : > { %1656 = vmatpush3.bf16.msra.mxu0 %v1860_v63  ;;  %v1899_v36 = vld [vmem:[%s2351_s17 + $0x130] sm:$0xff]   ;;  %v1901_v38 = vld [vmem:[%s2351_s17 + $0x138] sm:$0xff]  }
  0xa1   : > { %1684 = vmatpush3.bf16.msra.mxu1 %v1861_v0  ;;  %1657 = vmatprep.subr.bf16.mxu0 %v1862_v1  ;;  %v1905_v40 = vld [vmem:[%s2349_s24 + $0x40] ss:$24 sps:$4 sm:$0xff]   ;;  %v749_v16 = vld [vmem:[#allocation2 + $0x10] sm:$0xff] }
  0xa2   : > { %1685 = vmatprep.subr.bf16.mxu1 %v1863_v2 }
  0xa4   : > { %1658 = vmatpush3.bf16.msra.mxu0 %v1864_v3 }
  0xa5   : > { %1686 = vmatpush3.bf16.msra.mxu1 %v1865_v4  ;;  %1659 = vmatprep.subr.bf16.mxu0 %v1866_v5 }
  0xa6   : > { %1687 = vmatprep.subr.bf16.mxu1 %v1867_v6 }
  0xa8   : > { %1660 = vmatpush3.bf16.msra.mxu0 %v1868_v7 }
  0xa9   : > { %1688 = vmatpush3.bf16.msra.mxu1 %v1869_v8  ;;  %1661 = vmatprep.subr.bf16.mxu0 %v1870_v9 }
  0xaa   : > { %1689 = vmatprep.subr.bf16.mxu1 %v1871_v10 }
  0xac   : > { %1662 = vmatpush3.bf16.msra.mxu0 %v1872_v11  ;;  %v747_v11 = vld [vmem:[#allocation2] sm:$0xff] }
  0xad   : > { %1690 = vmatpush3.bf16.msra.mxu1 %v1873_v12  ;;  %1703 = vmatprep.subr.bf16.mxu0 %v1880_v17 }
  0xae   : > { %1731 = vmatprep.subr.bf16.mxu1 %v1880_v17 }
  0xaf   : > { %1240 = vmatmul.mubr.bf16.vlgmr.msra.gmra.mrb[0].mxu0 %v1874_v13 }
  0xb0   : > { %1289 = vmatmul.mubr.bf16.vlgmr.msra.gmra.mrb[0].mxu1 %v1877_v15  ;;  %1704 = vmatpush3.bf16.msra.mxu0 %v1881_v18 }
  0xb1   : > { %1739 = vmatpush3.bf16.msra.mxu1 %v1881_v18  ;;  %1705 = vmatprep.subr.bf16.mxu0 %v1882_v19 }
  0xb2   : > { %1732 = vmatprep.subr.bf16.mxu1 %v1882_v19  ;;  %1247 = vmatprep.mubr.bf16.mxu0 %v1890_v25 }
  0xb3   : > { %1296 = vmatprep.mubr.bf16.mxu1 %v1892_v26 }
  0xb4   : > { %1706 = vmatpush3.bf16.msra.mxu0 %v1883_v20 }
  0xb5   : > { %1740 = vmatpush3.bf16.msra.mxu1 %v1883_v20  ;;  %1707 = vmatprep.subr.bf16.mxu0 %v1884_v21  ;;  %v748_v20 = vld [vmem:[#allocation2 + $0x8] sm:$0xff] }
  0xb6   : > { %1733 = vmatprep.subr.bf16.mxu1 %v1884_v21 }
  0xb7   : > { %1248 = vmatmul.mubr.bf16.gmra.mrb[4].mxu0 %v1895_v28 }
  0xb8   : > { %1708 = vmatpush3.bf16.msra.mxu0 %v1885_v22  ;;  %1297 = vmatmul.mubr.bf16.gmra.mrb[4].mxu1 %v1896_v29 }
  0xb9   : > { %1741 = vmatpush3.bf16.msra.mxu1 %v1885_v22  ;;  %1709 = vmatprep.subr.bf16.mxu0 %v1886_v23 }
  0xba   : > { %1734 = vmatprep.subr.bf16.mxu1 %v1886_v23  ;;  %1337 = vmatprep.mubr.bf16.mxu0 %v1904_v33 }
  0xbb   : > { %1345 = vmatprep.mubr.bf16.mxu1 %v1907_v35 }
  0xbc   : > { %1710 = vmatpush3.bf16.msra.mxu0 %v1887_v24 }
  0xbd   : > { %1742 = vmatpush3.bf16.msra.mxu1 %v1887_v24  ;;  %1711 = vmatprep.subr.bf16.mxu0 %v1888_v27  ;;  %v750_v24 = vld [vmem:[#allocation2 + $0x18] sm:$0xff] }
  0xbe   : > { %1735 = vmatprep.subr.bf16.mxu1 %v1888_v27 }
  0xc0   : > { %1712 = vmatpush3.bf16.msra.mxu0 %v1889_v30 }
  0xc1   : > { %1743 = vmatpush3.bf16.msra.mxu1 %v1889_v30  ;;  %1713 = vmatprep.subr.bf16.mxu0 %v1894_v31  ;;  %v1640_v30 = vld [vmem:[%s733_s9] ss:$0 sm:$0xff] (!%p1639_p5) }
  0xc2   : > { %1736 = vmatprep.subr.bf16.mxu1 %v1894_v31  ;;  %v1641_v31 = vld [vmem:[%s736_s27] ss:$0 sm:$0xff] (!%p1639_p5) }
  0xc4   : > { %1714 = vmatpush3.bf16.msra.mxu0 %v1897_v32 }
  0xc5   : > { %1744 = vmatpush3.bf16.msra.mxu1 %v1897_v32  ;;  %1715 = vmatprep.subr.bf16.mxu0 %v1898_v34 }
  0xc6   : > { %1737 = vmatprep.subr.bf16.mxu1 %v1898_v34 }
  0xc8   : > { %1716 = vmatpush3.bf16.msra.mxu0 %v1899_v36 }
  0xc9   : > { %1745 = vmatpush3.bf16.msra.mxu1 %v1899_v36  ;;  %1717 = vmatprep.subr.bf16.mxu0 %v1900_v37 }
  0xca   : > { %1738 = vmatprep.subr.bf16.mxu1 %v1900_v37 }
  0xcc   : > { %1718 = vmatpush3.bf16.msra.mxu0 %v1901_v38 }
  0xcd   : > { %1746 = vmatpush3.bf16.msra.mxu1 %v1901_v38 }
  0xcf   : > { %1338 = vmatmul.mubr.bf16.vlgmr.msra.gmra.mrb[8].mxu0 %v1902_v39 }
  0xd0   : > { %1346 = vmatmul.mubr.bf16.vlgmr.msra.gmra.mrb[8].mxu1 %v1905_v40 }
 0x182   : > { %v1663_v41 = vpop.f32.mrb[0].mxu0 }
 0x183   : > { %v1691_v42 = vpop.f32.mrb[0].mxu1  ;;  %v1664_v43 = vpop.f32.mrb[1].mxu0 }
 0x184   : > { %v1665_v44 = vadd.f32 %v1664_v43, %v1663_v41  ;;  %v1692_v45 = vpop.f32.mrb[1].mxu1  ;;  %v1666_v46 = vpop.f32.mrb[2].mxu0 }
 0x185   : > { %v1693_v47 = vadd.f32 %v1692_v45, %v1691_v42  ;;  %v1694_v48 = vpop.f32.mrb[2].mxu1  ;;  %v1667_v49 = vpop.f32.mrb[3].mxu0 }
 0x186   : > { %v1668_v50 = vadd.f32 %v1667_v49, %v1666_v46  ;;  %v1695_v51 = vpop.f32.mrb[3].mxu1 }
 0x187   : > { %v1291_v52 = vadd.f32 %v1693_v47, %v1665_v44  ;;  %v1696_v53 = vadd.f32 %v1695_v51, %v1694_v48 }
 0x189   : > { %v1294_v54 = vadd.f32 %v1696_v53, %v1668_v50 }
 0x18a   : > { %v1669_v55 = vpop.f32.mrb[4].mxu0 }
 0x18b   : > { %v1697_v56 = vpop.f32.mrb[4].mxu1  ;;  %v1670_v57 = vpop.f32.mrb[5].mxu0 }
 0x18c   : > { %v1671_v58 = vadd.f32 %v1670_v57, %v1669_v55  ;;  %v1698_v59 = vpop.f32.mrb[5].mxu1  ;;  %v1672_v60 = vpop.f32.mrb[6].mxu0 }
 0x18d   : > { %v1699_v61 = vadd.f32 %v1698_v59, %v1697_v56  ;;  %v1700_v62 = vpop.f32.mrb[6].mxu1  ;;  %v1673_v63 = vpop.f32.mrb[7].mxu0 }
 0x18e   : > { %v1674_v0 = vadd.f32 %v1673_v63, %v1672_v60  ;;  %v1701_v1 = vpop.f32.mrb[7].mxu1 }
 0x18f   : > { %v1299_v2 = vadd.f32 %v1699_v61, %v1671_v58  ;;  %v1702_v3 = vadd.f32 %v1701_v1, %v1700_v62 }
 0x191   : > { %v1302_v4 = vadd.f32 %v1702_v3, %v1674_v0 }
 0x1a2   : > { %v1719_v5 = vpop.f32.mrb[8].mxu0 }
 0x1a3   : > { %v1725_v6 = vpop.f32.mrb[8].mxu1  ;;  %v1720_v7 = vpop.f32.mrb[9].mxu0 }
 0x1a4   : > { %v1721_v8 = vadd.f32 %v1720_v7, %v1719_v5  ;;  %v1726_v9 = vpop.f32.mrb[9].mxu1  ;;  %v1722_v10 = vpop.f32.mrb[10].mxu0 }
 0x1a5   : > { %v1727_v12 = vadd.f32 %v1726_v9, %v1725_v6  ;;  %v1728_v13 = vpop.f32.mrb[10].mxu1  ;;  %v1723_v14 = vpop.f32.mrb[11].mxu0 }
 0x1a6   : > { %v1340_v15 = vadd.f32 %v1721_v8, %v1291_v52  ;;  %v1724_v17 = vadd.f32 %v1723_v14, %v1722_v10  ;;  %v1729_v18 = vpop.f32.mrb[11].mxu1 }
 0x1a7   : > { %v1348_v19 = vadd.f32 %v1727_v12, %v1299_v2  ;;  %v1730_v21 = vadd.f32 %v1729_v18, %v1728_v13  ;;  %1365 = sbr.rel (%p1639_p5) target bundleno = 444 (0x1bc), region = 108 }
 0x1a8   : > { %v1354_v22 = vadd.f32 %v1340_v15, %v747_v11  ;;  %v1343_v23 = vadd.f32 %v1724_v17, %v1294_v54 }
 0x1a9   : > { %v1356_v25 = vadd.f32 %v1348_v19, %v749_v16  ;;  %v1351_v26 = vadd.f32 %v1730_v21, %v1302_v4 }
 0x1aa   : > { %1358 = vst [vmem:[#allocation2] sm:$0xff] %v1354_v22  ;;  %v1355_v27 = vadd.f32 %v1343_v23, %v748_v20 }
 0x1ab   : > { %1360 = vst [vmem:[#allocation2 + $0x10] sm:$0xff] %v1356_v25  ;;  %v1357_v28 = vadd.f32 %v1351_v26, %v750_v24 }
 0x1ac   : > { %1359 = vst [vmem:[#allocation2 + $0x8] sm:$0xff] %v1355_v27 }
 0x1ad   : > { %1361 = vst [vmem:[#allocation2 + $0x18] sm:$0xff] %v1357_v28 }
 0x1b1   : > { %v1366_v29 = vld [vmem:[#allocation2] sm:$0xff] }
 0x1b2   : > { %v1377_v32 = vmul.f32 %v1640_v30, %v1366_v29  ;;  %v1368_v34 = vld [vmem:[#allocation2 + $0x10] sm:$0xff] }
 0x1b3   : > { %v1367_v33 = vld [vmem:[#allocation2 + $0x8] sm:$0xff]  ;;  %v1379_v37 = vmul.f32 %v1640_v30, %v1368_v34 }
 0x1b4   : > { %v1369_v35 = vld [vmem:[#allocation2 + $0x18] sm:$0xff]  ;;  %v1378_v36 = vmul.f32 %v1640_v30, %v1367_v33  ;;  %v1388_v39 = vadd.f32 %v1641_v31, %v1377_v32 }
 0x1b5   : > { %v1380_v38 = vmul.f32 %v1640_v30, %v1369_v35  ;;  %v1390_v41 = vadd.f32 %v1641_v31, %v1379_v37 }
 0x1b6   : > { %v1389_v40 = vadd.f32 %v1641_v31, %v1378_v36  ;;  %v1392_v43 = vmax.f32 %v1388_v39, 0.0 }
 0x1b7   : > { %v1391_v42 = vadd.f32 %v1641_v31, %v1380_v38  ;;  %v1394_v45 = vmax.f32 %v1390_v41, 0.0 }
 0x1b8   : > { %v1393_v44 = vmax.f32 %v1389_v40, 0.0  ;;  %1396 = vst [vmem:[%s2353_s15] sm:$0xff] %v1392_v43 }
 0x1b9   : > { %v1395_v46 = vmax.f32 %v1391_v42, 0.0  ;;  %1398 = vst [vmem:[%s2353_s15 + $0x10] sm:$0xff] %v1394_v45 }
 0x1ba   : > { %1397 = vst [vmem:[%s2353_s15 + $0x8] sm:$0xff] %v1393_v44 }
 0x1bb   : > { %1399 = vst [vmem:[%s2353_s15 + $0x18] sm:$0xff] %v1395_v46 }
 0x1bc PF: > { %1406 = sbr.rel (!%p2116_p12) target bundleno = 452 (0x1c4), region = 112  ;;  %s1643_s21 = sshll.u32 (%p2116_p12), %s1982_s22, 3 }
 0x1bd   : > { %s1411_s26 = scalar_lea.vmem (%p2116_p12), %s2478_s4, %s1643_s21 }
 0x1bf   : > { %v1445_v47 = vld [vmem:[%s2353_s15] sm:$0xff] (%p2116_p12) }
 0x1c0   : > { %v1449_v49 = vld [vmem:[%s2353_s15 + $0x10] sm:$0xff] (%p2116_p12)  ;;  %1446 = vst [vmem:[%s1411_s26] sm:$0xff] (%p2116_p12), %v1445_v47 }
 0x1c1   : > { %v1447_v48 = vld [vmem:[%s2353_s15 + $0x8] sm:$0xff] (%p2116_p12)  ;;  %1450 = vst [vmem:[%s1411_s26 + $0x30] sm:$0xff] (%p2116_p12), %v1449_v49 }
 0x1c2   : > { %v1451_v50 = vld [vmem:[%s2353_s15 + $0x18] sm:$0xff] (%p2116_p12)  ;;  %1448 = vst [vmem:[%s1411_s26 + $0x18] sm:$0xff] (%p2116_p12), %v1447_v48 }
 0x1c3   : > { %1452 = vst [vmem:[%s1411_s26 + $0x48] sm:$0xff] %v1451_v50 }
 0x1c4 PF: > { %s14_s25 = sadd.s32 1, %s1994_s25   ;;  %s2492_s22 = sld [smem:[#allocation6_spill]] }
 0x1c5   : > { %p11_p6 = scmp.ge.s32.totalorder %s14_s25, 11   ;;  %s2493_s14 = sld [smem:[#allocation7_spill]] }
 0x1c6   : > { %s2494_s24 = sld [smem:[#allocation8_spill]]  ;;  %s2495_s15 = smov %s1958_s16 }
 0x1c7   : > { %s2496_s16 = smov %s2114_s13  ;;  %s2497_s17 = smov %s1966_s18 }
 0x1c8   : > { %s2498_s18 = smov %s2111_s12  ;;  %s2499_s19 = smov %s1974_s20 }
 0x1c9   : > { %s2500_s20 = smov %s2097_s7  ;;  %s2501_s21 = smov %s1986_s23 }
 0x1ca   :  { %13 = sbr.rel (!%p11_p6) target bundleno = 9 (0x9), region = 195 }
 0x1cb   : > { %s2502_s23 = smov %s2493_s14 }

// kernel: mixed_7a.8
= control target key start
LH: loop header
LB: loop body
LE: loop exit
PB: predicated region body
PF: predicated region fallthrough
CT: control target
= control target key end

     0   :  { %s1849_s15 = smov 0   ;;  %s1851_s16 = smov 0   ;;  %s2058_s0 = inlined_call_operand.vmem [shape: bf16[32,2304], index: 0, kind: input, shape index: {}]   ;;  %s2059_s1 = inlined_call_operand.vmem [shape: bf16[2304,256], index: 1, kind: input, shape index: {}]   ;;  %s2060_s2 = inlined_call_operand.vmem [shape: f32[1,256], index: 2, kind: input, shape index: {}]   ;;  %s2061_s3 = inlined_call_operand.vmem [shape: f32[1,256], index: 3, kind: input, shape index: {}]   ;;  %s2062_s4 = inlined_call_operand.vmem [shape: f32[32,256], index: 4, kind: output, shape index: {}]  }
   0x1   :  { %s1853_s17 = smov 0   ;;  %s1855_s18 = smov 0  }
   0x2   :  { %s1857_s19 = smov 0  }
   0x3 LB: > { %s26_s20 = sadd.s32 1, %s1817_s18  ;;  %p49_p1 = scmp.ne.s32.totalorder %s1809_s16, %s1805_s15  ;;  %s1821_s19 = sphi %s1857_s19, %s14_s19   ;;  %s1817_s18 = sphi %s1855_s18, %s2066_s18   ;;  %s1813_s17 = sphi %s1853_s17, %s2065_s17   ;;  %s1809_s16 = sphi %s1851_s16, %s2064_s16   ;;  %s1805_s15 = sphi %s1849_s15, %s2063_s15  }
   0x4   : > { %p27_p0 = scmp.ge.s32.totalorder %s26_s20, 3  ;;  %p50_p2 = scmp.eq.s32.totalorder %s1821_s19, 0 }
   0x5   : > { %s42_s22 = sadd.s32 1, %s1809_s16  ;;  %p1409_p5 = scmp.ge.s32.totalorder %s1821_s19, 3 }
   0x6   : > { %s2068_s20 = smov (%p27_p0, %s26_s20), 0  ;;  %p51_p3 = por %p50_p2, %p49_p1 }
   0x7   : > { %s38_s21 = ssub.s32 %s1817_s18, %s2068_s20  ;;  %199 = sbr.rel (%p1409_p5) target bundleno = 25 (0x19), region = 24 }
   0x8   : > { %p40_p4 = scmp.eq.s32.totalorder %s38_s21, 0 }
   0xa   : > { %s1884_s23 = scalar_select %p40_p4, %s1809_s16, %s42_s22  }
   0xe   : > { %202 = sbr.rel (!%p51_p3) target bundleno = 25 (0x19), region = 28  ;;  %s204_s24 = sand.u32 (%p51_p3), 1, %s1809_s16  }
   0xf   : > { %s1528_s25 = smul.u32 (%p51_p3), 24, %s1817_s18 }
  0x10   : > { %s1578_s26 = smul.u32 (%p51_p3), 96, %s204_s24 }
  0x11   : > { %s212_s29 = scalar_lea.vmem (%p51_p3), %s2058_s0, %s1528_s25 }
  0x12   : > { %v225_v0 = vld [vmem:[%s212_s29] sm:$0xff] (%p51_p3)  ;;  %v227_v1 = vld [vmem:[%s212_s29 + $0x8] sm:$0xff] (%p51_p3)  ;;  %v229_v2 = vld [vmem:[%s212_s29 + $0x10] sm:$0xff] (%p51_p3)  ;;  %s206_s30 = scalar_lea.vmem (%p51_p3), [#allocation3], %s1578_s26 }
  0x13   : > { %226 = vst [vmem:[%s206_s30] sm:$0xff] (%p51_p3), %v225_v0  ;;  %228 = vst [vmem:[%s206_s30 + $0x8] sm:$0xff] (%p51_p3), %v227_v1  ;;  %v231_v3 = vld [vmem:[%s212_s29 + $0x48] sm:$0xff] (%p51_p3)  ;;  %v233_v4 = vld [vmem:[%s212_s29 + $0x50] sm:$0xff] (%p51_p3) }
  0x14   : > { %230 = vst [vmem:[%s206_s30 + $0x10] sm:$0xff] (%p51_p3), %v229_v2  ;;  %v235_v5 = vld [vmem:[%s212_s29 + $0x58] sm:$0xff] (%p51_p3)  ;;  %232 = vst [vmem:[%s206_s30 + $0x18] sm:$0xff] (%p51_p3), %v231_v3  ;;  %v237_v6 = vld [vmem:[%s212_s29 + $0x90] sm:$0xff] (%p51_p3) }
  0x15   : > { %234 = vst [vmem:[%s206_s30 + $0x20] sm:$0xff] %v233_v4  ;;  %236 = vst [vmem:[%s206_s30 + $0x28] sm:$0xff] %v235_v5  ;;  %v239_v7 = vld [vmem:[%s212_s29 + $0x98] sm:$0xff]  ;;  %v241_v8 = vld [vmem:[%s212_s29 + $0xa0] sm:$0xff] }
  0x16   : > { %238 = vst [vmem:[%s206_s30 + $0x30] sm:$0xff] %v237_v6  ;;  %240 = vst [vmem:[%s206_s30 + $0x38] sm:$0xff] %v239_v7  ;;  %v243_v9 = vld [vmem:[%s212_s29 + $0xd8] sm:$0xff]  ;;  %v245_v10 = vld [vmem:[%s212_s29 + $0xe0] sm:$0xff] }
  0x17   : > { %242 = vst [vmem:[%s206_s30 + $0x40] sm:$0xff] %v241_v8  ;;  %v247_v11 = vld [vmem:[%s212_s29 + $0xe8] sm:$0xff]  ;;  %244 = vst [vmem:[%s206_s30 + $0x48] sm:$0xff] %v243_v9 }
  0x18   : > { %246 = vst [vmem:[%s206_s30 + $0x50] sm:$0xff] %v245_v10  ;;  %248 = vst [vmem:[%s206_s30 + $0x58] sm:$0xff] %v247_v11 }
  0x19 PF: > { %p1411_p6 = scmp.ge.s32.totalorder %s1821_s19, 1  ;;  %p268_p7 = scmp.lt.s32.totalorder %s1821_s19, 4 }
  0x1b   : > { %p269_p8 = pnand %p1411_p6, %p268_p7 }
  0x1c   : > { %s275_s5 = sand.u32 (!%p269_p8), 1, %s1805_s15   ;;  %s325_s6 = smul.u32 (!%p269_p8), 96, %s1813_s17 }
  0x1d   : > { %272 = sbr.rel (%p269_p8) target bundleno = 407 (0x197), region = 55  ;;  %p1414_p10 = scmp.ne.s32.totalorder (!%p269_p8), %s1813_s17, 0 }
  0x1e   : > { %s1579_s7 = smul.u32 (!%p269_p8), 96, %s275_s5  ;;  %p327_p9 = scmp.lt.s32.totalorder (!%p269_p8), %s325_s6, 287 }
  0x20   : > { %s1901_s12 = scalar_lea.vmem (!%p269_p8), [#allocation3], %s1579_s7 }
  0x24   : > { %s2070_s6 = smov (!%p327_p9, %s325_s6), 287  ;;  %362 = sbr.rel (%p1414_p10) target bundleno = 43 (0x2b), region = 63 }
  0x25   : > { %s1529_s8 = sshll.u32 %s2070_s6, 3  ;;  %v1823_v12 = vmov (!%p1414_p10), 0.0  }
  0x26   : > { %s1899_s11 = scalar_lea.vmem %s2059_s1, %s1529_s8  ;;  %363 = vst [vmem:[#allocation2] sm:$0xff] (!%p1414_p10), %v1823_v12  ;;  %364 = vst [vmem:[#allocation2 + $0x8] sm:$0xff] (!%p1414_p10), %v1823_v12 }
  0x27   : > { %365 = vst [vmem:[#allocation2 + $0x10] sm:$0xff] (!%p1414_p10), %v1823_v12  ;;  %366 = vst [vmem:[#allocation2 + $0x18] sm:$0xff] (!%p1414_p10), %v1823_v12 }
  0x28   : > { %367 = vst [vmem:[#allocation2 + $0x20] sm:$0xff] (!%p1414_p10), %v1823_v12  ;;  %368 = vst [vmem:[#allocation2 + $0x28] sm:$0xff] (!%p1414_p10), %v1823_v12 }
  0x29   : > { %369 = vst [vmem:[#allocation2 + $0x30] sm:$0xff] (!%p1414_p10), %v1823_v12  ;;  %370 = vst [vmem:[#allocation2 + $0x38] sm:$0xff] (!%p1414_p10), %v1823_v12 }
  0x2b PF: > { %v1621_v13 = vld [vmem:[%s1899_s11 + $0x4] ss:$8 sps:$4 sm:$0xff]   ;;  %v1625_v15 = vld [vmem:[%s1899_s11] ss:$8 sps:$4 sm:$0xff]   ;;  %v1627_v17 = vld [vmem:[%s1899_s11 + $0x14] ss:$8 sps:$4 sm:$0xff]  }
  0x2c   : > { %v1623_v14 = vld [vmem:[%s1899_s11 + $0x104] ss:$8 sps:$4 sm:$0xff]   ;;  %1027 = vmatprep.subr.bf16.mxu1 %v1621_v13  ;;  %v1626_v16 = vld [vmem:[%s1899_s11 + $0x100] ss:$8 sps:$4 sm:$0xff]   ;;  %v1629_v18 = vld [vmem:[%s1899_s11 + $0x114] ss:$8 sps:$4 sm:$0xff]  }
  0x2d   : > { %1080 = vmatprep.subr.bf16.mxu0 %v1623_v14  ;;  %1028 = vmatpush1.bf16.msra.mxu1 %v1625_v15  ;;  %v1631_v19 = vld [vmem:[%s1899_s11 + $0x10] ss:$8 sps:$4 sm:$0xff]   ;;  %v1633_v21 = vld [vmem:[%s1899_s11 + $0x24] ss:$8 sps:$4 sm:$0xff]   ;;  %v1637_v23 = vld [vmem:[%s1899_s11 + $0x20] ss:$8 sps:$4 sm:$0xff]  }
  0x2e   : > { %1081 = vmatpush1.bf16.msra.mxu0 %v1626_v16  ;;  %1029 = vmatprep.subr.bf16.mxu1 %v1627_v17  ;;  %v1632_v20 = vld [vmem:[%s1899_s11 + $0x110] ss:$8 sps:$4 sm:$0xff]   ;;  %v1635_v22 = vld [vmem:[%s1899_s11 + $0x124] ss:$8 sps:$4 sm:$0xff]   ;;  %v1638_v24 = vld [vmem:[%s1899_s11 + $0x120] ss:$8 sps:$4 sm:$0xff]  }
  0x2f   : > { %1082 = vmatprep.subr.bf16.mxu0 %v1629_v18  ;;  %v1639_v25 = vld [vmem:[%s1899_s11 + $0x34] ss:$8 sps:$4 sm:$0xff]   ;;  %v1643_v27 = vld [vmem:[%s1899_s11 + $0x30] ss:$8 sps:$4 sm:$0xff]   ;;  %v1645_v29 = vld [vmem:[%s1899_s11 + $0x44] ss:$8 sps:$4 sm:$0xff]  }
  0x30   : > { %v1641_v26 = vld [vmem:[%s1899_s11 + $0x134] ss:$8 sps:$4 sm:$0xff]   ;;  %v1644_v28 = vld [vmem:[%s1899_s11 + $0x130] ss:$8 sps:$4 sm:$0xff]   ;;  %v1647_v30 = vld [vmem:[%s1899_s11 + $0x144] ss:$8 sps:$4 sm:$0xff]  }
  0x31   : > { %1030 = vmatpush1.bf16.msra.mxu1 %v1631_v19  ;;  %v1649_v31 = vld [vmem:[%s1899_s11 + $0x40] ss:$8 sps:$4 sm:$0xff]   ;;  %v1651_v33 = vld [vmem:[%s1899_s11 + $0x54] ss:$8 sps:$4 sm:$0xff]   ;;  %v1655_v35 = vld [vmem:[%s1899_s11 + $0x50] ss:$8 sps:$4 sm:$0xff]  }
  0x32   : > { %1083 = vmatpush1.bf16.msra.mxu0 %v1632_v20  ;;  %1031 = vmatprep.subr.bf16.mxu1 %v1633_v21  ;;  %v1650_v32 = vld [vmem:[%s1899_s11 + $0x140] ss:$8 sps:$4 sm:$0xff]   ;;  %v1653_v34 = vld [vmem:[%s1899_s11 + $0x154] ss:$8 sps:$4 sm:$0xff]   ;;  %v1656_v36 = vld [vmem:[%s1899_s11 + $0x150] ss:$8 sps:$4 sm:$0xff]  }
  0x33   : > { %1084 = vmatprep.subr.bf16.mxu0 %v1635_v22  ;;  %v1657_v37 = vld [vmem:[%s1899_s11 + $0x64] ss:$8 sps:$4 sm:$0xff]   ;;  %v1661_v39 = vld [vmem:[%s1899_s11 + $0x60] ss:$8 sps:$4 sm:$0xff]   ;;  %v1663_v41 = vld [vmem:[%s1899_s11 + $0x74] ss:$8 sps:$4 sm:$0xff]  }
  0x34   : > { %v1659_v38 = vld [vmem:[%s1899_s11 + $0x164] ss:$8 sps:$4 sm:$0xff]   ;;  %v1662_v40 = vld [vmem:[%s1899_s11 + $0x160] ss:$8 sps:$4 sm:$0xff]   ;;  %v1665_v42 = vld [vmem:[%s1899_s11 + $0x174] ss:$8 sps:$4 sm:$0xff]  }
  0x35   : > { %1032 = vmatpush1.bf16.msra.mxu1 %v1637_v23  ;;  %v1667_v43 = vld [vmem:[%s1899_s11 + $0x70] ss:$8 sps:$4 sm:$0xff]   ;;  %v1669_v45 = vld [vmem:[%s1899_s11 + $0x84] ss:$8 sps:$4 sm:$0xff]   ;;  %v1673_v47 = vld [vmem:[%s1899_s11 + $0x80] ss:$8 sps:$4 sm:$0xff]  }
  0x36   : > { %1085 = vmatpush1.bf16.msra.mxu0 %v1638_v24  ;;  %1033 = vmatprep.subr.bf16.mxu1 %v1639_v25  ;;  %v1668_v44 = vld [vmem:[%s1899_s11 + $0x170] ss:$8 sps:$4 sm:$0xff]   ;;  %v1671_v46 = vld [vmem:[%s1899_s11 + $0x184] ss:$8 sps:$4 sm:$0xff]   ;;  %v1674_v48 = vld [vmem:[%s1899_s11 + $0x180] ss:$8 sps:$4 sm:$0xff]  }
  0x37   : > { %1086 = vmatprep.subr.bf16.mxu0 %v1641_v26  ;;  %v1675_v49 = vld [vmem:[%s1899_s11 + $0x94] ss:$8 sps:$4 sm:$0xff]   ;;  %v1679_v51 = vld [vmem:[%s1899_s11 + $0x90] ss:$8 sps:$4 sm:$0xff]   ;;  %v1681_v53 = vld [vmem:[%s1899_s11 + $0xa4] ss:$8 sps:$4 sm:$0xff]  }
  0x38   : > { %v1677_v50 = vld [vmem:[%s1899_s11 + $0x194] ss:$8 sps:$4 sm:$0xff]   ;;  %v1680_v52 = vld [vmem:[%s1899_s11 + $0x190] ss:$8 sps:$4 sm:$0xff]   ;;  %v1683_v54 = vld [vmem:[%s1899_s11 + $0x1a4] ss:$8 sps:$4 sm:$0xff]  }
  0x39   : > { %1034 = vmatpush1.bf16.msra.mxu1 %v1643_v27  ;;  %v1685_v55 = vld [vmem:[%s1899_s11 + $0xa0] ss:$8 sps:$4 sm:$0xff]   ;;  %v1687_v57 = vld [vmem:[%s1899_s11 + $0xb4] ss:$8 sps:$4 sm:$0xff]   ;;  %v1691_v59 = vld [vmem:[%s1899_s11 + $0xb0] ss:$8 sps:$4 sm:$0xff]  }
  0x3a   : > { %1087 = vmatpush1.bf16.msra.mxu0 %v1644_v28  ;;  %1035 = vmatprep.subr.bf16.mxu1 %v1645_v29  ;;  %v1686_v56 = vld [vmem:[%s1899_s11 + $0x1a0] ss:$8 sps:$4 sm:$0xff]   ;;  %v1689_v58 = vld [vmem:[%s1899_s11 + $0x1b4] ss:$8 sps:$4 sm:$0xff]   ;;  %v1692_v60 = vld [vmem:[%s1899_s11 + $0x1b0] ss:$8 sps:$4 sm:$0xff]  }
  0x3b   : > { %1088 = vmatprep.subr.bf16.mxu0 %v1647_v30  ;;  %v1693_v61 = vld [vmem:[%s1899_s11 + $0xc4] ss:$8 sps:$4 sm:$0xff]   ;;  %v1697_v1 = vld [vmem:[%s1899_s11 + $0xc0] ss:$8 sps:$4 sm:$0xff]   ;;  %v1699_v3 = vld [vmem:[%s1899_s11 + $0xd4] ss:$8 sps:$4 sm:$0xff]  }
  0x3c   : > { %v1719_v62 = vld [vmem:[%s1901_s12 + $0x4] ss:$24 sps:$4 sm:$0xff]   ;;  %v1698_v2 = vld [vmem:[%s1899_s11 + $0x1c0] ss:$8 sps:$4 sm:$0xff]   ;;  %v1703_v5 = vld [vmem:[%s1899_s11 + $0xd0] ss:$8 sps:$4 sm:$0xff]  }
  0x3d   : > { %1036 = vmatpush1.bf16.msra.mxu1 %v1649_v31  ;;  %v1695_v63 = vld [vmem:[%s1899_s11 + $0x1c4] ss:$8 sps:$4 sm:$0xff]   ;;  %1059 = vmatprep.mubr.bf16.mxu1 %v1719_v62  ;;  %v1701_v4 = vld [vmem:[%s1899_s11 + $0x1d4] ss:$8 sps:$4 sm:$0xff]   ;;  %v1704_v6 = vld [vmem:[%s1899_s11 + $0x1d0] ss:$8 sps:$4 sm:$0xff]  }
  0x3e   : > { %1089 = vmatpush1.bf16.msra.mxu0 %v1650_v32  ;;  %1037 = vmatprep.subr.bf16.mxu1 %v1651_v33  ;;  %v1722_v0 = vld [vmem:[%s1901_s12 + $0xc] ss:$24 sps:$4 sm:$0xff]   ;;  %v1709_v9 = vld [vmem:[%s1899_s11 + $0xe0] ss:$8 sps:$4 sm:$0xff]   ;;  %v1711_v11 = vld [vmem:[%s1899_s11 + $0xf4] ss:$8 sps:$4 sm:$0xff]  }
  0x3f   : > { %1090 = vmatprep.subr.bf16.mxu0 %v1653_v34  ;;  %1112 = vmatprep.mubr.bf16.mxu0 %v1722_v0  ;;  %v1705_v7 = vld [vmem:[%s1899_s11 + $0xe4] ss:$8 sps:$4 sm:$0xff]   ;;  %v1710_v10 = vld [vmem:[%s1899_s11 + $0x1e0] ss:$8 sps:$4 sm:$0xff]   ;;  %v1713_v12 = vld [vmem:[%s1899_s11 + $0x1f4] ss:$8 sps:$4 sm:$0xff]  }
  0x40   : > { %v1707_v8 = vld [vmem:[%s1899_s11 + $0x1e4] ss:$8 sps:$4 sm:$0xff]   ;;  %v1715_v13 = vld [vmem:[%s1899_s11 + $0xf0] ss:$8 sps:$4 sm:$0xff]   ;;  %v1720_v17 = vld [vmem:[%s1901_s12 + $0x8] ss:$24 sps:$4 sm:$0xff]  }
  0x41   : > { %1038 = vmatpush1.bf16.msra.mxu1 %v1655_v35  ;;  %v1716_v14 = vld [vmem:[%s1899_s11 + $0x1f0] ss:$8 sps:$4 sm:$0xff]   ;;  %v1725_v15 = vld [vmem:[%s1899_s11 + $0x204] ss:$8 sps:$4 sm:$0xff]   ;;  %v1723_v18 = vld [vmem:[%s1899_s11 + $0x200] ss:$8 sps:$4 sm:$0xff]  }
  0x42   : > { %1091 = vmatpush1.bf16.msra.mxu0 %v1656_v36  ;;  %1039 = vmatprep.subr.bf16.mxu1 %v1657_v37  ;;  %v1717_v16 = vld [vmem:[%s1901_s12] ss:$24 sps:$4 sm:$0xff]   ;;  %v1728_v19 = vld [vmem:[%s1899_s11 + $0x214] ss:$8 sps:$4 sm:$0xff]   ;;  %v1731_v23 = vld [vmem:[%s1899_s11 + $0x224] ss:$8 sps:$4 sm:$0xff]  }
  0x43   : > { %1092 = vmatprep.subr.bf16.mxu0 %v1659_v38  ;;  %v1762_v20 = vld [vmem:[%s1901_s12 + $0x34] ss:$24 sps:$4 sm:$0xff]   ;;  %v1726_v22 = vld [vmem:[%s1899_s11 + $0x210] ss:$8 sps:$4 sm:$0xff]   ;;  %v1729_v26 = vld [vmem:[%s1899_s11 + $0x220] ss:$8 sps:$4 sm:$0xff]  }
  0x44   : > { %v1764_v21 = vld [vmem:[%s1901_s12 + $0x3c] ss:$24 sps:$4 sm:$0xff]   ;;  %v1769_v24 = vld [vmem:[%s1901_s12 + $0x30] ss:$24 sps:$4 sm:$0xff]   ;;  %v1737_v31 = vld [vmem:[%s1899_s11 + $0x244] ss:$8 sps:$4 sm:$0xff]  }
  0x45   : > { %1040 = vmatpush1.bf16.msra.mxu1 %v1661_v39  ;;  %v1770_v25 = vld [vmem:[%s1901_s12 + $0x38] ss:$24 sps:$4 sm:$0xff]   ;;  %v1734_v27 = vld [vmem:[%s1899_s11 + $0x234] ss:$8 sps:$4 sm:$0xff]   ;;  %v1735_v32 = vld [vmem:[%s1899_s11 + $0x240] ss:$8 sps:$4 sm:$0xff]  }
  0x46   : > { %1093 = vmatpush1.bf16.msra.mxu0 %v1662_v40  ;;  %1041 = vmatprep.subr.bf16.mxu1 %v1663_v41  ;;  %v1779_v28 = vld [vmem:[%s1901_s12 + $0x14] ss:$24 sps:$4 sm:$0xff]   ;;  %v1782_v29 = vld [vmem:[%s1901_s12 + $0x44] ss:$24 sps:$4 sm:$0xff]   ;;  %v1732_v30 = vld [vmem:[%s1899_s11 + $0x230] ss:$8 sps:$4 sm:$0xff]  }
  0x47   : > { %1094 = vmatprep.subr.bf16.mxu0 %v1665_v42  ;;  %v1740_v33 = vld [vmem:[%s1899_s11 + $0x254] ss:$8 sps:$4 sm:$0xff]   ;;  %v1738_v34 = vld [vmem:[%s1899_s11 + $0x250] ss:$8 sps:$4 sm:$0xff]   ;;  %v1743_v35 = vld [vmem:[%s1899_s11 + $0x264] ss:$8 sps:$4 sm:$0xff]  }
  0x48   : > { %v1741_v36 = vld [vmem:[%s1899_s11 + $0x260] ss:$8 sps:$4 sm:$0xff]   ;;  %v1746_v37 = vld [vmem:[%s1899_s11 + $0x274] ss:$8 sps:$4 sm:$0xff]   ;;  %v1744_v38 = vld [vmem:[%s1899_s11 + $0x270] ss:$8 sps:$4 sm:$0xff]  }
  0x49   : > { %1042 = vmatpush1.bf16.msra.mxu1 %v1667_v43  ;;  %v1749_v39 = vld [vmem:[%s1899_s11 + $0x284] ss:$8 sps:$4 sm:$0xff]   ;;  %v1747_v40 = vld [vmem:[%s1899_s11 + $0x280] ss:$8 sps:$4 sm:$0xff]   ;;  %v1752_v41 = vld [vmem:[%s1899_s11 + $0x294] ss:$8 sps:$4 sm:$0xff]  }
  0x4a   : > { %1095 = vmatpush1.bf16.msra.mxu0 %v1668_v44  ;;  %1043 = vmatprep.subr.bf16.mxu1 %v1669_v45  ;;  %v1750_v42 = vld [vmem:[%s1899_s11 + $0x290] ss:$8 sps:$4 sm:$0xff]   ;;  %v1755_v43 = vld [vmem:[%s1899_s11 + $0x2a4] ss:$8 sps:$4 sm:$0xff]   ;;  %v1753_v44 = vld [vmem:[%s1899_s11 + $0x2a0] ss:$8 sps:$4 sm:$0xff]  }
  0x4b   : > { %1096 = vmatprep.subr.bf16.mxu0 %v1671_v46  ;;  %v1758_v45 = vld [vmem:[%s1899_s11 + $0x2b4] ss:$8 sps:$4 sm:$0xff]   ;;  %v1756_v46 = vld [vmem:[%s1899_s11 + $0x2b0] ss:$8 sps:$4 sm:$0xff]   ;;  %p1523_p11 = scmp.ne.s32.totalorder %s1813_s17, 2 }
  0x4d   : > { %1044 = vmatpush1.bf16.msra.mxu1 %v1673_v47  ;;  %v1761_v47 = vld [vmem:[%s1899_s11 + $0x2c4] ss:$8 sps:$4 sm:$0xff]  }
  0x4e   : > { %1097 = vmatpush1.bf16.msra.mxu0 %v1674_v48  ;;  %1045 = vmatprep.subr.bf16.mxu1 %v1675_v49  ;;  %v1759_v48 = vld [vmem:[%s1899_s11 + $0x2c0] ss:$8 sps:$4 sm:$0xff]   ;;  %v1768_v49 = vld [vmem:[%s1899_s11 + $0x2d4] ss:$8 sps:$4 sm:$0xff]  }
  0x4f   : > { %1098 = vmatprep.subr.bf16.mxu0 %v1677_v50  ;;  %v1766_v50 = vld [vmem:[%s1899_s11 + $0x2d0] ss:$8 sps:$4 sm:$0xff]  }
  0x51   : > { %1046 = vmatpush1.bf16.msra.mxu1 %v1679_v51  ;;  %v1773_v51 = vld [vmem:[%s1899_s11 + $0x2e4] ss:$8 sps:$4 sm:$0xff]  }
  0x52   : > { %1099 = vmatpush1.bf16.msra.mxu0 %v1680_v52  ;;  %1047 = vmatprep.subr.bf16.mxu1 %v1681_v53  ;;  %v1771_v52 = vld [vmem:[%s1899_s11 + $0x2e0] ss:$8 sps:$4 sm:$0xff]   ;;  %v1776_v53 = vld [vmem:[%s1899_s11 + $0x2f4] ss:$8 sps:$4 sm:$0xff]  }
  0x53   : > { %1100 = vmatprep.subr.bf16.mxu0 %v1683_v54  ;;  %v1774_v54 = vld [vmem:[%s1899_s11 + $0x2f0] ss:$8 sps:$4 sm:$0xff]  }
  0x55   : > { %1048 = vmatpush1.bf16.msra.mxu1 %v1685_v55  ;;  %v1777_v55 = vld [vmem:[%s1901_s12 + $0x10] ss:$24 sps:$4 sm:$0xff]  }
  0x56   : > { %1101 = vmatpush1.bf16.msra.mxu0 %v1686_v56  ;;  %1049 = vmatprep.subr.bf16.mxu1 %v1687_v57  ;;  %v1780_v56 = vld [vmem:[%s1901_s12 + $0x40] ss:$24 sps:$4 sm:$0xff]  }
  0x57   : > { %1102 = vmatprep.subr.bf16.mxu0 %v1689_v58 }
  0x59   : > { %1050 = vmatpush1.bf16.msra.mxu1 %v1691_v59 }
  0x5a   : > { %1103 = vmatpush1.bf16.msra.mxu0 %v1692_v60  ;;  %1051 = vmatprep.subr.bf16.mxu1 %v1693_v61 }
  0x5b   : > { %1104 = vmatprep.subr.bf16.mxu0 %v1695_v63 }
  0x5d   : > { %1052 = vmatpush1.bf16.msra.mxu1 %v1697_v1 }
  0x5e   : > { %1105 = vmatpush1.bf16.msra.mxu0 %v1698_v2  ;;  %1053 = vmatprep.subr.bf16.mxu1 %v1699_v3 }
  0x5f   : > { %1106 = vmatprep.subr.bf16.mxu0 %v1701_v4 }
  0x61   : > { %1054 = vmatpush1.bf16.msra.mxu1 %v1703_v5 }
  0x62   : > { %1107 = vmatpush1.bf16.msra.mxu0 %v1704_v6  ;;  %1055 = vmatprep.subr.bf16.mxu1 %v1705_v7 }
  0x63   : > { %1108 = vmatprep.subr.bf16.mxu0 %v1707_v8 }
  0x65   : > { %1056 = vmatpush1.bf16.msra.mxu1 %v1709_v9  ;;  %v371_v9 = vld [vmem:[#allocation2] sm:$0xff] }
  0x66   : > { %1109 = vmatpush1.bf16.msra.mxu0 %v1710_v10  ;;  %1057 = vmatprep.subr.bf16.mxu1 %v1711_v11  ;;  %v375_v11 = vld [vmem:[#allocation2 + $0x20] sm:$0xff] }
  0x67   : > { %1110 = vmatprep.subr.bf16.mxu0 %v1713_v12 }
  0x69   : > { %1058 = vmatpush1.bf16.msra.mxu1 %v1715_v13 }
  0x6a   : > { %1111 = vmatpush1.bf16.msra.mxu0 %v1716_v14  ;;  %1530 = vmatprep.subr.bf16.mxu1 %v1725_v15 }
  0x6b   : > { %1133 = vmatprep.subr.bf16.mxu0 %v1725_v15  ;;  %v372_v15 = vld [vmem:[#allocation2 + $0x8] sm:$0xff] }
  0x6c   : > { %1060 = vmatmul.mubr.bf16.vlgmr.msra.gmra.mrb[0].mxu1 %v1717_v16 }
  0x6d   : > { %1113 = vmatmul.mubr.bf16.vlgmr.msra.gmra.mrb[0].mxu0 %v1720_v17  ;;  %1546 = vmatpush1.bf16.msra.mxu1 %v1723_v18  ;;  %v376_v17 = vld [vmem:[#allocation2 + $0x28] sm:$0xff] }
  0x6e   : > { %1134 = vmatpush1.bf16.msra.mxu0 %v1723_v18  ;;  %1531 = vmatprep.subr.bf16.mxu1 %v1728_v19 }
  0x6f   : > { %1135 = vmatprep.subr.bf16.mxu0 %v1728_v19  ;;  %1069 = vmatprep.mubr.bf16.mxu1 %v1762_v20 }
  0x70   : > { %1122 = vmatprep.mubr.bf16.mxu0 %v1764_v21  ;;  %v373_v21 = vld [vmem:[#allocation2 + $0x10] sm:$0xff] }
  0x71   : > { %1547 = vmatpush1.bf16.msra.mxu1 %v1726_v22 }
  0x72   : > { %1136 = vmatpush1.bf16.msra.mxu0 %v1726_v22  ;;  %1532 = vmatprep.subr.bf16.mxu1 %v1731_v23 }
  0x73   : > { %1137 = vmatprep.subr.bf16.mxu0 %v1731_v23  ;;  %v377_v23 = vld [vmem:[#allocation2 + $0x30] sm:$0xff] }
  0x74   : > { %1070 = vmatmul.mubr.bf16.gmra.mrb[4].mxu1 %v1769_v24 }
  0x75   : > { %1123 = vmatmul.mubr.bf16.gmra.mrb[4].mxu0 %v1770_v25  ;;  %1548 = vmatpush1.bf16.msra.mxu1 %v1729_v26 }
  0x76   : > { %1138 = vmatpush1.bf16.msra.mxu0 %v1729_v26  ;;  %1533 = vmatprep.subr.bf16.mxu1 %v1734_v27 }
  0x77   : > { %1139 = vmatprep.subr.bf16.mxu0 %v1734_v27  ;;  %1165 = vmatprep.mubr.bf16.mxu0 %v1779_v28 }
  0x78   : > { %1175 = vmatprep.mubr.bf16.mxu1 %v1782_v29  ;;  %v374_v29 = vld [vmem:[#allocation2 + $0x18] sm:$0xff] }
  0x79   : > { %1549 = vmatpush1.bf16.msra.mxu1 %v1732_v30 }
  0x7a   : > { %1140 = vmatpush1.bf16.msra.mxu0 %v1732_v30  ;;  %1534 = vmatprep.subr.bf16.mxu1 %v1737_v31 }
  0x7b   : > { %1141 = vmatprep.subr.bf16.mxu0 %v1737_v31  ;;  %v378_v31 = vld [vmem:[#allocation2 + $0x38] sm:$0xff] }
  0x7d   : > { %1550 = vmatpush1.bf16.msra.mxu1 %v1735_v32 }
  0x7e   : > { %1142 = vmatpush1.bf16.msra.mxu0 %v1735_v32  ;;  %1535 = vmatprep.subr.bf16.mxu1 %v1740_v33 }
  0x7f   : > { %1143 = vmatprep.subr.bf16.mxu0 %v1740_v33 }
  0x81   : > { %1551 = vmatpush1.bf16.msra.mxu1 %v1738_v34 }
  0x82   : > { %1144 = vmatpush1.bf16.msra.mxu0 %v1738_v34  ;;  %1536 = vmatprep.subr.bf16.mxu1 %v1743_v35 }
  0x83   : > { %1145 = vmatprep.subr.bf16.mxu0 %v1743_v35 }
  0x85   : > { %1552 = vmatpush1.bf16.msra.mxu1 %v1741_v36 }
  0x86   : > { %1146 = vmatpush1.bf16.msra.mxu0 %v1741_v36  ;;  %1537 = vmatprep.subr.bf16.mxu1 %v1746_v37 }
  0x87   : > { %1147 = vmatprep.subr.bf16.mxu0 %v1746_v37 }
  0x89   : > { %1553 = vmatpush1.bf16.msra.mxu1 %v1744_v38 }
  0x8a   : > { %1148 = vmatpush1.bf16.msra.mxu0 %v1744_v38  ;;  %1538 = vmatprep.subr.bf16.mxu1 %v1749_v39 }
  0x8b   : > { %1149 = vmatprep.subr.bf16.mxu0 %v1749_v39 }
  0x8d   : > { %1554 = vmatpush1.bf16.msra.mxu1 %v1747_v40 }
  0x8e   : > { %1150 = vmatpush1.bf16.msra.mxu0 %v1747_v40  ;;  %1539 = vmatprep.subr.bf16.mxu1 %v1752_v41 }
  0x8f   : > { %1151 = vmatprep.subr.bf16.mxu0 %v1752_v41  ;;  %v1216_v41 = vlaneseq (!%p1523_p11) }
  0x91   : > { %1555 = vmatpush1.bf16.msra.mxu1 %v1750_v42 }
  0x92   : > { %1152 = vmatpush1.bf16.msra.mxu0 %v1750_v42  ;;  %1540 = vmatprep.subr.bf16.mxu1 %v1755_v43  ;;  %v1217_v42 = vshrl.u32 (!%p1523_p11), %v1216_v41, 7 }
  0x93   : > { %1153 = vmatprep.subr.bf16.mxu0 %v1755_v43  ;;  %v1214_v43 = vld [vmem:[%s2060_s2] sm:$0x3] (!%p1523_p11) }
  0x95   : > { %1556 = vmatpush1.bf16.msra.mxu1 %v1753_v44 }
  0x96   : > { %1154 = vmatpush1.bf16.msra.mxu0 %v1753_v44  ;;  %1541 = vmatprep.subr.bf16.mxu1 %v1758_v45  ;;  %v1234_v44 = vld [vmem:[%s2061_s3] sm:$0x3] (!%p1523_p11) }
  0x97   : > { %1155 = vmatprep.subr.bf16.mxu0 %v1758_v45 }
  0x99   : > { %1557 = vmatpush1.bf16.msra.mxu1 %v1756_v46 }
  0x9a   : > { %1156 = vmatpush1.bf16.msra.mxu0 %v1756_v46  ;;  %1542 = vmatprep.subr.bf16.mxu1 %v1761_v47  ;;  %v1218_v46 = vsub.s32 (!%p1523_p11), 0, %v1217_v42 }
  0x9b   : > { %1157 = vmatprep.subr.bf16.mxu0 %v1761_v47 }
  0x9d   : > { %1558 = vmatpush1.bf16.msra.mxu1 %v1759_v48 }
  0x9e   : > { %1158 = vmatpush1.bf16.msra.mxu0 %v1759_v48  ;;  %1543 = vmatprep.subr.bf16.mxu1 %v1768_v49  ;;  %v1222_v48 = vsub.s32 (!%p1523_p11), 1, %v1217_v42 }
  0x9f   : > { %1159 = vmatprep.subr.bf16.mxu0 %v1768_v49 }
  0xa1   : > { %1559 = vmatpush1.bf16.msra.mxu1 %v1766_v50 }
  0xa2   : > { %1160 = vmatpush1.bf16.msra.mxu0 %v1766_v50  ;;  %1544 = vmatprep.subr.bf16.mxu1 %v1773_v51 }
  0xa3   : > { %1161 = vmatprep.subr.bf16.mxu0 %v1773_v51 }
  0xa5   : > { %1560 = vmatpush1.bf16.msra.mxu1 %v1771_v52 }
  0xa6   : > { %1162 = vmatpush1.bf16.msra.mxu0 %v1771_v52  ;;  %1545 = vmatprep.subr.bf16.mxu1 %v1776_v53  ;;  %v1219_v52 = vrot.slane (!%p1523_p11), %v1214_v43, %v1218_v46 }
  0xa7   : > { %1163 = vmatprep.subr.bf16.mxu0 %v1776_v53  ;;  %v1239_v53 = vrot.slane (!%p1523_p11), %v1234_v44, %v1218_v46 }
  0xa9   : > { %1561 = vmatpush1.bf16.msra.mxu1 %v1774_v54 }
  0xaa   : > { %1164 = vmatpush1.bf16.msra.mxu0 %v1774_v54  ;;  %v1223_v54 = vrot.slane (!%p1523_p11), %v1214_v43, %v1222_v48 }
  0xac   : > { %1176 = vmatmul.mubr.bf16.vlgmr.msra.gmra.mrb[8].mxu1 %v1780_v56 }
  0xad   : > { %1166 = vmatmul.mubr.bf16.vlgmr.msra.gmra.mrb[0].mxu0 %v1777_v55  ;;  %v1243_v55 = vrot.slane (!%p1523_p11), %v1234_v44, %v1222_v48 }
 0x13f   : > { %v1061_v57 = vpop.f32.mrb[0].mxu1 }
 0x140   : > { %v1063_v58 = vpop.f32.mrb[1].mxu1 }
 0x141   : > { %v1065_v59 = vpop.f32.mrb[2].mxu1 }
 0x142   : > { %v1067_v60 = vpop.f32.mrb[3].mxu1 }
 0x147   : > { %v1071_v61 = vpop.f32.mrb[4].mxu1 }
 0x148   : > { %v1124_v62 = vpop.f32.mrb[4].mxu0  ;;  %v1073_v0 = vpop.f32.mrb[5].mxu1 }
 0x149   : > { %v1125_v63 = vadd.f32 %v1124_v62, %v1071_v61  ;;  %v1126_v1 = vpop.f32.mrb[5].mxu0  ;;  %v1075_v3 = vpop.f32.mrb[6].mxu1 }
 0x14a   : > { %v1127_v2 = vadd.f32 %v1126_v1, %v1073_v0  ;;  %v1128_v4 = vpop.f32.mrb[6].mxu0  ;;  %v1077_v6 = vpop.f32.mrb[7].mxu1 }
 0x14b   : > { %v1129_v5 = vadd.f32 %v1128_v4, %v1075_v3  ;;  %v1130_v7 = vpop.f32.mrb[7].mxu0 }
 0x14c   : > { %v1131_v8 = vadd.f32 %v1130_v7, %v1077_v6 }
 0x17f   : > { %v1177_v12 = vpop.f32.mrb[8].mxu1 }
 0x180   : > { %v1167_v10 = vpop.f32.mrb[0].mxu0  ;;  %v1178_v14 = vadd.f32 %v1177_v12, %v1125_v63  ;;  %v1179_v18 = vpop.f32.mrb[9].mxu1 }
 0x181   : > { %v1562_v13 = vadd.f32 %v1167_v10, %v1061_v57  ;;  %v1169_v16 = vpop.f32.mrb[1].mxu0  ;;  %v1180_v20 = vadd.f32 %v1179_v18, %v1127_v2  ;;  %v1181_v24 = vpop.f32.mrb[10].mxu1 }
 0x182   : > { %v1563_v19 = vadd.f32 %v1169_v16, %v1063_v58  ;;  %v1171_v22 = vpop.f32.mrb[2].mxu0  ;;  %v1190_v26 = vadd.f32 %v1178_v14, %v375_v11  ;;  %v1182_v28 = vadd.f32 %v1181_v24, %v1129_v5  ;;  %v1183_v32 = vpop.f32.mrb[11].mxu1  ;;  %1205 = sbr.rel (%p1523_p11) target bundleno = 407 (0x197), region = 67 }
 0x183   : > { %v1186_v25 = vadd.f32 %v1562_v13, %v371_v9  ;;  %v1564_v27 = vadd.f32 %v1171_v22, %v1065_v59  ;;  %v1173_v30 = vpop.f32.mrb[3].mxu0  ;;  %v1191_v34 = vadd.f32 %v1180_v20, %v376_v17  ;;  %v1184_v36 = vadd.f32 %v1183_v32, %v1131_v8 }
 0x184   : > { %v1187_v33 = vadd.f32 %v1563_v19, %v372_v15  ;;  %v1565_v35 = vadd.f32 %v1173_v30, %v1067_v60  ;;  %1198 = vst [vmem:[#allocation2 + $0x20] sm:$0xff] %v1190_v26  ;;  %v1192_v38 = vadd.f32 %v1182_v28, %v377_v23 }
 0x185   : > { %1194 = vst [vmem:[#allocation2] sm:$0xff] %v1186_v25  ;;  %v1188_v37 = vadd.f32 %v1564_v27, %v373_v21  ;;  %1199 = vst [vmem:[#allocation2 + $0x28] sm:$0xff] %v1191_v34  ;;  %v1193_v40 = vadd.f32 %v1184_v36, %v378_v31 }
 0x186   : > { %1195 = vst [vmem:[#allocation2 + $0x8] sm:$0xff] %v1187_v33  ;;  %v1189_v39 = vadd.f32 %v1565_v35, %v374_v29  ;;  %1200 = vst [vmem:[#allocation2 + $0x30] sm:$0xff] %v1192_v38 }
 0x187   : > { %1196 = vst [vmem:[#allocation2 + $0x10] sm:$0xff] %v1188_v37  ;;  %1201 = vst [vmem:[#allocation2 + $0x38] sm:$0xff] %v1193_v40 }
 0x188   : > { %1197 = vst [vmem:[#allocation2 + $0x18] sm:$0xff] %v1189_v39 }
 0x18b   : > { %v1210_v51 = vld [vmem:[#allocation2 + $0x20] sm:$0xff] }
 0x18c   : > { %v1206_v45 = vld [vmem:[#allocation2] sm:$0xff]  ;;  %v1211_v56 = vld [vmem:[#allocation2 + $0x28] sm:$0xff]  ;;  %v1230_v63 = vmul.f32 %v1219_v52, %v1210_v51 }
 0x18d   : > { %v1207_v47 = vld [vmem:[#allocation2 + $0x8] sm:$0xff]  ;;  %v1212_v57 = vld [vmem:[#allocation2 + $0x30] sm:$0xff]  ;;  %v1226_v59 = vmul.f32 %v1219_v52, %v1206_v45  ;;  %v1231_v0 = vmul.f32 %v1223_v54, %v1211_v56 }
 0x18e   : > { %v1208_v49 = vld [vmem:[#allocation2 + $0x10] sm:$0xff]  ;;  %v1213_v58 = vld [vmem:[#allocation2 + $0x38] sm:$0xff]  ;;  %v1227_v60 = vmul.f32 %v1223_v54, %v1207_v47  ;;  %v1232_v1 = vmul.f32 %v1219_v52, %v1212_v57  ;;  %v1250_v7 = vadd.f32 %v1239_v53, %v1230_v63 }
 0x18f   : > { %v1209_v50 = vld [vmem:[#allocation2 + $0x18] sm:$0xff]  ;;  %v1228_v61 = vmul.f32 %v1219_v52, %v1208_v49  ;;  %v1233_v2 = vmul.f32 %v1223_v54, %v1213_v58  ;;  %v1246_v3 = vadd.f32 %v1239_v53, %v1226_v59  ;;  %v1251_v8 = vadd.f32 %v1243_v55, %v1231_v0 }
 0x190   : > { %v1229_v62 = vmul.f32 %v1223_v54, %v1209_v50  ;;  %v1247_v4 = vadd.f32 %v1243_v55, %v1227_v60  ;;  %v1252_v9 = vadd.f32 %v1239_v53, %v1232_v1  ;;  %v1258_v15 = vmax.f32 %v1250_v7, 0.0 }
 0x191   : > { %v1248_v5 = vadd.f32 %v1239_v53, %v1228_v61  ;;  %v1253_v10 = vadd.f32 %v1243_v55, %v1233_v2  ;;  %v1254_v11 = vmax.f32 %v1246_v3, 0.0  ;;  %v1259_v16 = vmax.f32 %v1251_v8, 0.0 }
 0x192   : > { %v1249_v6 = vadd.f32 %v1243_v55, %v1229_v62  ;;  %v1255_v12 = vmax.f32 %v1247_v4, 0.0  ;;  %v1260_v17 = vmax.f32 %v1252_v9, 0.0  ;;  %1266 = vst [vmem:[%s2062_s4 + $0x20] sm:$0xff] %v1258_v15 }
 0x193   : > { %v1256_v13 = vmax.f32 %v1248_v5, 0.0  ;;  %v1261_v18 = vmax.f32 %v1253_v10, 0.0  ;;  %1262 = vst [vmem:[%s2062_s4] sm:$0xff] %v1254_v11  ;;  %1267 = vst [vmem:[%s2062_s4 + $0x28] sm:$0xff] %v1259_v16 }
 0x194   : > { %v1257_v14 = vmax.f32 %v1249_v6, 0.0  ;;  %1263 = vst [vmem:[%s2062_s4 + $0x8] sm:$0xff] %v1255_v12  ;;  %1268 = vst [vmem:[%s2062_s4 + $0x30] sm:$0xff] %v1260_v17 }
 0x195   : > { %1264 = vst [vmem:[%s2062_s4 + $0x10] sm:$0xff] %v1256_v13  ;;  %1269 = vst [vmem:[%s2062_s4 + $0x38] sm:$0xff] %v1261_v18 }
 0x196   : > { %1265 = vst [vmem:[%s2062_s4 + $0x18] sm:$0xff] %v1257_v14 }
 0x197 PF: > { %s14_s19 = sadd.s32 1, %s1821_s19   ;;  %s2063_s15 = smov %s1809_s16 }
 0x198   : > { %p11_p12 = scmp.ge.s32.totalorder %s14_s19, 5   ;;  %s2064_s16 = smov %s1884_s23 }
 0x199   : > { %s2065_s17 = smov %s1817_s18  ;;  %s2066_s18 = smov %s2068_s20 }
 0x19a   :  { %13 = sbr.rel (!%p11_p12) target bundleno = 3 (0x3), region = 111 }

// kernel: mixed_7a.9
= control target key start
LH: loop header
LB: loop body
LE: loop exit
PB: predicated region body
PF: predicated region fallthrough
CT: control target
= control target key end

     0   :  { %s3029_s15 = smov 0   ;;  %s3031_s16 = smov 0   ;;  %s3736_s0 = inlined_call_operand.vmem [shape: bf16[168,2304], index: 0, kind: input, shape index: {}]   ;;  %s3737_s1 = inlined_call_operand.vmem [shape: bf16[2304,256], index: 1, kind: input, shape index: {}]   ;;  %s3738_s2 = inlined_call_operand.vmem [shape: f32[1,256], index: 2, kind: input, shape index: {}]   ;;  %s3739_s3 = inlined_call_operand.vmem [shape: f32[1,256], index: 3, kind: input, shape index: {}]   ;;  %s3740_s4 = inlined_call_operand.vmem [shape: f32[168,256], index: 4, kind: output, shape index: {}]  }
   0x1   :  { %s3033_s17 = smov 0   ;;  %s3035_s18 = smov 0  }
   0x2   :  { %s3037_s19 = smov 0  }
   0x3 LB: > { %s26_s20 = sadd.s32 1, %s2997_s18  ;;  %p49_p1 = scmp.ne.s32.totalorder %s2989_s16, %s2985_s15  ;;  %s3001_s19 = sphi %s3037_s19, %s14_s19   ;;  %s2997_s18 = sphi %s3035_s18, %s3744_s18   ;;  %s2993_s17 = sphi %s3033_s17, %s3743_s17   ;;  %s2989_s16 = sphi %s3031_s16, %s3742_s16   ;;  %s2985_s15 = sphi %s3029_s15, %s3741_s15  }
   0x4   : > { %p27_p0 = scmp.ge.s32.totalorder %s26_s20, 3  ;;  %p50_p2 = scmp.eq.s32.totalorder %s3001_s19, 0 }
   0x5   : > { %s42_s22 = sadd.s32 1, %s2989_s16  ;;  %p2393_p5 = scmp.ge.s32.totalorder %s3001_s19, 3 }
   0x6   : > { %s3746_s20 = smov (%p27_p0, %s26_s20), 0  ;;  %p51_p3 = por %p50_p2, %p49_p1 }
   0x7   : > { %s38_s21 = ssub.s32 %s2997_s18, %s3746_s20  ;;  %199 = sbr.rel (%p2393_p5) target bundleno = 51 (0x33), region = 24 }
   0x8   : > { %p40_p4 = scmp.eq.s32.totalorder %s38_s21, 0 }
   0xa   : > { %s3064_s23 = scalar_select %p40_p4, %s2989_s16, %s42_s22  }
   0xe   : > { %202 = sbr.rel (!%p51_p3) target bundleno = 51 (0x33), region = 28  ;;  %s204_s24 = sand.u32 (%p51_p3), 1, %s2989_s16  }
   0xf   : > { %s2566_s25 = smul.u32 (%p51_p3), 24, %s2997_s18 }
  0x10   : > { %s2680_s26 = smul.u32 (%p51_p3), 504, %s204_s24 }
  0x11   : > { %s3072_s29 = scalar_lea.vmem (%p51_p3), %s3736_s0, %s2566_s25 }
  0x12   : > { %v225_v0 = vld [vmem:[%s3072_s29] sm:$0xff] (%p51_p3)  ;;  %v227_v1 = vld [vmem:[%s3072_s29 + $0x8] sm:$0xff] (%p51_p3)  ;;  %v229_v2 = vld [vmem:[%s3072_s29 + $0x10] sm:$0xff] (%p51_p3)  ;;  %s3077_s30 = scalar_lea.vmem (%p51_p3), [#allocation3], %s2680_s26 }
  0x13   : > { %226 = vst [vmem:[%s3077_s30] sm:$0xff] (%p51_p3), %v225_v0  ;;  %228 = vst [vmem:[%s3077_s30 + $0x8] sm:$0xff] (%p51_p3), %v227_v1  ;;  %v231_v3 = vld [vmem:[%s3072_s29 + $0x48] sm:$0xff] (%p51_p3)  ;;  %v233_v4 = vld [vmem:[%s3072_s29 + $0x50] sm:$0xff] (%p51_p3) }
  0x14   : > { %230 = vst [vmem:[%s3077_s30 + $0x10] sm:$0xff] (%p51_p3), %v229_v2  ;;  %v235_v5 = vld [vmem:[%s3072_s29 + $0x58] sm:$0xff] (%p51_p3)  ;;  %232 = vst [vmem:[%s3077_s30 + $0x18] sm:$0xff] (%p51_p3), %v231_v3  ;;  %v237_v6 = vld [vmem:[%s3072_s29 + $0x90] sm:$0xff] (%p51_p3) }
  0x15   : > { %234 = vst [vmem:[%s3077_s30 + $0x20] sm:$0xff] %v233_v4  ;;  %236 = vst [vmem:[%s3077_s30 + $0x28] sm:$0xff] %v235_v5  ;;  %v239_v7 = vld [vmem:[%s3072_s29 + $0x98] sm:$0xff]  ;;  %v241_v8 = vld [vmem:[%s3072_s29 + $0xa0] sm:$0xff] }
  0x16   : > { %238 = vst [vmem:[%s3077_s30 + $0x30] sm:$0xff] %v237_v6  ;;  %240 = vst [vmem:[%s3077_s30 + $0x38] sm:$0xff] %v239_v7  ;;  %v243_v9 = vld [vmem:[%s3072_s29 + $0xd8] sm:$0xff]  ;;  %v245_v10 = vld [vmem:[%s3072_s29 + $0xe0] sm:$0xff] }
  0x17   : > { %242 = vst [vmem:[%s3077_s30 + $0x40] sm:$0xff] %v241_v8  ;;  %v247_v11 = vld [vmem:[%s3072_s29 + $0xe8] sm:$0xff]  ;;  %244 = vst [vmem:[%s3077_s30 + $0x48] sm:$0xff] %v243_v9  ;;  %v249_v12 = vld [vmem:[%s3072_s29 + $0x120] sm:$0xff] }
  0x18   : > { %246 = vst [vmem:[%s3077_s30 + $0x50] sm:$0xff] %v245_v10  ;;  %248 = vst [vmem:[%s3077_s30 + $0x58] sm:$0xff] %v247_v11  ;;  %v251_v13 = vld [vmem:[%s3072_s29 + $0x128] sm:$0xff]  ;;  %v253_v14 = vld [vmem:[%s3072_s29 + $0x130] sm:$0xff] }
  0x19   : > { %250 = vst [vmem:[%s3077_s30 + $0x60] sm:$0xff] %v249_v12  ;;  %252 = vst [vmem:[%s3077_s30 + $0x68] sm:$0xff] %v251_v13  ;;  %v255_v15 = vld [vmem:[%s3072_s29 + $0x168] sm:$0xff]  ;;  %v257_v16 = vld [vmem:[%s3072_s29 + $0x170] sm:$0xff] }
  0x1a   : > { %254 = vst [vmem:[%s3077_s30 + $0x70] sm:$0xff] %v253_v14  ;;  %v259_v17 = vld [vmem:[%s3072_s29 + $0x178] sm:$0xff]  ;;  %256 = vst [vmem:[%s3077_s30 + $0x78] sm:$0xff] %v255_v15  ;;  %v261_v18 = vld [vmem:[%s3072_s29 + $0x1b0] sm:$0xff] }
  0x1b   : > { %258 = vst [vmem:[%s3077_s30 + $0x80] sm:$0xff] %v257_v16  ;;  %260 = vst [vmem:[%s3077_s30 + $0x88] sm:$0xff] %v259_v17  ;;  %v263_v19 = vld [vmem:[%s3072_s29 + $0x1b8] sm:$0xff]  ;;  %v265_v20 = vld [vmem:[%s3072_s29 + $0x1c0] sm:$0xff] }
  0x1c   : > { %262 = vst [vmem:[%s3077_s30 + $0x90] sm:$0xff] %v261_v18  ;;  %264 = vst [vmem:[%s3077_s30 + $0x98] sm:$0xff] %v263_v19  ;;  %v267_v21 = vld [vmem:[%s3072_s29 + $0x1f8] sm:$0xff]  ;;  %v269_v22 = vld [vmem:[%s3072_s29 + $0x200] sm:$0xff] }
  0x1d   : > { %266 = vst [vmem:[%s3077_s30 + $0xa0] sm:$0xff] %v265_v20  ;;  %v271_v23 = vld [vmem:[%s3072_s29 + $0x208] sm:$0xff]  ;;  %268 = vst [vmem:[%s3077_s30 + $0xa8] sm:$0xff] %v267_v21  ;;  %v273_v24 = vld [vmem:[%s3072_s29 + $0x240] sm:$0xff] }
  0x1e   : > { %270 = vst [vmem:[%s3077_s30 + $0xb0] sm:$0xff] %v269_v22  ;;  %272 = vst [vmem:[%s3077_s30 + $0xb8] sm:$0xff] %v271_v23  ;;  %v275_v25 = vld [vmem:[%s3072_s29 + $0x248] sm:$0xff]  ;;  %v277_v26 = vld [vmem:[%s3072_s29 + $0x250] sm:$0xff] }
  0x1f   : > { %274 = vst [vmem:[%s3077_s30 + $0xc0] sm:$0xff] %v273_v24  ;;  %276 = vst [vmem:[%s3077_s30 + $0xc8] sm:$0xff] %v275_v25  ;;  %v279_v27 = vld [vmem:[%s3072_s29 + $0x288] sm:$0xff]  ;;  %v281_v28 = vld [vmem:[%s3072_s29 + $0x290] sm:$0xff] }
  0x20   : > { %278 = vst [vmem:[%s3077_s30 + $0xd0] sm:$0xff] %v277_v26  ;;  %v283_v29 = vld [vmem:[%s3072_s29 + $0x298] sm:$0xff]  ;;  %280 = vst [vmem:[%s3077_s30 + $0xd8] sm:$0xff] %v279_v27  ;;  %v285_v30 = vld [vmem:[%s3072_s29 + $0x2d0] sm:$0xff] }
  0x21   : > { %282 = vst [vmem:[%s3077_s30 + $0xe0] sm:$0xff] %v281_v28  ;;  %284 = vst [vmem:[%s3077_s30 + $0xe8] sm:$0xff] %v283_v29  ;;  %v287_v31 = vld [vmem:[%s3072_s29 + $0x2d8] sm:$0xff]  ;;  %v289_v32 = vld [vmem:[%s3072_s29 + $0x2e0] sm:$0xff] }
  0x22   : > { %286 = vst [vmem:[%s3077_s30 + $0xf0] sm:$0xff] %v285_v30  ;;  %288 = vst [vmem:[%s3077_s30 + $0xf8] sm:$0xff] %v287_v31  ;;  %v291_v33 = vld [vmem:[%s3072_s29 + $0x318] sm:$0xff]  ;;  %v293_v34 = vld [vmem:[%s3072_s29 + $0x320] sm:$0xff] }
  0x23   : > { %290 = vst [vmem:[%s3077_s30 + $0x100] sm:$0xff] %v289_v32  ;;  %v295_v35 = vld [vmem:[%s3072_s29 + $0x328] sm:$0xff]  ;;  %292 = vst [vmem:[%s3077_s30 + $0x108] sm:$0xff] %v291_v33  ;;  %v297_v36 = vld [vmem:[%s3072_s29 + $0x360] sm:$0xff] }
  0x24   : > { %294 = vst [vmem:[%s3077_s30 + $0x110] sm:$0xff] %v293_v34  ;;  %296 = vst [vmem:[%s3077_s30 + $0x118] sm:$0xff] %v295_v35  ;;  %v299_v37 = vld [vmem:[%s3072_s29 + $0x368] sm:$0xff]  ;;  %v301_v38 = vld [vmem:[%s3072_s29 + $0x370] sm:$0xff] }
  0x25   : > { %298 = vst [vmem:[%s3077_s30 + $0x120] sm:$0xff] %v297_v36  ;;  %300 = vst [vmem:[%s3077_s30 + $0x128] sm:$0xff] %v299_v37  ;;  %v303_v39 = vld [vmem:[%s3072_s29 + $0x3a8] sm:$0xff]  ;;  %v305_v40 = vld [vmem:[%s3072_s29 + $0x3b0] sm:$0xff] }
  0x26   : > { %302 = vst [vmem:[%s3077_s30 + $0x130] sm:$0xff] %v301_v38  ;;  %v307_v41 = vld [vmem:[%s3072_s29 + $0x3b8] sm:$0xff]  ;;  %304 = vst [vmem:[%s3077_s30 + $0x138] sm:$0xff] %v303_v39  ;;  %v309_v42 = vld [vmem:[%s3072_s29 + $0x3f0] sm:$0xff] }
  0x27   : > { %306 = vst [vmem:[%s3077_s30 + $0x140] sm:$0xff] %v305_v40  ;;  %308 = vst [vmem:[%s3077_s30 + $0x148] sm:$0xff] %v307_v41  ;;  %v311_v43 = vld [vmem:[%s3072_s29 + $0x3f8] sm:$0xff]  ;;  %v313_v44 = vld [vmem:[%s3072_s29 + $0x400] sm:$0xff] }
  0x28   : > { %310 = vst [vmem:[%s3077_s30 + $0x150] sm:$0xff] %v309_v42  ;;  %312 = vst [vmem:[%s3077_s30 + $0x158] sm:$0xff] %v311_v43  ;;  %v315_v45 = vld [vmem:[%s3072_s29 + $0x438] sm:$0xff]  ;;  %v317_v46 = vld [vmem:[%s3072_s29 + $0x440] sm:$0xff] }
  0x29   : > { %314 = vst [vmem:[%s3077_s30 + $0x160] sm:$0xff] %v313_v44  ;;  %v319_v47 = vld [vmem:[%s3072_s29 + $0x448] sm:$0xff]  ;;  %316 = vst [vmem:[%s3077_s30 + $0x168] sm:$0xff] %v315_v45  ;;  %v321_v48 = vld [vmem:[%s3072_s29 + $0x480] sm:$0xff] }
  0x2a   : > { %318 = vst [vmem:[%s3077_s30 + $0x170] sm:$0xff] %v317_v46  ;;  %320 = vst [vmem:[%s3077_s30 + $0x178] sm:$0xff] %v319_v47  ;;  %v323_v49 = vld [vmem:[%s3072_s29 + $0x488] sm:$0xff]  ;;  %v325_v50 = vld [vmem:[%s3072_s29 + $0x490] sm:$0xff] }
  0x2b   : > { %322 = vst [vmem:[%s3077_s30 + $0x180] sm:$0xff] %v321_v48  ;;  %324 = vst [vmem:[%s3077_s30 + $0x188] sm:$0xff] %v323_v49  ;;  %v327_v51 = vld [vmem:[%s3072_s29 + $0x4c8] sm:$0xff]  ;;  %v329_v52 = vld [vmem:[%s3072_s29 + $0x4d0] sm:$0xff] }
  0x2c   : > { %326 = vst [vmem:[%s3077_s30 + $0x190] sm:$0xff] %v325_v50  ;;  %v331_v53 = vld [vmem:[%s3072_s29 + $0x4d8] sm:$0xff]  ;;  %328 = vst [vmem:[%s3077_s30 + $0x198] sm:$0xff] %v327_v51  ;;  %v333_v54 = vld [vmem:[%s3072_s29 + $0x510] sm:$0xff] }
  0x2d   : > { %330 = vst [vmem:[%s3077_s30 + $0x1a0] sm:$0xff] %v329_v52  ;;  %332 = vst [vmem:[%s3077_s30 + $0x1a8] sm:$0xff] %v331_v53  ;;  %v335_v55 = vld [vmem:[%s3072_s29 + $0x518] sm:$0xff]  ;;  %v337_v56 = vld [vmem:[%s3072_s29 + $0x520] sm:$0xff] }
  0x2e   : > { %334 = vst [vmem:[%s3077_s30 + $0x1b0] sm:$0xff] %v333_v54  ;;  %336 = vst [vmem:[%s3077_s30 + $0x1b8] sm:$0xff] %v335_v55  ;;  %v339_v57 = vld [vmem:[%s3072_s29 + $0x558] sm:$0xff]  ;;  %v341_v58 = vld [vmem:[%s3072_s29 + $0x560] sm:$0xff] }
  0x2f   : > { %338 = vst [vmem:[%s3077_s30 + $0x1c0] sm:$0xff] %v337_v56  ;;  %v343_v59 = vld [vmem:[%s3072_s29 + $0x568] sm:$0xff]  ;;  %340 = vst [vmem:[%s3077_s30 + $0x1c8] sm:$0xff] %v339_v57  ;;  %v345_v60 = vld [vmem:[%s3072_s29 + $0x5a0] sm:$0xff] }
  0x30   : > { %342 = vst [vmem:[%s3077_s30 + $0x1d0] sm:$0xff] %v341_v58  ;;  %344 = vst [vmem:[%s3077_s30 + $0x1d8] sm:$0xff] %v343_v59  ;;  %v347_v61 = vld [vmem:[%s3072_s29 + $0x5a8] sm:$0xff]  ;;  %v349_v62 = vld [vmem:[%s3072_s29 + $0x5b0] sm:$0xff] }
  0x31   : > { %346 = vst [vmem:[%s3077_s30 + $0x1e0] sm:$0xff] %v345_v60  ;;  %348 = vst [vmem:[%s3077_s30 + $0x1e8] sm:$0xff] %v347_v61 }
  0x32   : > { %350 = vst [vmem:[%s3077_s30 + $0x1f0] sm:$0xff] %v349_v62 }
  0x33 PF: > { %p2395_p6 = scmp.ge.s32.totalorder %s3001_s19, 1  ;;  %p370_p7 = scmp.lt.s32.totalorder %s3001_s19, 4 }
  0x35   : > { %p371_p8 = pnand %p2395_p6, %p370_p7 }
  0x36   : > { %s377_s5 = sand.u32 (!%p371_p8), 1, %s2985_s15   ;;  %s427_s6 = smul.u32 (!%p371_p8), 96, %s2993_s17 }
  0x37   : > { %374 = sbr.rel (%p371_p8) target bundleno = 540 (0x21c), region = 55  ;;  %p2398_p10 = scmp.ne.s32.totalorder (!%p371_p8), %s2993_s17, 0 }
  0x38   : > { %s2681_s7 = smul.u32 (!%p371_p8), 504, %s377_s5  ;;  %p429_p9 = scmp.lt.s32.totalorder (!%p371_p8), %s427_s6, 287 }
  0x3a   : > { %s3211_s12 = scalar_lea.vmem (!%p371_p8), [#allocation3], %s2681_s7 }
  0x3e   : > { %s3748_s6 = smov (!%p429_p9, %s427_s6), 287  ;;  %464 = sbr.rel (%p2398_p10) target bundleno = 85 (0x55), region = 63 }
  0x3f   : > { %s2567_s8 = sshll.u32 %s3748_s6, 3  ;;  %v3003_v63 = vmov (!%p2398_p10), 0.0  }
  0x40   : > { %s3209_s11 = scalar_lea.vmem %s3737_s1, %s2567_s8  ;;  %465 = vst [vmem:[#allocation2] sm:$0xff] (!%p2398_p10), %v3003_v63  ;;  %466 = vst [vmem:[#allocation2 + $0x8] sm:$0xff] (!%p2398_p10), %v3003_v63 }
  0x41   : > { %467 = vst [vmem:[#allocation2 + $0x10] sm:$0xff] (!%p2398_p10), %v3003_v63  ;;  %468 = vst [vmem:[#allocation2 + $0x18] sm:$0xff] (!%p2398_p10), %v3003_v63 }
  0x42   : > { %469 = vst [vmem:[#allocation2 + $0x20] sm:$0xff] (!%p2398_p10), %v3003_v63  ;;  %470 = vst [vmem:[#allocation2 + $0x28] sm:$0xff] (!%p2398_p10), %v3003_v63 }
  0x43   : > { %471 = vst [vmem:[#allocation2 + $0x30] sm:$0xff] (!%p2398_p10), %v3003_v63  ;;  %472 = vst [vmem:[#allocation2 + $0x38] sm:$0xff] (!%p2398_p10), %v3003_v63 }
  0x44   : > { %473 = vst [vmem:[#allocation2 + $0x40] sm:$0xff] (!%p2398_p10), %v3003_v63  ;;  %474 = vst [vmem:[#allocation2 + $0x48] sm:$0xff] (!%p2398_p10), %v3003_v63 }
  0x45   : > { %475 = vst [vmem:[#allocation2 + $0x50] sm:$0xff] %v3003_v63  ;;  %476 = vst [vmem:[#allocation2 + $0x58] sm:$0xff] %v3003_v63 }
  0x46   : > { %477 = vst [vmem:[#allocation2 + $0x60] sm:$0xff] %v3003_v63  ;;  %478 = vst [vmem:[#allocation2 + $0x68] sm:$0xff] %v3003_v63 }
  0x47   : > { %479 = vst [vmem:[#allocation2 + $0x70] sm:$0xff] %v3003_v63  ;;  %480 = vst [vmem:[#allocation2 + $0x78] sm:$0xff] %v3003_v63 }
  0x48   : > { %481 = vst [vmem:[#allocation2 + $0x80] sm:$0xff] %v3003_v63  ;;  %482 = vst [vmem:[#allocation2 + $0x88] sm:$0xff] %v3003_v63 }
  0x49   : > { %483 = vst [vmem:[#allocation2 + $0x90] sm:$0xff] %v3003_v63  ;;  %484 = vst [vmem:[#allocation2 + $0x98] sm:$0xff] %v3003_v63 }
  0x4a   : > { %485 = vst [vmem:[#allocation2 + $0xa0] sm:$0xff] %v3003_v63  ;;  %486 = vst [vmem:[#allocation2 + $0xa8] sm:$0xff] %v3003_v63 }
  0x4b   : > { %487 = vst [vmem:[#allocation2 + $0xb0] sm:$0xff] %v3003_v63  ;;  %488 = vst [vmem:[#allocation2 + $0xb8] sm:$0xff] %v3003_v63 }
  0x4c   : > { %489 = vst [vmem:[#allocation2 + $0xc0] sm:$0xff] %v3003_v63  ;;  %490 = vst [vmem:[#allocation2 + $0xc8] sm:$0xff] %v3003_v63 }
  0x4d   : > { %491 = vst [vmem:[#allocation2 + $0xd0] sm:$0xff] %v3003_v63  ;;  %492 = vst [vmem:[#allocation2 + $0xd8] sm:$0xff] %v3003_v63 }
  0x4e   : > { %493 = vst [vmem:[#allocation2 + $0xe0] sm:$0xff] %v3003_v63  ;;  %494 = vst [vmem:[#allocation2 + $0xe8] sm:$0xff] %v3003_v63 }
  0x4f   : > { %495 = vst [vmem:[#allocation2 + $0xf0] sm:$0xff] %v3003_v63  ;;  %496 = vst [vmem:[#allocation2 + $0xf8] sm:$0xff] %v3003_v63 }
  0x50   : > { %497 = vst [vmem:[#allocation2 + $0x100] sm:$0xff] %v3003_v63  ;;  %498 = vst [vmem:[#allocation2 + $0x108] sm:$0xff] %v3003_v63 }
  0x51   : > { %499 = vst [vmem:[#allocation2 + $0x110] sm:$0xff] %v3003_v63  ;;  %500 = vst [vmem:[#allocation2 + $0x118] sm:$0xff] %v3003_v63 }
  0x52   : > { %501 = vst [vmem:[#allocation2 + $0x120] sm:$0xff] %v3003_v63  ;;  %502 = vst [vmem:[#allocation2 + $0x128] sm:$0xff] %v3003_v63 }
  0x53   : > { %503 = vst [vmem:[#allocation2 + $0x130] sm:$0xff] %v3003_v63  ;;  %504 = vst [vmem:[#allocation2 + $0x138] sm:$0xff] %v3003_v63 }
  0x54   : > { %505 = vst [vmem:[#allocation2 + $0x140] sm:$0xff] %v3003_v63  ;;  %506 = vst [vmem:[#allocation2 + $0x148] sm:$0xff] %v3003_v63 }
  0x55 PF: > { %v2723_v0 = vld [vmem:[%s3209_s11 + $0x4] ss:$8 sps:$4 sm:$0xff]   ;;  %v2727_v2 = vld [vmem:[%s3209_s11] ss:$8 sps:$4 sm:$0xff]   ;;  %v2729_v4 = vld [vmem:[%s3209_s11 + $0x14] ss:$8 sps:$4 sm:$0xff]  }
  0x56   : > { %v2725_v1 = vld [vmem:[%s3209_s11 + $0x104] ss:$8 sps:$4 sm:$0xff]   ;;  %1509 = vmatprep.subr.bf16.mxu1 %v2723_v0  ;;  %v2728_v3 = vld [vmem:[%s3209_s11 + $0x100] ss:$8 sps:$4 sm:$0xff]   ;;  %v2731_v5 = vld [vmem:[%s3209_s11 + $0x114] ss:$8 sps:$4 sm:$0xff]  }
  0x57   : > { %1650 = vmatprep.subr.bf16.mxu0 %v2725_v1  ;;  %1510 = vmatpush1.bf16.msra.mxu1 %v2727_v2  ;;  %v2733_v6 = vld [vmem:[%s3209_s11 + $0x10] ss:$8 sps:$4 sm:$0xff]   ;;  %v2735_v8 = vld [vmem:[%s3209_s11 + $0x24] ss:$8 sps:$4 sm:$0xff]   ;;  %v2739_v10 = vld [vmem:[%s3209_s11 + $0x20] ss:$8 sps:$4 sm:$0xff]  }
  0x58   : > { %1651 = vmatpush1.bf16.msra.mxu0 %v2728_v3  ;;  %1511 = vmatprep.subr.bf16.mxu1 %v2729_v4  ;;  %v2734_v7 = vld [vmem:[%s3209_s11 + $0x110] ss:$8 sps:$4 sm:$0xff]   ;;  %v2737_v9 = vld [vmem:[%s3209_s11 + $0x124] ss:$8 sps:$4 sm:$0xff]   ;;  %v2740_v11 = vld [vmem:[%s3209_s11 + $0x120] ss:$8 sps:$4 sm:$0xff]  }
  0x59   : > { %1652 = vmatprep.subr.bf16.mxu0 %v2731_v5  ;;  %v2741_v12 = vld [vmem:[%s3209_s11 + $0x34] ss:$8 sps:$4 sm:$0xff]   ;;  %v2745_v14 = vld [vmem:[%s3209_s11 + $0x30] ss:$8 sps:$4 sm:$0xff]   ;;  %v2747_v16 = vld [vmem:[%s3209_s11 + $0x44] ss:$8 sps:$4 sm:$0xff]  }
  0x5a   : > { %v2743_v13 = vld [vmem:[%s3209_s11 + $0x134] ss:$8 sps:$4 sm:$0xff]   ;;  %v2746_v15 = vld [vmem:[%s3209_s11 + $0x130] ss:$8 sps:$4 sm:$0xff]   ;;  %v2749_v17 = vld [vmem:[%s3209_s11 + $0x144] ss:$8 sps:$4 sm:$0xff]  }
  0x5b   : > { %1512 = vmatpush1.bf16.msra.mxu1 %v2733_v6  ;;  %v2751_v18 = vld [vmem:[%s3209_s11 + $0x40] ss:$8 sps:$4 sm:$0xff]   ;;  %v2753_v20 = vld [vmem:[%s3209_s11 + $0x54] ss:$8 sps:$4 sm:$0xff]   ;;  %v2757_v22 = vld [vmem:[%s3209_s11 + $0x50] ss:$8 sps:$4 sm:$0xff]  }
  0x5c   : > { %1653 = vmatpush1.bf16.msra.mxu0 %v2734_v7  ;;  %1513 = vmatprep.subr.bf16.mxu1 %v2735_v8  ;;  %v2752_v19 = vld [vmem:[%s3209_s11 + $0x140] ss:$8 sps:$4 sm:$0xff]   ;;  %v2755_v21 = vld [vmem:[%s3209_s11 + $0x154] ss:$8 sps:$4 sm:$0xff]   ;;  %v2758_v23 = vld [vmem:[%s3209_s11 + $0x150] ss:$8 sps:$4 sm:$0xff]  }
  0x5d   : > { %1654 = vmatprep.subr.bf16.mxu0 %v2737_v9  ;;  %v2759_v24 = vld [vmem:[%s3209_s11 + $0x64] ss:$8 sps:$4 sm:$0xff]   ;;  %v2763_v26 = vld [vmem:[%s3209_s11 + $0x60] ss:$8 sps:$4 sm:$0xff]   ;;  %v2765_v28 = vld [vmem:[%s3209_s11 + $0x74] ss:$8 sps:$4 sm:$0xff]  }
  0x5e   : > { %v2761_v25 = vld [vmem:[%s3209_s11 + $0x164] ss:$8 sps:$4 sm:$0xff]   ;;  %v2764_v27 = vld [vmem:[%s3209_s11 + $0x160] ss:$8 sps:$4 sm:$0xff]   ;;  %v2767_v29 = vld [vmem:[%s3209_s11 + $0x174] ss:$8 sps:$4 sm:$0xff]  }
  0x5f   : > { %1514 = vmatpush1.bf16.msra.mxu1 %v2739_v10  ;;  %v2769_v30 = vld [vmem:[%s3209_s11 + $0x70] ss:$8 sps:$4 sm:$0xff]   ;;  %v2771_v32 = vld [vmem:[%s3209_s11 + $0x84] ss:$8 sps:$4 sm:$0xff]   ;;  %v2775_v34 = vld [vmem:[%s3209_s11 + $0x80] ss:$8 sps:$4 sm:$0xff]  }
  0x60   : > { %1655 = vmatpush1.bf16.msra.mxu0 %v2740_v11  ;;  %1515 = vmatprep.subr.bf16.mxu1 %v2741_v12  ;;  %v2770_v31 = vld [vmem:[%s3209_s11 + $0x170] ss:$8 sps:$4 sm:$0xff]   ;;  %v2773_v33 = vld [vmem:[%s3209_s11 + $0x184] ss:$8 sps:$4 sm:$0xff]   ;;  %v2776_v35 = vld [vmem:[%s3209_s11 + $0x180] ss:$8 sps:$4 sm:$0xff]  }
  0x61   : > { %1656 = vmatprep.subr.bf16.mxu0 %v2743_v13  ;;  %v2777_v36 = vld [vmem:[%s3209_s11 + $0x94] ss:$8 sps:$4 sm:$0xff]   ;;  %v2781_v38 = vld [vmem:[%s3209_s11 + $0x90] ss:$8 sps:$4 sm:$0xff]   ;;  %v2783_v40 = vld [vmem:[%s3209_s11 + $0xa4] ss:$8 sps:$4 sm:$0xff]  }
  0x62   : > { %v2779_v37 = vld [vmem:[%s3209_s11 + $0x194] ss:$8 sps:$4 sm:$0xff]   ;;  %v2782_v39 = vld [vmem:[%s3209_s11 + $0x190] ss:$8 sps:$4 sm:$0xff]   ;;  %v2785_v41 = vld [vmem:[%s3209_s11 + $0x1a4] ss:$8 sps:$4 sm:$0xff]  }
  0x63   : > { %1516 = vmatpush1.bf16.msra.mxu1 %v2745_v14  ;;  %v2787_v42 = vld [vmem:[%s3209_s11 + $0xa0] ss:$8 sps:$4 sm:$0xff]   ;;  %v2789_v44 = vld [vmem:[%s3209_s11 + $0xb4] ss:$8 sps:$4 sm:$0xff]   ;;  %v2793_v46 = vld [vmem:[%s3209_s11 + $0xb0] ss:$8 sps:$4 sm:$0xff]  }
  0x64   : > { %1657 = vmatpush1.bf16.msra.mxu0 %v2746_v15  ;;  %1517 = vmatprep.subr.bf16.mxu1 %v2747_v16  ;;  %v2788_v43 = vld [vmem:[%s3209_s11 + $0x1a0] ss:$8 sps:$4 sm:$0xff]   ;;  %v2791_v45 = vld [vmem:[%s3209_s11 + $0x1b4] ss:$8 sps:$4 sm:$0xff]   ;;  %v2794_v47 = vld [vmem:[%s3209_s11 + $0x1b0] ss:$8 sps:$4 sm:$0xff]  }
  0x65   : > { %1658 = vmatprep.subr.bf16.mxu0 %v2749_v17  ;;  %v2795_v48 = vld [vmem:[%s3209_s11 + $0xc4] ss:$8 sps:$4 sm:$0xff]   ;;  %v2799_v52 = vld [vmem:[%s3209_s11 + $0xc0] ss:$8 sps:$4 sm:$0xff]   ;;  %v2801_v54 = vld [vmem:[%s3209_s11 + $0xd4] ss:$8 sps:$4 sm:$0xff]  }
  0x66   : > { %v2821_v49 = vld [vmem:[%s3211_s12 + $0x4] ss:$24 sps:$4 sm:$0xff]   ;;  %v2800_v53 = vld [vmem:[%s3209_s11 + $0x1c0] ss:$8 sps:$4 sm:$0xff]   ;;  %v2805_v56 = vld [vmem:[%s3209_s11 + $0xd0] ss:$8 sps:$4 sm:$0xff]  }
  0x67   : > { %1518 = vmatpush1.bf16.msra.mxu1 %v2751_v18  ;;  %v2797_v50 = vld [vmem:[%s3209_s11 + $0x1c4] ss:$8 sps:$4 sm:$0xff]   ;;  %1541 = vmatprep.mubr.bf16.mxu1 %v2821_v49  ;;  %v2803_v55 = vld [vmem:[%s3209_s11 + $0x1d4] ss:$8 sps:$4 sm:$0xff]   ;;  %v2806_v57 = vld [vmem:[%s3209_s11 + $0x1d0] ss:$8 sps:$4 sm:$0xff]  }
  0x68   : > { %1659 = vmatpush1.bf16.msra.mxu0 %v2752_v19  ;;  %1519 = vmatprep.subr.bf16.mxu1 %v2753_v20  ;;  %v2824_v51 = vld [vmem:[%s3211_s12 + $0xc] ss:$24 sps:$4 sm:$0xff]   ;;  %v2811_v60 = vld [vmem:[%s3209_s11 + $0xe0] ss:$8 sps:$4 sm:$0xff]   ;;  %v2817_v0 = vld [vmem:[%s3209_s11 + $0xf0] ss:$8 sps:$4 sm:$0xff]  }
  0x69   : > { %1660 = vmatprep.subr.bf16.mxu0 %v2755_v21  ;;  %1682 = vmatprep.mubr.bf16.mxu0 %v2824_v51  ;;  %v2807_v58 = vld [vmem:[%s3209_s11 + $0xe4] ss:$8 sps:$4 sm:$0xff]   ;;  %v2812_v61 = vld [vmem:[%s3209_s11 + $0x1e0] ss:$8 sps:$4 sm:$0xff]   ;;  %v2813_v62 = vld [vmem:[%s3209_s11 + $0xf4] ss:$8 sps:$4 sm:$0xff]  }
  0x6a   : > { %v2809_v59 = vld [vmem:[%s3209_s11 + $0x1e4] ss:$8 sps:$4 sm:$0xff]   ;;  %v2815_v63 = vld [vmem:[%s3209_s11 + $0x1f4] ss:$8 sps:$4 sm:$0xff]   ;;  %v2818_v1 = vld [vmem:[%s3209_s11 + $0x1f0] ss:$8 sps:$4 sm:$0xff]  }
  0x6b   : > { %1520 = vmatpush1.bf16.msra.mxu1 %v2757_v22  ;;  %v2827_v2 = vld [vmem:[%s3209_s11 + $0x204] ss:$8 sps:$4 sm:$0xff]   ;;  %v2819_v3 = vld [vmem:[%s3211_s12] ss:$24 sps:$4 sm:$0xff]   ;;  %v2830_v6 = vld [vmem:[%s3209_s11 + $0x214] ss:$8 sps:$4 sm:$0xff]  }
  0x6c   : > { %1661 = vmatpush1.bf16.msra.mxu0 %v2758_v23  ;;  %1521 = vmatprep.subr.bf16.mxu1 %v2759_v24  ;;  %v2822_v4 = vld [vmem:[%s3211_s12 + $0x8] ss:$24 sps:$4 sm:$0xff]   ;;  %v2831_v7 = vld [vmem:[%s3211_s12 + $0x34] ss:$24 sps:$4 sm:$0xff]   ;;  %v2836_v12 = vld [vmem:[%s3211_s12 + $0x38] ss:$24 sps:$4 sm:$0xff]  }
  0x6d   : > { %1662 = vmatprep.subr.bf16.mxu0 %v2761_v25  ;;  %v2825_v5 = vld [vmem:[%s3209_s11 + $0x200] ss:$8 sps:$4 sm:$0xff]   ;;  %v2833_v8 = vld [vmem:[%s3211_s12 + $0x3c] ss:$24 sps:$4 sm:$0xff]   ;;  %v2828_v9 = vld [vmem:[%s3209_s11 + $0x210] ss:$8 sps:$4 sm:$0xff]  }
  0x6e   : > { %v2839_v10 = vld [vmem:[%s3209_s11 + $0x224] ss:$8 sps:$4 sm:$0xff]   ;;  %v2835_v11 = vld [vmem:[%s3211_s12 + $0x30] ss:$24 sps:$4 sm:$0xff]   ;;  %v2848_v16 = vld [vmem:[%s3209_s11 + $0x234] ss:$8 sps:$4 sm:$0xff]  }
  0x6f   : > { %1522 = vmatpush1.bf16.msra.mxu1 %v2763_v26  ;;  %v2837_v13 = vld [vmem:[%s3209_s11 + $0x220] ss:$8 sps:$4 sm:$0xff]   ;;  %v2840_v14 = vld [vmem:[%s3211_s12 + $0x64] ss:$24 sps:$4 sm:$0xff]   ;;  %v2846_v17 = vld [vmem:[%s3209_s11 + $0x230] ss:$8 sps:$4 sm:$0xff]  }
  0x70   : > { %1663 = vmatpush1.bf16.msra.mxu0 %v2764_v27  ;;  %1523 = vmatprep.subr.bf16.mxu1 %v2765_v28  ;;  %v2842_v15 = vld [vmem:[%s3211_s12 + $0x6c] ss:$24 sps:$4 sm:$0xff]   ;;  %v2844_v19 = vld [vmem:[%s3211_s12 + $0x60] ss:$24 sps:$4 sm:$0xff]   ;;  %v2854_v22 = vld [vmem:[%s3211_s12 + $0x9c] ss:$24 sps:$4 sm:$0xff]  }
  0x71   : > { %1664 = vmatprep.subr.bf16.mxu0 %v2767_v29  ;;  %v2851_v18 = vld [vmem:[%s3209_s11 + $0x244] ss:$8 sps:$4 sm:$0xff]   ;;  %v2845_v20 = vld [vmem:[%s3211_s12 + $0x68] ss:$24 sps:$4 sm:$0xff]   ;;  %v2860_v24 = vld [vmem:[%s3209_s11 + $0x254] ss:$8 sps:$4 sm:$0xff]  }
  0x72   : > { %v2852_v21 = vld [vmem:[%s3211_s12 + $0x94] ss:$24 sps:$4 sm:$0xff]   ;;  %v2849_v23 = vld [vmem:[%s3209_s11 + $0x240] ss:$8 sps:$4 sm:$0xff]   ;;  %v2858_v25 = vld [vmem:[%s3209_s11 + $0x250] ss:$8 sps:$4 sm:$0xff]  }
  0x73   : > { %1524 = vmatpush1.bf16.msra.mxu1 %v2769_v30  ;;  %v2856_v26 = vld [vmem:[%s3211_s12 + $0x90] ss:$24 sps:$4 sm:$0xff]   ;;  %v2869_v27 = vld [vmem:[%s3209_s11 + $0x264] ss:$8 sps:$4 sm:$0xff]   ;;  %v2886_v51 = vld [vmem:[%s3211_s12 + $0x120] ss:$24 sps:$4 sm:$0xff]  }
  0x74   : > { %1665 = vmatpush1.bf16.msra.mxu0 %v2770_v31  ;;  %1525 = vmatprep.subr.bf16.mxu1 %v2771_v32  ;;  %v2857_v28 = vld [vmem:[%s3211_s12 + $0x98] ss:$24 sps:$4 sm:$0xff]   ;;  %v2861_v29 = vld [vmem:[%s3211_s12 + $0xc4] ss:$24 sps:$4 sm:$0xff]   ;;  %p2561_p11 = scmp.ne.s32.totalorder %s2993_s17, 2 }
  0x75   : > { %1666 = vmatprep.subr.bf16.mxu0 %v2773_v33  ;;  %v2863_v30 = vld [vmem:[%s3211_s12 + $0xcc] ss:$24 sps:$4 sm:$0xff]   ;;  %v2867_v31 = vld [vmem:[%s3209_s11 + $0x260] ss:$8 sps:$4 sm:$0xff]   ;;  %v2900_v49 = vld [vmem:[%s3209_s11 + $0x2b0] ss:$8 sps:$4 sm:$0xff]  }
  0x76   : > { %v2876_v32 = vld [vmem:[%s3209_s11 + $0x274] ss:$8 sps:$4 sm:$0xff]   ;;  %v2865_v33 = vld [vmem:[%s3211_s12 + $0xc0] ss:$24 sps:$4 sm:$0xff]  }
  0x77   : > { %1526 = vmatpush1.bf16.msra.mxu1 %v2775_v34  ;;  %v2874_v34 = vld [vmem:[%s3209_s11 + $0x270] ss:$8 sps:$4 sm:$0xff]  }
  0x78   : > { %1667 = vmatpush1.bf16.msra.mxu0 %v2776_v35  ;;  %1527 = vmatprep.subr.bf16.mxu1 %v2777_v36  ;;  %v2881_v35 = vld [vmem:[%s3209_s11 + $0x284] ss:$8 sps:$4 sm:$0xff]   ;;  %v2866_v36 = vld [vmem:[%s3211_s12 + $0xc8] ss:$24 sps:$4 sm:$0xff]  }
  0x79   : > { %1668 = vmatprep.subr.bf16.mxu0 %v2779_v37  ;;  %v2870_v37 = vld [vmem:[%s3211_s12 + $0xf4] ss:$24 sps:$4 sm:$0xff]  }
  0x7b   : > { %1528 = vmatpush1.bf16.msra.mxu1 %v2781_v38  ;;  %v2872_v38 = vld [vmem:[%s3211_s12 + $0xfc] ss:$24 sps:$4 sm:$0xff]  }
  0x7c   : > { %1669 = vmatpush1.bf16.msra.mxu0 %v2782_v39  ;;  %1529 = vmatprep.subr.bf16.mxu1 %v2783_v40  ;;  %v2879_v39 = vld [vmem:[%s3209_s11 + $0x280] ss:$8 sps:$4 sm:$0xff]   ;;  %v2890_v40 = vld [vmem:[%s3209_s11 + $0x294] ss:$8 sps:$4 sm:$0xff]  }
  0x7d   : > { %1670 = vmatprep.subr.bf16.mxu0 %v2785_v41  ;;  %v2888_v41 = vld [vmem:[%s3209_s11 + $0x290] ss:$8 sps:$4 sm:$0xff]  }
  0x7f   : > { %1530 = vmatpush1.bf16.msra.mxu1 %v2787_v42  ;;  %v2897_v42 = vld [vmem:[%s3209_s11 + $0x2a4] ss:$8 sps:$4 sm:$0xff]  }
  0x80   : > { %1671 = vmatpush1.bf16.msra.mxu0 %v2788_v43  ;;  %1531 = vmatprep.subr.bf16.mxu1 %v2789_v44  ;;  %v2877_v43 = vld [vmem:[%s3211_s12 + $0xf0] ss:$24 sps:$4 sm:$0xff]  }
  0x81   : > { %1672 = vmatprep.subr.bf16.mxu0 %v2791_v45  ;;  %v2878_v44 = vld [vmem:[%s3211_s12 + $0xf8] ss:$24 sps:$4 sm:$0xff]   ;;  %v2882_v45 = vld [vmem:[%s3211_s12 + $0x124] ss:$24 sps:$4 sm:$0xff]  }
  0x83   : > { %1532 = vmatpush1.bf16.msra.mxu1 %v2793_v46  ;;  %v2884_v46 = vld [vmem:[%s3211_s12 + $0x12c] ss:$24 sps:$4 sm:$0xff]  }
  0x84   : > { %1673 = vmatpush1.bf16.msra.mxu0 %v2794_v47  ;;  %1533 = vmatprep.subr.bf16.mxu1 %v2795_v48  ;;  %v2895_v47 = vld [vmem:[%s3209_s11 + $0x2a0] ss:$8 sps:$4 sm:$0xff]   ;;  %v2902_v48 = vld [vmem:[%s3209_s11 + $0x2b4] ss:$8 sps:$4 sm:$0xff]  }
  0x85   : > { %1674 = vmatprep.subr.bf16.mxu0 %v2797_v50  ;;  %v2911_v50 = vld [vmem:[%s3209_s11 + $0x2c4] ss:$8 sps:$4 sm:$0xff]  }
  0x87   : > { %1534 = vmatpush1.bf16.msra.mxu1 %v2799_v52  ;;  %v2887_v52 = vld [vmem:[%s3211_s12 + $0x128] ss:$24 sps:$4 sm:$0xff]  }
  0x88   : > { %1675 = vmatpush1.bf16.msra.mxu0 %v2800_v53  ;;  %1535 = vmatprep.subr.bf16.mxu1 %v2801_v54  ;;  %v2891_v53 = vld [vmem:[%s3211_s12 + $0x154] ss:$24 sps:$4 sm:$0xff]  }
  0x89   : > { %1676 = vmatprep.subr.bf16.mxu0 %v2803_v55  ;;  %v2893_v54 = vld [vmem:[%s3211_s12 + $0x15c] ss:$24 sps:$4 sm:$0xff]   ;;  %v2909_v55 = vld [vmem:[%s3209_s11 + $0x2c0] ss:$8 sps:$4 sm:$0xff]  }
  0x8b   : > { %1536 = vmatpush1.bf16.msra.mxu1 %v2805_v56  ;;  %v2920_v56 = vld [vmem:[%s3209_s11 + $0x2d4] ss:$8 sps:$4 sm:$0xff]  }
  0x8c   : > { %1677 = vmatpush1.bf16.msra.mxu0 %v2806_v57  ;;  %1537 = vmatprep.subr.bf16.mxu1 %v2807_v58  ;;  %v2918_v57 = vld [vmem:[%s3209_s11 + $0x2d0] ss:$8 sps:$4 sm:$0xff]   ;;  %v2923_v58 = vld [vmem:[%s3209_s11 + $0x2e4] ss:$8 sps:$4 sm:$0xff]  }
  0x8d   : > { %1678 = vmatprep.subr.bf16.mxu0 %v2809_v59  ;;  %v2898_v59 = vld [vmem:[%s3211_s12 + $0x150] ss:$24 sps:$4 sm:$0xff]  }
  0x8f   : > { %1538 = vmatpush1.bf16.msra.mxu1 %v2811_v60  ;;  %v2899_v60 = vld [vmem:[%s3211_s12 + $0x158] ss:$24 sps:$4 sm:$0xff]  }
  0x90   : > { %1679 = vmatpush1.bf16.msra.mxu0 %v2812_v61  ;;  %1539 = vmatprep.subr.bf16.mxu1 %v2813_v62  ;;  %v2903_v61 = vld [vmem:[%s3211_s12 + $0x184] ss:$24 sps:$4 sm:$0xff]  }
  0x91   : > { %1680 = vmatprep.subr.bf16.mxu0 %v2815_v63  ;;  %v2905_v62 = vld [vmem:[%s3211_s12 + $0x18c] ss:$24 sps:$4 sm:$0xff]   ;;  %v2921_v63 = vld [vmem:[%s3209_s11 + $0x2e0] ss:$8 sps:$4 sm:$0xff]  }
  0x93   : > { %1540 = vmatpush1.bf16.msra.mxu1 %v2817_v0  ;;  %v2930_v0 = vld [vmem:[%s3209_s11 + $0x2f4] ss:$8 sps:$4 sm:$0xff]  }
  0x94   : > { %1681 = vmatpush1.bf16.msra.mxu0 %v2818_v1  ;;  %2568 = vmatprep.subr.bf16.mxu1 %v2827_v2  ;;  %v2928_v1 = vld [vmem:[%s3209_s11 + $0x2f0] ss:$8 sps:$4 sm:$0xff]  }
  0x95   : > { %1791 = vmatprep.subr.bf16.mxu0 %v2827_v2  ;;  %v2907_v2 = vld [vmem:[%s3211_s12 + $0x180] ss:$24 sps:$4 sm:$0xff]  }
  0x96   : > { %1542 = vmatmul.mubr.bf16.vlgmr.msra.gmra.mrb[0].mxu1 %v2819_v3  ;;  %v2908_v3 = vld [vmem:[%s3211_s12 + $0x188] ss:$24 sps:$4 sm:$0xff]  }
  0x97   : > { %1683 = vmatmul.mubr.bf16.vlgmr.msra.gmra.mrb[0].mxu0 %v2822_v4  ;;  %1551 = vmatprep.mubr.bf16.mxu1 %v2831_v7  ;;  %v2912_v4 = vld [vmem:[%s3211_s12 + $0x1b4] ss:$24 sps:$4 sm:$0xff]  }
  0x98   : > { %1792 = vmatpush1.bf16.msra.mxu0 %v2825_v5  ;;  %1692 = vmatprep.mubr.bf16.mxu0 %v2833_v8  ;;  %v610_v7 = vld [vmem:[%s3211_s12 + $0x1e8] sm:$0xff] }
  0x99   : > { %1793 = vmatprep.subr.bf16.mxu0 %v2830_v6  ;;  %2584 = vmatpush1.bf16.msra.mxu1 %v2825_v5  ;;  %v2914_v5 = vld [vmem:[%s3211_s12 + $0x1bc] ss:$24 sps:$4 sm:$0xff]   ;;  %v2916_v8 = vld [vmem:[%s3211_s12 + $0x1b0] ss:$24 sps:$4 sm:$0xff]  }
  0x9a   : > { %2569 = vmatprep.subr.bf16.mxu1 %v2830_v6  ;;  %v609_v6 = vld [vmem:[%s3211_s12 + $0x1e0] sm:$0xff] }
  0x9c   : > { %1794 = vmatpush1.bf16.msra.mxu0 %v2828_v9 }
  0x9d   : > { %1795 = vmatprep.subr.bf16.mxu0 %v2839_v10  ;;  %2585 = vmatpush1.bf16.msra.mxu1 %v2828_v9  ;;  %v2917_v9 = vld [vmem:[%s3211_s12 + $0x1b8] ss:$24 sps:$4 sm:$0xff]  }
  0x9e   : > { %1552 = vmatmul.mubr.bf16.gmra.mrb[4].mxu1 %v2835_v11  ;;  %2570 = vmatprep.subr.bf16.mxu1 %v2839_v10  ;;  %v2460_v10 = vcombine.high %v609_v6, %v609_v6  ;;  %v2462_v11 = vcombine.high %v610_v7, %v610_v7 }
  0x9f   : > { %1693 = vmatmul.mubr.bf16.gmra.mrb[4].mxu0 %v2836_v12  ;;  %1561 = vmatprep.mubr.bf16.mxu1 %v2840_v14  ;;  %v2459_v12 = vcombine.low %v609_v6, %v609_v6  ;;  %v2933_v14 = vld [vmem:[%s3211_s12 + $0x14] ss:$24 sps:$4 sm:$0xff]  }
  0xa0   : > { %1796 = vmatpush1.bf16.msra.mxu0 %v2837_v13  ;;  %1702 = vmatprep.mubr.bf16.mxu0 %v2842_v15  ;;  %v2936_v15 = vld [vmem:[%s3211_s12 + $0x134] ss:$24 sps:$4 sm:$0xff]  }
  0xa1   : > { %1797 = vmatprep.subr.bf16.mxu0 %v2848_v16  ;;  %2586 = vmatpush1.bf16.msra.mxu1 %v2837_v13  ;;  %v2461_v13 = vcombine.low %v610_v7, %v610_v7 }
  0xa2   : > { %2571 = vmatprep.subr.bf16.mxu1 %v2848_v16  ;;  %v2931_v16 = vld [vmem:[%s3211_s12 + $0x10] ss:$24 sps:$4 sm:$0xff]  }
  0xa4   : > { %1798 = vmatpush1.bf16.msra.mxu0 %v2846_v17 }
  0xa5   : > { %1799 = vmatprep.subr.bf16.mxu0 %v2851_v18  ;;  %2587 = vmatpush1.bf16.msra.mxu1 %v2846_v17  ;;  %v2934_v17 = vld [vmem:[%s3211_s12 + $0x130] ss:$24 sps:$4 sm:$0xff]  }
  0xa6   : > { %1562 = vmatmul.mubr.bf16.gmra.mrb[8].mxu1 %v2844_v19  ;;  %2572 = vmatprep.subr.bf16.mxu1 %v2851_v18  ;;  %v2937_v18 = vld [vmem:[%s3211_s12 + $0x44] ss:$24 sps:$4 sm:$0xff]  }
  0xa7   : > { %1703 = vmatmul.mubr.bf16.gmra.mrb[8].mxu0 %v2845_v20  ;;  %1571 = vmatprep.mubr.bf16.mxu1 %v2852_v21  ;;  %v2939_v19 = vld [vmem:[%s3211_s12 + $0x164] ss:$24 sps:$4 sm:$0xff]   ;;  %v2941_v20 = vld [vmem:[%s3211_s12 + $0x40] ss:$24 sps:$4 sm:$0xff]  }
  0xa8   : > { %1712 = vmatprep.mubr.bf16.mxu0 %v2854_v22  ;;  %1800 = vmatpush1.bf16.msra.mxu0 %v2849_v23  ;;  %v2942_v21 = vld [vmem:[%s3211_s12 + $0x160] ss:$24 sps:$4 sm:$0xff]   ;;  %v2943_v22 = vld [vmem:[%s3211_s12 + $0x74] ss:$24 sps:$4 sm:$0xff]  }
  0xa9   : > { %1801 = vmatprep.subr.bf16.mxu0 %v2860_v24  ;;  %2588 = vmatpush1.bf16.msra.mxu1 %v2849_v23  ;;  %v2945_v23 = vld [vmem:[%s3211_s12 + $0x194] ss:$24 sps:$4 sm:$0xff]  }
  0xaa   : > { %2573 = vmatprep.subr.bf16.mxu1 %v2860_v24  ;;  %v2947_v24 = vld [vmem:[%s3211_s12 + $0x70] ss:$24 sps:$4 sm:$0xff]  }
  0xac   : > { %1802 = vmatpush1.bf16.msra.mxu0 %v2858_v25 }
  0xad   : > { %1803 = vmatprep.subr.bf16.mxu0 %v2869_v27  ;;  %2589 = vmatpush1.bf16.msra.mxu1 %v2858_v25  ;;  %v2948_v25 = vld [vmem:[%s3211_s12 + $0x190] ss:$24 sps:$4 sm:$0xff]  }
  0xae   : > { %1572 = vmatmul.mubr.bf16.gmra.mrb[12].mxu1 %v2856_v26  ;;  %2574 = vmatprep.subr.bf16.mxu1 %v2869_v27  ;;  %v2949_v26 = vld [vmem:[%s3211_s12 + $0xa4] ss:$24 sps:$4 sm:$0xff]  }
  0xaf   : > { %1713 = vmatmul.mubr.bf16.gmra.mrb[12].mxu0 %v2857_v28  ;;  %1581 = vmatprep.mubr.bf16.mxu1 %v2861_v29  ;;  %v2951_v27 = vld [vmem:[%s3211_s12 + $0x1c4] ss:$24 sps:$4 sm:$0xff]   ;;  %v611_v28 = vld [vmem:[%s3211_s12 + $0x1f0] sm:$0xff]  ;;  %v2953_v29 = vld [vmem:[%s3211_s12 + $0xa0] ss:$24 sps:$4 sm:$0xff]  }
  0xb0   : > { %1722 = vmatprep.mubr.bf16.mxu0 %v2863_v30  ;;  %1804 = vmatpush1.bf16.msra.mxu0 %v2867_v31  ;;  %v2954_v30 = vld [vmem:[%s3211_s12 + $0x1c0] ss:$24 sps:$4 sm:$0xff]  }
  0xb1   : > { %1805 = vmatprep.subr.bf16.mxu0 %v2876_v32  ;;  %2590 = vmatpush1.bf16.msra.mxu1 %v2867_v31  ;;  %v2955_v31 = vld [vmem:[%s3211_s12 + $0xd4] ss:$24 sps:$4 sm:$0xff]  }
  0xb2   : > { %2575 = vmatprep.subr.bf16.mxu1 %v2876_v32  ;;  %v2464_v32 = vcombine.high %v611_v28, %v611_v28 }
  0xb4   : > { %1806 = vmatpush1.bf16.msra.mxu0 %v2874_v34 }
  0xb5   : > { %1807 = vmatprep.subr.bf16.mxu0 %v2881_v35  ;;  %2591 = vmatpush1.bf16.msra.mxu1 %v2874_v34  ;;  %v2463_v34 = vcombine.low %v611_v28, %v611_v28 }
  0xb6   : > { %1582 = vmatmul.mubr.bf16.gmra.mrb[16].mxu1 %v2865_v33  ;;  %2576 = vmatprep.subr.bf16.mxu1 %v2881_v35  ;;  %v2958_v33 = vld [vmem:[%s3211_s12 + $0xd0] ss:$24 sps:$4 sm:$0xff]   ;;  %v2960_v35 = vld [vmem:[%s3211_s12 + $0x104] ss:$24 sps:$4 sm:$0xff]  }
  0xb7   : > { %1723 = vmatmul.mubr.bf16.gmra.mrb[16].mxu0 %v2866_v36  ;;  %1591 = vmatprep.mubr.bf16.mxu1 %v2870_v37  ;;  %v2962_v36 = vld [vmem:[%s3211_s12 + $0x100] ss:$24 sps:$4 sm:$0xff]  }
  0xb8   : > { %1732 = vmatprep.mubr.bf16.mxu0 %v2872_v38  ;;  %1808 = vmatpush1.bf16.msra.mxu0 %v2879_v39 }
  0xb9   : > { %1809 = vmatprep.subr.bf16.mxu0 %v2890_v40  ;;  %2592 = vmatpush1.bf16.msra.mxu1 %v2879_v39 }
  0xba   : > { %2577 = vmatprep.subr.bf16.mxu1 %v2890_v40 }
  0xbc   : > { %1810 = vmatpush1.bf16.msra.mxu0 %v2888_v41 }
  0xbd   : > { %1811 = vmatprep.subr.bf16.mxu0 %v2897_v42  ;;  %2593 = vmatpush1.bf16.msra.mxu1 %v2888_v41 }
  0xbe   : > { %1592 = vmatmul.mubr.bf16.gmra.mrb[20].mxu1 %v2877_v43  ;;  %2578 = vmatprep.subr.bf16.mxu1 %v2897_v42 }
  0xbf   : > { %1733 = vmatmul.mubr.bf16.gmra.mrb[20].mxu0 %v2878_v44  ;;  %1601 = vmatprep.mubr.bf16.mxu1 %v2882_v45 }
  0xc0   : > { %1742 = vmatprep.mubr.bf16.mxu0 %v2884_v46  ;;  %1812 = vmatpush1.bf16.msra.mxu0 %v2895_v47 }
  0xc1   : > { %1813 = vmatprep.subr.bf16.mxu0 %v2902_v48  ;;  %2594 = vmatpush1.bf16.msra.mxu1 %v2895_v47 }
  0xc2   : > { %2579 = vmatprep.subr.bf16.mxu1 %v2902_v48 }
  0xc4   : > { %1814 = vmatpush1.bf16.msra.mxu0 %v2900_v49 }
  0xc5   : > { %1815 = vmatprep.subr.bf16.mxu0 %v2911_v50  ;;  %2595 = vmatpush1.bf16.msra.mxu1 %v2900_v49 }
  0xc6   : > { %1602 = vmatmul.mubr.bf16.gmra.mrb[24].mxu1 %v2886_v51  ;;  %2580 = vmatprep.subr.bf16.mxu1 %v2911_v50 }
  0xc7   : > { %1743 = vmatmul.mubr.bf16.gmra.mrb[24].mxu0 %v2887_v52  ;;  %1611 = vmatprep.mubr.bf16.mxu1 %v2891_v53 }
  0xc8   : > { %1752 = vmatprep.mubr.bf16.mxu0 %v2893_v54  ;;  %1816 = vmatpush1.bf16.msra.mxu0 %v2909_v55 }
  0xc9   : > { %1817 = vmatprep.subr.bf16.mxu0 %v2920_v56  ;;  %2596 = vmatpush1.bf16.msra.mxu1 %v2909_v55 }
  0xca   : > { %2581 = vmatprep.subr.bf16.mxu1 %v2920_v56 }
  0xcc   : > { %1818 = vmatpush1.bf16.msra.mxu0 %v2918_v57 }
  0xcd   : > { %1819 = vmatprep.subr.bf16.mxu0 %v2923_v58  ;;  %2597 = vmatpush1.bf16.msra.mxu1 %v2918_v57 }
  0xce   : > { %1612 = vmatmul.mubr.bf16.gmra.mrb[28].mxu1 %v2898_v59  ;;  %2582 = vmatprep.subr.bf16.mxu1 %v2923_v58 }
  0xcf   : > { %1753 = vmatmul.mubr.bf16.gmra.mrb[28].mxu0 %v2899_v60  ;;  %1621 = vmatprep.mubr.bf16.mxu1 %v2903_v61 }
  0xd0   : > { %1762 = vmatprep.mubr.bf16.mxu0 %v2905_v62  ;;  %1820 = vmatpush1.bf16.msra.mxu0 %v2921_v63 }
  0xd1   : > { %1821 = vmatprep.subr.bf16.mxu0 %v2930_v0  ;;  %2598 = vmatpush1.bf16.msra.mxu1 %v2921_v63 }
  0xd2   : > { %2583 = vmatprep.subr.bf16.mxu1 %v2930_v0 }
  0xd4   : > { %1822 = vmatpush1.bf16.msra.mxu0 %v2928_v1 }
  0xd5   : > { %2599 = vmatpush1.bf16.msra.mxu1 %v2928_v1 }
  0xd6   : > { %1622 = vmatmul.mubr.bf16.gmra.mrb[32].mxu1 %v2907_v2 }
  0xd7   : > { %1763 = vmatmul.mubr.bf16.gmra.mrb[32].mxu0 %v2908_v3  ;;  %1631 = vmatprep.mubr.bf16.mxu1 %v2912_v4 }
  0xd8   : > { %1772 = vmatprep.mubr.bf16.mxu0 %v2914_v5 }
  0xde   : > { %1632 = vmatmul.mubr.bf16.gmra.mrb[36].mxu1 %v2916_v8 }
  0xdf   : > { %1773 = vmatmul.mubr.bf16.gmra.mrb[36].mxu0 %v2917_v9  ;;  %1641 = vmatprep.mubr.bf16.mxu1 %v2460_v10 }
  0xe0   : > { %1782 = vmatprep.mubr.bf16.mxu0 %v2462_v11 }
  0xe6   : > { %1642 = vmatmul.mubr.bf16.gmra.mrb[40].mxu1 %v2459_v12 }
  0xe7   : > { %1783 = vmatmul.mubr.bf16.gmra.mrb[40].mxu0 %v2461_v13  ;;  %1883 = vmatprep.mubr.bf16.mxu1 %v2936_v15 }
  0xe8   : > { %1823 = vmatprep.mubr.bf16.mxu0 %v2933_v14 }
  0xee   : > { %1884 = vmatmul.mubr.bf16.vlgmr.msra.gmra.mrb[44].mxu1 %v2934_v17 }
  0xef   : > { %1824 = vmatmul.mubr.bf16.vlgmr.msra.gmra.mrb[0].mxu0 %v2931_v16  ;;  %1893 = vmatprep.mubr.bf16.mxu1 %v2939_v19 }
  0xf0   : > { %1833 = vmatprep.mubr.bf16.mxu0 %v2937_v18 }
  0xf6   : > { %1894 = vmatmul.mubr.bf16.gmra.mrb[48].mxu1 %v2942_v21 }
  0xf7   : > { %1834 = vmatmul.mubr.bf16.gmra.mrb[4].mxu0 %v2941_v20  ;;  %1903 = vmatprep.mubr.bf16.mxu1 %v2945_v23 }
  0xf8   : > { %1843 = vmatprep.mubr.bf16.mxu0 %v2943_v22 }
  0xfe   : > { %1904 = vmatmul.mubr.bf16.gmra.mrb[52].mxu1 %v2948_v25 }
  0xff   : > { %1844 = vmatmul.mubr.bf16.gmra.mrb[8].mxu0 %v2947_v24  ;;  %1913 = vmatprep.mubr.bf16.mxu1 %v2951_v27 }
 0x100   : > { %1853 = vmatprep.mubr.bf16.mxu0 %v2949_v26 }
 0x106   : > { %1914 = vmatmul.mubr.bf16.gmra.mrb[56].mxu1 %v2954_v30 }
 0x107   : > { %1854 = vmatmul.mubr.bf16.gmra.mrb[12].mxu0 %v2953_v29  ;;  %1923 = vmatprep.mubr.bf16.mxu1 %v2464_v32 }
 0x108   : > { %1863 = vmatprep.mubr.bf16.mxu0 %v2955_v31 }
 0x10e   : > { %1924 = vmatmul.mubr.bf16.gmra.mrb[60].mxu1 %v2463_v34 }
 0x10f   : > { %1864 = vmatmul.mubr.bf16.gmra.mrb[16].mxu0 %v2958_v33 }
 0x110   : > { %1873 = vmatprep.mubr.bf16.mxu0 %v2960_v35 }
 0x117   : > { %1874 = vmatmul.mubr.bf16.gmra.mrb[20].mxu0 %v2962_v36 }
 0x169   : > { %v3373_v37 = vpop.f32.mrb[0].mxu1 }
 0x16a   : > { %v3375_v38 = vpop.f32.mrb[1].mxu1 }
 0x16b   : > { %v3377_v39 = vpop.f32.mrb[2].mxu1 }
 0x16c   : > { %v3379_v40 = vpop.f32.mrb[3].mxu1 }
 0x171   : > { %v3381_v41 = vpop.f32.mrb[4].mxu1 }
 0x172   : > { %v3383_v42 = vpop.f32.mrb[5].mxu1 }
 0x173   : > { %v3385_v43 = vpop.f32.mrb[6].mxu1 }
 0x174   : > { %v3387_v44 = vpop.f32.mrb[7].mxu1 }
 0x179   : > { %v3389_v45 = vpop.f32.mrb[8].mxu1 }
 0x17a   : > { %v3391_v46 = vpop.f32.mrb[9].mxu1 }
 0x17b   : > { %v3393_v47 = vpop.f32.mrb[10].mxu1 }
 0x17c   : > { %v3395_v48 = vpop.f32.mrb[11].mxu1 }
 0x181   : > { %v3397_v49 = vpop.f32.mrb[12].mxu1 }
 0x182   : > { %v3399_v50 = vpop.f32.mrb[13].mxu1 }
 0x183   : > { %v3401_v51 = vpop.f32.mrb[14].mxu1 }
 0x184   : > { %v3403_v52 = vpop.f32.mrb[15].mxu1 }
 0x189   : > { %v3405_v53 = vpop.f32.mrb[16].mxu1 }
 0x18a   : > { %v3407_v54 = vpop.f32.mrb[17].mxu1 }
 0x18b   : > { %v3409_v55 = vpop.f32.mrb[18].mxu1 }
 0x18c   : > { %v3411_v56 = vpop.f32.mrb[19].mxu1 }
 0x191   : > { %v3413_v57 = vpop.f32.mrb[20].mxu1 }
 0x192   : > { %v3415_v58 = vpop.f32.mrb[21].mxu1 }
 0x193   : > { %v3417_v59 = vpop.f32.mrb[22].mxu1 }
 0x194   : > { %v3419_v60 = vpop.f32.mrb[23].mxu1 }
 0x199   : > { %v1603_v61 = vpop.f32.mrb[24].mxu1 }
 0x19a   : > { %v1744_v62 = vpop.f32.mrb[24].mxu0  ;;  %v1605_v0 = vpop.f32.mrb[25].mxu1 }
 0x19b   : > { %v1745_v63 = vadd.f32 %v1744_v62, %v1603_v61  ;;  %v1746_v1 = vpop.f32.mrb[25].mxu0  ;;  %v1607_v3 = vpop.f32.mrb[26].mxu1 }
 0x19c   : > { %v3421_v2 = vadd.f32 %v1746_v1, %v1605_v0  ;;  %v1748_v4 = vpop.f32.mrb[26].mxu0  ;;  %v1609_v6 = vpop.f32.mrb[27].mxu1 }
 0x19d   : > { %v3423_v5 = vadd.f32 %v1748_v4, %v1607_v3  ;;  %v1750_v7 = vpop.f32.mrb[27].mxu0 }
 0x19e   : > { %v3425_v8 = vadd.f32 %v1750_v7, %v1609_v6 }
 0x1a1   : > { %v1613_v9 = vpop.f32.mrb[28].mxu1 }
 0x1a2   : > { %v1754_v10 = vpop.f32.mrb[28].mxu0  ;;  %v1615_v12 = vpop.f32.mrb[29].mxu1 }
 0x1a3   : > { %v3427_v11 = vadd.f32 %v1754_v10, %v1613_v9  ;;  %v1756_v13 = vpop.f32.mrb[29].mxu0  ;;  %v1617_v15 = vpop.f32.mrb[30].mxu1 }
 0x1a4   : > { %v3429_v14 = vadd.f32 %v1756_v13, %v1615_v12  ;;  %v1758_v16 = vpop.f32.mrb[30].mxu0  ;;  %v1619_v18 = vpop.f32.mrb[31].mxu1 }
 0x1a5   : > { %v3431_v17 = vadd.f32 %v1758_v16, %v1617_v15  ;;  %v1760_v19 = vpop.f32.mrb[31].mxu0 }
 0x1a6   : > { %v3433_v20 = vadd.f32 %v1760_v19, %v1619_v18 }
 0x1a9   : > { %v1623_v21 = vpop.f32.mrb[32].mxu1 }
 0x1aa   : > { %v1764_v22 = vpop.f32.mrb[32].mxu0  ;;  %v1625_v24 = vpop.f32.mrb[33].mxu1 }
 0x1ab   : > { %v3435_v23 = vadd.f32 %v1764_v22, %v1623_v21  ;;  %v1766_v25 = vpop.f32.mrb[33].mxu0  ;;  %v1627_v27 = vpop.f32.mrb[34].mxu1 }
 0x1ac   : > { %v3437_v26 = vadd.f32 %v1766_v25, %v1625_v24  ;;  %v1768_v28 = vpop.f32.mrb[34].mxu0  ;;  %v1629_v30 = vpop.f32.mrb[35].mxu1  ;;  %v507_v24 = vld [vmem:[#allocation2] sm:$0xff] }
 0x1ad   : > { %v3439_v29 = vadd.f32 %v1768_v28, %v1627_v27  ;;  %v1770_v31 = vpop.f32.mrb[35].mxu0  ;;  %v531_v27 = vld [vmem:[#allocation2 + $0xc0] sm:$0xff] }
 0x1ae   : > { %v3441_v32 = vadd.f32 %v1770_v31, %v1629_v30 }
 0x1b1   : > { %v1633_v33 = vpop.f32.mrb[36].mxu1 }
 0x1b2   : > { %v1774_v34 = vpop.f32.mrb[36].mxu0  ;;  %v1635_v36 = vpop.f32.mrb[37].mxu1 }
 0x1b3   : > { %v3443_v35 = vadd.f32 %v1774_v34, %v1633_v33  ;;  %v1776_v61 = vpop.f32.mrb[37].mxu0  ;;  %v1637_v0 = vpop.f32.mrb[38].mxu1  ;;  %v508_v33 = vld [vmem:[#allocation2 + $0x8] sm:$0xff] }
 0x1b4   : > { %v3445_v62 = vadd.f32 %v1776_v61, %v1635_v36  ;;  %v1778_v1 = vpop.f32.mrb[38].mxu0  ;;  %v1639_v4 = vpop.f32.mrb[39].mxu1  ;;  %v532_v36 = vld [vmem:[#allocation2 + $0xc8] sm:$0xff] }
 0x1b5   : > { %v3447_v3 = vadd.f32 %v1778_v1, %v1637_v0  ;;  %v1780_v6 = vpop.f32.mrb[39].mxu0 }
 0x1b6   : > { %v3449_v7 = vadd.f32 %v1780_v6, %v1639_v4  ;;  %v509_v4 = vld [vmem:[#allocation2 + $0x10] sm:$0xff] }
 0x1b9   : > { %v1643_v9 = vpop.f32.mrb[40].mxu1 }
 0x1ba   : > { %v1784_v10 = vpop.f32.mrb[40].mxu0  ;;  %v1645_v13 = vpop.f32.mrb[41].mxu1 }
 0x1bb   : > { %v3451_v12 = vadd.f32 %v1784_v10, %v1643_v9  ;;  %v1786_v15 = vpop.f32.mrb[41].mxu0  ;;  %v1647_v19 = vpop.f32.mrb[42].mxu1  ;;  %v533_v9 = vld [vmem:[#allocation2 + $0xd0] sm:$0xff] }
 0x1bc   : > { %v3453_v16 = vadd.f32 %v1786_v15, %v1645_v13  ;;  %v1788_v18 = vpop.f32.mrb[42].mxu0  ;;  %v1648_v22 = vpop.f32.mrb[43].mxu1 }
 0x1bd   : > { %v1789_v21 = vpop.f32.mrb[43].mxu0 }
 0x1be   : > { %v534_v21 = vld [vmem:[#allocation2 + $0xd8] sm:$0xff] }
 0x1c1   : > { %v1885_v28 = vpop.f32.mrb[44].mxu1 }
 0x1c2   : > { %v1825_v25 = vpop.f32.mrb[0].mxu0  ;;  %v1886_v31 = vadd.f32 %v1885_v28, %v1745_v63  ;;  %v1887_v61 = vpop.f32.mrb[45].mxu1 }
 0x1c3   : > { %v2600_v30 = vadd.f32 %v1825_v25, %v3373_v37  ;;  %v1827_v34 = vpop.f32.mrb[1].mxu0  ;;  %v1888_v1 = vadd.f32 %v1887_v61, %v3421_v2  ;;  %v1889_v10 = vpop.f32.mrb[46].mxu1  ;;  %v510_v37 = vld [vmem:[#allocation2 + $0x18] sm:$0xff] }
 0x1c4   : > { %v2601_v0 = vadd.f32 %v1827_v34, %v3375_v38  ;;  %v1829_v6 = vpop.f32.mrb[2].mxu0  ;;  %v1956_v15 = vadd.f32 %v1886_v31, %v531_v27  ;;  %v1890_v19 = vadd.f32 %v1889_v10, %v3423_v5  ;;  %v1891_v22 = vpop.f32.mrb[47].mxu1  ;;  %v511_v5 = vld [vmem:[#allocation2 + $0x20] sm:$0xff] }
 0x1c5   : > { %v1932_v13 = vadd.f32 %v2600_v30, %v507_v24  ;;  %v2602_v18 = vadd.f32 %v1829_v6, %v3377_v39  ;;  %v1831_v63 = vpop.f32.mrb[3].mxu0  ;;  %v1957_v28 = vadd.f32 %v1888_v1, %v532_v36  ;;  %v1892_v2 = vadd.f32 %v1891_v22, %v3425_v8  ;;  %v535_v30 = vld [vmem:[#allocation2 + $0xe0] sm:$0xff] }
 0x1c6   : > { %v1933_v25 = vadd.f32 %v2601_v0, %v508_v33  ;;  %v2603_v38 = vadd.f32 %v1831_v63, %v3379_v40  ;;  %1998 = vst [vmem:[#allocation2 + $0xc0] sm:$0xff] %v1956_v15  ;;  %v1958_v61 = vadd.f32 %v1890_v19, %v533_v9  ;;  %v512_v33 = vld [vmem:[#allocation2 + $0x28] sm:$0xff]  ;;  %v513_v9 = vld [vmem:[#allocation2 + $0x30] sm:$0xff]  ;;  %v514_v63 = vld [vmem:[#allocation2 + $0x38] sm:$0xff] }
 0x1c7   : > { %1974 = vst [vmem:[#allocation2] sm:$0xff] %v1932_v13  ;;  %v1934_v34 = vadd.f32 %v2602_v18, %v509_v4  ;;  %1999 = vst [vmem:[#allocation2 + $0xc8] sm:$0xff] %v1957_v28  ;;  %v1959_v39 = vadd.f32 %v1892_v2, %v534_v21  ;;  %v536_v0 = vld [vmem:[#allocation2 + $0xe8] sm:$0xff]  ;;  %v537_v13 = vld [vmem:[#allocation2 + $0xf0] sm:$0xff] }
 0x1c8   : > { %1975 = vst [vmem:[#allocation2 + $0x8] sm:$0xff] %v1933_v25  ;;  %v1935_v24 = vadd.f32 %v2603_v38, %v510_v37  ;;  %2000 = vst [vmem:[#allocation2 + $0xd0] sm:$0xff] %v1958_v61  ;;  %v538_v21 = vld [vmem:[#allocation2 + $0xf8] sm:$0xff] }
 0x1c9   : > { %1976 = vst [vmem:[#allocation2 + $0x10] sm:$0xff] %v1934_v34  ;;  %2001 = vst [vmem:[#allocation2 + $0xd8] sm:$0xff] %v1959_v39  ;;  %v1895_v31 = vpop.f32.mrb[48].mxu1 }
 0x1ca   : > { %1977 = vst [vmem:[#allocation2 + $0x18] sm:$0xff] %v1935_v24  ;;  %v1835_v27 = vpop.f32.mrb[4].mxu0  ;;  %v1896_v8 = vadd.f32 %v1895_v31, %v3427_v11  ;;  %v1897_v1 = vpop.f32.mrb[49].mxu1  ;;  %v539_v24 = vld [vmem:[#allocation2 + $0x100] sm:$0xff] }
 0x1cb   : > { %v2604_v40 = vadd.f32 %v1835_v27, %v3381_v41  ;;  %v1837_v36 = vpop.f32.mrb[5].mxu0  ;;  %v1898_v6 = vadd.f32 %v1897_v1, %v3429_v14  ;;  %v1899_v15 = vpop.f32.mrb[50].mxu1 }
 0x1cc   : > { %v2605_v4 = vadd.f32 %v1837_v36, %v3383_v42  ;;  %v1839_v10 = vpop.f32.mrb[6].mxu0  ;;  %v1960_v19 = vadd.f32 %v1896_v8, %v535_v30  ;;  %v1900_v41 = vadd.f32 %v1899_v15, %v3431_v17  ;;  %v1901_v22 = vpop.f32.mrb[51].mxu1  ;;  %v515_v17 = vld [vmem:[#allocation2 + $0x40] sm:$0xff]  ;;  %v540_v30 = vld [vmem:[#allocation2 + $0x108] sm:$0xff] }
 0x1cd   : > { %v1936_v18 = vadd.f32 %v2604_v40, %v511_v5  ;;  %v2606_v37 = vadd.f32 %v1839_v10, %v3385_v43  ;;  %v1841_v11 = vpop.f32.mrb[7].mxu0  ;;  %v1961_v28 = vadd.f32 %v1898_v6, %v536_v0  ;;  %v1902_v14 = vadd.f32 %v1901_v22, %v3433_v20  ;;  %v516_v5 = vld [vmem:[#allocation2 + $0x48] sm:$0xff]  ;;  %v541_v0 = vld [vmem:[#allocation2 + $0x110] sm:$0xff]  ;;  %v518_v10 = vld [vmem:[#allocation2 + $0x58] sm:$0xff] }
 0x1ce   : > { %v1937_v25 = vadd.f32 %v2605_v4, %v512_v33  ;;  %v2607_v42 = vadd.f32 %v1841_v11, %v3387_v44  ;;  %2002 = vst [vmem:[#allocation2 + $0xe0] sm:$0xff] %v1960_v19  ;;  %v1962_v2 = vadd.f32 %v1900_v41, %v537_v13  ;;  %v517_v33 = vld [vmem:[#allocation2 + $0x50] sm:$0xff]  ;;  %v542_v13 = vld [vmem:[#allocation2 + $0x118] sm:$0xff] }
 0x1cf   : > { %1978 = vst [vmem:[#allocation2 + $0x20] sm:$0xff] %v1936_v18  ;;  %v1938_v38 = vadd.f32 %v2606_v37, %v513_v9  ;;  %2003 = vst [vmem:[#allocation2 + $0xe8] sm:$0xff] %v1961_v28  ;;  %v1963_v43 = vadd.f32 %v1902_v14, %v538_v21  ;;  %v543_v21 = vld [vmem:[#allocation2 + $0x120] sm:$0xff] }
 0x1d0   : > { %1979 = vst [vmem:[#allocation2 + $0x28] sm:$0xff] %v1937_v25  ;;  %v1939_v34 = vadd.f32 %v2607_v42, %v514_v63  ;;  %2004 = vst [vmem:[#allocation2 + $0xf0] sm:$0xff] %v1962_v2  ;;  %v520_v25 = vld [vmem:[#allocation2 + $0x68] sm:$0xff] }
 0x1d1   : > { %1980 = vst [vmem:[#allocation2 + $0x30] sm:$0xff] %v1938_v38  ;;  %2005 = vst [vmem:[#allocation2 + $0xf8] sm:$0xff] %v1963_v43  ;;  %v1905_v39 = vpop.f32.mrb[52].mxu1  ;;  %v544_v42 = vld [vmem:[#allocation2 + $0x128] sm:$0xff] }
 0x1d2   : > { %1981 = vst [vmem:[#allocation2 + $0x38] sm:$0xff] %v1939_v34  ;;  %v1845_v61 = vpop.f32.mrb[8].mxu0  ;;  %v1906_v20 = vadd.f32 %v1905_v39, %v3435_v23  ;;  %v1907_v31 = vpop.f32.mrb[53].mxu1  ;;  %v521_v34 = vld [vmem:[#allocation2 + $0x70] sm:$0xff] }
 0x1d3   : > { %v2608_v44 = vadd.f32 %v1845_v61, %v3389_v45  ;;  %v1847_v27 = vpop.f32.mrb[9].mxu0  ;;  %v1908_v8 = vadd.f32 %v1907_v31, %v3437_v26  ;;  %v1909_v1 = vpop.f32.mrb[54].mxu1 }
 0x1d4   : > { %v2609_v40 = vadd.f32 %v1847_v27, %v3391_v46  ;;  %v1849_v36 = vpop.f32.mrb[10].mxu0  ;;  %v1964_v6 = vadd.f32 %v1906_v20, %v539_v24  ;;  %v1910_v45 = vadd.f32 %v1909_v1, %v3439_v29  ;;  %v1911_v15 = vpop.f32.mrb[55].mxu1  ;;  %v519_v29 = vld [vmem:[#allocation2 + $0x60] sm:$0xff]  ;;  %v522_v20 = vld [vmem:[#allocation2 + $0x78] sm:$0xff] }
 0x1d5   : > { %v1940_v4 = vadd.f32 %v2608_v44, %v515_v17  ;;  %v2610_v9 = vadd.f32 %v1849_v36, %v3393_v47  ;;  %v1851_v23 = vpop.f32.mrb[11].mxu0  ;;  %v1965_v19 = vadd.f32 %v1908_v8, %v540_v30  ;;  %v1912_v26 = vadd.f32 %v1911_v15, %v3441_v32  ;;  %v545_v17 = vld [vmem:[#allocation2 + $0x130] sm:$0xff] }
 0x1d6   : > { %v1941_v18 = vadd.f32 %v2609_v40, %v516_v5  ;;  %v2611_v46 = vadd.f32 %v1851_v23, %v3395_v48  ;;  %2006 = vst [vmem:[#allocation2 + $0x100] sm:$0xff] %v1964_v6  ;;  %v1966_v41 = vadd.f32 %v1910_v45, %v541_v0  ;;  %v546_v5 = vld [vmem:[#allocation2 + $0x138] sm:$0xff]  ;;  %v547_v0 = vld [vmem:[#allocation2 + $0x140] sm:$0xff] }
 0x1d7   : > { %1982 = vst [vmem:[#allocation2 + $0x40] sm:$0xff] %v1940_v4  ;;  %v1942_v37 = vadd.f32 %v2610_v9, %v517_v33  ;;  %2007 = vst [vmem:[#allocation2 + $0x108] sm:$0xff] %v1965_v19  ;;  %v1967_v47 = vadd.f32 %v1912_v26, %v542_v13  ;;  %v524_v4 = vld [vmem:[#allocation2 + $0x88] sm:$0xff]  ;;  %v525_v13 = vld [vmem:[#allocation2 + $0x90] sm:$0xff] }
 0x1d8   : > { %1983 = vst [vmem:[#allocation2 + $0x48] sm:$0xff] %v1941_v18  ;;  %v1943_v63 = vadd.f32 %v2611_v46, %v518_v10  ;;  %2008 = vst [vmem:[#allocation2 + $0x110] sm:$0xff] %v1966_v41  ;;  %v548_v9 = vld [vmem:[#allocation2 + $0x148] sm:$0xff] }
 0x1d9   : > { %1984 = vst [vmem:[#allocation2 + $0x50] sm:$0xff] %v1942_v37  ;;  %2009 = vst [vmem:[#allocation2 + $0x118] sm:$0xff] %v1967_v47  ;;  %v1915_v22 = vpop.f32.mrb[56].mxu1  ;;  %v526_v37 = vld [vmem:[#allocation2 + $0x98] sm:$0xff] }
 0x1da   : > { %1985 = vst [vmem:[#allocation2 + $0x58] sm:$0xff] %v1943_v63  ;;  %v1855_v11 = vpop.f32.mrb[12].mxu0  ;;  %v1916_v32 = vadd.f32 %v1915_v22, %v3443_v35  ;;  %v1917_v14 = vpop.f32.mrb[57].mxu1 }
 0x1db   : > { %v2612_v48 = vadd.f32 %v1855_v11, %v3397_v49  ;;  %v1857_v28 = vpop.f32.mrb[13].mxu0  ;;  %v1918_v2 = vadd.f32 %v1917_v14, %v3445_v62  ;;  %v1919_v61 = vpop.f32.mrb[58].mxu1 }
 0x1dc   : > { %v2613_v38 = vadd.f32 %v1857_v28, %v3399_v50  ;;  %v1859_v43 = vpop.f32.mrb[14].mxu0  ;;  %v1968_v39 = vadd.f32 %v1916_v32, %v543_v21  ;;  %v1920_v49 = vadd.f32 %v1919_v61, %v3447_v3  ;;  %v1921_v27 = vpop.f32.mrb[59].mxu1  ;;  %v523_v3 = vld [vmem:[#allocation2 + $0x80] sm:$0xff]  ;;  %v529_v32 = vld [vmem:[#allocation2 + $0xb0] sm:$0xff] }
 0x1dd   : > { %v1944_v24 = vadd.f32 %v2612_v48, %v519_v29  ;;  %v2614_v44 = vadd.f32 %v1859_v43, %v3401_v51  ;;  %v1861_v35 = vpop.f32.mrb[15].mxu0  ;;  %v1969_v31 = vadd.f32 %v1918_v2, %v544_v42  ;;  %v1922_v62 = vadd.f32 %v1921_v27, %v3449_v7  ;;  %v530_v42 = vld [vmem:[#allocation2 + $0xb8] sm:$0xff] }
 0x1de   : > { %v1945_v30 = vadd.f32 %v2613_v38, %v520_v25  ;;  %v2615_v50 = vadd.f32 %v1861_v35, %v3403_v52  ;;  %2010 = vst [vmem:[#allocation2 + $0x120] sm:$0xff] %v1968_v39  ;;  %v1970_v8 = vadd.f32 %v1920_v49, %v545_v17  ;;  %v2116_v17 = vld [vmem:[%s3739_s3] sm:$0x3] (!%p2561_p11)  ;;  %v2023_v49 = vld [vmem:[#allocation2 + $0x18] sm:$0xff] (!%p2561_p11) }
 0x1df   : > { %1986 = vst [vmem:[#allocation2 + $0x60] sm:$0xff] %v1944_v24  ;;  %v1946_v40 = vadd.f32 %v2614_v44, %v521_v34  ;;  %2011 = vst [vmem:[#allocation2 + $0x128] sm:$0xff] %v1969_v31  ;;  %v1971_v51 = vadd.f32 %v1922_v62, %v546_v5  ;;  %v2021_v24 = vld [vmem:[#allocation2 + $0x8] sm:$0xff] (!%p2561_p11)  ;;  %v2022_v44 = vld [vmem:[#allocation2 + $0x10] sm:$0xff] (!%p2561_p11) }
 0x1e0   : > { %1987 = vst [vmem:[#allocation2 + $0x68] sm:$0xff] %v1945_v30  ;;  %v1947_v33 = vadd.f32 %v2615_v50, %v522_v20  ;;  %2012 = vst [vmem:[#allocation2 + $0x130] sm:$0xff] %v1970_v8  ;;  %v2024_v20 = vld [vmem:[#allocation2 + $0x20] sm:$0xff] (!%p2561_p11)  ;;  %v2025_v31 = vld [vmem:[#allocation2 + $0x28] sm:$0xff] (!%p2561_p11) }
 0x1e1   : > { %1988 = vst [vmem:[#allocation2 + $0x70] sm:$0xff] %v1946_v40  ;;  %2013 = vst [vmem:[#allocation2 + $0x138] sm:$0xff] %v1971_v51  ;;  %v1925_v1 = vpop.f32.mrb[60].mxu1  ;;  %v2026_v50 = vld [vmem:[#allocation2 + $0x30] sm:$0xff] (!%p2561_p11)  ;;  %v2027_v62 = vld [vmem:[#allocation2 + $0x38] sm:$0xff] (!%p2561_p11) }
 0x1e2   : > { %1989 = vst [vmem:[#allocation2 + $0x78] sm:$0xff] %v1947_v33  ;;  %v1865_v36 = vpop.f32.mrb[16].mxu0  ;;  %v1926_v7 = vadd.f32 %v1925_v1, %v3451_v12  ;;  %v1927_v45 = vpop.f32.mrb[61].mxu1 }
 0x1e3   : > { %v2616_v52 = vadd.f32 %v1865_v36, %v3405_v53  ;;  %v1867_v6 = vpop.f32.mrb[17].mxu0  ;;  %v1928_v23 = vadd.f32 %v1927_v45, %v3453_v16  ;;  %v1929_v18 = vpop.f32.mrb[62].mxu1  ;;  %v527_v16 = vld [vmem:[#allocation2 + $0xa0] sm:$0xff]  ;;  %v2029_v45 = vld [vmem:[#allocation2 + $0x48] sm:$0xff] (!%p2561_p11) }
 0x1e4   : > { %v2617_v10 = vadd.f32 %v1867_v6, %v3407_v54  ;;  %v1869_v15 = vpop.f32.mrb[18].mxu0  ;;  %v1972_v46 = vadd.f32 %v1926_v7, %v547_v0  ;;  %v1930_v53 = vpop.f32.mrb[63].mxu1 }
 0x1e5   : > { %v1948_v19 = vadd.f32 %v2616_v52, %v523_v3  ;;  %v2618_v26 = vadd.f32 %v1869_v15, %v3409_v55  ;;  %v1871_v41 = vpop.f32.mrb[19].mxu0  ;;  %v1973_v12 = vadd.f32 %v1928_v23, %v548_v9  ;;  %v528_v55 = vld [vmem:[#allocation2 + $0xa8] sm:$0xff]  ;;  %v2028_v9 = vld [vmem:[#allocation2 + $0x40] sm:$0xff] (!%p2561_p11) }
 0x1e6   : > { %v1949_v63 = vadd.f32 %v2617_v10, %v524_v4  ;;  %v2619_v47 = vadd.f32 %v1871_v41, %v3411_v56  ;;  %2014 = vst [vmem:[#allocation2 + $0x140] sm:$0xff] %v1972_v46  ;;  %v2030_v10 = vld [vmem:[#allocation2 + $0x50] sm:$0xff] (!%p2561_p11)  ;;  %v2032_v46 = vld [vmem:[#allocation2 + $0x60] sm:$0xff] (!%p2561_p11) }
 0x1e7   : > { %1990 = vst [vmem:[#allocation2 + $0x80] sm:$0xff] %v1948_v19  ;;  %v1950_v29 = vadd.f32 %v2618_v26, %v525_v13  ;;  %2015 = vst [vmem:[#allocation2 + $0x148] sm:$0xff] %v1973_v12  ;;  %v2031_v19 = vld [vmem:[#allocation2 + $0x58] sm:$0xff] (!%p2561_p11)  ;;  %v2033_v26 = vld [vmem:[#allocation2 + $0x68] sm:$0xff] (!%p2561_p11) }
 0x1e8   : > { %1991 = vst [vmem:[#allocation2 + $0x88] sm:$0xff] %v1949_v63  ;;  %v1951_v54 = vadd.f32 %v2619_v47, %v526_v37  ;;  %v2034_v12 = vld [vmem:[#allocation2 + $0x70] sm:$0xff] (!%p2561_p11) }
 0x1e9   : > { %1992 = vst [vmem:[#allocation2 + $0x90] sm:$0xff] %v1950_v29  ;;  %v2035_v47 = vld [vmem:[#allocation2 + $0x78] sm:$0xff] (!%p2561_p11) }
 0x1ea   : > { %1993 = vst [vmem:[#allocation2 + $0x98] sm:$0xff] %v1951_v54  ;;  %v1875_v11 = vpop.f32.mrb[20].mxu0 }
 0x1eb   : > { %v2620_v21 = vadd.f32 %v1875_v11, %v3413_v57  ;;  %v1877_v22 = vpop.f32.mrb[21].mxu0  ;;  %v2064_v57 = vlaneseq (!%p2561_p11) }
 0x1ec   : > { %v2621_v48 = vadd.f32 %v1877_v22, %v3415_v58  ;;  %v1879_v25 = vpop.f32.mrb[22].mxu0  ;;  %2019 = sbr.rel (%p2561_p11) target bundleno = 540 (0x21c), region = 67 }
 0x1ed   : > { %v1952_v28 = vadd.f32 %v2620_v21, %v527_v16  ;;  %v2622_v56 = vadd.f32 %v1879_v25, %v3417_v59  ;;  %v1881_v14 = vpop.f32.mrb[23].mxu0  ;;  %v2065_v58 = vshrl.u32 (!%p2561_p11), %v2064_v57, 7  ;;  %v2062_v59 = vld [vmem:[%s3738_s2] sm:$0x3] (!%p2561_p11) }
 0x1ee   : > { %v1953_v38 = vadd.f32 %v2621_v48, %v528_v55  ;;  %v2623_v2 = vadd.f32 %v1881_v14, %v3419_v60  ;;  %v2020_v60 = vld [vmem:[#allocation2] sm:$0xff] (!%p2561_p11) }
 0x1ef   : > { %1994 = vst [vmem:[#allocation2 + $0xa0] sm:$0xff] %v1952_v28  ;;  %v1954_v34 = vadd.f32 %v2622_v56, %v529_v32  ;;  %v2066_v61 = vsub.s32 (!%p2561_p11), 0, %v2065_v58  ;;  %v2070_v39 = vsub.s32 (!%p2561_p11), 1, %v2065_v58 }
 0x1f0   : > { %1995 = vst [vmem:[#allocation2 + $0xa8] sm:$0xff] %v1953_v38  ;;  %v1955_v43 = vadd.f32 %v2623_v2, %v530_v42  ;;  %v2038_v57 = vld [vmem:[#allocation2 + $0x90] sm:$0xff] (!%p2561_p11) }
 0x1f1   : > { %1996 = vst [vmem:[#allocation2 + $0xb0] sm:$0xff] %v1954_v34  ;;  %v3503_v35 = vrot.slane (!%p2561_p11), %v2062_v59, %v2066_v61  ;;  %v3505_v5 = vrot.slane (!%p2561_p11), %v2116_v17, %v2066_v61  ;;  %v3507_v27 = vrot.slane (!%p2561_p11), %v2062_v59, %v2070_v39  ;;  %v3509_v30 = vrot.slane (!%p2561_p11), %v2116_v17, %v2070_v39  ;;  %v2036_v34 = vld [vmem:[#allocation2 + $0x80] sm:$0xff] (!%p2561_p11)  ;;  %v2039_v61 = vld [vmem:[#allocation2 + $0x98] sm:$0xff] (!%p2561_p11) }
 0x1f2   : > { %1997 = vst [vmem:[#allocation2 + $0xb8] sm:$0xff] %v1955_v43  ;;  %v2037_v43 = vld [vmem:[#allocation2 + $0x88] sm:$0xff] (!%p2561_p11) }
 0x1f3   : > { %v2074_v40 = vmul.f32 %v3503_v35, %v2020_v60  ;;  %v2075_v8 = vmul.f32 %v3507_v27, %v2021_v24  ;;  %v2076_v33 = vmul.f32 %v3503_v35, %v2022_v44  ;;  %v2077_v51 = vmul.f32 %v3507_v27, %v2023_v49 }
 0x1f4   : > { %v2078_v3 = vmul.f32 %v3503_v35, %v2024_v20  ;;  %v2079_v36 = vmul.f32 %v3507_v27, %v2025_v31  ;;  %v2080_v0 = vmul.f32 %v3503_v35, %v2026_v50  ;;  %v2081_v1 = vmul.f32 %v3507_v27, %v2027_v62 }
 0x1f5   : > { %v2128_v52 = vadd.f32 %v3505_v5, %v2074_v40  ;;  %v2129_v7 = vadd.f32 %v3509_v30, %v2075_v8  ;;  %v2130_v4 = vadd.f32 %v3505_v5, %v2076_v33  ;;  %v2131_v6 = vadd.f32 %v3509_v30, %v2077_v51 }
 0x1f6   : > { %v2132_v23 = vadd.f32 %v3505_v5, %v2078_v3  ;;  %v2133_v13 = vadd.f32 %v3509_v30, %v2079_v36  ;;  %v2134_v15 = vadd.f32 %v3505_v5, %v2080_v0  ;;  %v2135_v18 = vadd.f32 %v3509_v30, %v2081_v1  ;;  %v2040_v24 = vld [vmem:[#allocation2 + $0xa0] sm:$0xff] }
 0x1f7   : > { %v2170_v37 = vmax.f32 %v2128_v52, 0.0  ;;  %v2171_v41 = vmax.f32 %v2129_v7, 0.0  ;;  %v2172_v53 = vmax.f32 %v2130_v4, 0.0  ;;  %v2173_v63 = vmax.f32 %v2131_v6, 0.0  ;;  %v2041_v39 = vld [vmem:[#allocation2 + $0xa8] sm:$0xff] }
 0x1f8   : > { %v2174_v29 = vmax.f32 %v2132_v23, 0.0  ;;  %v2175_v54 = vmax.f32 %v2133_v13, 0.0  ;;  %v2176_v16 = vmax.f32 %v2134_v15, 0.0  ;;  %v2177_v11 = vmax.f32 %v2135_v18, 0.0  ;;  %v2042_v50 = vld [vmem:[#allocation2 + $0xb0] sm:$0xff]  ;;  %v2044_v13 = vld [vmem:[#allocation2 + $0xc0] sm:$0xff] }
 0x1f9   : > { %2212 = vst [vmem:[%s3740_s4] sm:$0xff] %v2170_v37  ;;  %2213 = vst [vmem:[%s3740_s4 + $0x8] sm:$0xff] %v2171_v41  ;;  %v2082_v21 = vmul.f32 %v3503_v35, %v2028_v9  ;;  %v2083_v55 = vmul.f32 %v3507_v27, %v2029_v45  ;;  %v2084_v22 = vmul.f32 %v3503_v35, %v2030_v10  ;;  %v2043_v62 = vld [vmem:[#allocation2 + $0xb8] sm:$0xff]  ;;  %v2045_v15 = vld [vmem:[#allocation2 + $0xc8] sm:$0xff] }
 0x1fa   : > { %2214 = vst [vmem:[%s3740_s4 + $0x10] sm:$0xff] %v2172_v53  ;;  %2215 = vst [vmem:[%s3740_s4 + $0x18] sm:$0xff] %v2173_v63  ;;  %v2085_v48 = vmul.f32 %v3507_v27, %v2031_v19  ;;  %v2086_v32 = vmul.f32 %v3503_v35, %v2032_v46  ;;  %v2087_v25 = vmul.f32 %v3507_v27, %v2033_v26  ;;  %v2046_v18 = vld [vmem:[#allocation2 + $0xd0] sm:$0xff]  ;;  %v2047_v41 = vld [vmem:[#allocation2 + $0xd8] sm:$0xff] }
 0x1fb   : > { %2216 = vst [vmem:[%s3740_s4 + $0x20] sm:$0xff] %v2174_v29  ;;  %2217 = vst [vmem:[%s3740_s4 + $0x28] sm:$0xff] %v2175_v54  ;;  %v2088_v28 = vmul.f32 %v3503_v35, %v2034_v12  ;;  %v2089_v56 = vmul.f32 %v3507_v27, %v2035_v47  ;;  %v2136_v42 = vadd.f32 %v3505_v5, %v2082_v21  ;;  %v2048_v53 = vld [vmem:[#allocation2 + $0xe0] sm:$0xff]  ;;  %v2049_v63 = vld [vmem:[#allocation2 + $0xe8] sm:$0xff] }
 0x1fc   : > { %2218 = vst [vmem:[%s3740_s4 + $0x30] sm:$0xff] %v2176_v16  ;;  %2219 = vst [vmem:[%s3740_s4 + $0x38] sm:$0xff] %v2177_v11  ;;  %v2137_v14 = vadd.f32 %v3509_v30, %v2083_v55  ;;  %v2138_v38 = vadd.f32 %v3505_v5, %v2084_v22  ;;  %v2139_v2 = vadd.f32 %v3509_v30, %v2085_v48  ;;  %v2050_v16 = vld [vmem:[#allocation2 + $0xf0] sm:$0xff]  ;;  %v2051_v11 = vld [vmem:[#allocation2 + $0xf8] sm:$0xff] }
 0x1fd   : > { %v2140_v58 = vadd.f32 %v3505_v5, %v2086_v32  ;;  %v2141_v59 = vadd.f32 %v3509_v30, %v2087_v25  ;;  %v2142_v17 = vadd.f32 %v3505_v5, %v2088_v28  ;;  %v2143_v60 = vadd.f32 %v3509_v30, %v2089_v56 }
 0x1fe   : > { %v2178_v44 = vmax.f32 %v2136_v42, 0.0  ;;  %v2179_v49 = vmax.f32 %v2137_v14, 0.0  ;;  %v2180_v20 = vmax.f32 %v2138_v38, 0.0  ;;  %v2181_v31 = vmax.f32 %v2139_v2, 0.0 }
 0x1ff   : > { %v2182_v40 = vmax.f32 %v2140_v58, 0.0  ;;  %v2183_v8 = vmax.f32 %v2141_v59, 0.0  ;;  %v2184_v33 = vmax.f32 %v2142_v17, 0.0  ;;  %v2185_v51 = vmax.f32 %v2143_v60, 0.0  ;;  %v2052_v59 = vld [vmem:[#allocation2 + $0x100] sm:$0xff]  ;;  %v2053_v17 = vld [vmem:[#allocation2 + $0x108] sm:$0xff] }
 0x200   : > { %2220 = vst [vmem:[%s3740_s4 + $0x40] sm:$0xff] %v2178_v44  ;;  %2221 = vst [vmem:[%s3740_s4 + $0x48] sm:$0xff] %v2179_v49  ;;  %v2090_v3 = vmul.f32 %v3503_v35, %v2036_v34  ;;  %v2091_v36 = vmul.f32 %v3507_v27, %v2037_v43  ;;  %v2092_v0 = vmul.f32 %v3503_v35, %v2038_v57  ;;  %v2054_v60 = vld [vmem:[#allocation2 + $0x110] sm:$0xff]  ;;  %v2055_v49 = vld [vmem:[#allocation2 + $0x118] sm:$0xff] }
 0x201   : > { %2222 = vst [vmem:[%s3740_s4 + $0x50] sm:$0xff] %v2180_v20  ;;  %2223 = vst [vmem:[%s3740_s4 + $0x58] sm:$0xff] %v2181_v31  ;;  %v2093_v1 = vmul.f32 %v3507_v27, %v2039_v61  ;;  %v2094_v52 = vmul.f32 %v3503_v35, %v2040_v24  ;;  %v2095_v7 = vmul.f32 %v3507_v27, %v2041_v39  ;;  %v2056_v20 = vld [vmem:[#allocation2 + $0x120] sm:$0xff]  ;;  %v2057_v31 = vld [vmem:[#allocation2 + $0x128] sm:$0xff] }
 0x202   : > { %2224 = vst [vmem:[%s3740_s4 + $0x60] sm:$0xff] %v2182_v40  ;;  %2225 = vst [vmem:[%s3740_s4 + $0x68] sm:$0xff] %v2183_v8  ;;  %v2096_v4 = vmul.f32 %v3503_v35, %v2042_v50  ;;  %v2097_v6 = vmul.f32 %v3507_v27, %v2043_v62  ;;  %v2144_v9 = vadd.f32 %v3505_v5, %v2090_v3 }
 0x203   : > { %2226 = vst [vmem:[%s3740_s4 + $0x70] sm:$0xff] %v2184_v33  ;;  %2227 = vst [vmem:[%s3740_s4 + $0x78] sm:$0xff] %v2185_v51  ;;  %v2145_v45 = vadd.f32 %v3509_v30, %v2091_v36  ;;  %v2146_v10 = vadd.f32 %v3505_v5, %v2092_v0  ;;  %v2147_v23 = vadd.f32 %v3509_v30, %v2093_v1  ;;  %v2058_v33 = vld [vmem:[#allocation2 + $0x130] sm:$0xff]  ;;  %v2059_v51 = vld [vmem:[#allocation2 + $0x138] sm:$0xff] }
 0x204   : > { %v2148_v19 = vadd.f32 %v3505_v5, %v2094_v52  ;;  %v2149_v46 = vadd.f32 %v3509_v30, %v2095_v7  ;;  %v2150_v26 = vadd.f32 %v3505_v5, %v2096_v4  ;;  %v2151_v37 = vadd.f32 %v3509_v30, %v2097_v6 }
 0x205   : > { %v2186_v12 = vmax.f32 %v2144_v9, 0.0  ;;  %v2187_v47 = vmax.f32 %v2145_v45, 0.0  ;;  %v2188_v29 = vmax.f32 %v2146_v10, 0.0  ;;  %v2189_v54 = vmax.f32 %v2147_v23, 0.0 }
 0x206   : > { %v2190_v21 = vmax.f32 %v2148_v19, 0.0  ;;  %v2191_v55 = vmax.f32 %v2149_v46, 0.0  ;;  %v2192_v22 = vmax.f32 %v2150_v26, 0.0  ;;  %v2193_v48 = vmax.f32 %v2151_v37, 0.0 }
 0x207   : > { %2228 = vst [vmem:[%s3740_s4 + $0x80] sm:$0xff] %v2186_v12  ;;  %2229 = vst [vmem:[%s3740_s4 + $0x88] sm:$0xff] %v2187_v47  ;;  %v2098_v32 = vmul.f32 %v3503_v35, %v2044_v13  ;;  %v2099_v25 = vmul.f32 %v3507_v27, %v2045_v15  ;;  %v2100_v28 = vmul.f32 %v3503_v35, %v2046_v18 }
 0x208   : > { %2230 = vst [vmem:[%s3740_s4 + $0x90] sm:$0xff] %v2188_v29  ;;  %2231 = vst [vmem:[%s3740_s4 + $0x98] sm:$0xff] %v2189_v54  ;;  %v2101_v56 = vmul.f32 %v3507_v27, %v2047_v41  ;;  %v2102_v42 = vmul.f32 %v3503_v35, %v2048_v53  ;;  %v2103_v14 = vmul.f32 %v3507_v27, %v2049_v63  ;;  %v2060_v53 = vld [vmem:[#allocation2 + $0x140] sm:$0xff]  ;;  %v2061_v63 = vld [vmem:[#allocation2 + $0x148] sm:$0xff] }
 0x209   : > { %2232 = vst [vmem:[%s3740_s4 + $0xa0] sm:$0xff] %v2190_v21  ;;  %2233 = vst [vmem:[%s3740_s4 + $0xa8] sm:$0xff] %v2191_v55  ;;  %v2104_v38 = vmul.f32 %v3503_v35, %v2050_v16  ;;  %v2105_v2 = vmul.f32 %v3507_v27, %v2051_v11  ;;  %v2152_v34 = vadd.f32 %v3505_v5, %v2098_v32 }
 0x20a   : > { %2234 = vst [vmem:[%s3740_s4 + $0xb0] sm:$0xff] %v2192_v22  ;;  %2235 = vst [vmem:[%s3740_s4 + $0xb8] sm:$0xff] %v2193_v48  ;;  %v2153_v43 = vadd.f32 %v3509_v30, %v2099_v25  ;;  %v2154_v57 = vadd.f32 %v3505_v5, %v2100_v28  ;;  %v2155_v58 = vadd.f32 %v3509_v30, %v2101_v56 }
 0x20b   : > { %v2156_v61 = vadd.f32 %v3505_v5, %v2102_v42  ;;  %v2157_v24 = vadd.f32 %v3509_v30, %v2103_v14  ;;  %v2158_v39 = vadd.f32 %v3505_v5, %v2104_v38  ;;  %v2159_v44 = vadd.f32 %v3509_v30, %v2105_v2 }
 0x20c   : > { %v2194_v50 = vmax.f32 %v2152_v34, 0.0  ;;  %v2195_v62 = vmax.f32 %v2153_v43, 0.0  ;;  %v2196_v40 = vmax.f32 %v2154_v57, 0.0  ;;  %v2197_v8 = vmax.f32 %v2155_v58, 0.0 }
 0x20d   : > { %v2198_v3 = vmax.f32 %v2156_v61, 0.0  ;;  %v2199_v36 = vmax.f32 %v2157_v24, 0.0  ;;  %v2200_v0 = vmax.f32 %v2158_v39, 0.0  ;;  %v2201_v1 = vmax.f32 %v2159_v44, 0.0 }
 0x20e   : > { %2236 = vst [vmem:[%s3740_s4 + $0xc0] sm:$0xff] %v2194_v50  ;;  %2237 = vst [vmem:[%s3740_s4 + $0xc8] sm:$0xff] %v2195_v62  ;;  %v2106_v52 = vmul.f32 %v3503_v35, %v2052_v59  ;;  %v2107_v7 = vmul.f32 %v3507_v27, %v2053_v17  ;;  %v2108_v4 = vmul.f32 %v3503_v35, %v2054_v60 }
 0x20f   : > { %2238 = vst [vmem:[%s3740_s4 + $0xd0] sm:$0xff] %v2196_v40  ;;  %2239 = vst [vmem:[%s3740_s4 + $0xd8] sm:$0xff] %v2197_v8  ;;  %v2109_v6 = vmul.f32 %v3507_v27, %v2055_v49  ;;  %v2110_v9 = vmul.f32 %v3503_v35, %v2056_v20  ;;  %v2111_v45 = vmul.f32 %v3507_v27, %v2057_v31 }
 0x210   : > { %2240 = vst [vmem:[%s3740_s4 + $0xe0] sm:$0xff] %v2198_v3  ;;  %2241 = vst [vmem:[%s3740_s4 + $0xe8] sm:$0xff] %v2199_v36  ;;  %v2112_v10 = vmul.f32 %v3503_v35, %v2058_v33  ;;  %v2113_v23 = vmul.f32 %v3507_v27, %v2059_v51  ;;  %v2160_v13 = vadd.f32 %v3505_v5, %v2106_v52 }
 0x211   : > { %2242 = vst [vmem:[%s3740_s4 + $0xf0] sm:$0xff] %v2200_v0  ;;  %2243 = vst [vmem:[%s3740_s4 + $0xf8] sm:$0xff] %v2201_v1  ;;  %v2161_v15 = vadd.f32 %v3509_v30, %v2107_v7  ;;  %v2162_v18 = vadd.f32 %v3505_v5, %v2108_v4  ;;  %v2163_v19 = vadd.f32 %v3509_v30, %v2109_v6 }
 0x212   : > { %v2164_v46 = vadd.f32 %v3505_v5, %v2110_v9  ;;  %v2165_v26 = vadd.f32 %v3509_v30, %v2111_v45  ;;  %v2166_v37 = vadd.f32 %v3505_v5, %v2112_v10  ;;  %v2167_v41 = vadd.f32 %v3509_v30, %v2113_v23 }
 0x213   : > { %v2202_v12 = vmax.f32 %v2160_v13, 0.0  ;;  %v2203_v47 = vmax.f32 %v2161_v15, 0.0  ;;  %v2204_v29 = vmax.f32 %v2162_v18, 0.0  ;;  %v2205_v54 = vmax.f32 %v2163_v19, 0.0 }
 0x214   : > { %v2206_v16 = vmax.f32 %v2164_v46, 0.0  ;;  %v2207_v11 = vmax.f32 %v2165_v26, 0.0  ;;  %v2208_v21 = vmax.f32 %v2166_v37, 0.0  ;;  %v2209_v55 = vmax.f32 %v2167_v41, 0.0 }
 0x215   : > { %2244 = vst [vmem:[%s3740_s4 + $0x100] sm:$0xff] %v2202_v12  ;;  %2245 = vst [vmem:[%s3740_s4 + $0x108] sm:$0xff] %v2203_v47  ;;  %v2114_v22 = vmul.f32 %v3503_v35, %v2060_v53  ;;  %v2115_v48 = vmul.f32 %v3507_v27, %v2061_v63 }
 0x216   : > { %2246 = vst [vmem:[%s3740_s4 + $0x110] sm:$0xff] %v2204_v29  ;;  %2247 = vst [vmem:[%s3740_s4 + $0x118] sm:$0xff] %v2205_v54 }
 0x217   : > { %2248 = vst [vmem:[%s3740_s4 + $0x120] sm:$0xff] %v2206_v16  ;;  %2249 = vst [vmem:[%s3740_s4 + $0x128] sm:$0xff] %v2207_v11  ;;  %v2168_v35 = vadd.f32 %v3505_v5, %v2114_v22  ;;  %v2169_v27 = vadd.f32 %v3509_v30, %v2115_v48 }
 0x218   : > { %2250 = vst [vmem:[%s3740_s4 + $0x130] sm:$0xff] %v2208_v21  ;;  %2251 = vst [vmem:[%s3740_s4 + $0x138] sm:$0xff] %v2209_v55 }
 0x219   : > { %v2210_v32 = vmax.f32 %v2168_v35, 0.0  ;;  %v2211_v25 = vmax.f32 %v2169_v27, 0.0 }
 0x21b   : > { %2252 = vst [vmem:[%s3740_s4 + $0x140] sm:$0xff] %v2210_v32  ;;  %2253 = vst [vmem:[%s3740_s4 + $0x148] sm:$0xff] %v2211_v25 }
 0x21c PF: > { %s14_s19 = sadd.s32 1, %s3001_s19   ;;  %s3741_s15 = smov %s2989_s16 }
 0x21d   : > { %p11_p12 = scmp.ge.s32.totalorder %s14_s19, 5   ;;  %s3742_s16 = smov %s3064_s23 }
 0x21e   : > { %s3743_s17 = smov %s2997_s18  ;;  %s3744_s18 = smov %s3746_s20 }
 0x21f   :  { %13 = sbr.rel (!%p11_p12) target bundleno = 3 (0x3), region = 111 }

// kernel: mixed_7a.11
= control target key start
LH: loop header
LB: loop body
LE: loop exit
PB: predicated region body
PF: predicated region fallthrough
CT: control target
= control target key end

     0   :  { %s1366_s0 = inlined_call_operand.vmem [shape: f32[32,8064], index: 0, kind: input, shape index: {}]   ;;  %s1367_s1 = inlined_call_operand.vmem [shape: f32[32,896], index: 1, kind: output, shape index: {}]  }
   0x1   :  { %v8_v0 = vld [vmem:[%s1366_s0] sm:$0xff]  ;;  %v36_v1 = vld [vmem:[%s1366_s0 + $0x38] sm:$0xff]  ;;  %v92_v2 = vld [vmem:[%s1366_s0 + $0x70] sm:$0xff] }
   0x2   :  { %v64_v3 = vmax.f32 %v8_v0, %v36_v1  ;;  %v148_v4 = vld [vmem:[%s1366_s0 + $0xa8] sm:$0xff]  ;;  %v37_v7 = vld [vmem:[%s1366_s0 + $0x40] sm:$0xff]  ;;  %v93_v8 = vld [vmem:[%s1366_s0 + $0x78] sm:$0xff] }
   0x3   :  { %v9_v6 = vld [vmem:[%s1366_s0 + $0x8] sm:$0xff]  ;;  %v204_v9 = vld [vmem:[%s1366_s0 + $0xe0] sm:$0xff]  ;;  %v260_v12 = vld [vmem:[%s1366_s0 + $0x118] sm:$0xff] }
   0x4   :  { %v120_v5 = vmax.f32 %v64_v3, %v92_v2  ;;  %v65_v10 = vmax.f32 %v9_v6, %v37_v7  ;;  %v149_v13 = vld [vmem:[%s1366_s0 + $0xb0] sm:$0xff]  ;;  %v38_v16 = vld [vmem:[%s1366_s0 + $0x48] sm:$0xff]  ;;  %v94_v17 = vld [vmem:[%s1366_s0 + $0x80] sm:$0xff] }
   0x5   :  { %v10_v15 = vld [vmem:[%s1366_s0 + $0x10] sm:$0xff]  ;;  %v205_v19 = vld [vmem:[%s1366_s0 + $0xe8] sm:$0xff]  ;;  %v261_v23 = vld [vmem:[%s1366_s0 + $0x120] sm:$0xff] }
   0x6   :  { %v176_v11 = vmax.f32 %v120_v5, %v148_v4  ;;  %v121_v14 = vmax.f32 %v65_v10, %v93_v8  ;;  %v66_v20 = vmax.f32 %v10_v15, %v38_v16  ;;  %v316_v21 = vld [vmem:[%s1366_s0 + $0x150] sm:$0xff]  ;;  %v150_v24 = vld [vmem:[%s1366_s0 + $0xb8] sm:$0xff]  ;;  %v95_v29 = vld [vmem:[%s1366_s0 + $0x88] sm:$0xff] }
   0x7   :  { %v11_v27 = vld [vmem:[%s1366_s0 + $0x18] sm:$0xff]  ;;  %v39_v28 = vld [vmem:[%s1366_s0 + $0x50] sm:$0xff]  ;;  %v372_v30 = vld [vmem:[%s1366_s0 + $0x188] sm:$0xff] }
   0x8   :  { %v232_v18 = vmax.f32 %v176_v11, %v204_v9  ;;  %v177_v22 = vmax.f32 %v121_v14, %v149_v13  ;;  %v122_v26 = vmax.f32 %v66_v20, %v94_v17  ;;  %v428_v31 = vld [vmem:[%s1366_s0 + $0x1c0] sm:$0xff]  ;;  %v206_v33 = vld [vmem:[%s1366_s0 + $0xf0] sm:$0xff]  ;;  %v67_v34 = vmax.f32 %v11_v27, %v39_v28  ;;  %v317_v36 = vld [vmem:[%s1366_s0 + $0x158] sm:$0xff] }
   0x9   :  { %v262_v38 = vld [vmem:[%s1366_s0 + $0x128] sm:$0xff]  ;;  %v151_v39 = vld [vmem:[%s1366_s0 + $0xc0] sm:$0xff]  ;;  %v40_v43 = vld [vmem:[%s1366_s0 + $0x58] sm:$0xff] }
   0xa   :  { %v288_v25 = vmax.f32 %v232_v18, %v260_v12  ;;  %v233_v32 = vmax.f32 %v177_v22, %v205_v19  ;;  %v178_v37 = vmax.f32 %v122_v26, %v150_v24  ;;  %v123_v41 = vmax.f32 %v67_v34, %v95_v29  ;;  %v12_v42 = vld [vmem:[%s1366_s0 + $0x20] sm:$0xff]  ;;  %v96_v44 = vld [vmem:[%s1366_s0 + $0x90] sm:$0xff]  ;;  %v429_v47 = vld [vmem:[%s1366_s0 + $0x1c8] sm:$0xff] }
   0xb   :  { %v373_v46 = vld [vmem:[%s1366_s0 + $0x190] sm:$0xff]  ;;  %v207_v49 = vld [vmem:[%s1366_s0 + $0xf8] sm:$0xff]  ;;  %v68_v50 = vmax.f32 %v12_v42, %v40_v43  ;;  %v318_v52 = vld [vmem:[%s1366_s0 + $0x160] sm:$0xff] }
   0xc   :  { %v344_v35 = vmax.f32 %v288_v25, %v316_v21  ;;  %v289_v40 = vmax.f32 %v233_v32, %v261_v23  ;;  %v234_v48 = vmax.f32 %v178_v37, %v206_v33  ;;  %v179_v53 = vmax.f32 %v123_v41, %v151_v39  ;;  %v263_v54 = vld [vmem:[%s1366_s0 + $0x130] sm:$0xff]  ;;  %v152_v55 = vld [vmem:[%s1366_s0 + $0xc8] sm:$0xff]  ;;  %v41_v60 = vld [vmem:[%s1366_s0 + $0x60] sm:$0xff] }
   0xd   :  { %v124_v58 = vmax.f32 %v68_v50, %v96_v44  ;;  %v13_v59 = vld [vmem:[%s1366_s0 + $0x28] sm:$0xff]  ;;  %v97_v61 = vld [vmem:[%s1366_s0 + $0x98] sm:$0xff]  ;;  %v430_v0 = vld [vmem:[%s1366_s0 + $0x1d0] sm:$0xff] }
   0xe   :  { %v400_v45 = vmax.f32 %v344_v35, %v372_v30  ;;  %v345_v51 = vmax.f32 %v289_v40, %v317_v36  ;;  %v290_v57 = vmax.f32 %v234_v48, %v262_v38  ;;  %v374_v63 = vld [vmem:[%s1366_s0 + $0x198] sm:$0xff]  ;;  %v235_v1 = vmax.f32 %v179_v53, %v207_v49  ;;  %v208_v2 = vld [vmem:[%s1366_s0 + $0x100] sm:$0xff]  ;;  %v319_v5 = vld [vmem:[%s1366_s0 + $0x168] sm:$0xff] }
   0xf   :  { %v69_v3 = vmax.f32 %v13_v59, %v41_v60  ;;  %v180_v6 = vmax.f32 %v124_v58, %v152_v55  ;;  %v264_v7 = vld [vmem:[%s1366_s0 + $0x138] sm:$0xff]  ;;  %v153_v8 = vld [vmem:[%s1366_s0 + $0xd0] sm:$0xff]  ;;  %v42_v13 = vld [vmem:[%s1366_s0 + $0x68] sm:$0xff] }
  0x10   :  { %v456_v56 = vmax.f32 %v400_v45, %v428_v31  ;;  %v401_v62 = vmax.f32 %v345_v51, %v373_v46  ;;  %v346_v4 = vmax.f32 %v290_v57, %v318_v52  ;;  %v291_v10 = vmax.f32 %v235_v1, %v263_v54  ;;  %v14_v12 = vld [vmem:[%s1366_s0 + $0x30] sm:$0xff]  ;;  %v98_v14 = vld [vmem:[%s1366_s0 + $0xa0] sm:$0xff]  ;;  %v431_v17 = vld [vmem:[%s1366_s0 + $0x1d8] sm:$0xff] }
  0x11   :  { %v125_v11 = vmax.f32 %v69_v3, %v97_v61  ;;  %v375_v16 = vld [vmem:[%s1366_s0 + $0x1a0] sm:$0xff]  ;;  %v236_v18 = vmax.f32 %v180_v6, %v208_v2  ;;  %v209_v19 = vld [vmem:[%s1366_s0 + $0x108] sm:$0xff]  ;;  %v70_v20 = vmax.f32 %v14_v12, %v42_v13  ;;  %v320_v22 = vld [vmem:[%s1366_s0 + $0x170] sm:$0xff] }
  0x12   :  { %484 = vst [vmem:[%s1367_s1] sm:$0xff] %v456_v56  ;;  %v457_v9 = vmax.f32 %v401_v62, %v429_v47  ;;  %v402_v15 = vmax.f32 %v346_v4, %v374_v63  ;;  %v347_v21 = vmax.f32 %v291_v10, %v319_v5  ;;  %v265_v24 = vld [vmem:[%s1366_s0 + $0x140] sm:$0xff]  ;;  %v154_v25 = vld [vmem:[%s1366_s0 + $0xd8] sm:$0xff]  ;;  %v43_v30 = vld [vmem:[%s1366_s0 + $0x230] sm:$0xff] }
  0x13   :  { %v181_v23 = vmax.f32 %v125_v11, %v153_v8  ;;  %v292_v27 = vmax.f32 %v236_v18, %v264_v7  ;;  %v126_v28 = vmax.f32 %v70_v20, %v98_v14  ;;  %v15_v29 = vld [vmem:[%s1366_s0 + $0x1f8] sm:$0xff]  ;;  %v99_v31 = vld [vmem:[%s1366_s0 + $0x268] sm:$0xff]  ;;  %v432_v34 = vld [vmem:[%s1366_s0 + $0x1e0] sm:$0xff] }
  0x14   :  { %485 = vst [vmem:[%s1367_s1 + $0x8] sm:$0xff] %v457_v9  ;;  %v458_v26 = vmax.f32 %v402_v15, %v430_v0  ;;  %v403_v32 = vmax.f32 %v347_v21, %v375_v16  ;;  %v376_v33 = vld [vmem:[%s1366_s0 + $0x1a8] sm:$0xff]  ;;  %v210_v36 = vld [vmem:[%s1366_s0 + $0x110] sm:$0xff]  ;;  %v71_v37 = vmax.f32 %v15_v29, %v43_v30  ;;  %v321_v39 = vld [vmem:[%s1366_s0 + $0x178] sm:$0xff] }
  0x15   :  { %v237_v35 = vmax.f32 %v181_v23, %v209_v19  ;;  %v348_v38 = vmax.f32 %v292_v27, %v320_v22  ;;  %v182_v40 = vmax.f32 %v126_v28, %v154_v25  ;;  %v266_v41 = vld [vmem:[%s1366_s0 + $0x148] sm:$0xff]  ;;  %v155_v42 = vld [vmem:[%s1366_s0 + $0x2a0] sm:$0xff]  ;;  %v44_v47 = vld [vmem:[%s1366_s0 + $0x238] sm:$0xff] }
  0x16   :  { %486 = vst [vmem:[%s1367_s1 + $0x10] sm:$0xff] %v458_v26  ;;  %v459_v43 = vmax.f32 %v403_v32, %v431_v17  ;;  %v127_v45 = vmax.f32 %v71_v37, %v99_v31  ;;  %v16_v46 = vld [vmem:[%s1366_s0 + $0x200] sm:$0xff]  ;;  %v100_v48 = vld [vmem:[%s1366_s0 + $0x270] sm:$0xff]  ;;  %v433_v51 = vld [vmem:[%s1366_s0 + $0x1e8] sm:$0xff] }
  0x17   :  { %v293_v44 = vmax.f32 %v237_v35, %v265_v24  ;;  %v404_v49 = vmax.f32 %v348_v38, %v376_v33  ;;  %v377_v50 = vld [vmem:[%s1366_s0 + $0x1b0] sm:$0xff]  ;;  %v238_v52 = vmax.f32 %v182_v40, %v210_v36  ;;  %v211_v53 = vld [vmem:[%s1366_s0 + $0x2d8] sm:$0xff]  ;;  %v72_v54 = vmax.f32 %v16_v46, %v44_v47  ;;  %v322_v56 = vld [vmem:[%s1366_s0 + $0x180] sm:$0xff] }
  0x18   :  { %487 = vst [vmem:[%s1367_s1 + $0x18] sm:$0xff] %v459_v43  ;;  %v183_v57 = vmax.f32 %v127_v45, %v155_v42  ;;  %v267_v58 = vld [vmem:[%s1366_s0 + $0x310] sm:$0xff]  ;;  %v156_v59 = vld [vmem:[%s1366_s0 + $0x2a8] sm:$0xff]  ;;  %v45_v0 = vld [vmem:[%s1366_s0 + $0x240] sm:$0xff] }
  0x19   :  { %v349_v55 = vmax.f32 %v293_v44, %v321_v39  ;;  %v460_v60 = vmax.f32 %v404_v49, %v432_v34  ;;  %v294_v61 = vmax.f32 %v238_v52, %v266_v41  ;;  %v128_v62 = vmax.f32 %v72_v54, %v100_v48  ;;  %v17_v63 = vld [vmem:[%s1366_s0 + $0x208] sm:$0xff]  ;;  %v101_v1 = vld [vmem:[%s1366_s0 + $0x278] sm:$0xff]  ;;  %v434_v4 = vld [vmem:[%s1366_s0 + $0x1f0] sm:$0xff] }
  0x1a   :  { %v378_v3 = vld [vmem:[%s1366_s0 + $0x1b8] sm:$0xff]  ;;  %v239_v5 = vmax.f32 %v183_v57, %v211_v53  ;;  %v212_v6 = vld [vmem:[%s1366_s0 + $0x2e0] sm:$0xff]  ;;  %v73_v7 = vmax.f32 %v17_v63, %v45_v0  ;;  %v323_v9 = vld [vmem:[%s1366_s0 + $0x348] sm:$0xff] }
  0x1b   :  { %v405_v2 = vmax.f32 %v349_v55, %v377_v50  ;;  %488 = vst [vmem:[%s1367_s1 + $0x20] sm:$0xff] %v460_v60  ;;  %v350_v8 = vmax.f32 %v294_v61, %v322_v56  ;;  %v184_v10 = vmax.f32 %v128_v62, %v156_v59  ;;  %v268_v11 = vld [vmem:[%s1366_s0 + $0x318] sm:$0xff]  ;;  %v157_v12 = vld [vmem:[%s1366_s0 + $0x2b0] sm:$0xff]  ;;  %v46_v17 = vld [vmem:[%s1366_s0 + $0x248] sm:$0xff] }
  0x1c   :  { %v295_v14 = vmax.f32 %v239_v5, %v267_v58  ;;  %v129_v15 = vmax.f32 %v73_v7, %v101_v1  ;;  %v18_v16 = vld [vmem:[%s1366_s0 + $0x210] sm:$0xff]  ;;  %v102_v18 = vld [vmem:[%s1366_s0 + $0x280] sm:$0xff]  ;;  %v435_v21 = vld [vmem:[%s1366_s0 + $0x3b8] sm:$0xff] }
  0x1d   :  { %v461_v13 = vmax.f32 %v405_v2, %v433_v51  ;;  %v406_v19 = vmax.f32 %v350_v8, %v378_v3  ;;  %v379_v20 = vld [vmem:[%s1366_s0 + $0x380] sm:$0xff]  ;;  %v240_v22 = vmax.f32 %v184_v10, %v212_v6  ;;  %v213_v23 = vld [vmem:[%s1366_s0 + $0x2e8] sm:$0xff]  ;;  %v74_v24 = vmax.f32 %v18_v16, %v46_v17  ;;  %v324_v26 = vld [vmem:[%s1366_s0 + $0x350] sm:$0xff] }
  0x1e   :  { %v351_v25 = vmax.f32 %v295_v14, %v323_v9  ;;  %v185_v27 = vmax.f32 %v129_v15, %v157_v12  ;;  %v269_v28 = vld [vmem:[%s1366_s0 + $0x320] sm:$0xff]  ;;  %v158_v29 = vld [vmem:[%s1366_s0 + $0x2b8] sm:$0xff]  ;;  %v47_v34 = vld [vmem:[%s1366_s0 + $0x250] sm:$0xff] }
  0x1f   :  { %489 = vst [vmem:[%s1367_s1 + $0x28] sm:$0xff] %v461_v13  ;;  %v462_v30 = vmax.f32 %v406_v19, %v434_v4  ;;  %v296_v31 = vmax.f32 %v240_v22, %v268_v11  ;;  %v130_v32 = vmax.f32 %v74_v24, %v102_v18  ;;  %v19_v33 = vld [vmem:[%s1366_s0 + $0x218] sm:$0xff]  ;;  %v103_v35 = vld [vmem:[%s1366_s0 + $0x288] sm:$0xff]  ;;  %v436_v38 = vld [vmem:[%s1366_s0 + $0x3c0] sm:$0xff] }
  0x20   :  { %v407_v36 = vmax.f32 %v351_v25, %v379_v20  ;;  %v380_v37 = vld [vmem:[%s1366_s0 + $0x388] sm:$0xff]  ;;  %v241_v39 = vmax.f32 %v185_v27, %v213_v23  ;;  %v214_v40 = vld [vmem:[%s1366_s0 + $0x2f0] sm:$0xff]  ;;  %v75_v41 = vmax.f32 %v19_v33, %v47_v34  ;;  %v325_v43 = vld [vmem:[%s1366_s0 + $0x358] sm:$0xff] }
  0x21   :  { %490 = vst [vmem:[%s1367_s1 + $0x30] sm:$0xff] %v462_v30  ;;  %v352_v42 = vmax.f32 %v296_v31, %v324_v26  ;;  %v186_v44 = vmax.f32 %v130_v32, %v158_v29  ;;  %v270_v45 = vld [vmem:[%s1366_s0 + $0x328] sm:$0xff]  ;;  %v159_v46 = vld [vmem:[%s1366_s0 + $0x2c0] sm:$0xff]  ;;  %v48_v51 = vld [vmem:[%s1366_s0 + $0x258] sm:$0xff] }
  0x22   :  { %v463_v47 = vmax.f32 %v407_v36, %v435_v21  ;;  %v297_v48 = vmax.f32 %v241_v39, %v269_v28  ;;  %v131_v49 = vmax.f32 %v75_v41, %v103_v35  ;;  %v20_v50 = vld [vmem:[%s1366_s0 + $0x220] sm:$0xff]  ;;  %v104_v52 = vld [vmem:[%s1366_s0 + $0x290] sm:$0xff]  ;;  %v437_v55 = vld [vmem:[%s1366_s0 + $0x3c8] sm:$0xff] }
  0x23   :  { %v408_v53 = vmax.f32 %v352_v42, %v380_v37  ;;  %v381_v54 = vld [vmem:[%s1366_s0 + $0x390] sm:$0xff]  ;;  %v242_v56 = vmax.f32 %v186_v44, %v214_v40  ;;  %v215_v57 = vld [vmem:[%s1366_s0 + $0x2f8] sm:$0xff]  ;;  %v76_v58 = vmax.f32 %v20_v50, %v48_v51  ;;  %v326_v60 = vld [vmem:[%s1366_s0 + $0x360] sm:$0xff] }
  0x24   :  { %491 = vst [vmem:[%s1367_s1 + $0x38] sm:$0xff] %v463_v47  ;;  %v353_v59 = vmax.f32 %v297_v48, %v325_v43  ;;  %v187_v61 = vmax.f32 %v131_v49, %v159_v46  ;;  %v271_v62 = vld [vmem:[%s1366_s0 + $0x330] sm:$0xff]  ;;  %v160_v63 = vld [vmem:[%s1366_s0 + $0x2c8] sm:$0xff]  ;;  %v49_v4 = vld [vmem:[%s1366_s0 + $0x260] sm:$0xff] }
  0x25   :  { %v464_v0 = vmax.f32 %v408_v53, %v436_v38  ;;  %v298_v1 = vmax.f32 %v242_v56, %v270_v45  ;;  %v132_v2 = vmax.f32 %v76_v58, %v104_v52  ;;  %v21_v3 = vld [vmem:[%s1366_s0 + $0x228] sm:$0xff]  ;;  %v105_v5 = vld [vmem:[%s1366_s0 + $0x298] sm:$0xff]  ;;  %v438_v8 = vld [vmem:[%s1366_s0 + $0x3d0] sm:$0xff] }
  0x26   :  { %v409_v6 = vmax.f32 %v353_v59, %v381_v54  ;;  %v382_v7 = vld [vmem:[%s1366_s0 + $0x398] sm:$0xff]  ;;  %v243_v9 = vmax.f32 %v187_v61, %v215_v57  ;;  %v216_v10 = vld [vmem:[%s1366_s0 + $0x300] sm:$0xff]  ;;  %v77_v11 = vmax.f32 %v21_v3, %v49_v4  ;;  %v327_v13 = vld [vmem:[%s1366_s0 + $0x368] sm:$0xff] }
  0x27   :  { %492 = vst [vmem:[%s1367_s1 + $0x40] sm:$0xff] %v464_v0  ;;  %v354_v12 = vmax.f32 %v298_v1, %v326_v60  ;;  %v188_v14 = vmax.f32 %v132_v2, %v160_v63  ;;  %v272_v15 = vld [vmem:[%s1366_s0 + $0x338] sm:$0xff]  ;;  %v161_v16 = vld [vmem:[%s1366_s0 + $0x2d0] sm:$0xff]  ;;  %v50_v21 = vld [vmem:[%s1366_s0 + $0x428] sm:$0xff] }
  0x28   :  { %v465_v17 = vmax.f32 %v409_v6, %v437_v55  ;;  %v299_v18 = vmax.f32 %v243_v9, %v271_v62  ;;  %v133_v19 = vmax.f32 %v77_v11, %v105_v5  ;;  %v22_v20 = vld [vmem:[%s1366_s0 + $0x3f0] sm:$0xff]  ;;  %v106_v22 = vld [vmem:[%s1366_s0 + $0x460] sm:$0xff]  ;;  %v439_v25 = vld [vmem:[%s1366_s0 + $0x3d8] sm:$0xff] }
  0x29   :  { %v410_v23 = vmax.f32 %v354_v12, %v382_v7  ;;  %v383_v24 = vld [vmem:[%s1366_s0 + $0x3a0] sm:$0xff]  ;;  %v244_v26 = vmax.f32 %v188_v14, %v216_v10  ;;  %v217_v27 = vld [vmem:[%s1366_s0 + $0x308] sm:$0xff]  ;;  %v78_v28 = vmax.f32 %v22_v20, %v50_v21  ;;  %v328_v30 = vld [vmem:[%s1366_s0 + $0x370] sm:$0xff] }
  0x2a   :  { %493 = vst [vmem:[%s1367_s1 + $0x48] sm:$0xff] %v465_v17  ;;  %v355_v29 = vmax.f32 %v299_v18, %v327_v13  ;;  %v189_v31 = vmax.f32 %v133_v19, %v161_v16  ;;  %v273_v32 = vld [vmem:[%s1366_s0 + $0x340] sm:$0xff]  ;;  %v162_v33 = vld [vmem:[%s1366_s0 + $0x498] sm:$0xff]  ;;  %v51_v38 = vld [vmem:[%s1366_s0 + $0x430] sm:$0xff] }
  0x2b   :  { %v466_v34 = vmax.f32 %v410_v23, %v438_v8  ;;  %v300_v35 = vmax.f32 %v244_v26, %v272_v15  ;;  %v134_v36 = vmax.f32 %v78_v28, %v106_v22  ;;  %v23_v37 = vld [vmem:[%s1366_s0 + $0x3f8] sm:$0xff]  ;;  %v107_v39 = vld [vmem:[%s1366_s0 + $0x468] sm:$0xff]  ;;  %v440_v42 = vld [vmem:[%s1366_s0 + $0x3e0] sm:$0xff] }
  0x2c   :  { %v411_v40 = vmax.f32 %v355_v29, %v383_v24  ;;  %v384_v41 = vld [vmem:[%s1366_s0 + $0x3a8] sm:$0xff]  ;;  %v245_v43 = vmax.f32 %v189_v31, %v217_v27  ;;  %v218_v44 = vld [vmem:[%s1366_s0 + $0x4d0] sm:$0xff]  ;;  %v79_v45 = vmax.f32 %v23_v37, %v51_v38  ;;  %v329_v47 = vld [vmem:[%s1366_s0 + $0x378] sm:$0xff] }
  0x2d   :  { %494 = vst [vmem:[%s1367_s1 + $0x50] sm:$0xff] %v466_v34  ;;  %v356_v46 = vmax.f32 %v300_v35, %v328_v30  ;;  %v190_v48 = vmax.f32 %v134_v36, %v162_v33  ;;  %v274_v49 = vld [vmem:[%s1366_s0 + $0x508] sm:$0xff]  ;;  %v163_v50 = vld [vmem:[%s1366_s0 + $0x4a0] sm:$0xff]  ;;  %v52_v55 = vld [vmem:[%s1366_s0 + $0x438] sm:$0xff] }
  0x2e   :  { %v467_v51 = vmax.f32 %v411_v40, %v439_v25  ;;  %v301_v52 = vmax.f32 %v245_v43, %v273_v32  ;;  %v135_v53 = vmax.f32 %v79_v45, %v107_v39  ;;  %v24_v54 = vld [vmem:[%s1366_s0 + $0x400] sm:$0xff]  ;;  %v108_v56 = vld [vmem:[%s1366_s0 + $0x470] sm:$0xff]  ;;  %v441_v59 = vld [vmem:[%s1366_s0 + $0x3e8] sm:$0xff] }
  0x2f   :  { %v412_v57 = vmax.f32 %v356_v46, %v384_v41  ;;  %v385_v58 = vld [vmem:[%s1366_s0 + $0x3b0] sm:$0xff]  ;;  %v246_v60 = vmax.f32 %v190_v48, %v218_v44  ;;  %v219_v61 = vld [vmem:[%s1366_s0 + $0x4d8] sm:$0xff]  ;;  %v80_v62 = vmax.f32 %v24_v54, %v52_v55  ;;  %v330_v0 = vld [vmem:[%s1366_s0 + $0x540] sm:$0xff] }
  0x30   :  { %495 = vst [vmem:[%s1367_s1 + $0x58] sm:$0xff] %v467_v51  ;;  %v357_v63 = vmax.f32 %v301_v52, %v329_v47  ;;  %v191_v1 = vmax.f32 %v135_v53, %v163_v50  ;;  %v275_v2 = vld [vmem:[%s1366_s0 + $0x510] sm:$0xff]  ;;  %v164_v3 = vld [vmem:[%s1366_s0 + $0x4a8] sm:$0xff]  ;;  %v53_v8 = vld [vmem:[%s1366_s0 + $0x440] sm:$0xff] }
  0x31   :  { %v468_v4 = vmax.f32 %v412_v57, %v440_v42  ;;  %v302_v5 = vmax.f32 %v246_v60, %v274_v49  ;;  %v136_v6 = vmax.f32 %v80_v62, %v108_v56  ;;  %v25_v7 = vld [vmem:[%s1366_s0 + $0x408] sm:$0xff]  ;;  %v109_v9 = vld [vmem:[%s1366_s0 + $0x478] sm:$0xff]  ;;  %v442_v12 = vld [vmem:[%s1366_s0 + $0x5b0] sm:$0xff] }
  0x32   :  { %v413_v10 = vmax.f32 %v357_v63, %v385_v58  ;;  %v386_v11 = vld [vmem:[%s1366_s0 + $0x578] sm:$0xff]  ;;  %v247_v13 = vmax.f32 %v191_v1, %v219_v61  ;;  %v220_v14 = vld [vmem:[%s1366_s0 + $0x4e0] sm:$0xff]  ;;  %v81_v15 = vmax.f32 %v25_v7, %v53_v8  ;;  %v331_v17 = vld [vmem:[%s1366_s0 + $0x548] sm:$0xff] }
  0x33   :  { %496 = vst [vmem:[%s1367_s1 + $0x60] sm:$0xff] %v468_v4  ;;  %v358_v16 = vmax.f32 %v302_v5, %v330_v0  ;;  %v192_v18 = vmax.f32 %v136_v6, %v164_v3  ;;  %v276_v19 = vld [vmem:[%s1366_s0 + $0x518] sm:$0xff]  ;;  %v165_v20 = vld [vmem:[%s1366_s0 + $0x4b0] sm:$0xff]  ;;  %v54_v25 = vld [vmem:[%s1366_s0 + $0x448] sm:$0xff] }
  0x34   :  { %v469_v21 = vmax.f32 %v413_v10, %v441_v59  ;;  %v303_v22 = vmax.f32 %v247_v13, %v275_v2  ;;  %v137_v23 = vmax.f32 %v81_v15, %v109_v9  ;;  %v26_v24 = vld [vmem:[%s1366_s0 + $0x410] sm:$0xff]  ;;  %v110_v26 = vld [vmem:[%s1366_s0 + $0x480] sm:$0xff]  ;;  %v443_v29 = vld [vmem:[%s1366_s0 + $0x5b8] sm:$0xff] }
  0x35   :  { %v414_v27 = vmax.f32 %v358_v16, %v386_v11  ;;  %v387_v28 = vld [vmem:[%s1366_s0 + $0x580] sm:$0xff]  ;;  %v248_v30 = vmax.f32 %v192_v18, %v220_v14  ;;  %v221_v31 = vld [vmem:[%s1366_s0 + $0x4e8] sm:$0xff]  ;;  %v82_v32 = vmax.f32 %v26_v24, %v54_v25  ;;  %v332_v34 = vld [vmem:[%s1366_s0 + $0x550] sm:$0xff] }
  0x36   :  { %497 = vst [vmem:[%s1367_s1 + $0x68] sm:$0xff] %v469_v21  ;;  %v359_v33 = vmax.f32 %v303_v22, %v331_v17  ;;  %v193_v35 = vmax.f32 %v137_v23, %v165_v20  ;;  %v277_v36 = vld [vmem:[%s1366_s0 + $0x520] sm:$0xff]  ;;  %v166_v37 = vld [vmem:[%s1366_s0 + $0x4b8] sm:$0xff]  ;;  %v55_v42 = vld [vmem:[%s1366_s0 + $0x450] sm:$0xff] }
  0x37   :  { %v470_v38 = vmax.f32 %v414_v27, %v442_v12  ;;  %v304_v39 = vmax.f32 %v248_v30, %v276_v19  ;;  %v138_v40 = vmax.f32 %v82_v32, %v110_v26  ;;  %v27_v41 = vld [vmem:[%s1366_s0 + $0x418] sm:$0xff]  ;;  %v111_v43 = vld [vmem:[%s1366_s0 + $0x488] sm:$0xff]  ;;  %v444_v46 = vld [vmem:[%s1366_s0 + $0x5c0] sm:$0xff] }
  0x38   :  { %v415_v44 = vmax.f32 %v359_v33, %v387_v28  ;;  %v388_v45 = vld [vmem:[%s1366_s0 + $0x588] sm:$0xff]  ;;  %v249_v47 = vmax.f32 %v193_v35, %v221_v31  ;;  %v222_v48 = vld [vmem:[%s1366_s0 + $0x4f0] sm:$0xff]  ;;  %v83_v49 = vmax.f32 %v27_v41, %v55_v42  ;;  %v333_v51 = vld [vmem:[%s1366_s0 + $0x558] sm:$0xff] }
  0x39   :  { %498 = vst [vmem:[%s1367_s1 + $0x70] sm:$0xff] %v470_v38  ;;  %v360_v50 = vmax.f32 %v304_v39, %v332_v34  ;;  %v194_v52 = vmax.f32 %v138_v40, %v166_v37  ;;  %v278_v53 = vld [vmem:[%s1366_s0 + $0x528] sm:$0xff]  ;;  %v167_v54 = vld [vmem:[%s1366_s0 + $0x4c0] sm:$0xff]  ;;  %v56_v59 = vld [vmem:[%s1366_s0 + $0x458] sm:$0xff] }
  0x3a   :  { %v471_v55 = vmax.f32 %v415_v44, %v443_v29  ;;  %v305_v56 = vmax.f32 %v249_v47, %v277_v36  ;;  %v139_v57 = vmax.f32 %v83_v49, %v111_v43  ;;  %v28_v58 = vld [vmem:[%s1366_s0 + $0x420] sm:$0xff]  ;;  %v112_v60 = vld [vmem:[%s1366_s0 + $0x490] sm:$0xff]  ;;  %v445_v63 = vld [vmem:[%s1366_s0 + $0x5c8] sm:$0xff] }
  0x3b   :  { %v416_v61 = vmax.f32 %v360_v50, %v388_v45  ;;  %v389_v62 = vld [vmem:[%s1366_s0 + $0x590] sm:$0xff]  ;;  %v250_v0 = vmax.f32 %v194_v52, %v222_v48  ;;  %v223_v1 = vld [vmem:[%s1366_s0 + $0x4f8] sm:$0xff]  ;;  %v84_v2 = vmax.f32 %v28_v58, %v56_v59  ;;  %v334_v4 = vld [vmem:[%s1366_s0 + $0x560] sm:$0xff] }
  0x3c   :  { %499 = vst [vmem:[%s1367_s1 + $0x78] sm:$0xff] %v471_v55  ;;  %v361_v3 = vmax.f32 %v305_v56, %v333_v51  ;;  %v195_v5 = vmax.f32 %v139_v57, %v167_v54  ;;  %v279_v6 = vld [vmem:[%s1366_s0 + $0x530] sm:$0xff]  ;;  %v168_v7 = vld [vmem:[%s1366_s0 + $0x4c8] sm:$0xff]  ;;  %v57_v12 = vld [vmem:[%s1366_s0 + $0x620] sm:$0xff] }
  0x3d   :  { %v472_v8 = vmax.f32 %v416_v61, %v444_v46  ;;  %v306_v9 = vmax.f32 %v250_v0, %v278_v53  ;;  %v140_v10 = vmax.f32 %v84_v2, %v112_v60  ;;  %v29_v11 = vld [vmem:[%s1366_s0 + $0x5e8] sm:$0xff]  ;;  %v113_v13 = vld [vmem:[%s1366_s0 + $0x658] sm:$0xff]  ;;  %v446_v16 = vld [vmem:[%s1366_s0 + $0x5d0] sm:$0xff] }
  0x3e   :  { %v417_v14 = vmax.f32 %v361_v3, %v389_v62  ;;  %v390_v15 = vld [vmem:[%s1366_s0 + $0x598] sm:$0xff]  ;;  %v251_v17 = vmax.f32 %v195_v5, %v223_v1  ;;  %v224_v18 = vld [vmem:[%s1366_s0 + $0x500] sm:$0xff]  ;;  %v85_v19 = vmax.f32 %v29_v11, %v57_v12  ;;  %v335_v21 = vld [vmem:[%s1366_s0 + $0x568] sm:$0xff] }
  0x3f   :  { %500 = vst [vmem:[%s1367_s1 + $0x80] sm:$0xff] %v472_v8  ;;  %v362_v20 = vmax.f32 %v306_v9, %v334_v4  ;;  %v196_v22 = vmax.f32 %v140_v10, %v168_v7  ;;  %v280_v23 = vld [vmem:[%s1366_s0 + $0x538] sm:$0xff]  ;;  %v169_v24 = vld [vmem:[%s1366_s0 + $0x690] sm:$0xff]  ;;  %v58_v29 = vld [vmem:[%s1366_s0 + $0x628] sm:$0xff] }
  0x40   :  { %v473_v25 = vmax.f32 %v417_v14, %v445_v63  ;;  %v307_v26 = vmax.f32 %v251_v17, %v279_v6  ;;  %v141_v27 = vmax.f32 %v85_v19, %v113_v13  ;;  %v30_v28 = vld [vmem:[%s1366_s0 + $0x5f0] sm:$0xff]  ;;  %v114_v30 = vld [vmem:[%s1366_s0 + $0x660] sm:$0xff]  ;;  %v447_v33 = vld [vmem:[%s1366_s0 + $0x5d8] sm:$0xff] }
  0x41   :  { %v418_v31 = vmax.f32 %v362_v20, %v390_v15  ;;  %v391_v32 = vld [vmem:[%s1366_s0 + $0x5a0] sm:$0xff]  ;;  %v252_v34 = vmax.f32 %v196_v22, %v224_v18  ;;  %v225_v35 = vld [vmem:[%s1366_s0 + $0x6c8] sm:$0xff]  ;;  %v86_v36 = vmax.f32 %v30_v28, %v58_v29  ;;  %v336_v38 = vld [vmem:[%s1366_s0 + $0x570] sm:$0xff] }
  0x42   :  { %501 = vst [vmem:[%s1367_s1 + $0x88] sm:$0xff] %v473_v25  ;;  %v363_v37 = vmax.f32 %v307_v26, %v335_v21  ;;  %v197_v39 = vmax.f32 %v141_v27, %v169_v24  ;;  %v281_v40 = vld [vmem:[%s1366_s0 + $0x700] sm:$0xff]  ;;  %v170_v41 = vld [vmem:[%s1366_s0 + $0x698] sm:$0xff]  ;;  %v59_v46 = vld [vmem:[%s1366_s0 + $0x630] sm:$0xff] }
  0x43   :  { %v474_v42 = vmax.f32 %v418_v31, %v446_v16  ;;  %v308_v43 = vmax.f32 %v252_v34, %v280_v23  ;;  %v142_v44 = vmax.f32 %v86_v36, %v114_v30  ;;  %v31_v45 = vld [vmem:[%s1366_s0 + $0x5f8] sm:$0xff]  ;;  %v115_v47 = vld [vmem:[%s1366_s0 + $0x668] sm:$0xff]  ;;  %v448_v50 = vld [vmem:[%s1366_s0 + $0x5e0] sm:$0xff] }
  0x44   :  { %v419_v48 = vmax.f32 %v363_v37, %v391_v32  ;;  %v392_v49 = vld [vmem:[%s1366_s0 + $0x5a8] sm:$0xff]  ;;  %v253_v51 = vmax.f32 %v197_v39, %v225_v35  ;;  %v226_v52 = vld [vmem:[%s1366_s0 + $0x6d0] sm:$0xff]  ;;  %v87_v53 = vmax.f32 %v31_v45, %v59_v46  ;;  %v337_v55 = vld [vmem:[%s1366_s0 + $0x738] sm:$0xff] }
  0x45   :  { %502 = vst [vmem:[%s1367_s1 + $0x90] sm:$0xff] %v474_v42  ;;  %v364_v54 = vmax.f32 %v308_v43, %v336_v38  ;;  %v198_v56 = vmax.f32 %v142_v44, %v170_v41  ;;  %v282_v57 = vld [vmem:[%s1366_s0 + $0x708] sm:$0xff]  ;;  %v171_v58 = vld [vmem:[%s1366_s0 + $0x6a0] sm:$0xff]  ;;  %v60_v63 = vld [vmem:[%s1366_s0 + $0x638] sm:$0xff] }
  0x46   :  { %v475_v59 = vmax.f32 %v419_v48, %v447_v33  ;;  %v309_v60 = vmax.f32 %v253_v51, %v281_v40  ;;  %v143_v61 = vmax.f32 %v87_v53, %v115_v47  ;;  %v32_v62 = vld [vmem:[%s1366_s0 + $0x600] sm:$0xff]  ;;  %v116_v0 = vld [vmem:[%s1366_s0 + $0x670] sm:$0xff]  ;;  %v449_v3 = vld [vmem:[%s1366_s0 + $0x7a8] sm:$0xff] }
  0x47   :  { %v420_v1 = vmax.f32 %v364_v54, %v392_v49  ;;  %v393_v2 = vld [vmem:[%s1366_s0 + $0x770] sm:$0xff]  ;;  %v254_v4 = vmax.f32 %v198_v56, %v226_v52  ;;  %v227_v5 = vld [vmem:[%s1366_s0 + $0x6d8] sm:$0xff]  ;;  %v88_v6 = vmax.f32 %v32_v62, %v60_v63  ;;  %v338_v8 = vld [vmem:[%s1366_s0 + $0x740] sm:$0xff] }
  0x48   :  { %503 = vst [vmem:[%s1367_s1 + $0x98] sm:$0xff] %v475_v59  ;;  %v365_v7 = vmax.f32 %v309_v60, %v337_v55  ;;  %v199_v9 = vmax.f32 %v143_v61, %v171_v58  ;;  %v283_v10 = vld [vmem:[%s1366_s0 + $0x710] sm:$0xff]  ;;  %v172_v11 = vld [vmem:[%s1366_s0 + $0x6a8] sm:$0xff]  ;;  %v61_v16 = vld [vmem:[%s1366_s0 + $0x640] sm:$0xff] }
  0x49   :  { %v476_v12 = vmax.f32 %v420_v1, %v448_v50  ;;  %v310_v13 = vmax.f32 %v254_v4, %v282_v57  ;;  %v144_v14 = vmax.f32 %v88_v6, %v116_v0  ;;  %v33_v15 = vld [vmem:[%s1366_s0 + $0x608] sm:$0xff]  ;;  %v117_v17 = vld [vmem:[%s1366_s0 + $0x678] sm:$0xff]  ;;  %v450_v20 = vld [vmem:[%s1366_s0 + $0x7b0] sm:$0xff] }
  0x4a   :  { %v421_v18 = vmax.f32 %v365_v7, %v393_v2  ;;  %v394_v19 = vld [vmem:[%s1366_s0 + $0x778] sm:$0xff]  ;;  %v255_v21 = vmax.f32 %v199_v9, %v227_v5  ;;  %v228_v22 = vld [vmem:[%s1366_s0 + $0x6e0] sm:$0xff]  ;;  %v89_v23 = vmax.f32 %v33_v15, %v61_v16  ;;  %v339_v25 = vld [vmem:[%s1366_s0 + $0x748] sm:$0xff] }
  0x4b   :  { %504 = vst [vmem:[%s1367_s1 + $0xa0] sm:$0xff] %v476_v12  ;;  %v366_v24 = vmax.f32 %v310_v13, %v338_v8  ;;  %v200_v26 = vmax.f32 %v144_v14, %v172_v11  ;;  %v284_v27 = vld [vmem:[%s1366_s0 + $0x718] sm:$0xff]  ;;  %v173_v28 = vld [vmem:[%s1366_s0 + $0x6b0] sm:$0xff]  ;;  %v62_v33 = vld [vmem:[%s1366_s0 + $0x648] sm:$0xff] }
  0x4c   :  { %v477_v29 = vmax.f32 %v421_v18, %v449_v3  ;;  %v311_v30 = vmax.f32 %v255_v21, %v283_v10  ;;  %v145_v31 = vmax.f32 %v89_v23, %v117_v17  ;;  %v34_v32 = vld [vmem:[%s1366_s0 + $0x610] sm:$0xff]  ;;  %v118_v34 = vld [vmem:[%s1366_s0 + $0x680] sm:$0xff]  ;;  %v451_v37 = vld [vmem:[%s1366_s0 + $0x7b8] sm:$0xff] }
  0x4d   :  { %v422_v35 = vmax.f32 %v366_v24, %v394_v19  ;;  %v395_v36 = vld [vmem:[%s1366_s0 + $0x780] sm:$0xff]  ;;  %v256_v38 = vmax.f32 %v200_v26, %v228_v22  ;;  %v229_v39 = vld [vmem:[%s1366_s0 + $0x6e8] sm:$0xff]  ;;  %v90_v40 = vmax.f32 %v34_v32, %v62_v33  ;;  %v340_v42 = vld [vmem:[%s1366_s0 + $0x750] sm:$0xff] }
  0x4e   :  { %505 = vst [vmem:[%s1367_s1 + $0xa8] sm:$0xff] %v477_v29  ;;  %v367_v41 = vmax.f32 %v311_v30, %v339_v25  ;;  %v201_v43 = vmax.f32 %v145_v31, %v173_v28  ;;  %v285_v44 = vld [vmem:[%s1366_s0 + $0x720] sm:$0xff]  ;;  %v174_v45 = vld [vmem:[%s1366_s0 + $0x6b8] sm:$0xff]  ;;  %v63_v50 = vld [vmem:[%s1366_s0 + $0x650] sm:$0xff] }
  0x4f   :  { %v478_v46 = vmax.f32 %v422_v35, %v450_v20  ;;  %v312_v47 = vmax.f32 %v256_v38, %v284_v27  ;;  %v146_v48 = vmax.f32 %v90_v40, %v118_v34  ;;  %v35_v49 = vld [vmem:[%s1366_s0 + $0x618] sm:$0xff]  ;;  %v119_v51 = vld [vmem:[%s1366_s0 + $0x688] sm:$0xff]  ;;  %v230_v55 = vld [vmem:[%s1366_s0 + $0x6f0] sm:$0xff] }
  0x50   :  { %v423_v52 = vmax.f32 %v367_v41, %v395_v36  ;;  %v396_v53 = vld [vmem:[%s1366_s0 + $0x788] sm:$0xff]  ;;  %v257_v54 = vmax.f32 %v201_v43, %v229_v39  ;;  %v91_v56 = vmax.f32 %v35_v49, %v63_v50  ;;  %v341_v58 = vld [vmem:[%s1366_s0 + $0x758] sm:$0xff]  ;;  %v175_v60 = vld [vmem:[%s1366_s0 + $0x6c0] sm:$0xff] }
  0x51   :  { %506 = vst [vmem:[%s1367_s1 + $0xb0] sm:$0xff] %v478_v46  ;;  %v368_v57 = vmax.f32 %v312_v47, %v340_v42  ;;  %v202_v59 = vmax.f32 %v146_v48, %v174_v45  ;;  %v452_v62 = vld [vmem:[%s1366_s0 + $0x7c0] sm:$0xff]  ;;  %v286_v0 = vld [vmem:[%s1366_s0 + $0x728] sm:$0xff]  ;;  %v397_v3 = vld [vmem:[%s1366_s0 + $0x790] sm:$0xff] }
  0x52   :  { %v479_v61 = vmax.f32 %v423_v52, %v451_v37  ;;  %v313_v63 = vmax.f32 %v257_v54, %v285_v44  ;;  %v147_v1 = vmax.f32 %v91_v56, %v119_v51  ;;  %v231_v5 = vld [vmem:[%s1366_s0 + $0x6f8] sm:$0xff]  ;;  %v342_v7 = vld [vmem:[%s1366_s0 + $0x760] sm:$0xff]  ;;  %v453_v10 = vld [vmem:[%s1366_s0 + $0x7c8] sm:$0xff] }
  0x53   :  { %v424_v2 = vmax.f32 %v368_v57, %v396_v53  ;;  %v258_v4 = vmax.f32 %v202_v59, %v230_v55  ;;  %v287_v12 = vld [vmem:[%s1366_s0 + $0x730] sm:$0xff]  ;;  %v398_v14 = vld [vmem:[%s1366_s0 + $0x798] sm:$0xff]  ;;  %v343_v17 = vld [vmem:[%s1366_s0 + $0x768] sm:$0xff] }
  0x54   :  { %507 = vst [vmem:[%s1367_s1 + $0xb8] sm:$0xff] %v479_v61  ;;  %v369_v6 = vmax.f32 %v313_v63, %v341_v58  ;;  %v203_v8 = vmax.f32 %v147_v1, %v175_v60  ;;  %v454_v19 = vld [vmem:[%s1366_s0 + $0x7d0] sm:$0xff]  ;;  %v399_v22 = vld [vmem:[%s1366_s0 + $0x7a0] sm:$0xff]  ;;  %v455_v25 = vld [vmem:[%s1366_s0 + $0x7d8] sm:$0xff] }
  0x55   :  { %v480_v9 = vmax.f32 %v424_v2, %v452_v62  ;;  %v314_v11 = vmax.f32 %v258_v4, %v286_v0 }
  0x56   :  { %v425_v13 = vmax.f32 %v369_v6, %v397_v3  ;;  %v259_v15 = vmax.f32 %v203_v8, %v231_v5 }
  0x57   :  { %508 = vst [vmem:[%s1367_s1 + $0xc0] sm:$0xff] %v480_v9  ;;  %v370_v16 = vmax.f32 %v314_v11, %v342_v7 }
  0x58   :  { %v481_v18 = vmax.f32 %v425_v13, %v453_v10  ;;  %v315_v20 = vmax.f32 %v259_v15, %v287_v12 }
  0x59   :  { %v426_v21 = vmax.f32 %v370_v16, %v398_v14 }
  0x5a   :  { %509 = vst [vmem:[%s1367_s1 + $0xc8] sm:$0xff] %v481_v18  ;;  %v371_v23 = vmax.f32 %v315_v20, %v343_v17 }
  0x5b   :  { %v482_v24 = vmax.f32 %v426_v21, %v454_v19 }
  0x5c   :  { %v427_v26 = vmax.f32 %v371_v23, %v399_v22 }
  0x5d   :  { %510 = vst [vmem:[%s1367_s1 + $0xd0] sm:$0xff] %v482_v24 }
  0x5e   :  { %v483_v27 = vmax.f32 %v427_v26, %v455_v25 }
  0x60   :  { %511 = vst [vmem:[%s1367_s1 + $0xd8] sm:$0xff] %v483_v27 }

</bundles_post_ra>
